<compile_context>
chip_gen: v7x
topology: tpu7x:2x2x1
jax: 0.10.0
libtpu: 0.0.40
codegen_flags: <defaults>
</compile_context>

<pallas_src>
import functools

import jax
import jax.numpy as jnp
import numpy as np
from jax import lax
from jax.experimental import pallas as pl
from jax.experimental.pallas import tpu as pltpu


# ----------------------------- Pallas kernel --------------------------------
def siren_kernel(x_ref, w0_ref, b0_ref, wh_ref, bh_ref, wf_ref, bf_ref, o_ref,
                 *, hidden_layers, first_omega_0, hidden_omega_0):
    """Fused SIREN MLP; writes the output tile channel-major (out, tile_m)."""
    x = x_ref[...].astype(jnp.float32)            # (tile_m, in_features)
    in_features = x.shape[1]
    w0 = w0_ref[...].astype(jnp.float32)          # (in_features, H)
    b0 = b0_ref[...]                              # (1, H), f32

    # First sine layer. SIREN coords are 2-3 wide: a K=2 matmul wastes the
    # MXU, so do it as VPU broadcast-FMAs.
    if in_features <= 8:
        pre = b0
        for j in range(in_features):
            pre = pre + x[:, j:j + 1] * w0[j:j + 1, :]
    else:
        pre = jnp.dot(x, w0, preferred_element_type=jnp.float32) + b0
    h = jnp.sin(first_omega_0 * pre)              # (tile_m, H), f32

    # Hidden sine layers: bf16 operands into the MXU, f32 accumulation,
    # bias-add + sin in f32.
    w_dtype = wh_ref.dtype

    def sine_layer(hh, w, b):
        p = jnp.dot(hh.astype(w_dtype), w, preferred_element_type=jnp.float32)
        return jnp.sin(hidden_omega_0 * (p + b))

    if hidden_layers <= 4:
        for l in range(hidden_layers):            # shallow: static unroll
            h = sine_layer(h, wh_ref[l], bh_ref[l])
    elif hidden_layers > 0:                       # deep: cap vreg pressure
        h = lax.fori_loop(
            0, hidden_layers,
            lambda l, hh: sine_layer(hh, wh_ref[l], bh_ref[l]),
            h, unroll=2)

    # Final linear layer, computed channel-major: (out, H) x (tile_m, H)^T
    # -> (out, tile_m). Lane dim = tile_m (dense, unmasked stores).
    wf = wf_ref[...].astype(jnp.float32)          # (out_features, H)
    out_cm = lax.dot_general(
        wf, h, dimension_numbers=(((1,), (1,)), ((), ())),
        preferred_element_type=jnp.float32) + bf_ref[...]    # (out, tile_m)
    o_ref[...] = out_cm.astype(o_ref.dtype)


# ------------------------------ Host wrapper ---------------------------------
def _pick_tile_m(n):
    # Large tiles amortize the ~0.35us/step overhead; keep a multiple of 128
    # (lane-dense output blocks) and >=2 grid steps where possible.
    for cand in (2048, 1024, 512, 256):
        if n >= 2 * cand:
            return cand
    return 128


def siren_forward(coords, params, side_x, side_y,
                  first_omega_0=30.0, hidden_omega_0=30.0, tile_m=None):
    """coords: (N, in_features), N = side_y * side_x (y-major). Returns NCHW."""
    w0t, b0, wht, bh, wf_cm, bf = params
    N, in_features = coords.shape
    H = w0t.shape[1]
    L = wht.shape[0]
    out_features = wf_cm.shape[0]
    assert N == side_x * side_y

    if tile_m is None:
        tile_m = _pick_tile_m(N)
    assert tile_m % 128 == 0, "tile_m must be a multiple of 128"

    n_pad = ((N + tile_m - 1) // tile_m) * tile_m
    if n_pad != N:
        coords = jnp.pad(coords, ((0, n_pad - N), (0, 0)))
    grid = (n_pad // tile_m,)

    # Degenerate 0-hidden-layer nets: pass a dummy (never read) stack.
    if L == 0:
        wht = jnp.zeros((1, H, H), wht.dtype)
        bh = jnp.zeros((1, 1, H), bh.dtype)
    Lb = wht.shape[0]

    kernel = functools.partial(
        siren_kernel,
        hidden_layers=L,
        first_omega_0=float(first_omega_0),
        hidden_omega_0=float(hidden_omega_0),
    )

    # Weights never change across the grid -> single-buffer them.
    weight_mode = pl.Buffered(buffer_count=1)

    def nbytes(a):
        return int(a.size) * a.dtype.itemsize

    weight_bytes = (nbytes(w0t) + nbytes(b0) + nbytes(wht) + nbytes(bh)
                    + nbytes(wf_cm) + nbytes(bf))
    vmem_est = (2 * tile_m * in_features * 4          # coords (2 buffers)
                + 2 * out_features * tile_m * 4       # output (2 buffers)
                + weight_bytes                        # single-buffered weights
                + 4 * tile_m * H * 4)                 # activation working set
    vmem_limit = int(min(max(4 * vmem_est, 32 * 1024 * 1024),
                         64 * 1024 * 1024))

    cost = pl.CostEstimate(
        flops=int(2 * n_pad * (in_features * H + L * H * H + H * out_features)),
        transcendentals=int(n_pad * H * (L + 1)),
        bytes_accessed=int(nbytes(coords) + weight_bytes
                           + out_features * n_pad * 4),
    )

    out_cm = pl.pallas_call(
        kernel,
        out_shape=jax.ShapeDtypeStruct((out_features, n_pad), jnp.float32),
        grid=grid,
        in_specs=[
            # coords: tiled along rows.
            pl.BlockSpec((tile_m, in_features), lambda i: (i, 0)),
            # first-layer weight (in, H) / bias (1, H): grid-invariant.
            pl.BlockSpec((in_features, H), lambda i: (0, 0),
                         pipeline_mode=weight_mode),
            pl.BlockSpec((1, H), lambda i: (0, 0), pipeline_mode=weight_mode),
            # hidden weight stack (L, H, H) bf16 / biases (L, 1, H) f32.
            pl.BlockSpec((Lb, H, H), lambda i: (0, 0, 0),
                         pipeline_mode=weight_mode),
            pl.BlockSpec((Lb, 1, H), lambda i: (0, 0, 0),
                         pipeline_mode=weight_mode),
            # final weight stored channel-major (out, H) / bias (out, 1).
            pl.BlockSpec((out_features, H), lambda i: (0, 0),
                         pipeline_mode=weight_mode),
            pl.BlockSpec((out_features, 1), lambda i: (0, 0),
                         pipeline_mode=weight_mode),
        ],
        out_specs=pl.BlockSpec((out_features, tile_m), lambda i: (0, i)),
        compiler_params=pltpu.CompilerParams(
            dimension_semantics=("parallel",),
            vmem_limit_bytes=vmem_limit),
        cost_estimate=cost,
    )(coords, w0t, b0, wht, bh, wf_cm, bf)

    out_cm = out_cm[:, :N]
    # Channel-major already: just reshape to NCHW (no permute / extra pass).
    return out_cm.reshape(1, out_features, side_y, side_x)


# --------------------------- Parameter construction --------------------------
def init_siren_params(key, in_features, hidden_features, hidden_layers,
                      out_features, first_omega_0=30.0, hidden_omega_0=30.0,
                      hidden_weight_dtype=jnp.bfloat16):
    """Init matching the torch module's scheme.

    First weight is stored (in, H) so the kernel does x @ W; the final weight
    is stored channel-major (out, H) (PyTorch's native layout) for the
    channel-major output; hidden weights are bf16 (f32-accumulated dots).
    """
    keys = jax.random.split(key, 4 + 2 * hidden_layers)
    k_iter = iter(keys)

    def uniform(k, shape, lim):
        return jax.random.uniform(k, shape, jnp.float32, -lim, lim)

    # First sine layer (is_first=True): lim = 1/in_features.
    w0t = uniform(next(k_iter), (in_features, hidden_features),
                  1.0 / in_features)
    b0 = uniform(next(k_iter), (1, hidden_features),
                 1.0 / np.sqrt(in_features))

    # Hidden sine layers: lim = sqrt(6/hidden)/omega.
    lim_h = np.sqrt(6.0 / hidden_features) / hidden_omega_0
    whts, bhs = [], []
    for _ in range(hidden_layers):
        whts.append(uniform(next(k_iter),
                            (hidden_features, hidden_features), lim_h))
        bhs.append(uniform(next(k_iter), (1, hidden_features),
                           1.0 / np.sqrt(hidden_features)))
    if hidden_layers > 0:
        wht = jnp.stack(whts, axis=0).astype(hidden_weight_dtype)
        bh = jnp.stack(bhs, axis=0)
    else:
        wht = jnp.zeros((0, hidden_features, hidden_features),
                        hidden_weight_dtype)
        bh = jnp.zeros((0, 1, hidden_features), jnp.float32)

    # Final linear (outermost_linear=True), stored channel-major (out, H).
    wf_cm = uniform(next(k_iter), (out_features, hidden_features), lim_h)
    bf = uniform(next(k_iter), (out_features, 1),
                 1.0 / np.sqrt(hidden_features))

    return (w0t, b0, wht, bh, wf_cm, bf)


# -------------------------- Pure-JAX reference check --------------------------
def siren_ref(coords, params, side_x, side_y,
              first_omega_0=30.0, hidden_omega_0=30.0):
    w0t, b0, wht, bh, wf_cm, bf = params
    h = jnp.sin(first_omega_0 * (coords @ w0t + b0))
    for l in range(wht.shape[0]):
        pre = jnp.dot(h.astype(wht.dtype), wht[l],
                      preferred_element_type=jnp.float32) + bh[l]
        h = jnp.sin(hidden_omega_0 * pre)
    out = jnp.dot(h, wf_cm.T, preferred_element_type=jnp.float32) + bf.T
    out = out.reshape(1, side_y, side_x, out.shape[-1])
    return jnp.transpose(out, (0, 3, 1, 2)).astype(jnp.float32)


if __name__ == "__main__":
    # Small, Siren-consistent shapes: 2-D coords -> 3-channel image.
    in_features = 2
    hidden_features = 32
    hidden_layers = 2
    out_features = 3
    side_x, side_y = 16, 16
    N = side_x * side_y  # 256 -> tile_m=128, grid=(2,)

    key = jax.random.PRNGKey(0)
    params = init_siren_params(key, in_features, hidden_features,
                               hidden_layers, out_features)

    # Coordinate grid in [-1, 1], flattened y-major: (N, 2).
    ys = jnp.linspace(-1.0, 1.0, side_y)
    xs = jnp.linspace(-1.0, 1.0, side_x)
    gy, gx = jnp.meshgrid(ys, xs, indexing="ij")
    coords = jnp.stack([gx.ravel(), gy.ravel()], axis=-1).astype(jnp.float32)

    out = siren_forward(coords, params, side_x, side_y)
    out = jax.block_until_ready(out)
    assert out.shape == (1, out_features, side_y, side_x), out.shape

    ref = siren_ref(coords, params, side_x, side_y)
    # bf16 weights/activations into the MXU (f32 accumulate) in both paths;
    # tolerance covers tiny sin()/quantization implementation deltas.
    np.testing.assert_allclose(np.asarray(out), np.asarray(ref),
                               rtol=1e-2, atol=1e-2)

    print("KERNEL_OK")
</pallas_src>

<mosaic_0001>
module attributes {stable_mosaic.version = 11 : i64} {
  func.func @siren_kernel(%arg0: i32, %arg1: memref<128x2xf32, #tpu.memory_space<vmem>>, %arg2: memref<2x32xf32, #tpu.memory_space<vmem>>, %arg3: memref<1x32xf32, #tpu.memory_space<vmem>>, %arg4: memref<2x32x32xbf16, #tpu.memory_space<vmem>>, %arg5: memref<2x1x32xf32, #tpu.memory_space<vmem>>, %arg6: memref<3x32xf32, #tpu.memory_space<vmem>>, %arg7: memref<3x1xf32, #tpu.memory_space<vmem>>, %arg8: memref<3x128xf32, #tpu.memory_space<vmem>>) attributes {dimension_semantics = [#tpu.dimension_semantics<parallel>], iteration_bounds = array<i64: 2>, scalar_prefetch = 0 : i64, scratch_operands = 0 : i64, tpu.core_type = #tpu.core_type<tc>, window_params = [{transform_indices = @transform_0, window_bounds = array<i64: 128, 2>}, {pipeline_mode = #tpu.pipeline_mode<synchronous>, transform_indices = @transform_1, window_bounds = array<i64: 2, 32>}, {pipeline_mode = #tpu.pipeline_mode<synchronous>, transform_indices = @transform_2, window_bounds = array<i64: 1, 32>}, {pipeline_mode = #tpu.pipeline_mode<synchronous>, transform_indices = @transform_3, window_bounds = array<i64: 2, 32, 32>}, {pipeline_mode = #tpu.pipeline_mode<synchronous>, transform_indices = @transform_4, window_bounds = array<i64: 2, 1, 32>}, {pipeline_mode = #tpu.pipeline_mode<synchronous>, transform_indices = @transform_5, window_bounds = array<i64: 3, 32>}, {pipeline_mode = #tpu.pipeline_mode<synchronous>, transform_indices = @transform_6, window_bounds = array<i64: 3, 1>}, {transform_indices = @transform_7, window_bounds = array<i64: 3, 128>}]} {
    %c0 = arith.constant 0 : index
    %c0_0 = arith.constant 0 : index
    %0 = vector.load %arg1[%c0, %c0_0] : memref<128x2xf32, #tpu.memory_space<vmem>>, vector<128x2xf32>
    %c0_1 = arith.constant 0 : index
    %c0_2 = arith.constant 0 : index
    %1 = vector.load %arg2[%c0_1, %c0_2] : memref<2x32xf32, #tpu.memory_space<vmem>>, vector<2x32xf32>
    %c0_3 = arith.constant 0 : index
    %c0_4 = arith.constant 0 : index
    %2 = vector.load %arg3[%c0_3, %c0_4] : memref<1x32xf32, #tpu.memory_space<vmem>>, vector<1x32xf32>
    %3 = vector.extract_strided_slice %0 {offsets = [0, 0], sizes = [128, 1], strides = [1, 1]} : vector<128x2xf32> to vector<128x1xf32>
    %4 = vector.extract_strided_slice %1 {offsets = [0, 0], sizes = [1, 32], strides = [1, 1]} : vector<2x32xf32> to vector<1x32xf32>
    %5 = vector.broadcast %3 : vector<128x1xf32> to vector<128x32xf32>
    %6 = vector.broadcast %4 : vector<1x32xf32> to vector<128x32xf32>
    %7 = arith.mulf %5, %6 : vector<128x32xf32>
    %8 = vector.broadcast %2 : vector<1x32xf32> to vector<128x32xf32>
    %9 = arith.addf %8, %7 : vector<128x32xf32>
    %10 = vector.extract_strided_slice %0 {offsets = [0, 1], sizes = [128, 1], strides = [1, 1]} : vector<128x2xf32> to vector<128x1xf32>
    %11 = vector.extract_strided_slice %1 {offsets = [1, 0], sizes = [1, 32], strides = [1, 1]} : vector<2x32xf32> to vector<1x32xf32>
    %12 = vector.broadcast %10 : vector<128x1xf32> to vector<128x32xf32>
    %13 = vector.broadcast %11 : vector<1x32xf32> to vector<128x32xf32>
    %14 = arith.mulf %12, %13 : vector<128x32xf32>
    %15 = arith.addf %9, %14 : vector<128x32xf32>
    %cst = arith.constant 3.000000e+01 : f32
    %16 = vector.broadcast %cst : f32 to vector<128x32xf32>
    %17 = arith.mulf %16, %15 : vector<128x32xf32>
    %18 = math.sin %17 : vector<128x32xf32>
    %c0_5 = arith.constant 0 : index
    %c0_6 = arith.constant 0 : index
    %c0_7 = arith.constant 0 : index
    %19 = vector.load %arg4[%c0_5, %c0_6, %c0_7] : memref<2x32x32xbf16, #tpu.memory_space<vmem>>, vector<1x32x32xbf16>
    %20 = vector.shape_cast %19 : vector<1x32x32xbf16> to vector<32x32xbf16>
    %c0_8 = arith.constant 0 : index
    %c0_9 = arith.constant 0 : index
    %c0_10 = arith.constant 0 : index
    %21 = vector.load %arg5[%c0_8, %c0_9, %c0_10] : memref<2x1x32xf32, #tpu.memory_space<vmem>>, vector<1x1x32xf32>
    %22 = vector.shape_cast %21 : vector<1x1x32xf32> to vector<1x32xf32>
    %23 = arith.truncf %18 : vector<128x32xf32> to vector<128x32xbf16>
    %cst_11 = arith.constant dense<0.000000e+00> : vector<128x32xf32>
    %24 = tpu.matmul %23, %20, %cst_11 {dimension_numbers = #tpu.dot_dimension_numbers<[1], [0], [0], [1], [0, 0, 1, 1], [], []>} : vector<128x32xbf16>, vector<32x32xbf16>, vector<128x32xf32> -> vector<128x32xf32>
    %25 = vector.broadcast %22 : vector<1x32xf32> to vector<128x32xf32>
    %26 = arith.addf %24, %25 : vector<128x32xf32>
    %cst_12 = arith.constant 3.000000e+01 : f32
    %27 = vector.broadcast %cst_12 : f32 to vector<128x32xf32>
    %28 = arith.mulf %27, %26 : vector<128x32xf32>
    %29 = math.sin %28 : vector<128x32xf32>
    %c1 = arith.constant 1 : index
    %c0_13 = arith.constant 0 : index
    %c0_14 = arith.constant 0 : index
    %30 = vector.load %arg4[%c1, %c0_13, %c0_14] : memref<2x32x32xbf16, #tpu.memory_space<vmem>>, vector<1x32x32xbf16>
    %31 = vector.shape_cast %30 : vector<1x32x32xbf16> to vector<32x32xbf16>
    %c1_15 = arith.constant 1 : index
    %c0_16 = arith.constant 0 : index
    %c0_17 = arith.constant 0 : index
    %32 = vector.load %arg5[%c1_15, %c0_16, %c0_17] : memref<2x1x32xf32, #tpu.memory_space<vmem>>, vector<1x1x32xf32>
    %33 = vector.shape_cast %32 : vector<1x1x32xf32> to vector<1x32xf32>
    %34 = arith.truncf %29 : vector<128x32xf32> to vector<128x32xbf16>
    %cst_18 = arith.constant dense<0.000000e+00> : vector<128x32xf32>
    %35 = tpu.matmul %34, %31, %cst_18 {dimension_numbers = #tpu.dot_dimension_numbers<[1], [0], [0], [1], [0, 0, 1, 1], [], []>} : vector<128x32xbf16>, vector<32x32xbf16>, vector<128x32xf32> -> vector<128x32xf32>
    %36 = vector.broadcast %33 : vector<1x32xf32> to vector<128x32xf32>
    %37 = arith.addf %35, %36 : vector<128x32xf32>
    %cst_19 = arith.constant 3.000000e+01 : f32
    %38 = vector.broadcast %cst_19 : f32 to vector<128x32xf32>
    %39 = arith.mulf %38, %37 : vector<128x32xf32>
    %40 = math.sin %39 : vector<128x32xf32>
    %c0_20 = arith.constant 0 : index
    %c0_21 = arith.constant 0 : index
    %41 = vector.load %arg6[%c0_20, %c0_21] : memref<3x32xf32, #tpu.memory_space<vmem>>, vector<3x32xf32>
    %cst_22 = arith.constant dense<0.000000e+00> : vector<3x128xf32>
    %42 = tpu.matmul %41, %40, %cst_22 {dimension_numbers = #tpu.dot_dimension_numbers<[1], [1], [0], [0], [0, 0, 1, 0], [], []>} : vector<3x32xf32>, vector<128x32xf32>, vector<3x128xf32> -> vector<3x128xf32>
    %c0_23 = arith.constant 0 : index
    %c0_24 = arith.constant 0 : index
    %43 = vector.load %arg7[%c0_23, %c0_24] : memref<3x1xf32, #tpu.memory_space<vmem>>, vector<3x1xf32>
    %44 = vector.broadcast %43 : vector<3x1xf32> to vector<3x128xf32>
    %45 = arith.addf %42, %44 : vector<3x128xf32>
    %c0_25 = arith.constant 0 : index
    %c0_26 = arith.constant 0 : index
    %46 = vector.load %arg8[%c0_25, %c0_26] : memref<3x128xf32, #tpu.memory_space<vmem>>, vector<3x128xf32>
    tpu.vector_store %arg8[%c0_25, %c0_26], %45 {strides = array<i32>} : memref<3x128xf32, #tpu.memory_space<vmem>>, vector<3x128xf32>,
    return
  }
  func.func @transform_0(%arg0: i32) -> (i32, i32) {
    %c0_i32 = arith.constant 0 : i32
    %c0_i32_0 = arith.constant 0 : i32
    return %arg0, %c0_i32 : i32, i32
  }
  func.func @transform_1(%arg0: i32) -> (i32, i32) {
    %c0_i32 = arith.constant 0 : i32
    %c0_i32_0 = arith.constant 0 : i32
    %c0_i32_1 = arith.constant 0 : i32
    return %c0_i32, %c0_i32_0 : i32, i32
  }
  func.func @transform_2(%arg0: i32) -> (i32, i32) {
    %c0_i32 = arith.constant 0 : i32
    %c0_i32_0 = arith.constant 0 : i32
    %c0_i32_1 = arith.constant 0 : i32
    return %c0_i32, %c0_i32_0 : i32, i32
  }
  func.func @transform_3(%arg0: i32) -> (i32, i32, i32) {
    %c0_i32 = arith.constant 0 : i32
    %c0_i32_0 = arith.constant 0 : i32
    %c0_i32_1 = arith.constant 0 : i32
    %c0_i32_2 = arith.constant 0 : i32
    return %c0_i32, %c0_i32_0, %c0_i32_1 : i32, i32, i32
  }
  func.func @transform_4(%arg0: i32) -> (i32, i32, i32) {
    %c0_i32 = arith.constant 0 : i32
    %c0_i32_0 = arith.constant 0 : i32
    %c0_i32_1 = arith.constant 0 : i32
    %c0_i32_2 = arith.constant 0 : i32
    return %c0_i32, %c0_i32_0, %c0_i32_1 : i32, i32, i32
  }
  func.func @transform_5(%arg0: i32) -> (i32, i32) {
    %c0_i32 = arith.constant 0 : i32
    %c0_i32_0 = arith.constant 0 : i32
    %c0_i32_1 = arith.constant 0 : i32
    return %c0_i32, %c0_i32_0 : i32, i32
  }
  func.func @transform_6(%arg0: i32) -> (i32, i32) {
    %c0_i32 = arith.constant 0 : i32
    %c0_i32_0 = arith.constant 0 : i32
    %c0_i32_1 = arith.constant 0 : i32
    return %c0_i32, %c0_i32_0 : i32, i32
  }
  func.func @transform_7(%arg0: i32) -> (i32, i32) {
    %c0_i32 = arith.constant 0 : i32
    %c0_i32_0 = arith.constant 0 : i32
    return %c0_i32, %arg0 : i32, i32
  }
}

</mosaic_0001>

<bundles_post_ra>
// kernel: tpu_custom_call.1
= control target key start
LH: loop header
LB: loop body
LE: loop exit
PB: predicated region body
PF: predicated region fallthrough
CT: control target
= control target key end

     0   :  { %12 = vsyncpa [#allocation3], 0  ;;  %s11920_s0 = inlined_call_operand.vmem [shape: f32[256,2], index: 0, kind: input, shape index: {}]   ;;  %s11921_s1 = inlined_call_operand.vmem [shape: f32[2,32], index: 1, kind: input, shape index: {}]   ;;  %s11922_s2 = inlined_call_operand.vmem [shape: f32[1,32], index: 2, kind: input, shape index: {}]   ;;  %s11923_s3 = inlined_call_operand.vmem [shape: bf16[2,32,32], index: 3, kind: input, shape index: {}]   ;;  %s11924_s4 = inlined_call_operand.vmem [shape: f32[2,1,32], index: 4, kind: input, shape index: {}]   ;;  %s11925_s5 = inlined_call_operand.vmem [shape: f32[3,32], index: 5, kind: input, shape index: {}]   ;;  %s11926_s6 = inlined_call_operand.vmem [shape: f32[3,1], index: 6, kind: input, shape index: {}]   ;;  %s11927_s7 = inlined_call_operand.hbm [shape: f32[3,256], index: 7, kind: output, shape index: {}]  }
   0x1   :  { %14 = vsyncpa [#allocation3 + $0x1], 0  ;;  %s7035_s24 = smov 0   ;;  %s7037_s25 = smov 0  }
   0x2   :  { %s7039_s26 = smov 0   ;;  %s7041_s27 = smov 0  }
   0x3 LB: > { %s7056_s28 = sadd.s32 4294967295, %s6981_s27   ;;  %s6069_s29 = sadd.s32 4294967294, %s6981_s27   ;;  %s6981_s27 = sphi %s7041_s27, %s12652_s27   ;;  %s6977_s26 = sphi %s7039_s26, %s12651_s26   ;;  %s6973_s25 = sphi %s7037_s25, %s12650_s25   ;;  %s6969_s24 = sphi %s7035_s24, %s12649_s24  }
   0x4   : > { %s7060_s30 = sadd.s32 1, %s6981_s27   ;;  %s179_s8 = sadd.s32 1, %s6977_s26 }
   0x5   : > { %s176_s9 = ssub.s32 %s6981_s27, %s7060_s30  ;;  %p189_p0 = scmp.ne.s32.totalorder %s6977_s26, %s6973_s25 }
   0x6   : > { %p177_p1 = scmp.eq.s32.totalorder %s176_s9, 0  ;;  %p190_p2 = scmp.eq.s32.totalorder %s7056_s28, 1 }
   0x7   : > { %p195_p3 = scmp.ne.s32.totalorder %s6973_s25, %s6969_s24  ;;  %p196_p4 = scmp.eq.s32.totalorder %s6069_s29, 1 }
   0x8   : > { %s7071_s10 = scalar_select %p177_p1, %s6977_s26, %s179_s8  }
   0x9   : > { %p7073_p5 = por %p190_p2, %p189_p0  ;;  %p7077_p6 = por %p196_p4, %p195_p3 }
   0xa   : > { %p6072_p7 = scmp.ge.s32.totalorder %s6981_s27, 1  ;;  %p241_p8 = scmp.lt.s32.totalorder %s6981_s27, 3 }
   0xc   : > { %p242_p9 = pnand %p6072_p7, %p241_p8 }
   0xe   : > { %245 = sbr.rel (%p242_p9) target bundleno = 2041 (0x7f9), region = 48 }
  0x15   : > { %s6074_s13 = sshll.u32 %s7056_s28, 4  ;;  %v6983_v0 = vmov 0   ;;  %v6984_v5 = vmov 1   ;;  %v378_v18 = vlaneseq  ;;  %v296_v23 = vld [vmem:[%s11921_s1] sm:$0x3]  ;;  %s270_s18 = sand.u32 1, %s6973_s25  }
  0x16   : > { %6704 = vset.pattern.permute.xlu1 %v6983_v0  ;;  %6703 = vset.pattern.permute.xlu0 %v6983_v0  ;;  %p274_p10 = scmp.lt.s32.totalorder %s6074_s13, 31  ;;  %v7124_v32 = vld [vmem:[%s11922_s2] ss:$0 sm:$0xff]  ;;  %s6073_s19 = sshll.u32 %s270_s18, 2 }
  0x17   : > { %v379_v19 = vshrl.u32 %v378_v18, 7  ;;  %s6314_s20 = sshll.u32 %s7056_s28, 6  ;;  %s272_s21 = scalar_lea.vmem [#allocation2], %s6073_s19 }
  0x18   : > { %s12654_s13 = smov (!%p274_p10, %s6074_s13), 31  ;;  %s6010_s22 = sshll.u32 %s272_s21, 4  ;;  %s11880_s22 = int_to_ptr.vmem [resolvable:$true] %s6010_s22 }
  0x19   : > { %s6075_s14 = sshll.u32 %s12654_s13, 3  ;;  %v380_v22 = vsub.s32 0, %v379_v19  ;;  %v486_v27 = vsub.s32 1, %v379_v19  ;;  %v11941_v19 = vmov 2102212464   ;;  %s11878_s8 = scalar_lea.hbm %s11927_s7, %s6314_s20 }
  0x1a   : > { %s7089_s17 = scalar_lea.vmem %s11920_s0, %s6075_s14  ;;  %s5997_s9 = scalar_lea.sflag [#allocation3], %s270_s18 }
  0x1b   : > { %v282_v1 = vld [vmem:[%s7089_s17 + $0x10] sm:$0xff]  ;;  %v280_v2 = vld [vmem:[%s7089_s17] sm:$0xff]  ;;  %v283_v3 = vld [vmem:[%s7089_s17 + $0x18] sm:$0xff]  ;;  %v7117_v26 = vrot.slane %v296_v23, %v380_v22  ;;  %v7126_v33 = vrot.slane %v296_v23, %v486_v27  ;;  %v11939_v22 = vmov 920167782   ;;  %s6919_s13 = scalar_lea.vmem %s11880_s22, 64 }
  0x1c   : > { %310 = vperm.xlu1 %6704, %v282_v1   ;;  %300 = vperm.xlu0 %6703, %v280_v2   ;;  %v281_v4 = vld [vmem:[%s7089_s17 + $0x8] sm:$0xff]  ;;  %v284_v6 = vld [vmem:[%s7089_s17 + $0x20] sm:$0xff]  ;;  %v287_v7 = vld [vmem:[%s7089_s17 + $0x38] sm:$0xff]  ;;  %p6920_p11 = scmp.ne.s32.totalorder %s11880_s22, %s6919_s13  ;;  %s6994_s28 = smov [#allocation2]  }
  0x1d   : > { %v286_v8 = vld [vmem:[%s7089_s17 + $0x30] sm:$0xff]  ;;  %v285_v9 = vld [vmem:[%s7089_s17 + $0x28] sm:$0xff]  ;;  %v288_v11 = vld [vmem:[%s7089_s17 + $0x40] sm:$0xff]  ;;  %s6923_s14 = sshll.u32 %s6994_s28, 4  ;;  %s6924_s14 = int_to_ptr.vmem [resolvable:$false] %s6923_s14 }
  0x1e   : > { %v289_v10 = vld [vmem:[%s7089_s17 + $0x48] sm:$0xff]  ;;  %v291_v12 = vld [vmem:[%s7089_s17 + $0x58] sm:$0xff]  ;;  %v290_v13 = vld [vmem:[%s7089_s17 + $0x50] sm:$0xff]  ;;  %p6921_p12 = pnand %p6920_p11, %p7073_p5  ;;  %s6925_s15 = scalar_lea.vmem %s6924_s14, 128 }
  0x1f   : > { %v293_v14 = vld [vmem:[%s7089_s17 + $0x68] sm:$0xff]  ;;  %v292_v15 = vld [vmem:[%s7089_s17 + $0x60] sm:$0xff]  ;;  %v295_v16 = vld [vmem:[%s7089_s17 + $0x78] sm:$0xff]  ;;  %p6926_p0 = scmp.lt.s32.totalorder %s11880_s22, %s6924_s14  ;;  %p6927_p1 = scmp.lt.s32.totalorder %s6925_s15, %s6919_s13 }
  0x20   : > { %315 = vperm.xlu1 %6704, %v283_v3   ;;  %305 = vperm.xlu0 %6703, %v281_v4   ;;  %v294_v17 = vld [vmem:[%s7089_s17 + $0x70] sm:$0xff]  ;;  %p6922_p13 = pneg %p6921_p12 }
  0x21   : > { %p6928_p2 = por %p6927_p1, %p6926_p0 }
  0x23   : > { %p6929_p3 = pnand %p6928_p2, %p6922_p13 }
  0x24   : > { %6706 = vset.pattern.permute.xlu1 %v6984_v5  ;;  %6705 = vset.pattern.permute.xlu0 %v6984_v5 }
  0x25   : > { %425 = vperm.xlu1 %6706, %v281_v4   ;;  %421 = vperm.xlu0 %6705, %v280_v2  }
  0x29   : > { %429 = vperm.xlu1 %6706, %v282_v1   ;;  %433 = vperm.xlu0 %6705, %v283_v3  }
  0x2d   : > { %6707 = vset.pattern.permute.xlu1 %v6983_v0  ;;  %437 = vperm.xlu0 %6705, %v284_v6  }
  0x2e   : > { %320 = vperm.xlu1 %6707, %v284_v6  }
  0x31   : > { %449 = vperm.xlu0 %6705, %v287_v7  }
  0x32   : > { %330 = vperm.xlu1 %6707, %v286_v8  }
  0x35   : > { %6709 = vset.pattern.permute.xlu0 %v6983_v0 }
  0x36   : > { %335 = vperm.xlu1 %6707, %v287_v7   ;;  %325 = vperm.xlu0 %6709, %v285_v9  }
  0x3a   : > { %6708 = vset.pattern.permute.xlu1 %v6984_v5  ;;  %345 = vperm.xlu0 %6709, %v289_v10  }
  0x3b   : > { %441 = vperm.xlu1 %6708, %v285_v9  }
  0x3e   : > { %6711 = vset.pattern.permute.xlu0 %v6984_v5 }
  0x3f   : > { %445 = vperm.xlu1 %6708, %v286_v8   ;;  %453 = vperm.xlu0 %6711, %v288_v11  }
  0x43   : > { %6710 = vset.pattern.permute.xlu1 %v6983_v0  ;;  %465 = vperm.xlu0 %6711, %v291_v12  }
  0x44   : > { %340 = vperm.xlu1 %6710, %v288_v11  }
  0x47   : > { %6714 = vset.pattern.permute.xlu0 %v6983_v0 }
  0x48   : > { %350 = vperm.xlu1 %6710, %v290_v13   ;;  %365 = vperm.xlu0 %6714, %v293_v14  }
  0x4c   : > { %355 = vperm.xlu1 %6710, %v291_v12   ;;  %6715 = vset.pattern.permute.xlu0 %v6984_v5  ;;  %v11934_v12 = vmov 2475754826  }
  0x4d   : > { %469 = vperm.xlu0 %6715, %v292_v15  }
  0x50   : > { %6712 = vset.pattern.permute.xlu1 %v6984_v5 }
  0x51   : > { %457 = vperm.xlu1 %6712, %v289_v10   ;;  %481 = vperm.xlu0 %6715, %v295_v16   ;;  %v11945_v10 = vmov 683565275  }
  0x55   : > { %461 = vperm.xlu1 %6712, %v290_v13   ;;  %6718 = vset.pattern.permute.xlu0 %v6983_v0 }
  0x59   : > { %6713 = vset.pattern.permute.xlu1 %v6983_v0 }
  0x5a   : > { %360 = vperm.xlu1 %6713, %v292_v15  }
  0x5e   : > { %370 = vperm.xlu1 %6713, %v294_v17  }
  0x62   : > { %375 = vperm.xlu1 %6713, %v295_v16   ;;  %v11932_v16 = vmov 2131351028  }
  0x66   : > { %6716 = vset.pattern.permute.xlu1 %v6984_v5 }
  0x67   : > { %473 = vperm.xlu1 %6716, %v293_v14  }
  0x6b   : > { %477 = vperm.xlu1 %6716, %v294_v17  }
  0x6f   : > { %6717 = vset.pattern.permute.xlu1 %v6983_v0 }
  0x9b   : > { %v311_v20 = vpop.permute.xlu1 %310  ;;  %v301_v21 = vpop.permute.xlu0 %300 }
  0x9c   : > { %v384_v30 = vmul.f32 %v7117_v26, %v311_v20  ;;  %v382_v44 = vmul.f32 %v7117_v26, %v301_v21 }
  0x9e   : > { %v406_v36 = vadd.f32 %v7124_v32, %v384_v30  ;;  %v404_v51 = vadd.f32 %v7124_v32, %v382_v44 }
  0x9f   : > { %v316_v24 = vpop.permute.xlu1 %315  ;;  %v306_v25 = vpop.permute.xlu0 %305 }
  0xa0   : > { %v385_v31 = vmul.f32 %v7117_v26, %v316_v24  ;;  %v383_v45 = vmul.f32 %v7117_v26, %v306_v25  ;;  %v11937_v25 = vmov 1326507024  }
  0xa2   : > { %v407_v37 = vadd.f32 %v7124_v32, %v385_v31  ;;  %v405_v52 = vadd.f32 %v7124_v32, %v383_v45 }
  0xa4   : > { %v426_v28 = vpop.permute.xlu1 %425  ;;  %v422_v29 = vpop.permute.xlu0 %421 }
  0xa5   : > { %v489_v53 = vmul.f32 %v7126_v33, %v426_v28  ;;  %v488_v54 = vmul.f32 %v7126_v33, %v422_v29 }
  0xa7   : > { %v505_v60 = vadd.f32 %v489_v53, %v405_v52  ;;  %v504_v61 = vadd.f32 %v488_v54, %v404_v51 }
  0xa8   : > { %v430_v34 = vpop.permute.xlu1 %429  ;;  %v434_v35 = vpop.permute.xlu0 %433 }
  0xa9   : > { %v490_v38 = vmul.f32 %v7126_v33, %v430_v34  ;;  %v491_v39 = vmul.f32 %v7126_v33, %v434_v35  ;;  %v7148_v3 = vmul.f32 30.0, %v505_v60  ;;  %v7150_v4 = vmul.f32 30.0, %v504_v61 }
  0xab   : > { %v506_v40 = vadd.f32 %v490_v38, %v406_v36  ;;  %v507_v41 = vadd.f32 %v491_v39, %v407_v37  ;;  %12156 = vst [vmem:[#allocation7_spill] sm:$0xff] %v7148_v3  ;;  %12157 = vst [vmem:[#allocation8_spill] sm:$0xff] %v7150_v4 }
  0xac   : > { %v438_v61 = vpop.permute.xlu0 %437 }
  0xad   : > { %v7132_v42 = vmul.f32 30.0, %v506_v40  ;;  %v7134_v43 = vmul.f32 30.0, %v507_v41  ;;  %v321_v1 = vpop.permute.xlu1 %320 }
  0xae   : > { %v7159_v8 = vmul.f32 %v7117_v26, %v321_v1 }
  0xaf   : > { %12154 = vst [vmem:[#allocation5_spill] sm:$0xff] %v7132_v42  ;;  %12155 = vst [vmem:[#allocation6_spill] sm:$0xff] %v7134_v43  ;;  %v747_v46 = vand.u32 2139095040, %v7132_v42  ;;  %v851_v47 = vand.u32 2139095040, %v7134_v43  ;;  %v11931_v48 = vand.u32 2147483647, %v7132_v42 }
  0xb0   : > { %v11930_v63 = vand.u32 2147483647, %v7134_v43 }
  0xb1   : > { %v748_v49 = vshrl.u32 %v747_v46, 23  ;;  %v852_v50 = vshrl.u32 %v851_v47, 23  ;;  %v751_v57 = vand.u32 8388607, %v11931_v48 }
  0xb2   : > { %v7156_v7 = vand.u32 8388607, %v11930_v63 }
  0xb3   : > { %v6085_v55 = vadd.s32 4294967169, %v748_v49  ;;  %v6089_v56 = vadd.s32 4294967169, %v852_v50  ;;  %v752_v62 = vor.u32 8388608, %v751_v57 }
  0xb5   : > { %v754_v58 = vadd.s32 1, %v6085_v55  ;;  %v858_v59 = vadd.s32 1, %v6089_v56  ;;  %v7152_v6 = vshll.u32 %v752_v62, 8 }
  0xb7   : > { %vm755_vm0 = vcmp.gt.s32.totalorder %v754_v58, 0  ;;  %vm859_vm1 = vcmp.gt.s32.totalorder %v858_v59, 0 }
  0xb8   : > { %v756_v0 = vsel %vm755_vm0, %v754_v58, 0  ;;  %v860_v14 = vsel %vm859_vm1, %v858_v59, 0 }
  0xb9   : > { %v758_v2 = vand.u32 31, %v756_v0  ;;  %v7161_v9 = vshrl.u32 %v756_v0, 5  ;;  %v862_v31 = vand.u32 31, %v860_v14  ;;  %v7174_v36 = vshrl.u32 %v860_v14, 5 }
  0xbb   : > { %v759_v5 = vsub.s32 32, %v758_v2  ;;  %v761_v11 = vshll.u32 %v11945_v10, %v758_v2  ;;  %v764_v13 = vshll.u32 %v11934_v12, %v758_v2  ;;  %v767_v18 = vshll.u32 %v11932_v16, %v758_v2 }
  0xbc   : > { %v770_v21 = vshll.u32 %v11941_v19, %v758_v2  ;;  %v773_v24 = vshll.u32 %v11939_v22, %v758_v2  ;;  %vm776_vm2 = vcmp.lt.s32.totalorder %v7161_v9, 1  ;;  %vm779_vm3 = vcmp.lt.s32.totalorder %v7161_v9, 4 }
  0xbd   : > { %v762_v15 = vshrl.u32 %v11934_v12, %v759_v5  ;;  %v765_v17 = vshrl.u32 %v11932_v16, %v759_v5  ;;  %v768_v20 = vshrl.u32 %v11941_v19, %v759_v5  ;;  %v771_v23 = vshrl.u32 %v11939_v22, %v759_v5 }
  0xbe   : > { %v774_v27 = vshrl.u32 %v11937_v25, %v759_v5  ;;  %v760_v37 = vshrl.u32 %v11945_v10, %v759_v5  ;;  %vm777_vm4 = vcmp.lt.s32.totalorder %v7161_v9, 2  ;;  %vm778_vm5 = vcmp.lt.s32.totalorder %v7161_v9, 3 }
  0xbf   : > { %v763_v28 = vor.u32 %v762_v15, %v761_v11  ;;  %v766_v29 = vor.u32 %v765_v17, %v764_v13  ;;  %v769_v30 = vor.u32 %v768_v20, %v767_v18  ;;  %v772_v34 = vor.u32 %v771_v23, %v770_v21  ;;  %v7207_v20 = vpop.permute.xlu1 %330 }
  0xc0   : > { %v775_v35 = vor.u32 %v774_v27, %v773_v24  ;;  %v863_v47 = vsub.s32 32, %v862_v31  ;;  %v865_v52 = vshll.u32 %v11945_v10, %v862_v31  ;;  %v868_v59 = vshll.u32 %v11934_v12, %v862_v31 }
  0xc1   : > { %v784_v38 = vsel %vm776_vm2, %v763_v28, %v766_v29  ;;  %v788_v39 = vsel %vm776_vm2, %v766_v29, %v769_v30  ;;  %v785_v40 = vsel %vm779_vm3, %v772_v34, 920167782  ;;  %v781_v44 = vsel %vm779_vm3, %v769_v30, 2102212464 }
  0xc2   : > { %v789_v41 = vsel %vm779_vm3, %v775_v35, 1326507024  ;;  %v786_v45 = vsel %vm778_vm5, %v769_v30, %v785_v40  ;;  %v780_v49 = vsel %vm776_vm2, %v760_v37, %v763_v28  ;;  %v782_v57 = vsel %vm778_vm5, %v766_v29, %v781_v44 }
  0xc3   : > { %v790_v46 = vsel %vm778_vm5, %v772_v34, %v789_v41  ;;  %v787_v50 = vsel %vm777_vm4, %v784_v38, %v786_v45  ;;  %v866_v58 = vshrl.u32 %v11934_v12, %v863_v47  ;;  %v869_v60 = vshrl.u32 %v11932_v16, %v863_v47 }
  0xc4   : > { %v791_v51 = vsel %vm777_vm4, %v788_v39, %v790_v46  ;;  %v7190_v55 = vmul.u32.u64.low %v7152_v6, %v787_v50  ;;  %v7191_v56 = vmul.u32.u64.high %v7152_v6, %v787_v50, %v7190_v55  ;;  %v871_v62 = vshll.u32 %v11932_v16, %v862_v31  ;;  %v336_v46 = vpop.permute.xlu1 %335 }
  0xc5   : > { %v7186_v53 = vmul.u32.u64.low %v7152_v6, %v791_v51  ;;  %v7187_v54 = vmul.u32.u64.high %v7152_v6, %v791_v51, %v7186_v53  ;;  %v872_v0 = vshrl.u32 %v11941_v19, %v863_v47  ;;  %v874_v1 = vshll.u32 %v11941_v19, %v862_v31 }
  0xc6   : > { %v875_v2 = vshrl.u32 %v11939_v22, %v863_v47  ;;  %v867_v5 = vor.u32 %v866_v58, %v865_v52  ;;  %v870_v11 = vor.u32 %v869_v60, %v868_v59  ;;  %v877_v13 = vshll.u32 %v11939_v22, %v862_v31 }
  0xc7   : > { %v878_v14 = vshrl.u32 %v11937_v25, %v863_v47  ;;  %vm801_vm6 = vc.u32 %v7187_v54, %v7190_v55  ;;  %v802_v15 = vadd.s32 1, %v7191_v56  ;;  %v873_v17 = vor.u32 %v872_v0, %v871_v62 }
  0xc8   : > { %v492_v18 = vmul.f32 %v7126_v33, %v438_v61  ;;  %v856_v21 = vor.u32 8388608, %v7156_v7  ;;  %v876_v23 = vor.u32 %v875_v2, %v874_v1  ;;  %v408_v27 = vadd.f32 %v7124_v32, %v7159_v8  ;;  %v450_v2 = vpop.permute.xlu0 %449 }
  0xc9   : > { %v879_v24 = vor.u32 %v878_v14, %v877_v13  ;;  %v783_v28 = vsel %vm777_vm4, %v780_v49, %v782_v57  ;;  %vm880_vm7 = vcmp.lt.s32.totalorder %v7174_v36, 1  ;;  %vm881_vm8 = vcmp.lt.s32.totalorder %v7174_v36, 2 }
  0xca   : > { %vm883_vm9 = vcmp.lt.s32.totalorder %v7174_v36, 4  ;;  %v803_v29 = vsel %vm801_vm6, %v802_v15, %v7191_v56  ;;  %vm882_vm10 = vcmp.lt.s32.totalorder %v7174_v36, 3  ;;  %v888_v7 = vsel %vm880_vm7, %v867_v5, %v870_v11 }
  0xcb   : > { %v889_v30 = vsel %vm883_vm9, %v876_v23, 920167782  ;;  %v885_v31 = vsel %vm883_vm9, %v873_v17, 2102212464  ;;  %v892_v9 = vsel %vm880_vm7, %v870_v11, %v873_v17  ;;  %v893_v34 = vsel %vm883_vm9, %v879_v24, 1326507024 }
  0xcc   : > { %v890_v8 = vsel %vm882_vm10, %v873_v17, %v889_v30  ;;  %v799_v35 = vmul.u32 %v7152_v6, %v783_v28  ;;  %v864_v37 = vshrl.u32 %v11945_v10, %v863_v47  ;;  %v894_v39 = vsel %vm882_vm10, %v876_v23, %v893_v34 }
  0xcd   : > { %v891_v38 = vsel %vm881_vm8, %v888_v7, %v890_v8  ;;  %v643_v40 = vand.u32 2139095040, %v7148_v3  ;;  %v895_v41 = vsel %vm881_vm8, %v892_v9, %v894_v39  ;;  %v896_v44 = vshll.u32 %v856_v21, 8  ;;  %v326_v7 = vpop.permute.xlu0 %325 }
  0xce   : > { %v508_v45 = vadd.f32 %v492_v18, %v408_v27  ;;  %v539_v49 = vand.u32 2139095040, %v7150_v4  ;;  %v804_v50 = vadd.s32 %v803_v29, %v799_v35  ;;  %v884_v6 = vsel %vm880_vm7, %v864_v37, %v867_v5 }
  0xcf   : > { %v886_v47 = vsel %vm882_vm10, %v870_v11, %v885_v31  ;;  %v7239_v51 = vmul.u32.u64.low %v896_v44, %v895_v41  ;;  %v7240_v52 = vmul.u32.u64.high %v896_v44, %v895_v41, %v7239_v51  ;;  %v389_v58 = vmul.f32 %v7117_v26, %v336_v46 }
  0xd0   : > { %v7242_v53 = vmul.u32.u64.low %v896_v44, %v891_v38  ;;  %v7243_v56 = vmul.u32.u64.high %v896_v44, %v891_v38, %v7242_v53  ;;  %v7246_v57 = vmul.f32 30.0, %v508_v45  ;;  %v644_v59 = vshrl.u32 %v643_v40, 23  ;;  %v442_v40 = vpop.permute.xlu1 %441 }
  0xd1   : > { %v887_v60 = vsel %vm881_vm8, %v884_v6, %v886_v47  ;;  %v805_v61 = vadd.s32 536870912, %v804_v50  ;;  %v540_v62 = vshrl.u32 %v539_v49, 23  ;;  %v495_v11 = vmul.f32 %v7126_v33, %v450_v2 }
  0xd2   : > { %12158 = vst [vmem:[#allocation9_spill] sm:$0xff] %v7246_v57  ;;  %vm905_vm11 = vc.u32 %v7240_v52, %v7242_v53  ;;  %v906_v0 = vadd.s32 1, %v7243_v56  ;;  %v955_v1 = vand.u32 2139095040, %v7246_v57  ;;  %v903_v5 = vmul.u32 %v896_v44, %v887_v60 }
  0xd3   : > { %v411_v13 = vadd.f32 %v7124_v32, %v389_v58  ;;  %v6081_v14 = vadd.s32 4294967169, %v644_v59  ;;  %v7258_v17 = vshrl.u32 %v805_v61, 30  ;;  %v6077_v21 = vadd.s32 4294967169, %v540_v62 }
  0xd4   : > { %v907_v15 = vsel %vm905_vm11, %v906_v0, %v7243_v56  ;;  %v956_v36 = vshrl.u32 %v955_v1, 23  ;;  %v387_v35 = vmul.f32 %v7117_v26, %v326_v7  ;;  %v11929_v39 = vand.u32 2147483647, %v7246_v57 }
  0xd5   : > { %v908_v18 = vadd.s32 %v907_v15, %v903_v5  ;;  %v511_v27 = vadd.f32 %v495_v11, %v411_v13  ;;  %v650_v28 = vadd.s32 1, %v6081_v14  ;;  %v807_v30 = vshll.u32 %v7258_v17, 30 }
  0xd6   : > { %v6093_v23 = vadd.s32 4294967169, %v956_v36  ;;  %v546_v31 = vadd.s32 1, %v6077_v21  ;;  %v409_v49 = vadd.f32 %v7124_v32, %v387_v35  ;;  %v959_v58 = vand.u32 8388607, %v11929_v39 }
  0xd7   : > { %v909_v24 = vadd.s32 536870912, %v908_v18  ;;  %v7263_v34 = vmul.f32 30.0, %v511_v27  ;;  %vm651_vm13 = vcmp.gt.s32.totalorder %v650_v28, 0  ;;  %v7266_v38 = vsub.s32 %v804_v50, %v807_v30 }
  0xd8   : > { %v962_v29 = vadd.s32 1, %v6093_v23  ;;  %vm547_vm14 = vcmp.gt.s32.totalorder %v546_v31, 0  ;;  %v652_v44 = vsel %vm651_vm13, %v650_v28, 0  ;;  %v493_v50 = vmul.f32 %v7126_v33, %v442_v40 }
  0xd9   : > { %v7261_v8 = vshrl.u32 %v909_v24, 30  ;;  %12159 = vst [vmem:[#allocation10_spill] sm:$0xff] %v7263_v34  ;;  %v1267_v46 = vand.u32 2139095040, %v7263_v34  ;;  %v810_v56 = vsub.s32 0, %v7266_v38  ;;  %v7288_v23 = vshrl.u32 %v652_v44, 5 }
  0xda   : > { %vm963_vm12 = vcmp.gt.s32.totalorder %v962_v29, 0  ;;  %v7290_v24 = vand.u32 31, %v652_v44  ;;  %v548_v27 = vsel %vm547_vm14, %v546_v31, 0  ;;  %v509_v44 = vadd.f32 %v493_v50, %v409_v49  ;;  %v446_v49 = vpop.permute.xlu1 %445 }
  0xdb   : > { %v964_v9 = vsel %vm963_vm12, %v962_v29, 0  ;;  %v911_v45 = vshll.u32 %v7261_v8, 30  ;;  %v1268_v13 = vshrl.u32 %v1267_v46, 23  ;;  %12160 = vst [vmem:[#allocation11_spill] sm:$0xff] %v7288_v23  ;;  %v6086_v28 = vmin.u32 %v810_v56, %v7266_v38 }
  0xdc   : > { %v966_v37 = vand.u32 31, %v964_v9  ;;  %v965_v61 = vshrl.u32 %v964_v9, 5  ;;  %12161 = vst [vmem:[#allocation12_spill] sm:$0xff] %v7290_v24  ;;  %v960_v29 = vor.u32 8388608, %v959_v58 }
  0xdd   : > { %v7284_v2 = vsub.s32 %v908_v18, %v911_v45  ;;  %v6105_v40 = vadd.s32 4294967169, %v1268_v13  ;;  %v7315_v13 = vshrl.u32 %v548_v27, 5 }
  0xde   : > { %v967_v41 = vsub.s32 32, %v966_v37  ;;  %v969_v59 = vshll.u32 %v11945_v10, %v966_v37  ;;  %v972_v60 = vshll.u32 %v11934_v12, %v966_v37  ;;  %v975_v62 = vshll.u32 %v11932_v16, %v966_v37 }
  0xdf   : > { %v978_v0 = vshll.u32 %v11941_v19, %v966_v37  ;;  %v981_v36 = vshll.u32 %v11939_v22, %v966_v37  ;;  %vm984_vm15 = vcmp.lt.s32.totalorder %v965_v61, 1  ;;  %vm987_vm0 = vcmp.lt.s32.totalorder %v965_v61, 4  ;;  %12163 = vst [vmem:[#allocation14_spill] sm:$0xff] %v7315_v13 }
  0xe0   : > { %v970_v6 = vshrl.u32 %v11934_v12, %v967_v41  ;;  %v973_v47 = vshrl.u32 %v11932_v16, %v967_v41  ;;  %v976_v51 = vshrl.u32 %v11941_v19, %v967_v41  ;;  %v979_v1 = vshrl.u32 %v11939_v22, %v967_v41 }
  0xe1   : > { %v982_v21 = vshrl.u32 %v11937_v25, %v967_v41  ;;  %v914_v7 = vsub.s32 0, %v7284_v2  ;;  %vm986_vm1 = vcmp.lt.s32.totalorder %v965_v61, 3  ;;  %v388_v37 = vmul.f32 %v7117_v26, %v7207_v20 }
  0xe2   : > { %v971_v5 = vor.u32 %v970_v6, %v969_v59  ;;  %v974_v11 = vor.u32 %v973_v47, %v972_v60  ;;  %v977_v14 = vor.u32 %v976_v51, %v975_v62  ;;  %v980_v15 = vor.u32 %v979_v1, %v978_v0 }
  0xe3   : > { %v983_v18 = vor.u32 %v982_v21, %v981_v36  ;;  %v968_v31 = vshrl.u32 %v11945_v10, %v967_v41  ;;  %vm985_vm2 = vcmp.lt.s32.totalorder %v965_v61, 2  ;;  %v812_v6 = vclz %v6086_v28 }
  0xe4   : > { %v992_v30 = vsel %vm984_vm15, %v971_v5, %v974_v11  ;;  %v993_v9 = vsel %vm987_vm0, %v980_v15, 920167782  ;;  %v989_v45 = vsel %vm987_vm0, %v977_v14, 2102212464  ;;  %v996_v46 = vsel %vm984_vm15, %v974_v11, %v977_v14 }
  0xe5   : > { %v994_v35 = vsel %vm986_vm1, %v977_v14, %v993_v9  ;;  %v997_v51 = vsel %vm987_vm0, %v983_v18, 1326507024  ;;  %v1000_v56 = vshll.u32 %v960_v29, 8  ;;  %v6090_v58 = vmin.u32 %v914_v7, %v7284_v2 }
  0xe6   : > { %v995_v47 = vsel %vm985_vm2, %v992_v30, %v994_v35  ;;  %v988_v59 = vsel %vm984_vm15, %v968_v31, %v971_v5  ;;  %v998_v60 = vsel %vm986_vm1, %v980_v15, %v997_v51  ;;  %v11928_v20 = vand.u32 2147483647, %v7263_v34 }
  0xe7   : > { %v990_v41 = vsel %vm986_vm1, %v974_v11, %v989_v45  ;;  %v999_v50 = vsel %vm985_vm2, %v996_v46, %v998_v60  ;;  %v7308_v62 = vmul.u32.u64.low %v1000_v56, %v995_v47  ;;  %v7309_v0 = vmul.u32.u64.high %v1000_v56, %v995_v47, %v7308_v62 }
  0xe8   : > { %v7313_v1 = vsub.s32 32, %v7290_v24  ;;  %v7317_v14 = vand.u32 31, %v548_v27  ;;  %v1274_v5 = vadd.s32 1, %v6105_v40  ;;  %v6087_v15 = vadd.s32 4294967294, %v812_v6 }
  0xe9   : > { %v7319_v36 = vmul.u32.u64.low %v1000_v56, %v999_v50  ;;  %v7320_v21 = vmul.u32.u64.high %v1000_v56, %v999_v50, %v7319_v36  ;;  %v494_v11 = vmul.f32 %v7126_v33, %v446_v49  ;;  %v916_v28 = vclz %v6090_v58 }
  0xea   : > { %12162 = vst [vmem:[#allocation13_spill] sm:$0xff] %v7313_v1  ;;  %12164 = vst [vmem:[#allocation15_spill] sm:$0xff] %v7317_v14  ;;  %v991_v29 = vsel %vm985_vm2, %v988_v59, %v990_v41  ;;  %v1271_v18 = vand.u32 8388607, %v11928_v20  ;;  %vm1275_vm3 = vcmp.gt.s32.totalorder %v1274_v5, 0  ;;  %v1010_v7 = vadd.s32 1, %v7309_v0 }
  0xeb   : > { %v410_v30 = vadd.f32 %v7124_v32, %v388_v37  ;;  %v1276_v27 = vsel %vm1275_vm3, %v1274_v5, 0  ;;  %v7328_v9 = vmul.f32 30.0, %v509_v44  ;;  %v7332_v35 = vshll.u32 %v11941_v19, %v7290_v24 }
  0xec   : > { %v7336_v40 = vshll.u32 %v11939_v22, %v7290_v24  ;;  %v7339_v61 = vsub.s32 32, %v7317_v14  ;;  %v1278_v31 = vand.u32 31, %v1276_v27  ;;  %vm6088_vm4 = vcmp.lt.s32.totalorder %v6087_v15, 0 }
  0xed   : > { %12165 = vst [vmem:[#allocation16_spill] sm:$0xff] %v7328_v9  ;;  %v1007_v45 = vmul.u32 %v1000_v56, %v991_v29  ;;  %vm1009_vm5 = vc.u32 %v7320_v21, %v7308_v62  ;;  %v510_v37 = vadd.f32 %v494_v11, %v410_v30  ;;  %v6091_v44 = vadd.s32 4294967294, %v916_v28 }
  0xee   : > { %12166 = vst [vmem:[#allocation17_spill] sm:$0xff] %v7339_v61  ;;  %v1011_v46 = vsel %vm1009_vm5, %v1010_v7, %v7309_v0  ;;  %v1272_v6 = vor.u32 8388608, %v1271_v18  ;;  %v1279_v47 = vsub.s32 32, %v1278_v31  ;;  %v1277_v58 = vshrl.u32 %v1276_v27, 5 }
  0xef   : > { %v1012_v51 = vadd.s32 %v1011_v46, %v1007_v45  ;;  %v1281_v59 = vshll.u32 %v11945_v10, %v1278_v31  ;;  %v1059_v60 = vand.u32 2139095040, %v7328_v9  ;;  %v1284_v41 = vshll.u32 %v11934_v12, %v1278_v31 }
  0xf0   : > { %v1282_v49 = vshrl.u32 %v11934_v12, %v1279_v47  ;;  %v1285_v56 = vshrl.u32 %v11932_v16, %v1279_v47  ;;  %v1287_v50 = vshll.u32 %v11932_v16, %v1278_v31  ;;  %v1288_v36 = vshrl.u32 %v11941_v19, %v1279_v47 }
  0xf1   : > { %v1013_v5 = vadd.s32 536870912, %v1012_v51  ;;  %v1290_v0 = vshll.u32 %v11941_v19, %v1278_v31  ;;  %v1291_v11 = vshrl.u32 %v11939_v22, %v1279_v47  ;;  %v1293_v18 = vshll.u32 %v11939_v22, %v1278_v31 }
  0xf2   : > { %v1283_v28 = vor.u32 %v1282_v49, %v1281_v59  ;;  %v1286_v29 = vor.u32 %v1285_v56, %v1284_v41  ;;  %v1294_v7 = vshrl.u32 %v11937_v25, %v1279_v47  ;;  %v1289_v27 = vor.u32 %v1288_v36, %v1287_v50 }
  0xf3   : > { %v7355_v30 = vshrl.u32 %v1013_v5, 30  ;;  %v1292_v45 = vor.u32 %v1291_v11, %v1290_v0  ;;  %v11936_v46 = vand.u32 2147483647, %v7328_v9  ;;  %v7359_v20 = vsel %vm6088_vm4, 0, %v6087_v15 }
  0xf4   : > { %vm6092_vm6 = vcmp.lt.s32.totalorder %v6091_v44, 0  ;;  %v1295_v39 = vor.u32 %v1294_v7, %v1293_v18  ;;  %v1060_v63 = vshrl.u32 %v1059_v60, 23  ;;  %v1280_v59 = vshrl.u32 %v11945_v10, %v1279_v47 }
  0xf5   : > { %12167 = vst [vmem:[#allocation18_spill] sm:$0xff] %v7355_v30  ;;  %v1015_v48 = vshll.u32 %v7355_v30, 30  ;;  %vm1296_vm7 = vcmp.lt.s32.totalorder %v1277_v58, 1  ;;  %v1312_v31 = vshll.u32 %v1272_v6, 8  ;;  %vm1297_vm8 = vcmp.lt.s32.totalorder %v1277_v58, 2 }
  0xf6   : > { %vm1298_vm9 = vcmp.lt.s32.totalorder %v1277_v58, 3  ;;  %vm1299_vm10 = vcmp.lt.s32.totalorder %v1277_v58, 4  ;;  %v1304_v49 = vsel %vm1296_vm7, %v1283_v28, %v1286_v29  ;;  %v1308_v5 = vsel %vm1296_vm7, %v1286_v29, %v1289_v27 }
  0xf7   : > { %v7363_v41 = vsub.s32 %v1012_v51, %v1015_v48  ;;  %v1301_v56 = vsel %vm1299_vm10, %v1289_v27, 2102212464  ;;  %v1305_v50 = vsel %vm1299_vm10, %v1292_v45, 920167782  ;;  %v1300_v15 = vsel %vm1296_vm7, %v1280_v59, %v1283_v28 }
  0xf8   : > { %v1306_v36 = vsel %vm1298_vm9, %v1289_v27, %v1305_v50  ;;  %v1309_v0 = vsel %vm1299_vm10, %v1295_v39, 1326507024  ;;  %v6097_v11 = vadd.s32 4294967169, %v1060_v63  ;;  %v1302_v18 = vsel %vm1298_vm9, %v1286_v29, %v1301_v56 }
  0xf9   : > { %v1018_v60 = vsub.s32 0, %v7363_v41  ;;  %v1307_v47 = vsel %vm1297_vm8, %v1304_v49, %v1306_v36  ;;  %v1310_v7 = vsel %vm1298_vm9, %v1292_v45, %v1309_v0  ;;  %v7368_v6 = vsel %vm6092_vm6, 0, %v6091_v44 }
  0xfa   : > { %v1311_v16 = vsel %vm1297_vm8, %v1308_v5, %v1310_v7  ;;  %v7371_v48 = vmul.u32.u64.low %v1312_v31, %v1307_v47  ;;  %v7372_v51 = vmul.u32.u64.high %v1312_v31, %v1307_v47, %v7371_v48  ;;  %v1066_v39 = vadd.s32 1, %v6097_v11 }
  0xfb   : > { %v7375_v12 = vmul.u32.u64.low %v1312_v31, %v1311_v16  ;;  %v7376_v28 = vmul.u32.u64.high %v1312_v31, %v1311_v16, %v7375_v12  ;;  %v7378_v63 = vmul.f32 30.0, %v510_v37  ;;  %v7382_v29 = vshrl.u32 %v11939_v22, %v7313_v1 }
  0xfc   : > { %12168 = vst [vmem:[#allocation19_spill] sm:$0xff] %v7371_v48  ;;  %v7386_v44 = vshll.u32 %v11941_v19, %v7317_v14  ;;  %v7390_v27 = vshll.u32 %v11939_v22, %v7317_v14  ;;  %v1303_v45 = vsel %vm1297_vm8, %v1300_v15, %v1302_v18  ;;  %v7395_v12 = vshrl.u32 %v11937_v25, %v7313_v1 }
  0xfd   : > { %12169 = vst [vmem:[#allocation20_spill] sm:$0xff] %v7378_v63  ;;  %v816_v16 = vsub.s32 32, %v7359_v20  ;;  %v6094_v37 = vmin.u32 %v1018_v60, %v7363_v41  ;;  %vm1067_vm11 = vcmp.gt.s32.totalorder %v1066_v39, 0  ;;  %v820_v59 = vsub.s32 4294967266, %v7359_v20 }
  0xfe   : > { %v924_v49 = vsub.s32 4294967266, %v7368_v6  ;;  %v1322_v56 = vadd.s32 1, %v7372_v51  ;;  %v1068_v50 = vsel %vm1067_vm11, %v1066_v39, 0  ;;  %v1319_v5 = vmul.u32 %v1312_v31, %v1303_v45 }
  0xff   : > { %vm1321_vm12 = vc.u32 %v7376_v28, %v7371_v48  ;;  %v1063_v58 = vand.u32 8388607, %v11936_v46  ;;  %v1163_v15 = vand.u32 2139095040, %v7378_v63  ;;  %v7409_v36 = vshrl.u32 %v11939_v22, %v7339_v61 }
 0x100   : > { %v800_v0 = vadd.s32 %v7190_v55, %v7187_v54  ;;  %v1323_v11 = vsel %vm1321_vm12, %v1322_v56, %v7372_v51  ;;  %v1070_v60 = vand.u32 31, %v1068_v50  ;;  %v904_v18 = vadd.s32 %v7242_v53, %v7240_v52 }
 0x101   : > { %v1020_v47 = vclz %v6094_v37  ;;  %v7418_v7 = vadd.s32 %v1323_v11, %v1319_v5  ;;  %v821_v45 = vadd.s32 127, %v820_v59  ;;  %v920_v46 = vsub.s32 32, %v7368_v6 }
 0x102   : > { %v818_v39 = vshrl.u32 %v800_v0, %v816_v16  ;;  %v1071_v25 = vsub.s32 32, %v1070_v60  ;;  %v925_v22 = vadd.s32 127, %v924_v49  ;;  %v1064_v19 = vor.u32 8388608, %v1063_v58 }
 0x103   : > { %v1073_v54 = vshll.u32 %v11945_v10, %v1070_v60  ;;  %v1164_v55 = vshrl.u32 %v1163_v15, 23  ;;  %v1325_v51 = vadd.s32 536870912, %v7418_v7  ;;  %v12170_v56 = vmov 2475754826  }
 0x104   : > { %v1074_v31 = vshrl.u32 %v12170_v56, %v1071_v25  ;;  %v1076_v1 = vshll.u32 %v12170_v56, %v1070_v60  ;;  %v12171_v52 = vmov 2131351028   ;;  %v6095_v37 = vadd.s32 4294967294, %v1020_v47 }
 0x105   : > { %v1077_v53 = vshrl.u32 %v12171_v52, %v1071_v25  ;;  %v1069_v5 = vshrl.u32 %v1068_v50, 5  ;;  %v1079_v16 = vshll.u32 %v12171_v52, %v1070_v60  ;;  %v12172_v59 = vmov 2102212464  }
 0x106   : > { %v1080_v0 = vshrl.u32 %v12172_v59, %v1071_v25  ;;  %v1075_v11 = vor.u32 %v1074_v31, %v1073_v54  ;;  %v1082_v58 = vshll.u32 %v12172_v59, %v1070_v60  ;;  %v12173_v10 = vmov 920167782  }
 0x107   : > { %v1078_v49 = vor.u32 %v1077_v53, %v1076_v1  ;;  %v1083_v15 = vshrl.u32 %v12173_v10, %v1071_v25  ;;  %v822_v24 = vshll.u32 %v821_v45, 23  ;;  %v922_v3 = vshrl.u32 %v904_v18, %v920_v46 }
 0x108   : > { %v926_v14 = vshll.u32 %v925_v22, 23  ;;  %v1081_v4 = vor.u32 %v1080_v0, %v1079_v16  ;;  %v7430_v9 = vshrl.u32 %v1325_v51, 30  ;;  %v1085_v47 = vshll.u32 %v12173_v10, %v1070_v60 }
 0x109   : > { %v1084_v34 = vor.u32 %v1083_v15, %v1082_v58  ;;  %v12175_v50 = vmov 1326507024   ;;  %vm1088_vm13 = vcmp.lt.s32.totalorder %v1069_v5, 1  ;;  %vm1091_vm14 = vcmp.lt.s32.totalorder %v1069_v5, 4 }
 0x10a   : > { %12174 = vst [vmem:[#allocation21_spill] sm:$0xff] %v7430_v9  ;;  %v1086_v30 = vshrl.u32 %v12175_v50, %v1071_v25  ;;  %v1104_v48 = vshll.u32 %v1064_v19, 8  ;;  %v6101_v31 = vadd.s32 4294967169, %v1164_v55  ;;  %vm6096_vm15 = vcmp.lt.s32.totalorder %v6095_v37, 0 }
 0x10b   : > { %v1093_v54 = vsel %vm1091_vm14, %v1081_v4, 2102212464  ;;  %v1096_v53 = vsel %vm1088_vm13, %v1075_v11, %v1078_v49  ;;  %v12176_v45 = vmov 683565275   ;;  %vm1089_vm0 = vcmp.lt.s32.totalorder %v1069_v5, 2 }
 0x10c   : > { %v1087_v1 = vor.u32 %v1086_v30, %v1085_v47  ;;  %v1072_v46 = vshrl.u32 %v12176_v45, %v1071_v25  ;;  %vm1090_vm1 = vcmp.lt.s32.totalorder %v1069_v5, 3  ;;  %v1097_v22 = vsel %vm1091_vm14, %v1084_v34, 920167782 }
 0x10d   : > { %v1327_v18 = vshll.u32 %v7430_v9, 30  ;;  %v1098_v51 = vsel %vm1090_vm1, %v1081_v4, %v1097_v22  ;;  %v1100_v60 = vsel %vm1088_vm13, %v1078_v49, %v1081_v4  ;;  %v1094_v19 = vsel %vm1090_vm1, %v1078_v49, %v1093_v54  ;;  %v7448_v9 = vpop.permute.xlu0 %345 }
 0x10e   : > { %v1101_v16 = vsel %vm1091_vm14, %v1087_v1, 1326507024  ;;  %v1092_v0 = vsel %vm1088_vm13, %v1072_v46, %v1075_v11  ;;  %v1099_v55 = vsel %vm1089_vm0, %v1096_v53, %v1098_v51  ;;  %v7441_v58 = vsel %vm6096_vm15, 0, %v6095_v37  ;;  %v341_v53 = vpop.permute.xlu1 %340 }
 0x10f   : > { %v1102_v30 = vsel %vm1090_vm1, %v1084_v34, %v1101_v16  ;;  %v7444_v15 = vmul.u32.u64.low %v1104_v48, %v1099_v55  ;;  %v7445_v47 = vmul.u32.u64.high %v1104_v48, %v1099_v55, %v7444_v15  ;;  %v823_v22 = vor.u32 4788187, %v822_v24 }
 0x110   : > { %v1103_v25 = vsel %vm1089_vm0, %v1100_v60, %v1102_v30  ;;  %v921_v4 = vshll.u32 %v7284_v2, %v7368_v6  ;;  %v927_v1 = vor.u32 4788187, %v926_v14  ;;  %v1095_v34 = vsel %vm1089_vm0, %v1092_v0, %v1094_v19 }
 0x111   : > { %v7452_v11 = vmul.u32.u64.low %v1104_v48, %v1103_v25  ;;  %v7453_v49 = vmul.u32.u64.high %v1104_v48, %v1103_v25, %v7452_v11  ;;  %v11964_v37 = vand.u32 2147483647, %v7378_v63  ;;  %v1170_v54 = vadd.s32 1, %v6101_v31 }
 0x112   : > { %v7459_v46 = vshrl.u32 %v12175_v50, %v7339_v61  ;;  %v12177_v24 = vshll.u32 %v7266_v38, %v7359_v20  ;;  %v1028_v2 = vsub.s32 4294967266, %v7441_v58  ;;  %v7466_v6 = vsub.s32 %v7418_v7, %v1327_v18 }
 0x113   : > { %v7470_v14 = vor.u32 %v7382_v29, %v7332_v35  ;;  %v923_v5 = vor.u32 %v922_v3, %v921_v4  ;;  %v1114_v31 = vadd.s32 1, %v7445_v47  ;;  %vm1171_vm2 = vcmp.gt.s32.totalorder %v1170_v54, 0  ;;  %v454_v35 = vpop.permute.xlu0 %453 }
 0x114   : > { %v819_v51 = vor.u32 %v818_v39, %v12177_v24  ;;  %v824_v60 = vand.u32 2147483647, %v823_v22  ;;  %v1111_v16 = vmul.u32 %v1104_v48, %v1095_v34  ;;  %vm1113_vm3 = vc.u32 %v7453_v49, %v7444_v15 }
 0x115   : > { %12178 = vst [vmem:[#allocation22_spill] sm:$0xff] %v7470_v14  ;;  %v390_v38 = vmul.f32 %v7117_v26, %v341_v53  ;;  %v928_v20 = vand.u32 2147483647, %v927_v1  ;;  %v1115_v39 = vsel %vm1113_vm3, %v1114_v31, %v7445_v47  ;;  %v1167_v7 = vand.u32 8388607, %v11964_v37  ;;  %v7486_v47 = vpop.permute.xlu1 %350 }
 0x116   : > { %v1172_v18 = vsel %vm1171_vm2, %v1170_v54, 0  ;;  %v826_v29 = vcvt.s32.f32 %v819_v51  ;;  %v1029_v3 = vadd.s32 127, %v1028_v2  ;;  %v1330_v0 = vsub.s32 0, %v7466_v6 }
 0x117   : > { %v1116_v19 = vadd.s32 %v1115_v39, %v1111_v16  ;;  %v7484_v55 = vor.u32 %v7409_v36, %v7386_v44  ;;  %v930_v30 = vcvt.s32.f32 %v923_v5  ;;  %v1174_v25 = vand.u32 31, %v1172_v18 }
 0x118   : > { %v7488_v22 = vmul.f32 %v826_v29, %v824_v60  ;;  %v412_v11 = vadd.f32 %v7124_v32, %v390_v38  ;;  %v496_v1 = vmul.f32 %v7126_v33, %v454_v35  ;;  %v1008_v54 = vadd.s32 %v7308_v62, %v7320_v21 }
 0x119   : > { %12179 = vst [vmem:[#allocation23_spill] sm:$0xff] %v7484_v55  ;;  %v1117_v4 = vadd.s32 536870912, %v1116_v19  ;;  %v7492_v34 = vmul.f32 %v930_v30, %v928_v20  ;;  %v1168_v53 = vor.u32 8388608, %v1167_v7  ;;  %v1175_v24 = vsub.s32 32, %v1174_v25 }
 0x11a   : > { %v1024_v44 = vsub.s32 32, %v7441_v58  ;;  %v1030_v36 = vshll.u32 %v1029_v3, 23  ;;  %v6106_v51 = vmin.u32 %v1330_v0, %v7466_v6  ;;  %v1177_v2 = vshll.u32 %v12176_v45, %v1174_v25  ;;  %v356_v3 = vpop.permute.xlu1 %355 }
 0x11b   : > { %v1178_v5 = vshrl.u32 %v12170_v56, %v1175_v24  ;;  %v1180_v31 = vshll.u32 %v12170_v56, %v1174_v25  ;;  %v1181_v60 = vshrl.u32 %v12171_v52, %v1175_v24  ;;  %v1184_v16 = vshrl.u32 %v12172_v59, %v1175_v24 }
 0x11c   : > { %v7503_v38 = vshrl.u32 %v1117_v4, 30  ;;  %v1173_v62 = vshrl.u32 %v1172_v18, 5  ;;  %v1183_v21 = vshll.u32 %v12171_v52, %v1174_v25  ;;  %v512_v20 = vadd.f32 %v496_v1, %v412_v11 }
 0x11d   : > { %v1179_v39 = vor.u32 %v1178_v5, %v1177_v2  ;;  %v1182_v7 = vor.u32 %v1181_v60, %v1180_v31  ;;  %v1186_v35 = vshll.u32 %v12172_v59, %v1174_v25  ;;  %v1187_v29 = vshrl.u32 %v12173_v10, %v1175_v24 }
 0x11e   : > { %vm12016_vm4 = vcmp.lt.s32.totalorder %v7288_v23, 4  ;;  %v1025_v0 = vshll.u32 %v7363_v41, %v7441_v58  ;;  %v1026_v30 = vshrl.u32 %v1008_v54, %v1024_v44  ;;  %v7511_v37 = vor.u32 4788187, %v1030_v36 }
 0x11f   : > { %v1185_v4 = vor.u32 %v1184_v16, %v1183_v21  ;;  %vm12018_vm5 = vcmp.lt.s32.totalorder %v7315_v13, 4  ;;  %v1332_v18 = vclz %v6106_v51  ;;  %v1188_v11 = vor.u32 %v1187_v29, %v1186_v35 }
 0x120   : > { %v1189_v1 = vshll.u32 %v12173_v10, %v1174_v25  ;;  %v1190_v2 = vshrl.u32 %v12175_v50, %v1175_v24  ;;  %v1119_v5 = vshll.u32 %v7503_v38, 30  ;;  %vm1192_vm6 = vcmp.lt.s32.totalorder %v1173_v62, 1 }
 0x121   : > { %v1208_v31 = vshll.u32 %v1168_v53, 8  ;;  %v393_v60 = vmul.f32 %v7117_v26, %v356_v3  ;;  %vm1195_vm7 = vcmp.lt.s32.totalorder %v1173_v62, 4  ;;  %v1200_v41 = vsel %vm1192_vm6, %v1179_v39, %v1182_v7 }
 0x122   : > { %v1191_v48 = vor.u32 %v1190_v2, %v1189_v1  ;;  %v7519_v58 = vmul.f32 30.0, %v512_v20  ;;  %v1176_v54 = vshrl.u32 %v12176_v45, %v1175_v24  ;;  %vm1194_vm8 = vcmp.lt.s32.totalorder %v1173_v62, 3  ;;  %v466_v2 = vpop.permute.xlu0 %465 }
 0x123   : > { %v1197_v44 = vsel %vm1195_vm7, %v1185_v4, 2102212464  ;;  %v1201_v36 = vsel %vm1195_vm7, %v1188_v11, 920167782  ;;  %vm746_vm9 = vcmp.lt.s32.totalorder %v7132_v42, 0  ;;  %vm1193_vm10 = vcmp.lt.s32.totalorder %v1173_v62, 2 }
 0x124   : > { %12180 = vst [vmem:[#allocation24_spill] sm:$0xff] %v7519_v58  ;;  %v1202_v25 = vsel %vm1194_vm8, %v1185_v4, %v1201_v36  ;;  %v1204_v51 = vsel %vm1192_vm6, %v1182_v7, %v1185_v4  ;;  %v1205_v53 = vsel %vm1195_vm7, %v1191_v48, 1326507024  ;;  %vm850_vm11 = vcmp.lt.s32.totalorder %v7134_v43, 0 }
 0x125   : > { %v7525_v16 = vsub.s32 %v1116_v19, %v1119_v5  ;;  %v1196_v21 = vsel %vm1192_vm6, %v1176_v54, %v1179_v39  ;;  %v1203_v20 = vsel %vm1193_vm10, %v1200_v41, %v1202_v25  ;;  %v1206_v35 = vsel %vm1194_vm8, %v1188_v11, %v1205_v53 }
 0x126   : > { %v1198_v24 = vsel %vm1194_vm8, %v1182_v7, %v1197_v44  ;;  %v1207_v29 = vsel %vm1193_vm10, %v1204_v51, %v1206_v35  ;;  %v7530_v3 = vmul.u32.u64.low %v1208_v31, %v1203_v20  ;;  %v7531_v1 = vmul.u32.u64.high %v1208_v31, %v1203_v20, %v7530_v3 }
 0x127   : > { %v12181_v4 = vand.u32 2147483647, %v7132_v42  ;;  %v12182_v48 = vmov 0  ;;  %v1027_v19 = vor.u32 %v1026_v30, %v1025_v0  ;;  %v6107_v5 = vadd.s32 4294967294, %v1332_v18 }
 0x128   : > { %v7540_v39 = vmul.u32.u64.low %v1208_v31, %v1207_v29  ;;  %v7541_v54 = vmul.u32.u64.high %v1208_v31, %v1207_v29, %v7540_v39  ;;  %v7546_v7 = vsel %vm12016_vm4, %v7470_v14, 920167782  ;;  %v567_v11 = vor.u32 %v7459_v46, %v7390_v27 }
 0x129   : > { %vm7536_vm12 = vcmp.le.f32.partialorder %v12181_v4, 0.7853982  ;;  %12185 = vst [vmem:[#allocation26_spill] sm:$0xff] %v7546_v7  ;;  %v828_v41 = vxor.u32 2147483648, %v7488_v22  ;;  %v12186_v44 = vand.u32 2147483647, %v7134_v43  ;;  %v415_v0 = vadd.f32 %v7124_v32, %v393_v60 }
 0x12a   : > { %v12183_v48 = vsel %vm7536_vm12, 4294967295, %v12182_v48  ;;  %v12187_v36 = vmov 0  ;;  %v1032_v30 = vand.u32 2147483647, %v7511_v37  ;;  %v1199_v18 = vsel %vm1193_vm10, %v1196_v21, %v1198_v24 }
 0x12b   : > { %12184 = vst [vmem:[#allocation25_spill] sm:$0xff] %v12183_v48  ;;  %vm7553_vm13 = vcmp.le.f32.partialorder %v12186_v44, 0.7853982  ;;  %v1371_v25 = vand.u32 2139095040, %v7519_v58  ;;  %v499_v51 = vmul.f32 %v7126_v33, %v466_v2  ;;  %v12190_v27 = vor.u32 %v7395_v12, %v7336_v40 }
 0x12c   : > { %v12188_v36 = vsel %vm7553_vm13, 4294967295, %v12187_v36  ;;  %v932_v53 = vxor.u32 2147483648, %v7492_v34  ;;  %v1122_v20 = vsub.s32 0, %v7525_v16  ;;  %v1218_v32 = vadd.s32 1, %v7531_v1 }
 0x12d   : > { %12189 = vst [vmem:[#allocation27_spill] sm:$0xff] %v12188_v36  ;;  %v7567_v46 = vsel %vm12016_vm4, %v12190_v27, 1326507024  ;;  %v7575_v37 = vsel %vm12018_vm5, %v7484_v55, 920167782  ;;  %v830_v62 = vsub.s32 4, %v7258_v17  ;;  %v1034_v60 = vcvt.s32.f32 %v1027_v19 }
 0x12e   : > { %12191 = vst [vmem:[#allocation28_spill] sm:$0xff] %v7567_v46  ;;  %12192 = vst [vmem:[#allocation29_spill] sm:$0xff] %v7575_v37  ;;  %vm6108_vm14 = vcmp.lt.s32.totalorder %v6107_v5, 0  ;;  %v1215_v40 = vmul.u32 %v1208_v31, %v1199_v18  ;;  %vm1217_vm15 = vc.u32 %v7541_v54, %v7530_v3  ;;  %v1372_v12 = vshrl.u32 %v1371_v25, 23 }
 0x12f   : > { %v515_v21 = vadd.f32 %v499_v51, %v415_v0  ;;  %v7582_v35 = vsel %vm12018_vm5, %v567_v11, 1326507024  ;;  %v829_v24 = vsel %vm746_vm9, %v828_v41, %v7488_v22  ;;  %v1035_v29 = vmul.f32 %v1034_v60, %v1032_v30 }
 0x130   : > { %12193 = vst [vmem:[#allocation30_spill] sm:$0xff] %v7582_v35  ;;  %v1219_v2 = vsel %vm1217_vm15, %v1218_v32, %v7531_v1  ;;  %v933_v31 = vsel %vm850_vm11, %v932_v53, %v7492_v34  ;;  %v6098_v4 = vmin.u32 %v1122_v20, %v7525_v16  ;;  %v6109_v39 = vadd.s32 4294967169, %v1372_v12 }
 0x131   : > { %v1220_v19 = vadd.s32 %v1219_v2, %v1215_v40  ;;  %v7595_v11 = vsel %vm746_vm9, %v830_v62, %v7258_v17  ;;  %v7597_v44 = vsel %vm6108_vm14, 0, %v6107_v5  ;;  %v11965_v22 = vand.u32 2147483647, %v7519_v58  ;;  %v12196_v62 = vld [vmem:[#allocation19_spill] sm:$0xff] }
 0x132   : > { %12194 = vst [vmem:[#allocation31_spill] sm:$0xff] %v7595_v11  ;;  %v7600_v41 = vmul.f32 30.0, %v515_v21  ;;  %v832_v1 = vsel %vm7536_vm12, %v7132_v42, %v829_v24  ;;  %vm954_vm0 = vcmp.lt.s32.totalorder %v7246_v57, 0  ;;  %v1378_v0 = vadd.s32 1, %v6109_v39  ;;  %v7634_v24 = vld [vmem:[%s11922_s2] ss:$0 sm:$0xff] }
 0x133   : > { %v1221_v34 = vadd.s32 536870912, %v1220_v19  ;;  %v934_v30 = vsub.s32 4, %v7261_v8  ;;  %v7610_v17 = vsel %vm7553_vm13, %v7134_v43, %v933_v31  ;;  %v1036_v5 = vxor.u32 2147483648, %v1035_v29 }
 0x134   : > { %12195 = vst [vmem:[#allocation32_spill] sm:$0xff] %v7600_v41  ;;  %v391_v18 = vmul.f32 %v7117_v26, %v7448_v9  ;;  %v1336_v25 = vsub.s32 32, %v7597_v44  ;;  %v1124_v51 = vclz %v6098_v4  ;;  %vm1379_vm1 = vcmp.gt.s32.totalorder %v1378_v0, 0 }
 0x135   : > { %v7615_v27 = vshrl.u32 %v1221_v34, 30  ;;  %6723 = vcosq.f32 %v832_v1  ;;  %v1375_v53 = vand.u32 8388607, %v11965_v22  ;;  %v1380_v20 = vsel %vm1379_vm1, %v1378_v0, 0 }
 0x136   : > { %v1683_v32 = vand.u32 2139095040, %v7600_v41  ;;  %6725 = vsinq.f32 %v832_v1  ;;  %v1320_v60 = vadd.s32 %v12196_v62, %v7376_v28  ;;  %v1382_v9 = vand.u32 31, %v1380_v20 }
 0x137   : > { %v1223_v40 = vshll.u32 %v7615_v27, 30  ;;  %v7626_v12 = vsel %vm850_vm11, %v934_v30, %v7261_v8  ;;  %6727 = vcosq.f32 %v7610_v17  ;;  %v1037_v21 = vsel %vm954_vm0, %v1036_v5, %v1035_v29 }
 0x138   : > { %12197 = vst [vmem:[#allocation19_spill] sm:$0xff] %v7626_v12  ;;  %v413_v28 = vadd.f32 %v7634_v24, %v391_v18  ;;  %v1338_v2 = vshrl.u32 %v1320_v60, %v1336_v25  ;;  %v1340_v31 = vsub.s32 4294967266, %v7597_v44  ;;  %v6099_v4 = vadd.s32 4294967294, %v1124_v51  ;;  %v458_v60 = vpop.permute.xlu1 %457 }
 0x139   : > { %v1383_v39 = vsub.s32 32, %v1382_v9  ;;  %v7638_v1 = vsub.s32 %v1220_v19, %v1223_v40  ;;  %v1376_v8 = vor.u32 8388608, %v1375_v53  ;;  %v1381_v34 = vshrl.u32 %v1380_v20, 5 }
 0x13a   : > { %v1684_v0 = vshrl.u32 %v1683_v32, 23  ;;  %v1385_v30 = vshll.u32 %v12176_v45, %v1382_v9  ;;  %v1388_v5 = vshll.u32 %v12170_v56, %v1382_v9  ;;  %v1391_v18 = vshll.u32 %v12171_v52, %v1382_v9 }
 0x13b   : > { %v1386_v29 = vshrl.u32 %v12170_v56, %v1383_v39  ;;  %v1389_v62 = vshrl.u32 %v12171_v52, %v1383_v39  ;;  %v1392_v25 = vshrl.u32 %v12172_v59, %v1383_v39  ;;  %v1394_v51 = vshll.u32 %v12172_v59, %v1382_v9 }
 0x13c   : > { %v1395_v19 = vshrl.u32 %v12173_v10, %v1383_v39  ;;  %v12198_v53 = vand.u32 2147483647, %v7246_v57  ;;  %v12199_v20 = vmov 0  ;;  %v1341_v32 = vadd.s32 127, %v1340_v31 }
 0x13d   : > { %vm6100_vm3 = vcmp.lt.s32.totalorder %v6099_v4, 0  ;;  %v1387_v40 = vor.u32 %v1386_v29, %v1385_v30  ;;  %v1390_v22 = vor.u32 %v1389_v62, %v1388_v5  ;;  %v1393_v43 = vor.u32 %v1392_v25, %v1391_v18 }
 0x13e   : > { %vm7650_vm2 = vcmp.le.f32.partialorder %v12198_v53, 0.7853982  ;;  %v1396_v42 = vor.u32 %v1395_v19, %v1394_v51  ;;  %v1397_v36 = vshll.u32 %v12173_v10, %v1382_v9  ;;  %v1398_v12 = vshrl.u32 %v12175_v50, %v1383_v39 }
 0x13f   : > { %v12200_v20 = vsel %vm7650_vm2, 4294967295, %v12199_v20  ;;  %v1226_v48 = vsub.s32 0, %v7638_v1  ;;  %v1416_v11 = vshll.u32 %v1376_v8, 8  ;;  %v6121_v14 = vadd.s32 4294967169, %v1684_v0  ;;  %v7658_v53 = vpop.eup %6723 }
 0x140   : > { %12201 = vst [vmem:[#allocation33_spill] sm:$0xff] %v12200_v20  ;;  %v497_v46 = vmul.f32 %v7126_v33, %v458_v60  ;;  %12202 = vst [vmem:[#allocation34_spill] sm:$0xff] %v7658_v53  ;;  %v1384_v7 = vshrl.u32 %v12176_v45, %v1383_v39  ;;  %v1399_v31 = vor.u32 %v1398_v12, %v1397_v36  ;;  %vm1400_vm6 = vcmp.lt.s32.totalorder %v1381_v34, 1  ;;  %v7661_v30 = vpop.eup %6725 }
 0x141   : > { %vm1403_vm7 = vcmp.lt.s32.totalorder %v1381_v34, 4  ;;  %12203 = vst [vmem:[#allocation35_spill] sm:$0xff] %v7661_v30  ;;  %vm1402_vm8 = vcmp.lt.s32.totalorder %v1381_v34, 3  ;;  %v1408_v9 = vsel %vm1400_vm6, %v1387_v40, %v1390_v22  ;;  %v7663_v62 = vpop.eup %6727  ;;  %vm1401_vm9 = vcmp.lt.s32.totalorder %v1381_v34, 2  ;;  %v12205_v30 = vld [vmem:[#allocation18_spill] sm:$0xff] }
 0x142   : > { %v1405_v29 = vsel %vm1403_vm7, %v1393_v43, 2102212464  ;;  %v1409_v5 = vsel %vm1403_vm7, %v1396_v42, 920167782  ;;  %12204 = vst [vmem:[#allocation36_spill] sm:$0xff] %v7663_v62  ;;  %v1412_v0 = vsel %vm1400_vm6, %v1390_v22, %v1393_v43  ;;  %v1404_v25 = vsel %vm1400_vm6, %v1384_v7, %v1387_v40 }
 0x143   : > { %v1410_v8 = vsel %vm1402_vm8, %v1393_v43, %v1409_v5  ;;  %v1413_v18 = vsel %vm1403_vm7, %v1399_v31, 1326507024  ;;  %v513_v39 = vadd.f32 %v497_v46, %v413_v28  ;;  %v1406_v36 = vsel %vm1402_vm8, %v1390_v22, %v1405_v29 }
 0x144   : > { %v1411_v51 = vsel %vm1401_vm9, %v1408_v9, %v1410_v8  ;;  %v1414_v19 = vsel %vm1402_vm8, %v1396_v42, %v1413_v18  ;;  %6729 = vsinq.f32 %v7610_v17  ;;  %v1337_v43 = vshll.u32 %v7466_v6, %v7597_v44 }
 0x145   : > { %v1415_v12 = vsel %vm1401_vm9, %v1412_v0, %v1414_v19  ;;  %v7667_v60 = vmul.u32.u64.low %v1416_v11, %v1411_v51  ;;  %v7668_v53 = vmul.u32.u64.high %v1416_v11, %v1411_v51, %v7667_v60  ;;  %v6102_v7 = vmin.u32 %v1226_v48, %v7638_v1 }
 0x146   : > { %v7679_v42 = vsel %vm7650_vm2, %v7246_v57, %v1037_v21  ;;  %v7681_v46 = vmul.u32.u64.low %v1416_v11, %v1415_v12  ;;  %v7682_v22 = vmul.u32.u64.high %v1416_v11, %v1415_v12, %v7681_v46  ;;  %v1690_v28 = vadd.s32 1, %v6121_v14 }
 0x147   : > { %v7684_v40 = vor.u32 %v1338_v2, %v1337_v43  ;;  %v1342_v31 = vshll.u32 %v1341_v32, 23  ;;  %v7687_v17 = vsel %vm6100_vm3, 0, %v6099_v4  ;;  %v1407_v29 = vsel %vm1401_vm9, %v1404_v25, %v1406_v36 }
 0x148   : > { %v1426_v6 = vadd.s32 1, %v7668_v53  ;;  %v11975_v48 = vand.u32 2147483647, %v7600_v41  ;;  %vm1691_vm10 = vcmp.gt.s32.totalorder %v1690_v28, 0  ;;  %v7692_v44 = vmul.f32 30.0, %v513_v39 }
 0x149   : > { %6731 = vcosq.f32 %v7679_v42  ;;  %v1228_v21 = vclz %v6102_v7  ;;  %v7697_v14 = vmul.f32 %v7117_v26, %v7486_v47  ;;  %v1692_v2 = vsel %vm1691_vm10, %v1690_v28, 0 }
 0x14a   : > { %12206 = vst [vmem:[#allocation18_spill] sm:$0xff] %v7692_v44  ;;  %v7701_v4 = vadd.s32 %v7444_v15, %v7453_v49  ;;  %v1423_v34 = vmul.u32 %v1416_v11, %v1407_v29  ;;  %vm1425_vm11 = vc.u32 %v7682_v22, %v7667_v60  ;;  %v1694_v32 = vand.u32 31, %v1692_v2 }
 0x14b   : > { %v7705_v9 = vor.u32 4788187, %v1342_v31  ;;  %v1132_v8 = vsub.s32 4294967266, %v7687_v17  ;;  %v1427_v0 = vsel %vm1425_vm11, %v1426_v6, %v7668_v53  ;;  %v1687_v18 = vand.u32 8388607, %v11975_v48 }
 0x14c   : > { %v1428_v47 = vadd.s32 %v1427_v0, %v1423_v34  ;;  %v1695_v25 = vsub.s32 32, %v1694_v32  ;;  %v1475_v15 = vand.u32 2139095040, %v7692_v44  ;;  %v6103_v49 = vadd.s32 4294967294, %v1228_v21  ;;  %v462_v34 = vpop.permute.xlu1 %461  ;;  %v6719_v0 = vld [vmem:[%s11923_s3] sm:$0xff]  }
 0x14d   : > { %v7713_v11 = vshrl.u32 %v1692_v2, 5  ;;  %v1697_v51 = vshll.u32 %v12176_v45, %v1694_v32  ;;  %v1700_v19 = vshll.u32 %v12170_v56, %v1694_v32  ;;  %v1703_v53 = vshll.u32 %v12171_v52, %v1694_v32  ;;  %6354 = vmatprep.subr.bf16.mxu1 %v6719_v0 }
 0x14e   : > { %v1429_v39 = vadd.s32 536870912, %v1428_v47  ;;  %v1698_v36 = vshrl.u32 %v12170_v56, %v1695_v25  ;;  %v1701_v12 = vshrl.u32 %v12171_v52, %v1695_v25  ;;  %v7720_v43 = vpop.eup %6729  ;;  %v1704_v7 = vshrl.u32 %v12172_v59, %v1695_v25  ;;  %6355 = vmatpush3.bf16.msra.mxu1 %v6719_v0 }
 0x14f   : > { %12207 = vst [vmem:[#allocation37_spill] sm:$0xff] %v7720_v43  ;;  %v1706_v46 = vshll.u32 %v12172_v59, %v1694_v32  ;;  %v1707_v28 = vshrl.u32 %v12173_v10, %v1695_v25  ;;  %v1710_v31 = vshrl.u32 %v12175_v50, %v1695_v25  ;;  %v1476_v2 = vshrl.u32 %v1475_v15, 23 }
 0x150   : > { %v7726_v29 = vshrl.u32 %v1429_v39, 30  ;;  %v1699_v6 = vor.u32 %v1698_v36, %v1697_v51  ;;  %v1702_v21 = vor.u32 %v1701_v12, %v1700_v19  ;;  %vm6104_vm14 = vcmp.lt.s32.totalorder %v6103_v49, 0 }
 0x151   : > { %v1705_v48 = vor.u32 %v1704_v7, %v1703_v53  ;;  %v1708_v62 = vor.u32 %v1707_v28, %v1706_v46  ;;  %v1709_v5 = vshll.u32 %v12173_v10, %v1694_v32  ;;  %v1344_v43 = vand.u32 2147483647, %v7705_v9 }
 0x152   : > { %v1128_v20 = vsub.s32 32, %v7687_v17  ;;  %v1133_v23 = vadd.s32 127, %v1132_v8  ;;  %v1688_v39 = vor.u32 8388608, %v1687_v18  ;;  %v1431_v15 = vshll.u32 %v7726_v29, 30  ;;  %v6720_v8 = vld [vmem:[%s11923_s3 + $0x8] sm:$0xff]  }
 0x153   : > { %v7734_v51 = vpop.eup %6731  ;;  %v1711_v19 = vor.u32 %v1710_v31, %v1709_v5  ;;  %vm1712_vm15 = vcmp.lt.s32.totalorder %v7713_v11, 1  ;;  %v498_v36 = vmul.f32 %v7126_v33, %v462_v34  ;;  %v7739_v12 = vsel %vm6104_vm14, 0, %v6103_v49  ;;  %6356 = vmatprep.subr.bf16.mxu1 %v6720_v8 }
 0x154   : > { %12208 = vst [vmem:[#allocation38_spill] sm:$0xff] %v7734_v51  ;;  %vm1715_vm1 = vcmp.lt.s32.totalorder %v7713_v11, 4  ;;  %v1720_v32 = vsel %vm1712_vm15, %v1699_v6, %v1702_v21  ;;  %v6113_v9 = vadd.s32 4294967169, %v1476_v2  ;;  %v1696_v18 = vshrl.u32 %v12176_v45, %v1695_v25  ;;  %6357 = vmatpush3.bf16.msra.mxu1 %v6720_v8 }
 0x155   : > { %vm1714_vm3 = vcmp.lt.s32.totalorder %v7713_v11, 3  ;;  %v1717_v5 = vsel %vm1715_vm1, %v1705_v48, 2102212464  ;;  %v1721_v49 = vsel %vm1715_vm1, %v1708_v62, 920167782  ;;  %vm1713_vm6 = vcmp.lt.s32.totalorder %v7713_v11, 2 }
 0x156   : > { %v1722_v53 = vsel %vm1714_vm3, %v1705_v48, %v1721_v49  ;;  %v1724_v7 = vsel %vm1712_vm15, %v1702_v21, %v1705_v48  ;;  %v1728_v46 = vshll.u32 %v1688_v39, 8  ;;  %v7756_v28 = vsub.s32 %v1428_v47, %v1431_v15 }
 0x157   : > { %v1716_v25 = vsel %vm1712_vm15, %v1696_v18, %v1699_v6  ;;  %v1723_v31 = vsel %vm1713_vm6, %v1720_v32, %v1722_v53  ;;  %v1725_v2 = vsel %vm1715_vm1, %v1711_v19, 1326507024  ;;  %v1718_v34 = vsel %vm1714_vm3, %v1702_v21, %v1717_v5 }
 0x158   : > { %v1726_v0 = vsel %vm1714_vm3, %v1708_v62, %v1725_v2  ;;  %v7764_v49 = vmul.u32.u64.low %v1728_v46, %v1723_v31  ;;  %v7765_v51 = vmul.u32.u64.high %v1728_v46, %v1723_v31, %v7764_v49  ;;  %v1236_v48 = vsub.s32 4294967266, %v7739_v12 }
 0x159   : > { %v414_v47 = vadd.f32 %v7634_v24, %v7697_v14  ;;  %v1727_v6 = vsel %vm1713_vm6, %v1724_v7, %v1726_v0  ;;  %v1482_v39 = vadd.s32 1, %v6113_v9  ;;  %v12209_v15 = vcvt.s32.f32 %v7684_v40 }
 0x15a   : > { %v7777_v19 = vmul.u32.u64.low %v1728_v46, %v1727_v6  ;;  %v7778_v21 = vmul.u32.u64.high %v1728_v46, %v1727_v6, %v7777_v19  ;;  %v11981_v62 = vand.u32 2147483647, %v7692_v44  ;;  %v1434_v8 = vsub.s32 0, %v7756_v28 }
 0x15b   : > { %v7775_v32 = vmul.f32 %v12209_v15, %v1344_v43  ;;  %v1719_v18 = vsel %vm1713_vm6, %v1716_v25, %v1718_v34  ;;  %vm1483_vm7 = vcmp.gt.s32.totalorder %v1482_v39, 0  ;;  %v514_v14 = vadd.f32 %v498_v36, %v414_v47 }
 0x15c   : > { %v1130_v5 = vshrl.u32 %v7701_v4, %v1128_v20  ;;  %v1134_v53 = vshll.u32 %v1133_v23, 23  ;;  %v1738_v9 = vadd.s32 1, %v7765_v51  ;;  %v1484_v40 = vsel %vm1483_vm7, %v1482_v39, 0 }
 0x15d   : > { %v1129_v43 = vshll.u32 %v7525_v16, %v7687_v17  ;;  %v1232_v7 = vsub.s32 32, %v7739_v12  ;;  %v1237_v31 = vadd.s32 127, %v1236_v48  ;;  %v1486_v2 = vand.u32 31, %v1484_v40 }
 0x15e   : > { %v1216_v0 = vadd.s32 %v7530_v3, %v7541_v54  ;;  %v1735_v11 = vmul.u32 %v1728_v46, %v1719_v18  ;;  %vm1737_vm8 = vc.u32 %v7778_v21, %v7764_v49  ;;  %v1479_v23 = vand.u32 8388607, %v11981_v62 }
 0x15f   : > { %v6110_v20 = vmin.u32 %v1434_v8, %v7756_v28  ;;  %v1739_v4 = vsel %vm1737_vm8, %v1738_v9, %v7765_v51  ;;  %v1487_v36 = vsub.s32 32, %v1486_v2  ;;  %v7797_v16 = vmul.f32 30.0, %v514_v14 }
 0x160   : > { %v1131_v17 = vor.u32 %v1130_v5, %v1129_v43  ;;  %v1135_v25 = vor.u32 4788187, %v1134_v53  ;;  %v1233_v34 = vshll.u32 %v7638_v1, %v7739_v12  ;;  %v1740_v3 = vadd.s32 %v1739_v4, %v1735_v11 }
 0x161   : > { %12210 = vst [vmem:[#allocation39_spill] sm:$0xff] %v7797_v16  ;;  %v1234_v54 = vshrl.u32 %v1216_v0, %v1232_v7  ;;  %v1238_v46 = vshll.u32 %v1237_v31, 23  ;;  %v1490_v48 = vshrl.u32 %v12170_v56, %v1487_v36  ;;  %v1493_v47 = vshrl.u32 %v12171_v52, %v1487_v36 }
 0x162   : > { %v1741_v6 = vadd.s32 536870912, %v1740_v3  ;;  %v1480_v39 = vor.u32 8388608, %v1479_v23  ;;  %v1489_v15 = vshll.u32 %v12176_v45, %v1486_v2  ;;  %v1492_v51 = vshll.u32 %v12170_v56, %v1486_v2 }
 0x163   : > { %v1436_v19 = vclz %v6110_v20  ;;  %v1495_v8 = vshll.u32 %v12171_v52, %v1486_v2  ;;  %v1496_v18 = vshrl.u32 %v12172_v59, %v1487_v36  ;;  %v1579_v1 = vand.u32 2139095040, %v7797_v16 }
 0x164   : > { %v1485_v12 = vshrl.u32 %v1484_v40, 5  ;;  %v1491_v14 = vor.u32 %v1490_v48, %v1489_v15  ;;  %v1494_v5 = vor.u32 %v1493_v47, %v1492_v51  ;;  %v1499_v53 = vshrl.u32 %v12173_v10, %v1487_v36 }
 0x165   : > { %v1497_v9 = vor.u32 %v1496_v18, %v1495_v8  ;;  %v1498_v43 = vshll.u32 %v12172_v59, %v1486_v2  ;;  %v1501_v7 = vshll.u32 %v12173_v10, %v1486_v2  ;;  %v1502_v31 = vshrl.u32 %v12175_v50, %v1487_v36  ;;  %v12211_v8 = vld [vmem:[#allocation10_spill] sm:$0xff] }
 0x166   : > { %v1136_v0 = vand.u32 2147483647, %v1135_v25  ;;  %v1138_v11 = vcvt.s32.f32 %v1131_v17  ;;  %v1235_v23 = vor.u32 %v1234_v54, %v1233_v34  ;;  %v7812_v20 = vshrl.u32 %v1741_v6, 30 }
 0x167   : > { %v1239_v4 = vor.u32 4788187, %v1238_v46  ;;  %v6111_v62 = vadd.s32 4294967294, %v1436_v19  ;;  %v1500_v55 = vor.u32 %v1499_v53, %v1498_v43  ;;  %v1503_v40 = vor.u32 %v1502_v31, %v1501_v7 }
 0x168   : > { %vm1504_vm9 = vcmp.lt.s32.totalorder %v1485_v12, 1  ;;  %vm1507_vm10 = vcmp.lt.s32.totalorder %v1485_v12, 4  ;;  %v1520_v48 = vshll.u32 %v1480_v39, 8  ;;  %v1580_v47 = vshrl.u32 %v1579_v1, 23 }
 0x169   : > { %vm1506_vm11 = vcmp.lt.s32.totalorder %v1485_v12, 3  ;;  %v1509_v15 = vsel %vm1507_vm10, %v1497_v9, 2102212464  ;;  %v1512_v51 = vsel %vm1504_vm9, %v1491_v14, %v1494_v5  ;;  %v1513_v2 = vsel %vm1507_vm10, %v1500_v55, 920167782 }
 0x16a   : > { %vm12007_vm14 = vcmp.lt.s32.totalorder %v12211_v8, 0  ;;  %v1743_v17 = vshll.u32 %v7812_v20, 30  ;;  %v1488_v25 = vshrl.u32 %v12176_v45, %v1487_v36  ;;  %vm1505_vm15 = vcmp.lt.s32.totalorder %v1485_v12, 2 }
 0x16b   : > { %v1514_v34 = vsel %vm1506_vm11, %v1497_v9, %v1513_v2  ;;  %vm6112_vm1 = vcmp.lt.s32.totalorder %v6111_v62, 0  ;;  %v1516_v46 = vsel %vm1504_vm9, %v1494_v5, %v1497_v9  ;;  %v1517_v6 = vsel %vm1507_vm10, %v1503_v40, 1326507024 }
 0x16c   : > { %v1515_v54 = vsel %vm1505_vm15, %v1512_v51, %v1514_v34  ;;  %v1508_v39 = vsel %vm1504_vm9, %v1488_v25, %v1491_v14  ;;  %v1510_v19 = vsel %vm1506_vm11, %v1494_v5, %v1509_v15  ;;  %v1518_v18 = vsel %vm1506_vm11, %v1500_v55, %v1517_v6 }
 0x16d   : > { %v11983_v1 = vand.u32 2147483647, %v7797_v16  ;;  %v1519_v53 = vsel %vm1505_vm15, %v1516_v46, %v1518_v18  ;;  %v7823_v43 = vmul.u32.u64.low %v1520_v48, %v1515_v54  ;;  %v7824_v7 = vmul.u32.u64.high %v1520_v48, %v1515_v54, %v7823_v43  ;;  %v7860_v46 = vpop.permute.xlu0 %365 }
 0x16e   : > { %v6117_v36 = vadd.s32 4294967169, %v1580_v47  ;;  %v7827_v31 = vsel %vm6112_vm1, 0, %v6111_v62  ;;  %v7829_v2 = vsub.s32 %v1740_v3, %v1743_v17  ;;  %v1348_v14 = vxor.u32 2147483648, %v7775_v32 }
 0x16f   : > { %v7831_v51 = vmul.u32.u64.low %v1520_v48, %v1519_v53  ;;  %v7832_v9 = vmul.u32.u64.high %v1520_v48, %v1519_v53, %v7831_v51  ;;  %v7835_v5 = vmul.f32 %v1138_v11, %v1136_v0  ;;  %v1511_v55 = vsel %vm1505_vm15, %v1508_v39, %v1510_v19  ;;  %v361_v0 = vpop.permute.xlu1 %360 }
 0x170   : > { %v1586_v40 = vadd.s32 1, %v6117_v36  ;;  %v12212_v15 = vsub.s32 4, %v12205_v30  ;;  %6733 = vsinq.f32 %v7679_v42  ;;  %v1240_v62 = vand.u32 2147483647, %v1239_v4 }
 0x171   : > { %v1242_v3 = vcvt.s32.f32 %v1235_v23  ;;  %v1444_v17 = vsub.s32 4294967266, %v7827_v31  ;;  %v1530_v25 = vadd.s32 1, %v7824_v7  ;;  %v1583_v12 = vand.u32 8388607, %v11983_v1 }
 0x172   : > { %v7843_v47 = vsel %vm954_vm0, %v12212_v15, %v12205_v30  ;;  %vm1587_vm3 = vcmp.gt.s32.totalorder %v1586_v40, 0  ;;  %v1746_v11 = vsub.s32 0, %v7829_v2  ;;  %v1527_v34 = vmul.u32 %v1520_v48, %v1511_v55 }
 0x173   : > { %12213 = vst [vmem:[#allocation40_spill] sm:$0xff] %v7843_v47  ;;  %vm1529_vm0 = vc.u32 %v7832_v9, %v7823_v43  ;;  %v1588_v30 = vsel %vm1587_vm3, %v1586_v40, 0  ;;  %v7856_v42 = vsel %vm12007_vm14, %v1348_v14, %v7775_v32  ;;  %v7862_v6 = vmul.f32 %v1242_v3, %v1240_v62  ;;  %v470_v32 = vpop.permute.xlu0 %469 }
 0x174   : > { %v1531_v4 = vsel %vm1529_vm0, %v1530_v25, %v7824_v7  ;;  %v1590_v54 = vand.u32 31, %v1588_v30  ;;  %v1424_v48 = vadd.s32 %v7667_v60, %v7682_v22  ;;  %v394_v19 = vmul.f32 %v7117_v26, %v361_v0 }
 0x175   : > { %v1532_v39 = vadd.s32 %v1531_v4, %v1527_v34  ;;  %v1440_v18 = vsub.s32 32, %v7827_v31  ;;  %v1445_v53 = vadd.s32 127, %v1444_v17  ;;  %v6122_v7 = vmin.u32 %v1746_v11, %v7829_v2 }
 0x176   : > { %v1591_v36 = vsub.s32 32, %v1590_v54  ;;  %v1584_v14 = vor.u32 8388608, %v1583_v12  ;;  %v1593_v55 = vshll.u32 %v12176_v45, %v1590_v54  ;;  %v1596_v60 = vshll.u32 %v12170_v56, %v1590_v54 }
 0x177   : > { %v1533_v51 = vadd.s32 536870912, %v1532_v39  ;;  %v1589_v3 = vshrl.u32 %v1588_v30, 5  ;;  %v1599_v17 = vshll.u32 %v12171_v52, %v1590_v54  ;;  %v12214_v0 = vand.u32 2147483647, %v12211_v8 }
 0x178   : > { %v1594_v40 = vshrl.u32 %v12170_v56, %v1591_v36  ;;  %v1597_v22 = vshrl.u32 %v12171_v52, %v1591_v36  ;;  %v1600_v15 = vshrl.u32 %v12172_v59, %v1591_v36  ;;  %v1603_v25 = vshrl.u32 %v12173_v10, %v1591_v36 }
 0x179   : > { %v7876_v62 = vshrl.u32 %v1533_v51, 30  ;;  %vm7882_vm6 = vcmp.le.f32.partialorder %v12214_v0, 0.7853982  ;;  %v12215_v12 = vmov 0  ;;  %v1442_v11 = vshrl.u32 %v1424_v48, %v1440_v18  ;;  %v12219_v51 = vld [vmem:[#allocation16_spill] sm:$0xff]  ;;  %v7894_v18 = vpop.permute.xlu1 %370 }
 0x17a   : > { %v12216_v12 = vsel %vm7882_vm6, 4294967295, %v12215_v12  ;;  %v1595_v34 = vor.u32 %v1594_v40, %v1593_v55  ;;  %v1598_v4 = vor.u32 %v1597_v22, %v1596_v60  ;;  %v1602_v1 = vshll.u32 %v12172_v59, %v1590_v54  ;;  %v7887_v23 = vpop.eup %6733 }
 0x17b   : > { %12217 = vst [vmem:[#allocation41_spill] sm:$0xff] %v12216_v12  ;;  %12218 = vst [vmem:[#allocation42_spill] sm:$0xff] %v7887_v23  ;;  %vm1058_vm7 = vcmp.lt.s32.totalorder %v12219_v51, 0  ;;  %v1446_v30 = vshll.u32 %v1445_v53, 23  ;;  %v1748_v57 = vclz %v6122_v7  ;;  %v1535_v47 = vshll.u32 %v7876_v62, 30 }
 0x17c   : > { %v1601_v35 = vor.u32 %v1600_v15, %v1599_v17  ;;  %v1604_v37 = vor.u32 %v1603_v25, %v1602_v1  ;;  %v1605_v0 = vshll.u32 %v12173_v10, %v1590_v54  ;;  %v1606_v13 = vshrl.u32 %v12175_v50, %v1591_v36 }
 0x17d   : > { %v416_v48 = vadd.f32 %v7634_v24, %v394_v19  ;;  %v7896_v55 = vsub.s32 %v1532_v39, %v1535_v47  ;;  %vm1608_vm8 = vcmp.lt.s32.totalorder %v1589_v3, 1  ;;  %v1624_v40 = vshll.u32 %v1584_v14, 8  ;;  %v376_v16 = vpop.permute.xlu1 %375 }
 0x17e   : > { %v500_v60 = vmul.f32 %v7126_v33, %v470_v32  ;;  %v1592_v53 = vshrl.u32 %v12176_v45, %v1591_v36  ;;  %v1607_v7 = vor.u32 %v1606_v13, %v1605_v0  ;;  %vm1611_vm9 = vcmp.lt.s32.totalorder %v1589_v3, 4 }
 0x17f   : > { %v1616_v1 = vsel %vm1608_vm8, %v1595_v34, %v1598_v4  ;;  %v12220_v54 = vand.u32 2147483647, %v12219_v51  ;;  %v1538_v19 = vsub.s32 0, %v7896_v55  ;;  %vm1610_vm11 = vcmp.lt.s32.totalorder %v1589_v3, 3 }
 0x180   : > { %v1613_v47 = vsel %vm1611_vm9, %v1601_v35, 2102212464  ;;  %v1617_v39 = vsel %vm1611_vm9, %v1604_v37, 920167782  ;;  %vm1609_vm15 = vcmp.lt.s32.totalorder %v1589_v3, 2  ;;  %v1620_v32 = vsel %vm1608_vm8, %v1598_v4, %v1601_v35 }
 0x181   : > { %vm7903_vm10 = vcmp.le.f32.partialorder %v12220_v54, 0.7853982  ;;  %v1618_v14 = vsel %vm1610_vm11, %v1601_v35, %v1617_v39  ;;  %v1621_v36 = vsel %vm1611_vm9, %v1607_v7, 1326507024  ;;  %vm1162_vm1 = vcmp.lt.s32.totalorder %v7378_v63, 0 }
 0x182   : > { %v6123_v13 = vadd.s32 4294967294, %v1748_v57  ;;  %v1612_v15 = vsel %vm1608_vm8, %v1592_v53, %v1595_v34  ;;  %v1614_v17 = vsel %vm1610_vm11, %v1598_v4, %v1613_v47  ;;  %v1619_v25 = vsel %vm1609_vm15, %v1616_v1, %v1618_v14 }
 0x183   : > { %v6114_v0 = vmin.u32 %v1538_v19, %v7896_v55  ;;  %v1622_v54 = vsel %vm1610_vm11, %v1604_v37, %v1621_v36  ;;  %v7913_v23 = vmul.u32.u64.low %v1624_v40, %v1619_v25  ;;  %v7914_v61 = vmul.u32.u64.high %v1624_v40, %v1619_v25, %v7913_v23  ;;  %v482_v25 = vpop.permute.xlu0 %481 }
 0x184   : > { %v1352_v35 = vsel %vm7882_vm6, %v12211_v8, %v7856_v42  ;;  %v1447_v7 = vor.u32 4788187, %v1446_v30  ;;  %v1623_v57 = vsel %vm1609_vm15, %v1620_v32, %v1622_v54  ;;  %v516_v34 = vadd.f32 %v500_v60, %v416_v48 }
 0x185   : > { %v12223_v4 = vxor.u32 2147483648, %v7835_v5  ;;  %v12224_v53 = vand.u32 2147483647, %v7378_v63  ;;  %v12225_v1 = vmov 0  ;;  %v12228_v19 = vshll.u32 %v7756_v28, %v7827_v31 }
 0x186   : > { %v7936_v30 = vmul.u32.u64.low %v1624_v40, %v1623_v57  ;;  %v7937_v47 = vmul.u32.u64.high %v1624_v40, %v1623_v57, %v7936_v30  ;;  %vm6124_vm0 = vcmp.lt.s32.totalorder %v6123_v13, 0  ;;  %v1615_v48 = vsel %vm1609_vm15, %v1612_v15, %v1614_v17 }
 0x187   : > { %v1141_v37 = vsel %vm1058_vm7, %v12223_v4, %v7835_v5  ;;  %vm7929_vm3 = vcmp.le.f32.partialorder %v12224_v53, 0.7853982  ;;  %v1443_v42 = vor.u32 %v1442_v11, %v12228_v19  ;;  %v7940_v60 = vmul.f32 30.0, %v516_v34 }
 0x188   : > { %v12226_v1 = vsel %vm7929_vm3, 4294967295, %v12225_v1  ;;  %v397_v5 = vmul.f32 %v7117_v26, %v376_v16  ;;  %v1142_v39 = vsub.s32 4, %v7503_v38  ;;  %v1244_v14 = vxor.u32 2147483648, %v7862_v6 }
 0x189   : > { %12227 = vst [vmem:[#allocation43_spill] sm:$0xff] %v12226_v1  ;;  %v1540_v32 = vclz %v6114_v0  ;;  %v1634_v36 = vadd.s32 1, %v7914_v61  ;;  %6735 = vcosq.f32 %v1352_v35  ;;  %v1246_v28 = vsub.s32 4, %v7615_v27 }
 0x18a   : > { %v1448_v31 = vand.u32 2147483647, %v1447_v7  ;;  %v1787_v11 = vand.u32 2139095040, %v7940_v60  ;;  %v1144_v3 = vsel %vm7903_vm10, %v12219_v51, %v1141_v37  ;;  %v7951_v15 = vsel %vm6124_vm0, 0, %v6123_v13 }
 0x18b   : > { %v1631_v16 = vmul.u32 %v1624_v40, %v1615_v48  ;;  %vm1633_vm8 = vc.u32 %v7937_v47, %v7913_v23  ;;  %v1450_v17 = vcvt.s32.f32 %v1443_v42  ;;  %v419_v54 = vadd.f32 %v7634_v24, %v397_v5 }
 0x18c   : > { %v1635_v0 = vsel %vm1633_vm8, %v1634_v36, %v7914_v61  ;;  %v503_v57 = vmul.f32 %v7126_v33, %v482_v25  ;;  %v1245_v7 = vsel %vm1162_vm1, %v1244_v14, %v7862_v6  ;;  %v6115_v34 = vadd.s32 4294967294, %v1540_v32 }
 0x18d   : > { %v1636_v4 = vadd.s32 %v1635_v0, %v1631_v16  ;;  %v1788_v37 = vshrl.u32 %v1787_v11, 23  ;;  %6737 = vsinq.f32 %v1352_v35  ;;  %v7964_v40 = vsel %vm1058_vm7, %v1142_v39, %v7503_v38 }
 0x18e   : > { %v1451_v13 = vmul.f32 %v1450_v17, %v1448_v31  ;;  %v1756_v61 = vsub.s32 4294967266, %v7951_v15  ;;  %v7970_v53 = vsel %vm1162_vm1, %v1246_v28, %v7615_v27  ;;  %vm1370_vm9 = vcmp.lt.s32.totalorder %v7519_v58, 0 }
 0x18f   : > { %v1637_v6 = vadd.s32 536870912, %v1636_v4  ;;  %v6125_v19 = vadd.s32 4294967169, %v1788_v37  ;;  %6739 = vcosq.f32 %v1144_v3  ;;  %v1248_v35 = vsel %vm7929_vm3, %v7378_v63, %v1245_v7 }
 0x190   : > { %v395_v38 = vmul.f32 %v7117_v26, %v7860_v46  ;;  %v519_v42 = vadd.f32 %v503_v57, %v419_v54  ;;  %v1454_v30 = vsub.s32 4, %v7726_v29  ;;  %vm6116_vm7 = vcmp.lt.s32.totalorder %v6115_v34, 0 }
 0x191   : > { %v7979_v48 = vshrl.u32 %v1637_v6, 30  ;;  %v1794_v27 = vadd.s32 1, %v6125_v19  ;;  %6741 = vsinq.f32 %v1144_v3  ;;  %v1452_v5 = vxor.u32 2147483648, %v1451_v13 }
 0x192   : > { %v1752_v39 = vsub.s32 32, %v7951_v15  ;;  %v1757_v14 = vadd.s32 127, %v1756_v61  ;;  %6743 = vcosq.f32 %v1248_v35  ;;  %v12229_v32 = vand.u32 2147483647, %v7519_v58 }
 0x193   : > { %v1639_v46 = vshll.u32 %v7979_v48, 30  ;;  %v11993_v25 = vand.u32 2147483647, %v7940_v60  ;;  %vm1795_vm15 = vcmp.gt.s32.totalorder %v1794_v27, 0  ;;  %v7990_v28 = vpop.eup %6735  ;;  %v1736_v31 = vadd.s32 %v7764_v49, %v7778_v21 }
 0x194   : > { %vm7984_vm11 = vcmp.le.f32.partialorder %v12229_v32, 0.7853982  ;;  %12232 = vst [vmem:[#allocation44_spill] sm:$0xff] %v7990_v28  ;;  %v7994_v11 = vsel %vm6116_vm7, 0, %v6115_v34  ;;  %v1796_v3 = vsel %vm1795_vm15, %v1794_v27, 0  ;;  %v7996_v16 = vmul.f32 30.0, %v519_v42 }
 0x195   : > { %6745 = vsinq.f32 %v1248_v35  ;;  %v8001_v17 = vsel %vm1370_vm9, %v1454_v30, %v7726_v29  ;;  %v417_v0 = vadd.f32 %v7634_v24, %v395_v38  ;;  %v1798_v54 = vand.u32 31, %v1796_v3 }
 0x196   : > { %12233 = vst [vmem:[#allocation45_spill] sm:$0xff] %v7996_v16  ;;  %12234 = vst [vmem:[#allocation46_spill] sm:$0xff] %v8001_v17  ;;  %v1453_v57 = vsel %vm1370_vm9, %v1452_v5, %v1451_v13  ;;  %v1754_v7 = vshrl.u32 %v1736_v31, %v1752_v39  ;;  %v1758_v37 = vshll.u32 %v1757_v14, 23  ;;  %v1548_v21 = vsub.s32 4294967266, %v7994_v11  ;;  %v474_v31 = vpop.permute.xlu1 %473 }
 0x197   : > { %v8008_v34 = vsub.s32 %v1636_v4, %v1639_v46  ;;  %v1791_v61 = vand.u32 8388607, %v11993_v25  ;;  %v1799_v6 = vsub.s32 32, %v1798_v54  ;;  %v8012_v29 = vpop.eup %6737  ;;  %v8014_v19 = vshrl.u32 %v1796_v3, 5 }
 0x198   : > { %12235 = vst [vmem:[#allocation47_spill] sm:$0xff] %v8012_v29  ;;  %v1801_v35 = vshll.u32 %v12176_v45, %v1798_v54  ;;  %v1804_v13 = vshll.u32 %v12170_v56, %v1798_v54  ;;  %v2099_v38 = vand.u32 2139095040, %v7996_v16  ;;  %v1807_v4 = vshll.u32 %v12171_v52, %v1798_v54 }
 0x199   : > { %v1802_v42 = vshrl.u32 %v12170_v56, %v1799_v6  ;;  %v1805_v30 = vshrl.u32 %v12171_v52, %v1799_v6  ;;  %v1810_v27 = vshll.u32 %v12172_v59, %v1798_v54  ;;  %v8023_v5 = vpop.eup %6739  ;;  %v1808_v39 = vshrl.u32 %v12172_v59, %v1799_v6 }
 0x19a   : > { %12236 = vst [vmem:[#allocation48_spill] sm:$0xff] %v8023_v5  ;;  %v1811_v14 = vshrl.u32 %v12173_v10, %v1799_v6  ;;  %v1813_v32 = vshll.u32 %v12173_v10, %v1798_v54  ;;  %v1814_v46 = vshrl.u32 %v12175_v50, %v1799_v6  ;;  %v1753_v3 = vshll.u32 %v7829_v2, %v7951_v15 }
 0x19b   : > { %v1642_v25 = vsub.s32 0, %v8008_v34  ;;  %v1803_v49 = vor.u32 %v1802_v42, %v1801_v35  ;;  %v1806_v63 = vor.u32 %v1805_v30, %v1804_v13  ;;  %v8032_v51 = vpop.eup %6741  ;;  %v8037_v28 = vsel %vm7984_vm11, %v7519_v58, %v1453_v57 }
 0x19c   : > { %v1809_v29 = vor.u32 %v1808_v39, %v1807_v4  ;;  %v1812_v17 = vor.u32 %v1811_v14, %v1810_v27  ;;  %v1815_v54 = vor.u32 %v1814_v46, %v1813_v32  ;;  %v8039_v5 = vpop.eup %6743  ;;  %v1755_v12 = vor.u32 %v1754_v7, %v1753_v3 }
 0x19d   : > { %v1759_v8 = vor.u32 4788187, %v1758_v37  ;;  %v1792_v1 = vor.u32 8388608, %v1791_v61  ;;  %v501_v2 = vmul.f32 %v7126_v33, %v474_v31  ;;  %v1549_v15 = vadd.s32 127, %v1548_v21 }
 0x19e   : > { %vm1816_vm1 = vcmp.lt.s32.totalorder %v8014_v19, 1  ;;  %vm1819_vm0 = vcmp.lt.s32.totalorder %v8014_v19, 4  ;;  %v2100_v35 = vshrl.u32 %v2099_v38, 23  ;;  %v6118_v57 = vmin.u32 %v1642_v25, %v8008_v34 }
 0x19f   : > { %v8044_v13 = vpop.eup %6745  ;;  %vm1818_vm8 = vcmp.lt.s32.totalorder %v8014_v19, 3  ;;  %v1824_v42 = vsel %vm1816_vm1, %v1803_v49, %v1806_v63  ;;  %v1825_v7 = vsel %vm1819_vm0, %v1812_v17, 920167782  ;;  %v1821_v37 = vsel %vm1819_vm0, %v1809_v29, 2102212464 }
 0x1a0   : > { %v1826_v61 = vsel %vm1818_vm8, %v1809_v29, %v1825_v7  ;;  %v1828_v21 = vsel %vm1816_vm1, %v1806_v63, %v1809_v29  ;;  %v1829_v30 = vsel %vm1819_vm0, %v1815_v54, 1326507024  ;;  %v1800_v38 = vshrl.u32 %v12176_v45, %v1799_v6 }
 0x1a1   : > { %vm1817_vm9 = vcmp.lt.s32.totalorder %v8014_v19, 2  ;;  %v1832_v4 = vshll.u32 %v1792_v1, 8  ;;  %v517_v25 = vadd.f32 %v501_v2, %v417_v0  ;;  %v1830_v39 = vsel %vm1818_vm8, %v1812_v17, %v1829_v30 }
 0x1a2   : > { %v1827_v27 = vsel %vm1817_vm9, %v1824_v42, %v1826_v61  ;;  %v12002_v14 = vand.u32 2147483647, %v7996_v16  ;;  %v6137_v32 = vadd.s32 4294967169, %v2100_v35  ;;  %v1644_v46 = vclz %v6118_v57 }
 0x1a3   : > { %v1820_v29 = vsel %vm1816_vm1, %v1800_v38, %v1803_v49  ;;  %v1822_v6 = vsel %vm1818_vm8, %v1806_v63, %v1821_v37  ;;  %v1831_v1 = vsel %vm1817_vm9, %v1828_v21, %v1830_v39  ;;  %6747 = vcosq.f32 %v8037_v28 }
 0x1a4   : > { %v8067_v0 = vmul.u32.u64.low %v1832_v4, %v1831_v1  ;;  %v8068_v31 = vmul.u32.u64.high %v1832_v4, %v1831_v1, %v8067_v0  ;;  %v8070_v3 = vmul.u32.u64.low %v1832_v4, %v1827_v27  ;;  %v8071_v54 = vmul.u32.u64.high %v1832_v4, %v1827_v27, %v8070_v3 }
 0x1a5   : > { %v1760_v17 = vand.u32 2147483647, %v1759_v8  ;;  %v396_v2 = vmul.f32 %v7117_v26, %v7894_v18  ;;  %v2106_v49 = vadd.s32 1, %v6137_v32  ;;  %v1528_v63 = vadd.s32 %v7823_v43, %v7832_v9  ;;  %v478_v8 = vpop.permute.xlu1 %477 }
 0x1a6   : > { %v1544_v35 = vsub.s32 32, %v7994_v11  ;;  %v1550_v57 = vshll.u32 %v1549_v15, 23  ;;  %v1823_v42 = vsel %vm1817_vm9, %v1820_v29, %v1822_v6  ;;  %v1762_v7 = vcvt.s32.f32 %v1755_v12 }
 0x1a7   : > { %v6119_v37 = vadd.s32 4294967294, %v1644_v46  ;;  %v2103_v61 = vand.u32 8388607, %v12002_v14  ;;  %vm2107_vm7 = vcmp.gt.s32.totalorder %v2106_v49, 0  ;;  %vm1841_vm15 = vc.u32 %v8068_v31, %v8070_v3 }
 0x1a8   : > { %v1842_v26 = vadd.s32 1, %v8071_v54  ;;  %v2108_v18 = vsel %vm2107_vm7, %v2106_v49, 0  ;;  %v8087_v43 = vmul.f32 30.0, %v517_v25  ;;  %v8089_v9 = vmul.f32 %v1762_v7, %v1760_v17 }
 0x1a9   : > { %v1839_v15 = vmul.u32 %v1832_v4, %v1823_v42  ;;  %v418_v19 = vadd.f32 %v7634_v24, %v396_v2  ;;  %v2110_v12 = vand.u32 31, %v2108_v18  ;;  %v1546_v21 = vshrl.u32 %v1528_v63, %v1544_v35 }
 0x1aa   : > { %v8092_v30 = vor.u32 4788187, %v1550_v57  ;;  %v1843_v38 = vsel %vm1841_vm15, %v1842_v26, %v8071_v54  ;;  %v502_v27 = vmul.f32 %v7126_v33, %v478_v8  ;;  %vm6120_vm1 = vcmp.lt.s32.totalorder %v6119_v37, 0 }
 0x1ab   : > { %v1844_v39 = vadd.s32 %v1843_v38, %v1839_v15  ;;  %v2104_v32 = vor.u32 8388608, %v2103_v61  ;;  %v2111_v46 = vsub.s32 32, %v2110_v12  ;;  %v2109_v29 = vshrl.u32 %v2108_v18, 5 }
 0x1ac   : > { %v2113_v25 = vshll.u32 %v12176_v45, %v2110_v12  ;;  %v2116_v6 = vshll.u32 %v12170_v56, %v2110_v12  ;;  %v1891_v4 = vand.u32 2139095040, %v8087_v43  ;;  %v2119_v0 = vshll.u32 %v12171_v52, %v2110_v12 }
 0x1ad   : > { %v1845_v24 = vadd.s32 536870912, %v1844_v39  ;;  %v2114_v1 = vshrl.u32 %v12170_v56, %v2111_v46  ;;  %v2122_v54 = vshll.u32 %v12172_v59, %v2110_v12  ;;  %v2117_v33 = vshrl.u32 %v12171_v52, %v2111_v46  ;;  %v8106_v63 = vpop.eup %6747 }
 0x1ae   : > { %v2120_v17 = vshrl.u32 %v12172_v59, %v2111_v46  ;;  %v2123_v2 = vshrl.u32 %v12173_v10, %v2111_v46  ;;  %v2126_v49 = vshrl.u32 %v12175_v50, %v2111_v46  ;;  %12237 = vst [vmem:[#allocation49_spill] sm:$0xff] %v8106_v63  ;;  %v1545_v35 = vshll.u32 %v7896_v55, %v7994_v11 }
 0x1af   : > { %v8111_v57 = vsel %vm6120_vm1, 0, %v6119_v37  ;;  %v8113_v42 = vshrl.u32 %v1845_v24, 30  ;;  %v2125_v7 = vshll.u32 %v12173_v10, %v2110_v12  ;;  %vm1682_vm0 = vcmp.lt.s32.totalorder %v7600_v41, 0 }
 0x1b0   : > { %v2115_v61 = vor.u32 %v2114_v1, %v2113_v25  ;;  %v2118_v8 = vor.u32 %v2117_v33, %v2116_v6  ;;  %v2121_v26 = vor.u32 %v2120_v17, %v2119_v0  ;;  %v2124_v18 = vor.u32 %v2123_v2, %v2122_v54 }
 0x1b1   : > { %v1547_v15 = vor.u32 %v1546_v21, %v1545_v35  ;;  %v1552_v38 = vand.u32 2147483647, %v8092_v30  ;;  %v2127_v14 = vor.u32 %v2126_v49, %v2125_v7  ;;  %v518_v58 = vadd.f32 %v502_v27, %v418_v19 }
 0x1b2   : > { %v1652_v55 = vsub.s32 4294967266, %v8111_v57  ;;  %vm2131_vm8 = vcmp.lt.s32.totalorder %v2109_v29, 4  ;;  %v2144_v11 = vshll.u32 %v2104_v32, 8  ;;  %v1892_v37 = vshrl.u32 %v1891_v4, 23 }
 0x1b3   : > { %v1847_v24 = vshll.u32 %v8113_v42, 30  ;;  %v2112_v12 = vshrl.u32 %v12176_v45, %v2111_v46  ;;  %vm2128_vm9 = vcmp.lt.s32.totalorder %v2109_v29, 1  ;;  %v2133_v63 = vsel %vm2131_vm8, %v2121_v26, 2102212464 }
 0x1b4   : > { %vm2130_vm7 = vcmp.lt.s32.totalorder %v2109_v29, 3  ;;  %v2136_v25 = vsel %vm2128_vm9, %v2115_v61, %v2118_v8  ;;  %v2137_v6 = vsel %vm2131_vm8, %v2124_v18, 920167782  ;;  %v2140_v1 = vsel %vm2128_vm9, %v2118_v8, %v2121_v26 }
 0x1b5   : > { %vm2129_vm15 = vcmp.lt.s32.totalorder %v2109_v29, 2  ;;  %v2132_v21 = vsel %vm2128_vm9, %v2112_v12, %v2115_v61  ;;  %v2138_v30 = vsel %vm2130_vm7, %v2121_v26, %v2137_v6  ;;  %v2141_v0 = vsel %vm2131_vm8, %v2127_v14, 1326507024 }
 0x1b6   : > { %v2134_v19 = vsel %vm2130_vm7, %v2118_v8, %v2133_v63  ;;  %v2139_v27 = vsel %vm2129_vm15, %v2136_v25, %v2138_v30  ;;  %v2142_v54 = vsel %vm2130_vm7, %v2124_v18, %v2141_v0  ;;  %v6129_v32 = vadd.s32 4294967169, %v1892_v37 }
 0x1b7   : > { %v1554_v4 = vcvt.s32.f32 %v1547_v15  ;;  %v2143_v33 = vsel %vm2129_vm15, %v2140_v1, %v2142_v54  ;;  %v8123_v17 = vmul.u32.u64.low %v2144_v11, %v2139_v27  ;;  %v8124_v46 = vmul.u32.u64.high %v2144_v11, %v2139_v27, %v8123_v17 }
 0x1b8   : > { %v1653_v2 = vadd.s32 127, %v1652_v55  ;;  %v8127_v49 = vmul.u32.u64.low %v2144_v11, %v2143_v33  ;;  %v8128_v35 = vmul.u32.u64.high %v2144_v11, %v2143_v33, %v8127_v49  ;;  %v1898_v7 = vadd.s32 1, %v6129_v32 }
 0x1b9   : > { %6749 = vsinq.f32 %v8037_v28  ;;  %v12238_v14 = vsub.s32 4, %v7812_v20  ;;  %v8138_v61 = vsub.s32 %v1844_v39, %v1847_v24  ;;  %v2135_v8 = vsel %vm2129_vm15, %v2132_v21, %v2134_v19 }
 0x1ba   : > { %v1764_v26 = vxor.u32 2147483648, %v8089_v9  ;;  %v1555_v18 = vmul.f32 %v1554_v4, %v1552_v38  ;;  %vm1899_vm1 = vcmp.gt.s32.totalorder %v1898_v7, 0  ;;  %v8142_v15 = vmul.f32 30.0, %v518_v58 }
 0x1bb   : > { %v8136_v63 = vsel %vm1682_vm0, %v12238_v14, %v7812_v20  ;;  %v1648_v55 = vsub.s32 32, %v8111_v57  ;;  %v2154_v28 = vadd.s32 1, %v8124_v46  ;;  %v12006_v37 = vand.u32 2147483647, %v8087_v43 }
 0x1bc   : > { %12239 = vst [vmem:[#allocation50_spill] sm:$0xff] %v8136_v63  ;;  %12240 = vst [vmem:[#allocation51_spill] sm:$0xff] %v8142_v15  ;;  %v1900_v12 = vsel %vm1899_vm1, %v1898_v7, 0  ;;  %vm1474_vm8 = vcmp.lt.s32.totalorder %v7692_v44, 0  ;;  %v1654_v20 = vshll.u32 %v1653_v2, 23  ;;  %v2151_v39 = vmul.u32 %v2144_v11, %v2135_v8 }
 0x1bd   : > { %vm2153_vm9 = vc.u32 %v8128_v35, %v8123_v17  ;;  %v1902_v29 = vand.u32 31, %v1900_v12  ;;  %v1632_v58 = vadd.s32 %v7913_v23, %v7937_v47  ;;  %v1850_v24 = vsub.s32 0, %v8138_v61 }
 0x1be   : > { %v2155_v25 = vsel %vm2153_vm9, %v2154_v28, %v8124_v46  ;;  %v8158_v6 = vsel %vm1682_vm0, %v1764_v26, %v8089_v9  ;;  %v1995_v21 = vand.u32 2139095040, %v8142_v15  ;;  %v1556_v30 = vxor.u32 2147483648, %v1555_v18 }
 0x1bf   : > { %v2156_v1 = vadd.s32 %v2155_v25, %v2151_v39  ;;  %v1903_v11 = vsub.s32 32, %v1902_v29  ;;  %v1649_v0 = vshll.u32 %v8008_v34, %v8111_v57  ;;  %v1650_v19 = vshrl.u32 %v1632_v58, %v1648_v55 }
 0x1c0   : > { %v1895_v23 = vand.u32 8388607, %v12006_v37  ;;  %v8165_v47 = vor.u32 4788187, %v1654_v20  ;;  %v6126_v32 = vmin.u32 %v1850_v24, %v8138_v61  ;;  %v1905_v4 = vshll.u32 %v12176_v45, %v1902_v29 }
 0x1c1   : > { %v2157_v27 = vadd.s32 536870912, %v2156_v1  ;;  %v1906_v54 = vshrl.u32 %v12170_v56, %v1903_v11  ;;  %v1909_v9 = vshrl.u32 %v12171_v52, %v1903_v11  ;;  %v1908_v33 = vshll.u32 %v12170_v56, %v1902_v29 }
 0x1c2   : > { %v1912_v46 = vshrl.u32 %v12172_v59, %v1903_v11  ;;  %v1901_v57 = vshrl.u32 %v1900_v12, 5  ;;  %v1911_v2 = vshll.u32 %v12171_v52, %v1902_v29  ;;  %v1996_v49 = vshrl.u32 %v1995_v21, 23 }
 0x1c3   : > { %v8173_v34 = vshrl.u32 %v2157_v27, 30  ;;  %v8176_v7 = vpop.eup %6749  ;;  %v1907_v14 = vor.u32 %v1906_v54, %v1905_v4  ;;  %v1910_v8 = vor.u32 %v1909_v9, %v1908_v33  ;;  %v1914_v26 = vshll.u32 %v12172_v59, %v1902_v29 }
 0x1c4   : > { %12241 = vst [vmem:[#allocation52_spill] sm:$0xff] %v8176_v7  ;;  %v1915_v55 = vshrl.u32 %v12173_v10, %v1903_v11  ;;  %v12242_v28 = vand.u32 2147483647, %v7600_v41  ;;  %v12243_v20 = vmov 0  ;;  %v1913_v12 = vor.u32 %v1912_v46, %v1911_v2 }
 0x1c5   : > { %v2159_v39 = vshll.u32 %v8173_v34, 30  ;;  %v1917_v58 = vshll.u32 %v12173_v10, %v1902_v29  ;;  %v1918_v24 = vshrl.u32 %v12175_v50, %v1903_v11  ;;  %v1557_v25 = vsel %vm1474_vm8, %v1556_v30, %v1555_v18 }
 0x1c6   : > { %vm8182_vm0 = vcmp.le.f32.partialorder %v12242_v28, 0.7853982  ;;  %v1651_v21 = vor.u32 %v1650_v19, %v1649_v0  ;;  %v1896_v27 = vor.u32 8388608, %v1895_v23  ;;  %v1916_v54 = vor.u32 %v1915_v55, %v1914_v26 }
 0x1c7   : > { %v12244_v20 = vsel %vm8182_vm0, 4294967295, %v12243_v20  ;;  %v12246_v9 = vand.u32 2147483647, %v7692_v44  ;;  %v1656_v33 = vand.u32 2147483647, %v8165_v47  ;;  %v1852_v28 = vclz %v6126_v32 }
 0x1c8   : > { %12245 = vst [vmem:[#allocation53_spill] sm:$0xff] %v12244_v20  ;;  %v1919_v46 = vor.u32 %v1918_v24, %v1917_v58  ;;  %v6133_v2 = vadd.s32 4294967169, %v1996_v49  ;;  %v8198_v29 = vsub.s32 %v2156_v1, %v2159_v39  ;;  %v1904_v37 = vshrl.u32 %v12176_v45, %v1903_v11 }
 0x1c9   : > { %vm8193_vm7 = vcmp.le.f32.partialorder %v12246_v9, 0.7853982  ;;  %vm1920_vm15 = vcmp.lt.s32.totalorder %v1901_v57, 1  ;;  %vm1923_vm1 = vcmp.lt.s32.totalorder %v1901_v57, 4  ;;  %vm1922_vm9 = vcmp.lt.s32.totalorder %v1901_v57, 3 }
 0x1ca   : > { %v1925_v18 = vsel %vm1923_vm1, %v1913_v12, 2102212464  ;;  %v1928_v30 = vsel %vm1920_vm15, %v1907_v14, %v1910_v8  ;;  %v1929_v0 = vsel %vm1923_vm1, %v1916_v54, 920167782  ;;  %vm1921_vm14 = vcmp.lt.s32.totalorder %v1901_v57, 2 }
 0x1cb   : > { %v1930_v19 = vsel %vm1922_vm9, %v1913_v12, %v1929_v0  ;;  %v1932_v23 = vsel %vm1920_vm15, %v1910_v8, %v1913_v12  ;;  %v1936_v26 = vshll.u32 %v1896_v27, 8  ;;  %v6127_v55 = vadd.s32 4294967294, %v1852_v28  ;;  %v12250_v28 = vld [vmem:[#allocation39_spill] sm:$0xff] }
 0x1cc   : > { %v1924_v9 = vsel %vm1920_vm15, %v1904_v37, %v1907_v14  ;;  %v1931_v47 = vsel %vm1921_vm14, %v1928_v30, %v1930_v19  ;;  %v1933_v32 = vsel %vm1923_vm1, %v1919_v46, 1326507024  ;;  %v1926_v49 = vsel %vm1922_vm9, %v1910_v8, %v1925_v18 }
 0x1cd   : > { %v1934_v1 = vsel %vm1922_vm9, %v1916_v54, %v1933_v32  ;;  %v8202_v39 = vmul.u32.u64.low %v1936_v26, %v1931_v47  ;;  %v8203_v58 = vmul.u32.u64.high %v1936_v26, %v1931_v47, %v8202_v39  ;;  %v2162_v11 = vsub.s32 0, %v8198_v29 }
 0x1ce   : > { %v1935_v24 = vsel %vm1921_vm14, %v1932_v23, %v1934_v1  ;;  %v12008_v38 = vand.u32 2147483647, %v8142_v15  ;;  %v2002_v0 = vadd.s32 1, %v6133_v2  ;;  %v1768_v37 = vsel %vm8182_vm0, %v7600_v41, %v8158_v6 }
 0x1cf   : > { %v1658_v14 = vcvt.s32.f32 %v1651_v21  ;;  %v8213_v12 = vmul.u32.u64.low %v1936_v26, %v1935_v24  ;;  %v8214_v8 = vmul.u32.u64.high %v1936_v26, %v1935_v24, %v8213_v12  ;;  %v12249_v27 = vsub.s32 4, %v7876_v62 }
 0x1d0   : > { %vm12017_vm15 = vcmp.lt.s32.totalorder %v12250_v28, 0  ;;  %vm6128_vm1 = vcmp.lt.s32.totalorder %v6127_v55, 0  ;;  %v1927_v46 = vsel %vm1921_vm14, %v1924_v9, %v1926_v49  ;;  %vm2003_vm9 = vcmp.gt.s32.totalorder %v2002_v0, 0  ;;  %v12251_v9 = vld [vmem:[#allocation8_spill] sm:$0xff] }
 0x1d1   : > { %v8221_v54 = vsel %vm1474_vm8, %v12249_v27, %v7876_v62  ;;  %v8228_v6 = vsel %vm8193_vm7, %v7692_v44, %v1557_v25  ;;  %v1659_v21 = vmul.f32 %v1658_v14, %v1656_v33  ;;  %v1946_v2 = vadd.s32 1, %v8203_v58 }
 0x1d2   : > { %v2004_v18 = vsel %vm2003_vm9, %v2002_v0, 0  ;;  %6751 = vcosq.f32 %v1768_v37  ;;  %v6138_v30 = vmin.u32 %v2162_v11, %v8198_v29  ;;  %v1999_v62 = vand.u32 8388607, %v12008_v38 }
 0x1d3   : > { %v2006_v19 = vand.u32 31, %v2004_v18  ;;  %6753 = vsinq.f32 %v1768_v37  ;;  %v8234_v57 = vsel %vm6128_vm1, 0, %v6127_v55  ;;  %v1943_v23 = vmul.u32 %v1936_v26, %v1927_v46 }
 0x1d4   : > { %vm1945_vm14 = vc.u32 %v8214_v8, %v8202_v39  ;;  %6755 = vcosq.f32 %v8228_v6  ;;  %v1660_v32 = vxor.u32 2147483648, %v1659_v21  ;;  %v1840_v49 = vadd.s32 %v8070_v3, %v8068_v31 }
 0x1d5   : > { %v1947_v33 = vsel %vm1945_vm14, %v1946_v2, %v8203_v58  ;;  %v2007_v11 = vsub.s32 32, %v2006_v19  ;;  %v1856_v55 = vsub.s32 32, %v8234_v57  ;;  %v2164_v26 = vclz %v6138_v30 }
 0x1d6   : > { %v1948_v1 = vadd.s32 %v1947_v33, %v1943_v23  ;;  %v2000_v24 = vor.u32 8388608, %v1999_v62  ;;  %v2009_v0 = vshll.u32 %v12176_v45, %v2006_v19  ;;  %v2012_v12 = vshll.u32 %v12170_v56, %v2006_v19 }
 0x1d7   : > { %v2010_v14 = vshrl.u32 %v12170_v56, %v2007_v11  ;;  %v2013_v58 = vshrl.u32 %v12171_v52, %v2007_v11  ;;  %v2015_v27 = vshll.u32 %v12171_v52, %v2006_v19  ;;  %v2016_v46 = vshrl.u32 %v12172_v59, %v2007_v11 }
 0x1d8   : > { %v1949_v37 = vadd.s32 536870912, %v1948_v1  ;;  %v2018_v31 = vshll.u32 %v12172_v59, %v2006_v19  ;;  %v2019_v3 = vshrl.u32 %v12173_v10, %v2007_v11  ;;  %v8255_v2 = vsel %vm12017_vm15, %v1660_v32, %v1659_v21 }
 0x1d9   : > { %v1857_v30 = vshll.u32 %v8138_v61, %v8234_v57  ;;  %v2005_v23 = vshrl.u32 %v2004_v18, 5  ;;  %v2011_v33 = vor.u32 %v2010_v14, %v2009_v0  ;;  %v2014_v38 = vor.u32 %v2013_v58, %v2012_v12 }
 0x1da   : > { %v8259_v62 = vshrl.u32 %v1949_v37, 30  ;;  %v2017_v25 = vor.u32 %v2016_v46, %v2015_v27  ;;  %v2020_v47 = vor.u32 %v2019_v3, %v2018_v31  ;;  %v1860_v41 = vsub.s32 4294967266, %v8234_v57 }
 0x1db   : > { %v2021_v63 = vshll.u32 %v12173_v10, %v2006_v19  ;;  %v2022_v44 = vshrl.u32 %v12175_v50, %v2007_v11  ;;  %v1858_v32 = vshrl.u32 %v1840_v49, %v1856_v55  ;;  %v6139_v7 = vadd.s32 4294967294, %v2164_v26  ;;  %v12253_v50 = vld [vmem:[#allocation15_spill] sm:$0xff] }
 0x1dc   : > { %v1951_v20 = vshll.u32 %v8259_v62, 30  ;;  %v8265_v21 = vpop.eup %6751  ;;  %v2008_v61 = vshrl.u32 %v12176_v45, %v2007_v11  ;;  %v2040_v37 = vshll.u32 %v2000_v24, 8  ;;  %vm2024_vm8 = vcmp.lt.s32.totalorder %v2005_v23, 1 }
 0x1dd   : > { %12252 = vst [vmem:[#allocation8_spill] sm:$0xff] %v8265_v21  ;;  %v8268_v18 = vpop.eup %6753  ;;  %v2023_v14 = vor.u32 %v2022_v44, %v2021_v63  ;;  %vm2027_vm1 = vcmp.lt.s32.totalorder %v2005_v23, 4  ;;  %vm2026_vm9 = vcmp.lt.s32.totalorder %v2005_v23, 3  ;;  %v2032_v12 = vsel %vm2024_vm8, %v2011_v33, %v2014_v38 }
 0x1de   : > { %v8270_v0 = vsub.s32 %v1948_v1, %v1951_v20  ;;  %v8272_v57 = vpop.eup %6755  ;;  %v2029_v19 = vsel %vm2027_vm1, %v2017_v25, 2102212464  ;;  %v2033_v58 = vsel %vm2027_vm1, %v2020_v47, 920167782  ;;  %vm2025_vm14 = vcmp.lt.s32.totalorder %v2005_v23, 2 }
 0x1df   : > { %v2034_v49 = vsel %vm2026_vm9, %v2017_v25, %v2033_v58  ;;  %v2036_v55 = vsel %vm2024_vm8, %v2014_v38, %v2017_v25  ;;  %v2028_v11 = vsel %vm2024_vm8, %v2008_v61, %v2011_v33  ;;  %v2030_v26 = vsel %vm2026_vm9, %v2014_v38, %v2029_v19  ;;  %v12254_v58 = vld [vmem:[#allocation17_spill] sm:$0xff] }
 0x1e0   : > { %v1954_v27 = vsub.s32 0, %v8270_v0  ;;  %v2035_v24 = vsel %vm2025_vm14, %v2032_v12, %v2034_v49  ;;  %v2037_v20 = vsel %vm2027_vm1, %v2023_v14, 1326507024  ;;  %v1861_v31 = vadd.s32 127, %v1860_v41 }
 0x1e1   : > { %v2038_v63 = vsel %vm2026_vm9, %v2020_v47, %v2037_v20  ;;  %v8277_v1 = vmul.u32.u64.low %v2040_v37, %v2035_v24  ;;  %v8278_v46 = vmul.u32.u64.high %v2040_v37, %v2035_v24, %v8277_v1  ;;  %v553_v10 = vshll.u32 %v12176_v45, %v12253_v50 }
 0x1e2   : > { %v6130_v44 = vmin.u32 %v1954_v27, %v8270_v0  ;;  %v2039_v3 = vsel %vm2025_vm14, %v2036_v55, %v2038_v63  ;;  %v554_v25 = vshrl.u32 %v12170_v56, %v12254_v58  ;;  %v12255_v14 = vand.u32 2147483647, %v12251_v9 }
 0x1e3   : > { %v8286_v33 = vmul.u32.u64.low %v2040_v37, %v2039_v3  ;;  %v8287_v61 = vmul.u32.u64.high %v2040_v37, %v2039_v3, %v8286_v33  ;;  %v8291_v19 = vor.u32 %v1858_v32, %v1857_v30  ;;  %v2031_v12 = vsel %vm2025_vm14, %v2028_v11, %v2030_v26  ;;  %v12259_v26 = vld [vmem:[#allocation14_spill] sm:$0xff] }
 0x1e4   : > { %v1956_v38 = vclz %v6130_v44  ;;  %v543_v47 = vand.u32 8388607, %v12255_v14  ;;  %v556_v41 = vshll.u32 %v12170_v56, %v12253_v50  ;;  %v557_v27 = vshrl.u32 %v12171_v52, %v12254_v58  ;;  %v12261_v14 = vld [vmem:[#allocation29_spill] sm:$0xff]  ;;  %v12328_v32 = vld [vmem:[#allocation18_spill] sm:$0xff] }
 0x1e5   : > { %vm6140_vm8 = vcmp.lt.s32.totalorder %v6139_v7, 0  ;;  %v2050_v55 = vadd.s32 1, %v8278_v46  ;;  %v559_v24 = vshll.u32 %v12171_v52, %v12253_v50  ;;  %v1862_v20 = vshll.u32 %v1861_v31, 23 }
 0x1e6   : > { %v6131_v49 = vadd.s32 4294967294, %v1956_v38  ;;  %v555_v44 = vor.u32 %v554_v25, %v553_v10  ;;  %v558_v63 = vor.u32 %v557_v27, %v556_v41  ;;  %v560_v30 = vshrl.u32 %v12172_v59, %v12254_v58 }
 0x1e7   : > { %v12256_v23 = vand.u32 2147483647, %v12250_v28  ;;  %v2047_v11 = vmul.u32 %v2040_v37, %v2031_v12  ;;  %vm2049_vm9 = vc.u32 %v8287_v61, %v8277_v1  ;;  %vm568_vm14 = vcmp.lt.s32.totalorder %v12259_v26, 1 }
 0x1e8   : > { %vm570_vm4 = vcmp.lt.s32.totalorder %v12259_v26, 3  ;;  %v8313_v50 = vsel %vm6140_vm8, 0, %v6139_v7  ;;  %v2051_v10 = vsel %vm2049_vm9, %v2050_v55, %v8278_v46  ;;  %v544_v31 = vor.u32 8388608, %v543_v47 }
 0x1e9   : > { %vm8305_vm1 = vcmp.le.f32.partialorder %v12256_v23, 0.7853982  ;;  %v561_v3 = vor.u32 %v560_v30, %v559_v24  ;;  %vm6132_vm15 = vcmp.lt.s32.totalorder %v6131_v49, 0  ;;  %v2052_v25 = vadd.s32 %v2051_v10, %v2047_v11  ;;  %v12262_v24 = vld [vmem:[#allocation30_spill] sm:$0xff]  ;;  %v12263_v30 = vld [vmem:[#allocation23_spill] sm:$0xff] }
 0x1ea   : > { %v552_v38 = vshrl.u32 %v12176_v45, %v12254_v58  ;;  %vm569_vm5 = vcmp.lt.s32.totalorder %v12259_v26, 2  ;;  %vm12260_vm0 = vcmp.lt.s32.totalorder %v12259_v26, 4  ;;  %v576_v33 = vsel %vm568_vm14, %v555_v44, %v558_v63 }
 0x1eb   : > { %v573_v37 = vsel %vm12260_vm0, %v561_v3, 2102212464  ;;  %v578_v7 = vsel %vm570_vm4, %v561_v3, %v12261_v14  ;;  %v580_v46 = vsel %vm568_vm14, %v558_v63, %v561_v3  ;;  %v1863_v47 = vor.u32 4788187, %v1862_v20 }
 0x1ec   : > { %v2168_v12 = vsub.s32 32, %v8313_v50  ;;  %v2172_v58 = vsub.s32 4294967266, %v8313_v50  ;;  %v2053_v41 = vadd.s32 536870912, %v2052_v25  ;;  %v8330_v27 = vsel %vm6132_vm15, 0, %v6131_v49 }
 0x1ed   : > { %v579_v55 = vsel %vm569_vm5, %v576_v33, %v578_v7  ;;  %v582_v23 = vsel %vm570_vm4, %v12263_v30, %v12262_v24  ;;  %v584_v11 = vshll.u32 %v544_v31, 8  ;;  %v572_v20 = vsel %vm568_vm14, %v552_v38, %v555_v44  ;;  %v12266_v24 = vld [vmem:[#allocation7_spill] sm:$0xff] }
 0x1ee   : > { %v8338_v10 = vshrl.u32 %v2053_v41, 30  ;;  %v574_v3 = vsel %vm570_vm4, %v558_v63, %v573_v37  ;;  %v583_v49 = vsel %vm569_vm5, %v580_v46, %v582_v23  ;;  %6757 = vsinq.f32 %v8228_v6 }
 0x1ef   : > { %v8346_v14 = vmul.u32.u64.low %v584_v11, %v583_v49  ;;  %v8347_v21 = vmul.u32.u64.high %v584_v11, %v583_v49, %v8346_v14  ;;  %v8349_v33 = vmul.u32.u64.low %v584_v11, %v579_v55  ;;  %v8350_v7 = vmul.u32.u64.high %v584_v11, %v579_v55, %v8349_v33 }
 0x1f0   : > { %v12264_v31 = vsub.s32 4, %v7979_v48  ;;  %vm12265_vm0 = vcmp.lt.s32.totalorder %v12250_v28, 0  ;;  %v2173_v63 = vadd.s32 127, %v2172_v58  ;;  %v2055_v38 = vshll.u32 %v8338_v10, 30 }
 0x1f1   : > { %v8366_v37 = vsel %vm8305_vm1, %v12250_v28, %v8255_v2  ;;  %v1866_v46 = vcvt.s32.f32 %v8291_v19  ;;  %v2152_v6 = vadd.s32 %v8123_v17, %v8128_v35  ;;  %v575_v41 = vsel %vm569_vm5, %v572_v20, %v574_v3  ;;  %v12268_v3 = vld [vmem:[#allocation13_spill] sm:$0xff] }
 0x1f2   : > { %v8359_v44 = vsel %vm12265_vm0, %v12264_v31, %v7979_v48  ;;  %v1864_v55 = vand.u32 2147483647, %v1863_v47  ;;  %v1964_v48 = vsub.s32 4294967266, %v8330_v27  ;;  %v8374_v58 = vsub.s32 %v2052_v25, %v2055_v38  ;;  %v12267_v47 = vld [vmem:[#allocation12_spill] sm:$0xff] }
 0x1f3   : > { %v12023_v30 = vand.u32 2147483647, %v12266_v24  ;;  %v2169_v23 = vshll.u32 %v8198_v29, %v8313_v50  ;;  %v2170_v2 = vshrl.u32 %v2152_v6, %v2168_v12  ;;  %vm593_vm4 = vc.u32 %v8347_v21, %v8349_v33 }
 0x1f4   : > { %v594_v19 = vadd.s32 1, %v8350_v7  ;;  %v2174_v17 = vshll.u32 %v2173_v63, 23  ;;  %v2058_v35 = vsub.s32 0, %v8374_v58  ;;  %v591_v26 = vmul.u32 %v584_v11, %v575_v41 }
 0x1f5   : > { %v657_v20 = vshll.u32 %v12176_v45, %v12267_v47  ;;  %v658_v49 = vshrl.u32 %v12170_v56, %v12268_v3  ;;  %v660_v29 = vshll.u32 %v12170_v56, %v12267_v47  ;;  %v661_v50 = vshrl.u32 %v12171_v52, %v12268_v3 }
 0x1f6   : > { %v595_v25 = vsel %vm593_vm4, %v594_v19, %v8350_v7  ;;  %v1965_v12 = vadd.s32 127, %v1964_v48  ;;  %v6134_v14 = vmin.u32 %v2058_v35, %v8374_v58  ;;  %v647_v11 = vand.u32 8388607, %v12023_v30 }
 0x1f7   : > { %v596_v31 = vadd.s32 %v595_v25, %v591_v26  ;;  %v659_v63 = vor.u32 %v658_v49, %v657_v20  ;;  %v662_v38 = vor.u32 %v661_v50, %v660_v29  ;;  %v663_v7 = vshll.u32 %v12171_v52, %v12267_v47  ;;  %v12269_v47 = vld [vmem:[#allocation11_spill] sm:$0xff] }
 0x1f8   : > { %v664_v6 = vshrl.u32 %v12172_v59, %v12268_v3  ;;  %v8399_v41 = vmul.f32 %v1866_v46, %v1864_v55  ;;  %v1960_v19 = vsub.s32 32, %v8330_v27  ;;  %v2060_v56 = vclz %v6134_v14  ;;  %v8404_v20 = vpop.eup %6757 }
 0x1f9   : > { %v597_v48 = vadd.s32 536870912, %v596_v31  ;;  %v2171_v28 = vor.u32 %v2170_v2, %v2169_v23  ;;  %v2175_v35 = vor.u32 4788187, %v2174_v17  ;;  %v1944_v26 = vadd.s32 %v8202_v39, %v8214_v8  ;;  %v12270_v23 = vld [vmem:[#allocation26_spill] sm:$0xff] }
 0x1fa   : > { %v665_v25 = vor.u32 %v664_v6, %v663_v7  ;;  %v6135_v49 = vadd.s32 4294967294, %v2060_v56  ;;  %vm672_vm5 = vcmp.lt.s32.totalorder %v12269_v47, 1  ;;  %vm674_vm15 = vcmp.lt.s32.totalorder %v12269_v47, 3 }
 0x1fb   : > { %v8406_v29 = vshrl.u32 %v597_v48, 30  ;;  %v1966_v46 = vshll.u32 %v1965_v12, 23  ;;  %v648_v55 = vor.u32 8388608, %v647_v11  ;;  %v680_v50 = vsel %vm672_vm5, %v659_v63, %v662_v38  ;;  %v12272_v48 = vld [vmem:[#allocation28_spill] sm:$0xff] }
 0x1fc   : > { %v682_v2 = vsel %vm674_vm15, %v665_v25, %v12270_v23  ;;  %v1961_v39 = vshll.u32 %v8270_v0, %v8330_v27  ;;  %v1962_v8 = vshrl.u32 %v1944_v26, %v1960_v19  ;;  %vm6136_vm8 = vcmp.lt.s32.totalorder %v6135_v49, 0  ;;  %v12273_v26 = vld [vmem:[#allocation22_spill] sm:$0xff] }
 0x1fd   : > { %v599_v56 = vshll.u32 %v8406_v29, 30  ;;  %vm1786_vm9 = vcmp.lt.s32.totalorder %v7940_v60, 0  ;;  %v2063_v17 = vsel %vm6136_vm8, 0, %v6135_v49  ;;  %v656_v12 = vshrl.u32 %v12176_v45, %v12268_v3 }
 0x1fe   : > { %vm673_vm14 = vcmp.lt.s32.totalorder %v12269_v47, 2  ;;  %vm12271_vm0 = vcmp.lt.s32.totalorder %v12269_v47, 4  ;;  %v2068_v11 = vsub.s32 4294967266, %v2063_v17  ;;  %v684_v27 = vsel %vm672_vm5, %v662_v38, %v665_v25 }
 0x1ff   : > { %v677_v14 = vsel %vm12271_vm0, %v665_v25, 2102212464  ;;  %v8424_v7 = vsub.s32 %v596_v31, %v599_v56  ;;  %v683_v0 = vsel %vm673_vm14, %v680_v50, %v682_v2  ;;  %v2176_v6 = vand.u32 2147483647, %v2175_v35 }
 0x200   : > { %v1967_v19 = vor.u32 4788187, %v1966_v46  ;;  %v686_v3 = vsel %vm674_vm15, %v12273_v26, %v12272_v48  ;;  %v688_v49 = vshll.u32 %v648_v55, 8  ;;  %v1963_v23 = vor.u32 %v1962_v8, %v1961_v39 }
 0x201   : > { %v2069_v30 = vadd.s32 127, %v2068_v11  ;;  %v602_v59 = vsub.s32 0, %v8424_v7  ;;  %v676_v31 = vsel %vm672_vm5, %v656_v12, %v659_v63  ;;  %v678_v50 = vsel %vm674_vm15, %v662_v38, %v677_v14 }
 0x202   : > { %v687_v35 = vsel %vm673_vm14, %v684_v27, %v686_v3  ;;  %v8441_v25 = vmul.u32.u64.low %v688_v49, %v683_v0  ;;  %v8442_v46 = vmul.u32.u64.high %v688_v49, %v683_v0, %v8441_v25  ;;  %v12274_v2 = vand.u32 2147483647, %v7940_v60 }
 0x203   : > { %v1868_v39 = vxor.u32 2147483648, %v8399_v41  ;;  %v1870_v63 = vsub.s32 4, %v8113_v42  ;;  %v2064_v8 = vsub.s32 32, %v2063_v17  ;;  %v6078_v38 = vmin.u32 %v602_v59, %v8424_v7 }
 0x204   : > { %vm8447_vm4 = vcmp.le.f32.partialorder %v12274_v2, 0.7853982  ;;  %v2178_v56 = vcvt.s32.f32 %v2171_v28  ;;  %v1968_v12 = vand.u32 2147483647, %v1967_v19  ;;  %vm12025_vm5 = vcmp.lt.s32.totalorder %v7996_v16, 0 }
 0x205   : > { %v8454_v14 = vmul.u32.u64.low %v688_v49, %v687_v35  ;;  %v8455_v11 = vmul.u32.u64.high %v688_v49, %v687_v35, %v8454_v14  ;;  %v2048_v0 = vadd.s32 %v8277_v1, %v8287_v61  ;;  %v2070_v27 = vshll.u32 %v2069_v30, 23 }
 0x206   : > { %v604_v48 = vclz %v6078_v38  ;;  %v679_v26 = vsel %vm673_vm14, %v676_v31, %v678_v50  ;;  %6759 = vcosq.f32 %v8366_v37  ;;  %v2179_v3 = vmul.f32 %v2178_v56, %v2176_v6 }
 0x207   : > { %v1970_v2 = vcvt.s32.f32 %v1963_v23  ;;  %v698_v59 = vadd.s32 1, %v8442_v46  ;;  %6761 = vsinq.f32 %v8366_v37  ;;  %v8468_v28 = vsel %vm1786_vm9, %v1870_v63, %v8113_v42 }
 0x208   : > { %v2066_v1 = vshrl.u32 %v2048_v0, %v2064_v8  ;;  %v6079_v61 = vadd.s32 4294967294, %v604_v48  ;;  %v1869_v30 = vsel %vm1786_vm9, %v1868_v39, %v8399_v41  ;;  %v12277_v47 = vand.u32 2147483647, %v7996_v16 }
 0x209   : > { %v12278_v6 = vmov 0  ;;  %v1971_v37 = vmul.f32 %v1970_v2, %v1968_v12  ;;  %v12280_v19 = vand.u32 2147483647, %v12251_v9  ;;  %v695_v23 = vmul.u32 %v688_v49, %v679_v26 }
 0x20a   : > { %vm8476_vm8 = vcmp.le.f32.partialorder %v12277_v47, 0.7853982  ;;  %vm697_vm0 = vc.u32 %v8455_v11, %v8441_v25  ;;  %v2065_v31 = vshll.u32 %v8374_v58, %v2063_v17  ;;  %v2071_v41 = vor.u32 4788187, %v2070_v27 }
 0x20b   : > { %v12279_v6 = vsel %vm8476_vm8, 4294967295, %v12278_v6  ;;  %vm8482_vm14 = vcmp.le.f32.partialorder %v12280_v19, 0.7853982  ;;  %vm6080_vm9 = vcmp.lt.s32.totalorder %v6079_v61, 0  ;;  %v699_v50 = vsel %vm697_vm0, %v698_v59, %v8442_v46  ;;  %v12286_v19 = vld [vmem:[#allocation31_spill] sm:$0xff] }
 0x20c   : > { %v2180_v35 = vxor.u32 2147483648, %v2179_v3  ;;  %v12283_v39 = vand.u32 2147483647, %v8087_v43  ;;  %v12284_v63 = vmov 0  ;;  %v607_v8 = vsel %vm6080_vm9, 0, %v6079_v61 }
 0x20d   : > { %v622_v38 = vsub.s32 4, %v8406_v29  ;;  %v700_v49 = vadd.s32 %v699_v50, %v695_v23  ;;  %v2067_v56 = vor.u32 %v2066_v1, %v2065_v31  ;;  %v592_v12 = vadd.s32 %v8349_v33, %v8347_v21 }
 0x20e   : > { %vm8492_vm15 = vcmp.le.f32.partialorder %v12283_v39, 0.7853982  ;;  %v608_v58 = vsub.s32 32, %v607_v8  ;;  %v612_v17 = vsub.s32 4294967266, %v607_v8  ;;  %v1872_v46 = vsel %vm8447_vm4, %v7940_v60, %v1869_v30 }
 0x20f   : > { %v12285_v63 = vsel %vm8492_vm15, 4294967295, %v12284_v63  ;;  %v1972_v14 = vxor.u32 2147483648, %v1971_v37  ;;  %vm12026_vm0 = vcmp.lt.s32.totalorder %v12251_v9, 0  ;;  %v701_v0 = vadd.s32 536870912, %v700_v49 }
 0x210   : > { %v2072_v27 = vand.u32 2147483647, %v2071_v41  ;;  %v609_v48 = vshll.u32 %v8424_v7, %v607_v8  ;;  %v610_v26 = vshrl.u32 %v592_v12, %v608_v58  ;;  %v613_v2 = vadd.s32 127, %v612_v17  ;;  %v8516_v31 = vpop.eup %6759 }
 0x211   : > { %v2181_v59 = vsel %vm12025_vm5, %v2180_v35, %v2179_v3  ;;  %v2182_v21 = vsub.s32 4, %v8173_v34  ;;  %vm1994_vm9 = vcmp.lt.s32.totalorder %v8142_v15, 0  ;;  %v623_v33 = vsel %vm12026_vm0, %v622_v38, %v8406_v29  ;;  %v8522_v29 = vpop.eup %6761 }
 0x212   : > { %v8511_v1 = vshrl.u32 %v701_v0, 30  ;;  %v2074_v61 = vcvt.s32.f32 %v2067_v56  ;;  %v611_v30 = vor.u32 %v610_v26, %v609_v48  ;;  %v614_v47 = vshll.u32 %v613_v2, 23  ;;  %v12292_v48 = vld [vmem:[#allocation19_spill] sm:$0xff] }
 0x213   : > { %v833_v23 = vsel %vm7536_vm12, 0, %v12286_v19  ;;  %6763 = vcosq.f32 %v1872_v46  ;;  %vm12288_vm5 = vcmp.lt.s32.totalorder %v8087_v43, 0  ;;  %v1974_v41 = vsub.s32 4, %v8259_v62 }
 0x214   : > { %v1973_v3 = vsel %vm12288_vm5, %v1972_v14, %v1971_v37  ;;  %v703_v50 = vshll.u32 %v8511_v1, 30  ;;  %v2184_v35 = vsel %vm8476_vm8, %v7996_v16, %v2181_v59  ;;  %v2075_v39 = vmul.f32 %v2074_v61, %v2072_v27 }
 0x215   : > { %v615_v8 = vor.u32 4788187, %v614_v47  ;;  %v625_v38 = vsel %vm8482_vm14, 0, %v623_v33  ;;  %6765 = vsinq.f32 %v1872_v46  ;;  %v2078_v56 = vsub.s32 4, %v8338_v10 }
 0x216   : > { %v8530_v12 = vsub.s32 %v700_v49, %v703_v50  ;;  %v837_v37 = vadd.s32 3, %v833_v23  ;;  %v1976_v58 = vsel %vm8492_vm15, %v8087_v43, %v1973_v3  ;;  %v12289_v17 = vand.u32 2147483647, %v8142_v15 }
 0x217   : > { %v12290_v14 = vmov 0  ;;  %v616_v0 = vand.u32 2147483647, %v615_v8  ;;  %v618_v27 = vcvt.s32.f32 %v611_v30  ;;  %v937_v46 = vsel %vm7553_vm13, 0, %v12292_v48  ;;  %v12304_v48 = vld [vmem:[#allocation37_spill] sm:$0xff] }
 0x218   : > { %vm8537_vm12 = vcmp.le.f32.partialorder %v12289_v17, 0.7853982  ;;  %vm12294_vm5 = vcmp.lt.s32.totalorder %v7996_v16, 0  ;;  %6767 = vcosq.f32 %v2184_v35  ;;  %v629_v2 = vadd.s32 3, %v625_v38  ;;  %v12310_v16 = vld [vmem:[#allocation42_spill] sm:$0xff] }
 0x219   : > { %v12291_v14 = vsel %vm8537_vm12, 4294967295, %v12290_v14  ;;  %v8547_v49 = vsel %vm12294_vm5, %v2182_v21, %v8173_v34  ;;  %v706_v59 = vsub.s32 0, %v8530_v12  ;;  %6769 = vsinq.f32 %v2184_v35 }
 0x21a   : > { %vm12295_vm0 = vcmp.lt.s32.totalorder %v8087_v43, 0  ;;  %v2076_v61 = vxor.u32 2147483648, %v2075_v39  ;;  %v619_v30 = vmul.f32 %v618_v27, %v616_v0  ;;  %6771 = vcosq.f32 %v1976_v58  ;;  %v12302_v0 = vld [vmem:[#allocation40_spill] sm:$0xff] }
 0x21b   : > { %v8553_v33 = vsel %vm12295_vm0, %v1974_v41, %v8259_v62  ;;  %v6082_v47 = vmin.u32 %v706_v59, %v8530_v12  ;;  %v838_v19 = vand.u32 3, %v837_v37  ;;  %v941_v7 = vadd.s32 3, %v937_v46  ;;  %v12296_v41 = vld [vmem:[#allocation35_spill] sm:$0xff]  ;;  %v12301_v37 = vld [vmem:[#allocation34_spill] sm:$0xff]  ;;  %v12305_v46 = vld [vmem:[#allocation36_spill] sm:$0xff] }
 0x21c   : > { %6773 = vsinq.f32 %v1976_v58  ;;  %v8559_v34 = vsel %vm1994_vm9, %v2078_v56, %v8338_v10  ;;  %v620_v21 = vxor.u32 2147483648, %v619_v30  ;;  %v8562_v23 = vand.u32 3, %v629_v2 }
 0x21d   : > { %v696_v62 = vadd.s32 %v8441_v25, %v8455_v11  ;;  %v708_v3 = vclz %v6082_v47  ;;  %v841_v50 = vxor.u32 2147483648, %v12296_v41  ;;  %v2077_v35 = vsel %vm1994_vm9, %v2076_v61, %v2075_v39  ;;  %v8579_v25 = vpop.eup %6763  ;;  %v12306_v47 = vld [vmem:[#allocation5_spill] sm:$0xff] }
 0x21e   : > { %vm12297_vm0 = vcmp.lt.s32.totalorder %v12251_v9, 0  ;;  %v12298_v10 = vand.u32 2147483647, %v12266_v24  ;;  %v726_v56 = vsub.s32 4, %v8511_v1  ;;  %v844_v58 = vxor.u32 2147483648, %v12301_v37 }
 0x21f   : > { %v621_v8 = vsel %vm12297_vm0, %v620_v21, %v619_v30  ;;  %v6083_v11 = vadd.s32 4294967294, %v708_v3  ;;  %v942_v17 = vand.u32 3, %v941_v7  ;;  %v1041_v27 = vsel %vm7650_vm2, 0, %v12302_v0  ;;  %v8586_v59 = vpop.eup %6765 }
 0x220   : > { %vm8573_vm5 = vcmp.le.f32.partialorder %v12298_v10, 0.7853982  ;;  %vm840_vm9 = vcmp.eq.s32.totalorder %v838_v19, 0  ;;  %vm843_vm0 = vcmp.eq.s32.totalorder %v838_v19, 2  ;;  %v945_v26 = vxor.u32 2147483648, %v12304_v48 }
 0x221   : > { %v948_v2 = vxor.u32 2147483648, %v12305_v46  ;;  %v2080_v61 = vsel %vm8537_vm12, %v8142_v15, %v2077_v35  ;;  %v624_v30 = vsel %vm8482_vm14, %v12251_v9, %v621_v8  ;;  %vm6084_vm13 = vcmp.lt.s32.totalorder %v6083_v11, 0  ;;  %v12311_v15 = vld [vmem:[#allocation38_spill] sm:$0xff] }
 0x222   : > { %vm836_vm8 = vweird.f32 %v12306_v47  ;;  %v842_v7 = vsel %vm840_vm9, %v12301_v37, %v841_v50  ;;  %v711_v21 = vsel %vm6084_vm13, 0, %v6083_v11  ;;  %vm12307_vm2 = vcmp.lt.s32.totalorder %v12266_v24, 0  ;;  %v8600_v39 = vpop.eup %6767 }
 0x223   : > { %v727_v3 = vsel %vm12307_vm2, %v726_v56, %v8511_v1  ;;  %v845_v10 = vsel %vm843_vm0, %v844_v58, %v12296_v41  ;;  %v1045_v0 = vadd.s32 3, %v1041_v27  ;;  %v712_v35 = vsub.s32 32, %v711_v21  ;;  %v8602_v42 = vpop.eup %6769 }
 0x224   : > { %v716_v52 = vsub.s32 4294967266, %v711_v21  ;;  %vm944_vm12 = vcmp.eq.s32.totalorder %v942_v17, 0  ;;  %vm947_vm15 = vcmp.eq.s32.totalorder %v942_v17, 2  ;;  %6775 = vcosq.f32 %v624_v30  ;;  %v8609_v56 = vpop.eup %6771 }
 0x225   : > { %v946_v8 = vsel %vm944_vm12, %v12305_v46, %v945_v26  ;;  %v949_v50 = vsel %vm947_vm15, %v948_v2, %v12304_v48  ;;  %v1145_v1 = vsel %vm7903_vm10, 0, %v7964_v40  ;;  %6777 = vsinq.f32 %v624_v30  ;;  %v12309_v26 = vld [vmem:[#allocation21_spill] sm:$0xff] }
 0x226   : > { %v713_v41 = vshll.u32 %v8530_v12, %v711_v21  ;;  %v714_v37 = vshrl.u32 %v696_v62, %v712_v35  ;;  %v717_v58 = vadd.s32 127, %v716_v52  ;;  %v8612_v11 = vpop.eup %6773  ;;  %vm12308_vm14 = vcmp.lt.s32.totalorder %v838_v19, 2  ;;  %v12314_v21 = vld [vmem:[#allocation10_spill] sm:$0xff] }
 0x227   : > { %v846_v27 = vsel %vm12308_vm14, %v842_v7, %v845_v10  ;;  %vm943_vm13 = vcmp.lt.s32.totalorder %v942_v17, 2  ;;  %v1046_v45 = vand.u32 3, %v1045_v0  ;;  %v1350_v46 = vsub.s32 4, %v12309_v26  ;;  %v12313_v7 = vld [vmem:[#allocation6_spill] sm:$0xff] }
 0x228   : > { %v715_v48 = vor.u32 %v714_v37, %v713_v41  ;;  %v718_v2 = vshll.u32 %v717_v58, 23  ;;  %v729_v22 = vsel %vm8573_vm5, 0, %v727_v3  ;;  %v950_v40 = vsel %vm943_vm13, %v946_v8, %v949_v50  ;;  %v12321_v58 = vld [vmem:[#allocation47_spill] sm:$0xff] }
 0x229   : > { %v1049_v30 = vxor.u32 2147483648, %v12310_v16  ;;  %v1052_v12 = vxor.u32 2147483648, %v12311_v15  ;;  %v1149_v62 = vadd.s32 3, %v1145_v1  ;;  %v1249_v19 = vsel %vm7929_vm3, 0, %v7970_v53 }
 0x22a   : > { %6779 = vcosq.f32 %v2080_v61  ;;  %v719_v17 = vor.u32 4788187, %v718_v2  ;;  %vm940_vm10 = vweird.f32 %v12313_v7  ;;  %vm12315_vm15 = vcmp.lt.s32.totalorder %v12314_v21, 0 }
 0x22b   : > { %v1351_v10 = vsel %vm12315_vm15, %v1350_v46, %v12309_v26  ;;  %v733_v0 = vadd.s32 3, %v729_v22  ;;  %v8629_v3 = vsel %vm836_vm8, nan, %v846_v27  ;;  %v8631_v35 = vsel %vm940_vm10, nan, %v950_v40  ;;  %v12317_v46 = vld [vmem:[#allocation48_spill] sm:$0xff] }
 0x22c   : > { %vm1048_vm12 = vcmp.eq.s32.totalorder %v1046_v45, 0  ;;  %v720_v8 = vand.u32 2147483647, %v719_v17  ;;  %v722_v50 = vcvt.s32.f32 %v715_v48  ;;  %vm1051_vm9 = vcmp.eq.s32.totalorder %v1046_v45, 2 }
 0x22d   : > { %v1253_v53 = vadd.s32 3, %v1249_v19  ;;  %v1050_v1 = vsel %vm1048_vm12, %v12311_v15, %v1049_v30  ;;  %v1053_v41 = vsel %vm1051_vm9, %v1052_v12, %v12310_v16  ;;  %v1150_v37 = vand.u32 3, %v1149_v62  ;;  %v12318_v15 = vld [vmem:[#allocation9_spill] sm:$0xff] }
 0x22e   : > { %v1353_v26 = vsel %vm7882_vm6, 0, %v1351_v10  ;;  %6781 = vsinq.f32 %v2080_v61  ;;  %vm632_vm3 = vcmp.eq.s32.totalorder %v8562_v23, 0  ;;  %vm635_vm8 = vcmp.eq.s32.totalorder %v8562_v23, 2  ;;  %v6776_v2 = vpop.eup %6775 }
 0x22f   : > { %v723_v47 = vmul.f32 %v722_v50, %v720_v8  ;;  %v1153_v27 = vxor.u32 2147483648, %v8032_v51  ;;  %v1156_v48 = vxor.u32 2147483648, %v12317_v46  ;;  %v8641_v22 = vand.u32 3, %v733_v0  ;;  %v6778_v40 = vpop.eup %6777  ;;  %v12320_v50 = vld [vmem:[#allocation46_spill] sm:$0xff] }
 0x230   : > { %v2206_v16 = vpack.c.bf16 %v8631_v35, %v8629_v3  ;;  %vm1044_vm0 = vweird.f32 %v12318_v15  ;;  %vm1047_vm2 = vcmp.lt.s32.totalorder %v1046_v45, 2  ;;  %v1254_v12 = vand.u32 3, %v1253_v53 }
 0x231   : > { %v724_v61 = vxor.u32 2147483648, %v723_v47  ;;  %v1054_v30 = vsel %vm1047_vm2, %v1050_v1, %v1053_v41  ;;  %v1357_v62 = vadd.s32 3, %v1353_v26  ;;  %vm631_vm6 = vcmp.lt.s32.totalorder %v8562_v23, 2 }
 0x232   : > { %vm1152_vm14 = vcmp.eq.s32.totalorder %v1150_v37, 0  ;;  %vm1155_vm13 = vcmp.eq.s32.totalorder %v1150_v37, 2  ;;  %v1257_v52 = vxor.u32 2147483648, %v8044_v13  ;;  %v1260_v19 = vxor.u32 2147483648, %v8039_v5 }
 0x233   : > { %vm12319_vm10 = vcmp.lt.s32.totalorder %v12266_v24, 0  ;;  %vm1151_vm15 = vcmp.lt.s32.totalorder %v1150_v37, 2  ;;  %v1154_v7 = vsel %vm1152_vm14, %v12317_v46, %v1153_v27  ;;  %v1157_v45 = vsel %vm1155_vm13, %v1156_v48, %v8032_v51  ;;  %v12322_v51 = vld [vmem:[#allocation44_spill] sm:$0xff] }
 0x234   : > { %v725_v17 = vsel %vm12319_vm10, %v724_v61, %v723_v47  ;;  %v633_v10 = vxor.u32 2147483648, %v6778_v40  ;;  %v636_v0 = vxor.u32 2147483648, %v6776_v2  ;;  %v1457_v53 = vsel %vm7984_vm11, 0, %v12320_v50  ;;  %v8659_v1 = vpop.eup %6779 }
 0x235   : > { %v728_v8 = vsel %vm8573_vm5, %v12266_v24, %v725_v17  ;;  %vm628_vm12 = vweird.f32 %v12251_v9  ;;  %vm1256_vm9 = vcmp.eq.s32.totalorder %v1254_v12, 0  ;;  %v1358_v41 = vand.u32 3, %v1357_v62 }
 0x236   : > { %6783 = vcosq.f32 %v728_v8  ;;  %v1361_v26 = vxor.u32 2147483648, %v12321_v58  ;;  %vm1259_vm2 = vcmp.eq.s32.totalorder %v1254_v12, 2  ;;  %v1364_v47 = vxor.u32 2147483648, %v12322_v51 }
 0x237   : > { %6785 = vsinq.f32 %v728_v8  ;;  %v1561_v38 = vsel %vm8193_vm7, 0, %v8221_v54  ;;  %v1158_v36 = vsel %vm1151_vm15, %v1154_v7, %v1157_v45  ;;  %v1258_v27 = vsel %vm1256_vm9, %v8039_v5, %v1257_v52  ;;  %v12323_v8 = vld [vmem:[#allocation16_spill] sm:$0xff] }
 0x238   : > { %v1261_v46 = vsel %vm1259_vm2, %v1260_v19, %v8044_v13  ;;  %v1461_v48 = vadd.s32 3, %v1457_v53  ;;  %v634_v61 = vsel %vm632_vm3, %v6776_v2, %v633_v10  ;;  %v637_v62 = vsel %vm635_vm8, %v636_v0, %v6778_v40  ;;  %v8679_v4 = vpop.eup %6781  ;;  %v12324_v40 = vld [vmem:[#allocation20_spill] sm:$0xff]  ;;  %v12326_v19 = vld [vmem:[#allocation49_spill] sm:$0xff] }
 0x239   : > { %v8676_v17 = vsel %vm1044_vm0, nan, %v1054_v30  ;;  %vm1148_vm11 = vweird.f32 %v12323_v8  ;;  %vm739_vm7 = vcmp.eq.s32.totalorder %v8641_v22, 2  ;;  %vm1255_vm5 = vcmp.lt.s32.totalorder %v1254_v12, 2  ;;  %v12325_v12 = vld [vmem:[#allocation52_spill] sm:$0xff] }
 0x23a   : > { %vm1360_vm14 = vcmp.eq.s32.totalorder %v1358_v41, 0  ;;  %vm1363_vm13 = vcmp.eq.s32.totalorder %v1358_v41, 2  ;;  %v1565_v5 = vadd.s32 3, %v1561_v38  ;;  %vm736_vm10 = vcmp.eq.s32.totalorder %v8641_v22, 0 }
 0x23b   : > { %v8683_v13 = vsel %vm1148_vm11, nan, %v1158_v36  ;;  %v1262_v54 = vsel %vm1255_vm5, %v1258_v27, %v1261_v46  ;;  %v1362_v37 = vsel %vm1360_vm14, %v12322_v51, %v1361_v26  ;;  %v1365_v2 = vsel %vm1363_vm13, %v1364_v47, %v12321_v58 }
 0x23c   : > { %v638_v15 = vsel %vm631_vm6, %v634_v61, %v637_v62  ;;  %vm735_vm3 = vcmp.lt.s32.totalorder %v8641_v22, 2  ;;  %vm1252_vm8 = vweird.f32 %v12324_v40  ;;  %vm1356_vm0 = vweird.f32 %v12314_v21  ;;  %v12330_v61 = vld [vmem:[#allocation53_spill] sm:$0xff] }
 0x23d   : > { %v1462_v30 = vand.u32 3, %v1461_v48  ;;  %vm732_vm15 = vweird.f32 %v12266_v24  ;;  %vm1359_vm9 = vcmp.lt.s32.totalorder %v1358_v41, 2  ;;  %v1465_v52 = vxor.u32 2147483648, %v12325_v12  ;;  %v12327_v41 = vld [vmem:[#allocation24_spill] sm:$0xff]  ;;  %v12329_v48 = vld [vmem:[#allocation50_spill] sm:$0xff] }
 0x23e   : > { %v1468_v7 = vxor.u32 2147483648, %v12326_v19  ;;  %v1665_v45 = vsel %vm8305_vm1, 0, %v8359_v44  ;;  %vm12072_vm2 = vcmask 261120   ;;  %v2207_v23 = vpack.c.bf16 %v8683_v13, %v8676_v17 }
 0x23f   : > { %v8700_v10 = vsel %vm1252_vm8, nan, %v1262_v54  ;;  %v1366_v0 = vsel %vm1359_vm9, %v1362_v37, %v1365_v2  ;;  %v1566_v50 = vand.u32 3, %v1565_v5  ;;  %v639_v53 = vsel %vm628_vm12, nan, %v638_v15 }
 0x240   : > { %vm1460_vm6 = vweird.f32 %v12327_v41  ;;  %v1569_v58 = vxor.u32 2147483648, %v8404_v20  ;;  %v1572_v26 = vxor.u32 2147483648, %v8272_v57  ;;  %v6784_v51 = vpop.eup %6783  ;;  %vm1464_vm11 = vcmp.eq.s32.totalorder %v1462_v30, 0 }
 0x241   : > { %vm1467_vm1 = vcmp.eq.s32.totalorder %v1462_v30, 2  ;;  %vm1564_vm5 = vweird.f32 %v12328_v32  ;;  %v1669_v44 = vadd.s32 3, %v1665_v45  ;;  %v6786_v47 = vpop.eup %6785  ;;  %v740_v38 = vxor.u32 2147483648, %v6784_v51 }
 0x242   : > { %v8710_v36 = vsel %vm1356_vm0, nan, %v1366_v0  ;;  %v1466_v9 = vsel %vm1464_vm11, %v12326_v19, %v1465_v52  ;;  %v1469_v27 = vsel %vm1467_vm1, %v1468_v7, %v12325_v12  ;;  %v737_v46 = vxor.u32 2147483648, %v6786_v47 }
 0x243   : > { %vm1568_vm12 = vcmp.eq.s32.totalorder %v1566_v50, 0  ;;  %vm1571_vm14 = vcmp.eq.s32.totalorder %v1566_v50, 2  ;;  %vm12331_vm13 = vnez %v12330_v61  ;;  %v741_v17 = vsel %vm739_vm7, %v740_v38, %v6786_v47 }
 0x244   : > { %v1769_v62 = vsel %vm12331_vm13, 0, %v12329_v48  ;;  %vm1463_vm8 = vcmp.lt.s32.totalorder %v1462_v30, 2  ;;  %v1570_v8 = vsel %vm1568_vm12, %v8272_v57, %v1569_v58  ;;  %v1573_v21 = vsel %vm1571_vm14, %v1572_v26, %v8404_v20  ;;  %v12335_v58 = vld [vmem:[#allocation8_spill] sm:$0xff] }
 0x245   : > { %v738_v5 = vsel %vm736_vm10, %v6784_v51, %v737_v46  ;;  %v1470_v13 = vsel %vm1463_vm8, %v1466_v9, %v1469_v27  ;;  %v1670_v54 = vand.u32 3, %v1669_v44  ;;  %v1873_v37 = vsel %vm8447_vm4, 0, %v8468_v28  ;;  %v12337_v48 = vld [vmem:[#allocation32_spill] sm:$0xff] }
 0x246   : > { %v742_v2 = vsel %vm735_vm3, %v738_v5, %v741_v17  ;;  %vm1567_vm0 = vcmp.lt.s32.totalorder %v1566_v50, 2  ;;  %v1673_v15 = vxor.u32 2147483648, %v8522_v29  ;;  %v1773_v40 = vadd.s32 3, %v1769_v62 }
 0x247   : > { %v743_v57 = vsel %vm732_vm15, nan, %v742_v2  ;;  %v1574_v20 = vsel %vm1567_vm0, %v1570_v8, %v1573_v21  ;;  %v1676_v30 = vxor.u32 2147483648, %v8516_v31  ;;  %vm12332_vm7 = vnez %v12285_v63  ;;  %v12333_v63 = vld [vmem:[#allocation39_spill] sm:$0xff] }
 0x248   : > { %v1977_v12 = vsel %vm12332_vm7, 0, %v8553_v33  ;;  %v2205_v52 = vpack.c.bf16 %v743_v57, %v639_v53  ;;  %v2208_v55 = vpack.c.bf16 %v8710_v36, %v8700_v10  ;;  %v1877_v28 = vadd.s32 3, %v1873_v37  ;;  %v12338_v2 = vld [vmem:[#allocation51_spill] sm:$0xff] }
 0x249   : > { %v1981_v22 = vadd.s32 3, %v1977_v12  ;;  %v1471_v19 = vsel %vm1460_vm6, nan, %v1470_v13  ;;  %vm1672_vm4 = vcmp.eq.s32.totalorder %v1670_v54, 0  ;;  %vm1675_vm10 = vcmp.eq.s32.totalorder %v1670_v54, 2 }
 0x24a   : > { %v1777_v24 = vxor.u32 2147483648, %v8268_v18  ;;  %6358 = vmatprep.mubr.msk.bf16.mxu1 %vm12072_vm2, %v2205_v52  ;;  %v1575_v7 = vsel %vm1564_vm5, nan, %v1574_v20  ;;  %vm1668_vm3 = vweird.f32 %v12333_v63  ;;  %v1774_v33 = vand.u32 3, %v1773_v40 }
 0x24b   : > { %v1982_v45 = vand.u32 3, %v1981_v22  ;;  %vm12334_vm15 = vnez %v12291_v14  ;;  %6359 = vmatmul.mubr.msk.bf16.vlgmr.msra.gmra.mrb[0].mxu1 %vm12072_vm2, %v2206_v16  ;;  %v1674_v0 = vsel %vm1672_vm4, %v8516_v31, %v1673_v15  ;;  %v1677_v50 = vsel %vm1675_vm10, %v1676_v30, %v8522_v29 }
 0x24c   : > { %v2081_v10 = vsel %vm12334_vm15, 0, %v8559_v34  ;;  %v1985_v53 = vxor.u32 2147483648, %v8612_v11  ;;  %v1988_v41 = vxor.u32 2147483648, %v8609_v56  ;;  %6362 = vmatprep.mubr.msk.bf16.mxu1 %vm12072_vm2, %v2207_v23  ;;  %vm1671_vm9 = vcmp.lt.s32.totalorder %v1670_v54, 2 }
 0x24d   : > { %v1780_v26 = vxor.u32 2147483648, %v12335_v58  ;;  %v1878_v14 = vand.u32 3, %v1877_v28  ;;  %vm12336_vm6 = vnez %v12279_v6  ;;  %v2209_v3 = vpack.c.bf16 %v1575_v7, %v1471_v19 }
 0x24e   : > { %v2185_v34 = vsel %vm12336_vm6, 0, %v8547_v49  ;;  %v1881_v35 = vxor.u32 2147483648, %v8586_v59  ;;  %v1884_v31 = vxor.u32 2147483648, %v8579_v25  ;;  %v2085_v29 = vadd.s32 3, %v2081_v10 }
 0x24f   : > { %v1678_v16 = vsel %vm1671_vm9, %v1674_v0, %v1677_v50  ;;  %vm1776_vm11 = vcmp.eq.s32.totalorder %v1774_v33, 0  ;;  %vm1984_vm1 = vcmp.eq.s32.totalorder %v1982_v45, 0  ;;  %vm1987_vm5 = vcmp.eq.s32.totalorder %v1982_v45, 2 }
 0x250   : > { %vm1779_vm12 = vcmp.eq.s32.totalorder %v1774_v33, 2  ;;  %v1986_v23 = vsel %vm1984_vm1, %v8609_v56, %v1985_v53  ;;  %v1989_v51 = vsel %vm1987_vm5, %v1988_v41, %v8612_v11  ;;  %v2189_v32 = vadd.s32 3, %v2185_v34 }
 0x251   : > { %v1778_v44 = vsel %vm1776_vm11, %v12335_v58, %v1777_v24  ;;  %v1781_v6 = vsel %vm1779_vm12, %v1780_v26, %v8268_v18  ;;  %vm1880_vm14 = vcmp.eq.s32.totalorder %v1878_v14, 0  ;;  %vm1883_vm13 = vcmp.eq.s32.totalorder %v1878_v14, 2 }
 0x252   : > { %v1882_v49 = vsel %vm1880_vm14, %v8579_v25, %v1881_v35  ;;  %v1885_v47 = vsel %vm1883_vm13, %v1884_v31, %v8586_v59  ;;  %vm1983_vm8 = vcmp.lt.s32.totalorder %v1982_v45, 2  ;;  %v2086_v38 = vand.u32 3, %v2085_v29 }
 0x253   : > { %vm1775_vm0 = vcmp.lt.s32.totalorder %v1774_v33, 2  ;;  %v1990_v36 = vsel %vm1983_vm8, %v1986_v23, %v1989_v51  ;;  %v2089_v9 = vxor.u32 2147483648, %v8679_v4  ;;  %v2092_v56 = vxor.u32 2147483648, %v8659_v1  ;;  %6363 = vmatmul.mubr.msk.bf16.gmra.mrb[4].mxu1 %vm12072_vm2, %v2208_v55 }
 0x254   : > { %v1679_v11 = vsel %vm1668_vm3, nan, %v1678_v16  ;;  %v1782_v18 = vsel %vm1775_vm0, %v1778_v44, %v1781_v6  ;;  %vm1879_vm7 = vcmp.lt.s32.totalorder %v1878_v14, 2  ;;  %v2190_v27 = vand.u32 3, %v2189_v32  ;;  %6366 = vmatprep.mubr.msk.bf16.mxu1 %vm12072_vm2, %v2209_v3 }
 0x255   : > { %v1886_v25 = vsel %vm1879_vm7, %v1882_v49, %v1885_v47  ;;  %vm1980_vm4 = vweird.f32 %v8087_v43  ;;  %v2193_v59 = vxor.u32 2147483648, %v8602_v42  ;;  %v2196_v46 = vxor.u32 2147483648, %v8600_v39 }
 0x256   : > { %vm1772_vm10 = vweird.f32 %v12337_v48  ;;  %v1991_v61 = vsel %vm1980_vm4, nan, %v1990_v36  ;;  %vm2088_vm15 = vcmp.eq.s32.totalorder %v2086_v38, 0  ;;  %vm2091_vm9 = vcmp.eq.s32.totalorder %v2086_v38, 2 }
 0x257   : > { %v1783_v62 = vsel %vm1772_vm10, nan, %v1782_v18  ;;  %vm1876_vm3 = vweird.f32 %v7940_v60  ;;  %v2090_v17 = vsel %vm2088_vm15, %v8659_v1, %v2089_v9  ;;  %v2093_v8 = vsel %vm2091_vm9, %v2092_v56, %v8679_v4  ;;  %v12339_v4 = vld [vmem:[#allocation45_spill] sm:$0xff] }
 0x258   : > { %v2210_v21 = vpack.c.bf16 %v1783_v62, %v1679_v11  ;;  %v1887_v5 = vsel %vm1876_vm3, nan, %v1886_v25  ;;  %vm2192_vm6 = vcmp.eq.s32.totalorder %v2190_v27, 0  ;;  %vm2195_vm11 = vcmp.eq.s32.totalorder %v2190_v27, 2 }
 0x259   : > { %v2211_v43 = vpack.c.bf16 %v1991_v61, %v1887_v5  ;;  %vm2087_vm1 = vcmp.lt.s32.totalorder %v2086_v38, 2  ;;  %v2194_v13 = vsel %vm2192_vm6, %v8600_v39, %v2193_v59  ;;  %v2197_v54 = vsel %vm2195_vm11, %v2196_v46, %v8602_v42  ;;  %v8791_v39 = vld [vmem:[%s11924_s4] ss:$0 sm:$0xff] }
 0x25a   : > { %v2094_v37 = vsel %vm2087_vm1, %v2090_v17, %v2093_v8  ;;  %vm2191_vm5 = vcmp.lt.s32.totalorder %v2190_v27, 2  ;;  %vm2084_vm12 = vweird.f32 %v12338_v2  ;;  %vm2188_vm14 = vweird.f32 %v12339_v4 }
 0x25b   : > { %6367 = vmatmul.mubr.msk.bf16.gmra.mrb[8].mxu1 %vm12072_vm2, %v2210_v21  ;;  %v2198_v60 = vsel %vm2191_vm5, %v2194_v13, %v2197_v54  ;;  %v2095_v1 = vsel %vm2084_vm12, nan, %v2094_v37  ;;  %v12340_v27 = vmov 683565275   ;;  %v12341_v48 = vmov 2475754826  }
 0x25c   : > { %6370 = vmatprep.mubr.msk.bf16.mxu1 %vm12072_vm2, %v2211_v43  ;;  %v2199_v15 = vsel %vm2188_vm14, nan, %v2198_v60  ;;  %v12342_v62 = vmov 2131351028   ;;  %v12343_v8 = vmov 2102212464  }
 0x25d   : > { %v2212_v40 = vpack.c.bf16 %v2199_v15, %v2095_v1  ;;  %v12344_v5 = vmov 920167782   ;;  %v12345_v1 = vmov 1326507024  }
 0x263   : > { %6371 = vmatmul.mubr.msk.bf16.gmra.mrb[12].mxu1 %vm12072_vm2, %v2212_v40 }
 0x31e   : > { %v6360_v42 = vpop.f32.mrb[0].mxu1 }
 0x31f   : > { %v2299_v57 = vadd.f32 %v6360_v42, %v8791_v39  ;;  %v2290_v20 = vpop.f32.mrb[1].mxu1 }
 0x320   : > { %v2291_v30 = vadd.f32 %v8791_v39, %v2290_v20  ;;  %v6361_v12 = vpop.f32.mrb[2].mxu1 }
 0x321   : > { %v8795_v52 = vmul.f32 30.0, %v2299_v57  ;;  %v2302_v55 = vadd.f32 %v6361_v12, %v8791_v39  ;;  %v2293_v28 = vpop.f32.mrb[3].mxu1 }
 0x322   : > { %v8798_v22 = vmul.f32 30.0, %v2291_v30  ;;  %v8821_v38 = vadd.f32 %v8791_v39, %v2293_v28 }
 0x323   : > { %v2577_v19 = vand.u32 2147483647, %v8795_v52  ;;  %v2580_v24 = vand.u32 2139095040, %v8795_v52  ;;  %v8804_v33 = vmul.f32 30.0, %v2302_v55 }
 0x324   : > { %v2369_v7 = vand.u32 2147483647, %v8798_v22  ;;  %v2372_v63 = vand.u32 2139095040, %v8798_v22 }
 0x325   : > { %v2581_v45 = vshrl.u32 %v2580_v24, 23  ;;  %v2584_v10 = vand.u32 8388607, %v2577_v19  ;;  %v2684_v41 = vand.u32 2139095040, %v8804_v33  ;;  %v2681_v23 = vand.u32 2147483647, %v8804_v33 }
 0x326   : > { %v2373_v0 = vshrl.u32 %v2372_v63, 23  ;;  %v2376_v50 = vand.u32 8388607, %v2369_v7  ;;  %v8811_v58 = vpop.f32.mrb[4].mxu1 }
 0x327   : > { %v6160_v53 = vadd.s32 4294967169, %v2581_v45  ;;  %v8813_v14 = vpop.f32.mrb[5].mxu1  ;;  %v2685_v3 = vshrl.u32 %v2684_v41, 23  ;;  %v2585_v31 = vor.u32 8388608, %v2584_v10  ;;  %v8829_v56 = vand.u32 8388607, %v2681_v23 }
 0x328   : > { %v6152_v26 = vadd.s32 4294967169, %v2373_v0  ;;  %v8815_v35 = vpop.f32.mrb[6].mxu1  ;;  %v2377_v29 = vor.u32 8388608, %v2376_v50 }
 0x329   : > { %v2587_v34 = vadd.s32 1, %v6160_v53  ;;  %v6164_v51 = vadd.s32 4294967169, %v2685_v3  ;;  %v8818_v32 = vpop.f32.mrb[7].mxu1  ;;  %v8823_v36 = vshll.u32 %v2585_v31, 8 }
 0x32a   : > { %v2379_v16 = vadd.s32 1, %v6152_v26  ;;  %v8825_v9 = vshll.u32 %v2377_v29, 8 }
 0x32b   : > { %vm2588_vm13 = vcmp.gt.s32.totalorder %v2587_v34, 0  ;;  %v8831_v11 = vadd.s32 1, %v6164_v51 }
 0x32c   : > { %v2589_v44 = vsel %vm2588_vm13, %v2587_v34, 0  ;;  %vm2380_vm8 = vcmp.gt.s32.totalorder %v2379_v16, 0 }
 0x32d   : > { %v2590_v6 = vshrl.u32 %v2589_v44, 5  ;;  %v2591_v49 = vand.u32 31, %v2589_v44  ;;  %v2381_v47 = vsel %vm2380_vm8, %v2379_v16, 0  ;;  %vm2692_vm1 = vcmp.gt.s32.totalorder %v8831_v11, 0 }
 0x32e   : > { %v8834_v59 = vshrl.u32 %v2381_v47, 5  ;;  %v2383_v46 = vand.u32 31, %v2381_v47 }
 0x32f   : > { %v2592_v18 = vsub.s32 32, %v2591_v49  ;;  %v2594_v25 = vshll.u32 %v12340_v27, %v2591_v49  ;;  %v2597_v61 = vshll.u32 %v12341_v48, %v2591_v49  ;;  %v2600_v17 = vshll.u32 %v12342_v62, %v2591_v49 }
 0x330   : > { %v2603_v21 = vshll.u32 %v12343_v8, %v2591_v49  ;;  %v2606_v43 = vshll.u32 %v12344_v5, %v2591_v49  ;;  %vm2609_vm0 = vcmp.lt.s32.totalorder %v2590_v6, 1  ;;  %vm2610_vm7 = vcmp.lt.s32.totalorder %v2590_v6, 2 }
 0x331   : > { %v2595_v13 = vshrl.u32 %v12341_v48, %v2592_v18  ;;  %v2598_v54 = vshrl.u32 %v12342_v62, %v2592_v18  ;;  %v2601_v37 = vshrl.u32 %v12343_v8, %v2592_v18  ;;  %v2593_v2 = vshrl.u32 %v12340_v27, %v2592_v18 }
 0x332   : > { %v2604_v60 = vshrl.u32 %v12344_v5, %v2592_v18  ;;  %v2607_v4 = vshrl.u32 %v12345_v1, %v2592_v18  ;;  %v2384_v57 = vsub.s32 32, %v2383_v46  ;;  %vm2611_vm4 = vcmp.lt.s32.totalorder %v2590_v6, 3 }
 0x333   : > { %v2596_v15 = vor.u32 %v2595_v13, %v2594_v25  ;;  %v2599_v40 = vor.u32 %v2598_v54, %v2597_v61  ;;  %v2602_v42 = vor.u32 %v2601_v37, %v2600_v17  ;;  %vm2612_vm10 = vcmp.lt.s32.totalorder %v2590_v6, 4 }
 0x334   : > { %v2605_v20 = vor.u32 %v2604_v60, %v2603_v21  ;;  %v2608_v30 = vor.u32 %v2607_v4, %v2606_v43  ;;  %v2386_v0 = vshll.u32 %v12340_v27, %v2383_v46  ;;  %v2387_v41 = vshrl.u32 %v12341_v48, %v2384_v57 }
 0x335   : > { %v2613_v12 = vsel %vm2609_vm0, %v2593_v2, %v2596_v15  ;;  %v2614_v55 = vsel %vm2612_vm10, %v2602_v42, 2102212464  ;;  %v2617_v28 = vsel %vm2609_vm0, %v2596_v15, %v2599_v40  ;;  %v2621_v24 = vsel %vm2609_vm0, %v2599_v40, %v2602_v42 }
 0x336   : > { %v2615_v63 = vsel %vm2611_vm4, %v2599_v40, %v2614_v55  ;;  %v2618_v45 = vsel %vm2612_vm10, %v2605_v20, 920167782  ;;  %v2622_v10 = vsel %vm2612_vm10, %v2608_v30, 1326507024  ;;  %v2389_v26 = vshll.u32 %v12341_v48, %v2383_v46 }
 0x337   : > { %v2619_v50 = vsel %vm2611_vm4, %v2602_v42, %v2618_v45  ;;  %v2623_v53 = vsel %vm2611_vm4, %v2605_v20, %v2622_v10  ;;  %v2616_v34 = vsel %vm2610_vm7, %v2613_v12, %v2615_v63  ;;  %v2390_v29 = vshrl.u32 %v12342_v62, %v2384_v57 }
 0x338   : > { %v2620_v3 = vsel %vm2610_vm7, %v2617_v28, %v2619_v50  ;;  %v2624_v31 = vsel %vm2610_vm7, %v2621_v24, %v2623_v53  ;;  %v2388_v47 = vor.u32 %v2387_v41, %v2386_v0  ;;  %v2392_v25 = vshll.u32 %v12342_v62, %v2383_v46 }
 0x339   : > { %v8857_v16 = vmul.u32.u64.low %v8823_v36, %v2624_v31  ;;  %v8858_v51 = vmul.u32.u64.high %v8823_v36, %v2624_v31, %v8857_v16  ;;  %v8861_v44 = vmul.u32.u64.low %v8823_v36, %v2620_v3  ;;  %v8862_v49 = vmul.u32.u64.high %v8823_v36, %v2620_v3, %v8861_v44 }
 0x33a   : > { %v2391_v18 = vor.u32 %v2390_v29, %v2389_v26  ;;  %v2393_v61 = vshrl.u32 %v12343_v8, %v2384_v57  ;;  %v2385_v6 = vshrl.u32 %v12340_v27, %v2384_v57  ;;  %v2395_v17 = vshll.u32 %v12343_v8, %v2383_v46 }
 0x33b   : > { %v2396_v21 = vshrl.u32 %v12344_v5, %v2384_v57  ;;  %v2399_v43 = vshrl.u32 %v12345_v1, %v2384_v57  ;;  %v2632_v13 = vmul.u32 %v8823_v36, %v2616_v34  ;;  %v2398_v37 = vshll.u32 %v12344_v5, %v2383_v46 }
 0x33c   : > { %v2394_v54 = vor.u32 %v2393_v61, %v2392_v25  ;;  %vm2401_vm15 = vcmp.lt.s32.totalorder %v8834_v59, 1  ;;  %vm2634_vm9 = vc.u32 %v8858_v51, %v8861_v44  ;;  %v2635_v2 = vadd.s32 1, %v8862_v49  ;;  %v8913_v25 = vpop.f32.mrb[8].mxu1 }
 0x33d   : > { %v2397_v60 = vor.u32 %v2396_v21, %v2395_v17  ;;  %vm2402_vm3 = vcmp.lt.s32.totalorder %v8834_v59, 2  ;;  %v2400_v4 = vor.u32 %v2399_v43, %v2398_v37  ;;  %vm2403_vm6 = vcmp.lt.s32.totalorder %v8834_v59, 3 }
 0x33e   : > { %vm2404_vm11 = vcmp.lt.s32.totalorder %v8834_v59, 4  ;;  %v2409_v15 = vsel %vm2401_vm15, %v2388_v47, %v2391_v18  ;;  %v2636_v36 = vsel %vm2634_vm9, %v2635_v2, %v8862_v49  ;;  %v2413_v42 = vsel %vm2401_vm15, %v2391_v18, %v2394_v54 }
 0x33f   : > { %v2406_v40 = vsel %vm2404_vm11, %v2394_v54, 2102212464  ;;  %v2410_v46 = vsel %vm2404_vm11, %v2397_v60, 920167782  ;;  %v2637_v57 = vadd.s32 %v2636_v36, %v2632_v13  ;;  %v2405_v20 = vsel %vm2401_vm15, %v2385_v6, %v2388_v47 }
 0x340   : > { %v2411_v30 = vsel %vm2403_vm6, %v2394_v54, %v2410_v46  ;;  %v2414_v12 = vsel %vm2404_vm11, %v2400_v4, 1326507024  ;;  %v2407_v55 = vsel %vm2403_vm6, %v2391_v18, %v2406_v40  ;;  %v2693_v41 = vsel %vm2692_vm1, %v8831_v11, 0 }
 0x341   : > { %v2412_v28 = vsel %vm2402_vm3, %v2409_v15, %v2411_v30  ;;  %v2415_v24 = vsel %vm2403_vm6, %v2397_v60, %v2414_v12  ;;  %v2638_v63 = vadd.s32 536870912, %v2637_v57  ;;  %v8897_v26 = vmul.f32 30.0, %v8821_v38  ;;  %v8923_v60 = vpop.f32.mrb[9].mxu1 }
 0x342   : > { %v2416_v45 = vsel %vm2402_vm3, %v2413_v42, %v2415_v24  ;;  %v8887_v10 = vmul.u32.u64.low %v8825_v9, %v2412_v28  ;;  %v8888_v0 = vmul.u32.u64.high %v8825_v9, %v2412_v28, %v8887_v10  ;;  %v2408_v3 = vsel %vm2402_vm3, %v2405_v20, %v2407_v55 }
 0x343   : > { %v8892_v50 = vmul.u32.u64.low %v8825_v9, %v2416_v45  ;;  %v8893_v53 = vmul.u32.u64.high %v8825_v9, %v2416_v45, %v8892_v50  ;;  %12346 = vst [vmem:[#allocation15_spill] sm:$0xff] %v8897_v26  ;;  %v8899_v34 = vshrl.u32 %v2638_v63, 30  ;;  %v2695_v31 = vand.u32 31, %v2693_v41 }
 0x344   : > { %v2689_v29 = vor.u32 8388608, %v8829_v56  ;;  %v2427_v49 = vadd.s32 1, %v8888_v0  ;;  %v2424_v18 = vmul.u32 %v8825_v9, %v2408_v3  ;;  %v2476_v38 = vand.u32 2139095040, %v8897_v26 }
 0x345   : > { %v2640_v16 = vshll.u32 %v8899_v34, 30  ;;  %v2696_v47 = vsub.s32 32, %v2695_v31  ;;  %vm2426_vm5 = vc.u32 %v8893_v53, %v8887_v10  ;;  %v2473_v6 = vand.u32 2147483647, %v8897_v26 }
 0x346   : > { %v2428_v59 = vsel %vm2426_vm5, %v2427_v49, %v8888_v0  ;;  %v8915_v56 = vshll.u32 %v2689_v29, 8  ;;  %v2694_v54 = vshrl.u32 %v2693_v41, 5  ;;  %v2704_v37 = vshll.u32 %v12342_v62, %v2695_v31 }
 0x347   : > { %v8910_v11 = vsub.s32 %v2637_v57, %v2640_v16  ;;  %v2429_v61 = vadd.s32 %v2428_v59, %v2424_v18  ;;  %v2699_v9 = vshrl.u32 %v12341_v48, %v2696_v47  ;;  %v2702_v21 = vshrl.u32 %v12342_v62, %v2696_v47 }
 0x348   : > { %v2705_v43 = vshrl.u32 %v12343_v8, %v2696_v47  ;;  %v2477_v2 = vshrl.u32 %v2476_v38, 23  ;;  %v2698_v15 = vshll.u32 %v12340_v27, %v2695_v31  ;;  %v2701_v36 = vshll.u32 %v12341_v48, %v2695_v31 }
 0x349   : > { %v2643_v17 = vsub.s32 0, %v8910_v11  ;;  %v2430_v13 = vadd.s32 536870912, %v2429_v61  ;;  %v2708_v40 = vshrl.u32 %v12344_v5, %v2696_v47  ;;  %v2707_v57 = vshll.u32 %v12343_v8, %v2695_v31 }
 0x34a   : > { %v2706_v42 = vor.u32 %v2705_v43, %v2704_v37  ;;  %v2711_v20 = vshrl.u32 %v12345_v1, %v2696_v47  ;;  %v2633_v30 = vadd.s32 %v8861_v44, %v8858_v51  ;;  %v2700_v55 = vor.u32 %v2699_v9, %v2698_v15 }
 0x34b   : > { %v6161_v4 = vmin.u32 %v2643_v17, %v8910_v11  ;;  %v8929_v46 = vshrl.u32 %v2430_v13, 30  ;;  %v2703_v28 = vor.u32 %v2702_v21, %v2701_v36  ;;  %v2709_v63 = vor.u32 %v2708_v40, %v2707_v57 }
 0x34c   : > { %v2710_v45 = vshll.u32 %v12344_v5, %v2695_v31  ;;  %v6156_v0 = vadd.s32 4294967169, %v2477_v2  ;;  %v2663_v41 = vsub.s32 4, %v8899_v34  ;;  %v2697_v3 = vshrl.u32 %v12340_v27, %v2696_v47 }
 0x34d   : > { %v2645_v12 = vclz %v6161_v4  ;;  %v2432_v24 = vshll.u32 %v8929_v46, 30  ;;  %vm2716_vm12 = vcmp.lt.s32.totalorder %v2694_v54, 4  ;;  %vm2713_vm14 = vcmp.lt.s32.totalorder %v2694_v54, 1 }
 0x34e   : > { %v2712_v16 = vor.u32 %v2711_v20, %v2710_v45  ;;  %v2718_v51 = vsel %vm2716_vm12, %v2706_v42, 2102212464  ;;  %vm2714_vm8 = vcmp.lt.s32.totalorder %v2694_v54, 2  ;;  %vm2715_vm0 = vcmp.lt.s32.totalorder %v2694_v54, 3 }
 0x34f   : > { %v6162_v50 = vadd.s32 4294967294, %v2645_v12  ;;  %v8939_v29 = vsub.s32 %v2429_v61, %v2432_v24  ;;  %v2721_v44 = vsel %vm2713_vm14, %v2700_v55, %v2703_v28  ;;  %v2717_v18 = vsel %vm2713_vm14, %v2697_v3, %v2700_v55 }
 0x350   : > { %v2722_v38 = vsel %vm2716_vm12, %v2709_v63, 920167782  ;;  %v2719_v61 = vsel %vm2715_vm0, %v2703_v28, %v2718_v51  ;;  %v2725_v43 = vsel %vm2713_vm14, %v2703_v28, %v2706_v42  ;;  %v2726_v13 = vsel %vm2716_vm12, %v2712_v16, 1326507024 }
 0x351   : > { %vm6163_vm13 = vcmp.lt.s32.totalorder %v6162_v50, 0  ;;  %v2435_v31 = vsub.s32 0, %v8939_v29  ;;  %v2723_v17 = vsel %vm2715_vm0, %v2706_v42, %v2722_v38  ;;  %v2727_v15 = vsel %vm2715_vm0, %v2709_v63, %v2726_v13 }
 0x352   : > { %v2648_v49 = vsel %vm6163_vm13, 0, %v6162_v50  ;;  %v2724_v21 = vsel %vm2714_vm8, %v2721_v44, %v2723_v17  ;;  %v2728_v40 = vsel %vm2714_vm8, %v2725_v43, %v2727_v15  ;;  %vm2579_vm7 = vcmp.lt.s32.totalorder %v8795_v52, 0 }
 0x353   : > { %v2649_v47 = vsub.s32 32, %v2648_v49  ;;  %v2653_v59 = vsub.s32 4294967266, %v2648_v49  ;;  %v6153_v9 = vmin.u32 %v2435_v31, %v8939_v29  ;;  %v2650_v37 = vshll.u32 %v8910_v11, %v2648_v49 }
 0x354   : > { %v8956_v57 = vmul.u32.u64.low %v8915_v56, %v2724_v21  ;;  %v8957_v20 = vmul.u32.u64.high %v8915_v56, %v2724_v21, %v8956_v57  ;;  %v8961_v42 = vmul.u32.u64.low %v8915_v56, %v2728_v40  ;;  %v8962_v28 = vmul.u32.u64.high %v8915_v56, %v2728_v40, %v8961_v42 }
 0x355   : > { %v2651_v2 = vshrl.u32 %v2633_v30, %v2649_v47  ;;  %v2654_v4 = vadd.s32 127, %v2653_v59  ;;  %v2437_v36 = vclz %v6153_v9  ;;  %v2720_v30 = vsel %vm2714_vm8, %v2717_v18, %v2719_v61 }
 0x356   : > { %v2483_v24 = vadd.s32 1, %v6156_v0  ;;  %v2664_v45 = vsel %vm2579_vm7, %v2663_v41, %v8899_v34  ;;  %vm8971_vm4 = vcmp.le.f32.partialorder %v2577_v19, 0.7853982  ;;  %v2739_v3 = vadd.s32 1, %v8957_v20 }
 0x357   : > { %v2652_v12 = vor.u32 %v2651_v2, %v2650_v37  ;;  %v2655_v55 = vshll.u32 %v2654_v4, 23  ;;  %v6154_v11 = vadd.s32 4294967294, %v2437_v36  ;;  %v2480_v16 = vand.u32 8388607, %v2473_v6  ;;  %v9005_v36 = vpop.f32.mrb[10].mxu1 }
 0x358   : > { %vm2484_vm10 = vcmp.gt.s32.totalorder %v2483_v24, 0  ;;  %v2736_v0 = vmul.u32 %v8915_v56, %v2720_v30  ;;  %vm2738_vm15 = vc.u32 %v8962_v28, %v8956_v57  ;;  %v2666_v34 = vsel %vm8971_vm4, 0, %v2664_v45 }
 0x359   : > { %v2656_v63 = vor.u32 4788187, %v2655_v55  ;;  %v2659_v51 = vcvt.s32.f32 %v2652_v12  ;;  %vm6155_vm9 = vcmp.lt.s32.totalorder %v6154_v11, 0  ;;  %v2740_v19 = vsel %vm2738_vm15, %v2739_v3, %v8957_v20 }
 0x35a   : > { %v2741_v44 = vadd.s32 %v2740_v19, %v2736_v0  ;;  %v2485_v49 = vsel %vm2484_vm10, %v2483_v24, 0  ;;  %v2481_v31 = vor.u32 8388608, %v2480_v16  ;;  %v2670_v47 = vadd.s32 3, %v2666_v34 }
 0x35b   : > { %v2657_v54 = vand.u32 2147483647, %v2656_v63  ;;  %v2487_v18 = vand.u32 31, %v2485_v49  ;;  %v8984_v59 = vsel %vm6155_vm9, 0, %v6154_v11  ;;  %v2315_v17 = vadd.f32 %v8811_v58, %v8791_v39 }
 0x35c   : > { %v2742_v61 = vadd.s32 536870912, %v2741_v44  ;;  %v2307_v43 = vadd.f32 %v8791_v39, %v8813_v14  ;;  %v2425_v37 = vadd.s32 %v8887_v10, %v8893_v53  ;;  %v2445_v2 = vsub.s32 4294967266, %v8984_v59 }
 0x35d   : > { %v2660_v41 = vmul.f32 %v2659_v51, %v2657_v54  ;;  %v2488_v56 = vsub.s32 32, %v2487_v18  ;;  %v9000_v4 = vand.u32 3, %v2670_v47  ;;  %v9003_v15 = vshll.u32 %v2481_v31, 8 }
 0x35e   : > { %v8990_v21 = vshrl.u32 %v2742_v61, 30  ;;  %v9009_v20 = vmul.f32 30.0, %v2315_v17  ;;  %v2441_v10 = vsub.s32 32, %v8984_v59  ;;  %v9015_v55 = vmul.f32 30.0, %v2307_v43 }
 0x35f   : > { %v2661_v38 = vxor.u32 2147483648, %v2660_v41  ;;  %v2491_v14 = vshrl.u32 %v12341_v48, %v2488_v56  ;;  %v2494_v40 = vshrl.u32 %v12342_v62, %v2488_v56  ;;  %v2497_v12 = vshrl.u32 %v12343_v8, %v2488_v56 }
 0x360   : > { %v2744_v58 = vshll.u32 %v8990_v21, 30  ;;  %12349 = vst [vmem:[#allocation17_spill] sm:$0xff] %v9009_v20  ;;  %12350 = vst [vmem:[#allocation14_spill] sm:$0xff] %v9015_v55  ;;  %v9017_v42 = vadd.s32 127, %v2445_v2  ;;  %v9019_v11 = vshrl.u32 %v2485_v49, 5  ;;  %v2490_v30 = vshll.u32 %v12340_v27, %v2487_v18 }
 0x361   : > { %v2662_v9 = vsel %vm2579_vm7, %v2661_v38, %v2660_v41  ;;  %v2493_v24 = vshll.u32 %v12341_v48, %v2487_v18  ;;  %vm2676_vm3 = vcmp.eq.s32.totalorder %v9000_v4, 2  ;;  %v2496_v45 = vshll.u32 %v12342_v62, %v2487_v18 }
 0x362   : > { %v2665_v13 = vsel %vm8971_vm4, %v8795_v52, %v2662_v9  ;;  %v9012_v53 = vsub.s32 %v2741_v44, %v2744_v58  ;;  %v2499_v50 = vshll.u32 %v12343_v8, %v2487_v18  ;;  %v2500_v3 = vshrl.u32 %v12344_v5, %v2488_v56 }
 0x363   : > { %6787 = vcosq.f32 %v2665_v13  ;;  %vm2673_vm6 = vcmp.eq.s32.totalorder %v9000_v4, 0  ;;  %v2492_v16 = vor.u32 %v2491_v14, %v2490_v30  ;;  %v2495_v54 = vor.u32 %v2494_v40, %v2493_v24 }
 0x364   : > { %6789 = vsinq.f32 %v2665_v13  ;;  %v2747_v63 = vsub.s32 0, %v9012_v53  ;;  %v2503_v51 = vshrl.u32 %v12345_v1, %v2488_v56  ;;  %v2993_v0 = vand.u32 2147483647, %v9009_v20 }
 0x365   : > { %vm2672_vm11 = vcmp.lt.s32.totalorder %v9000_v4, 2  ;;  %v2498_v19 = vor.u32 %v2497_v12, %v2496_v45  ;;  %v2501_v41 = vor.u32 %v2500_v3, %v2499_v50  ;;  %v2502_v44 = vshll.u32 %v12344_v5, %v2487_v18 }
 0x366   : > { %v6165_v34 = vmin.u32 %v2747_v63, %v9012_v53  ;;  %vm2669_vm1 = vweird.f32 %v8795_v52  ;;  %v2443_v49 = vshrl.u32 %v2425_v37, %v2441_v10  ;;  %v2447_v31 = vshll.u32 %v9017_v42, 23 }
 0x367   : > { %v2737_v38 = vadd.s32 %v8956_v57, %v8962_v28  ;;  %v2996_v47 = vand.u32 2139095040, %v9009_v20  ;;  %vm2683_vm5 = vcmp.lt.s32.totalorder %v8804_v33, 0  ;;  %v2489_v17 = vshrl.u32 %v12340_v27, %v2488_v56 }
 0x368   : > { %v2749_v61 = vclz %v6165_v34  ;;  %v2504_v9 = vor.u32 %v2503_v51, %v2502_v44  ;;  %vm2505_vm12 = vcmp.lt.s32.totalorder %v9019_v11, 1  ;;  %v2767_v18 = vsub.s32 4, %v8990_v21 }
 0x369   : > { %vm2506_vm14 = vcmp.lt.s32.totalorder %v9019_v11, 2  ;;  %vm2508_vm13 = vcmp.lt.s32.totalorder %v9019_v11, 4  ;;  %v2513_v43 = vsel %vm2505_vm12, %v2492_v16, %v2495_v54  ;;  %vm2507_vm8 = vcmp.lt.s32.totalorder %v9019_v11, 3 }
 0x36a   : > { %v6166_v37 = vadd.s32 4294967294, %v2749_v61  ;;  %v2510_v57 = vsel %vm2508_vm13, %v2498_v19, 2102212464  ;;  %v2514_v28 = vsel %vm2508_vm13, %v2501_v41, 920167782  ;;  %v2509_v14 = vsel %vm2505_vm12, %v2489_v17, %v2492_v16 }
 0x36b   : > { %v2515_v56 = vsel %vm2507_vm8, %v2498_v19, %v2514_v28  ;;  %v2517_v40 = vsel %vm2505_vm12, %v2495_v54, %v2498_v19  ;;  %v2518_v42 = vsel %vm2508_vm13, %v2504_v9, 1326507024  ;;  %v2511_v63 = vsel %vm2507_vm8, %v2495_v54, %v2510_v57 }
 0x36c   : > { %vm6167_vm0 = vcmp.lt.s32.totalorder %v6166_v37, 0  ;;  %v2516_v12 = vsel %vm2506_vm14, %v2513_v43, %v2515_v56  ;;  %v2519_v45 = vsel %vm2507_vm8, %v2501_v41, %v2518_v42  ;;  %v2997_v9 = vshrl.u32 %v2996_v47, 23 }
 0x36d   : > { %v6788_v13 = vpop.eup %6787  ;;  %v2752_v24 = vsel %vm6167_vm0, 0, %v6166_v37  ;;  %v2520_v19 = vsel %vm2506_vm14, %v2517_v40, %v2519_v45  ;;  %v9058_v44 = vmul.u32.u64.low %v9003_v15, %v2516_v12  ;;  %v9059_v61 = vmul.u32.u64.high %v9003_v15, %v2516_v12, %v9058_v44  ;;  %v9075_v37 = vpop.f32.mrb[11].mxu1 }
 0x36e   : > { %v6790_v2 = vpop.eup %6789  ;;  %v2677_v58 = vxor.u32 2147483648, %v6788_v13  ;;  %v2753_v3 = vsub.s32 32, %v2752_v24  ;;  %v2754_v16 = vshll.u32 %v9012_v53, %v2752_v24  ;;  %v2757_v51 = vsub.s32 4294967266, %v2752_v24 }
 0x36f   : > { %v2674_v10 = vxor.u32 2147483648, %v6790_v2  ;;  %v2442_v53 = vshll.u32 %v8939_v29, %v8984_v59  ;;  %v2768_v4 = vsel %vm2683_vm5, %v2767_v18, %v8990_v21  ;;  %v6176_v28 = vadd.s32 4294967169, %v2997_v9 }
 0x370   : > { %v2678_v30 = vsel %vm2676_vm3, %v2677_v58, %v6790_v2  ;;  %v2755_v41 = vshrl.u32 %v2737_v38, %v2753_v3  ;;  %v2758_v17 = vadd.s32 127, %v2757_v51  ;;  %v2512_v38 = vsel %vm2506_vm14, %v2509_v14, %v2511_v63 }
 0x371   : > { %v2675_v50 = vsel %vm2673_vm6, %v6788_v13, %v2674_v10  ;;  %v9072_v43 = vmul.u32.u64.low %v9003_v15, %v2520_v19  ;;  %v9073_v13 = vmul.u32.u64.high %v9003_v15, %v2520_v19, %v9072_v43  ;;  %v9079_v47 = vor.u32 %v2443_v49, %v2442_v53 }
 0x372   : > { %v2679_v34 = vsel %vm2672_vm11, %v2675_v50, %v2678_v30  ;;  %v2756_v57 = vor.u32 %v2755_v41, %v2754_v16  ;;  %v2759_v52 = vshll.u32 %v2758_v17, 23  ;;  %vm9083_vm7 = vcmp.le.f32.partialorder %v2681_v23, 0.7853982 }
 0x373   : > { %v9064_v54 = vsel %vm2669_vm1, nan, %v2679_v34  ;;  %v2531_v59 = vadd.s32 1, %v9059_v61  ;;  %v2788_v21 = vand.u32 2139095040, %v9015_v55  ;;  %v9089_v18 = vor.u32 4788187, %v2447_v31 }
 0x374   : > { %12351 = vst [vmem:[#allocation29_spill] sm:$0xff] %v9064_v54  ;;  %v2760_v2 = vor.u32 4788187, %v2759_v52  ;;  %v2770_v11 = vsel %vm9083_vm7, 0, %v2768_v4  ;;  %v3003_v58 = vadd.s32 1, %v6176_v28  ;;  %v2528_v49 = vmul.u32 %v9003_v15, %v2512_v38 }
 0x375   : > { %vm2530_vm4 = vc.u32 %v9073_v13, %v9058_v44  ;;  %v3000_v23 = vand.u32 8388607, %v2993_v0  ;;  %v12036_v14 = vand.u32 2147483647, %v9015_v55  ;;  %v2763_v40 = vcvt.s32.f32 %v2756_v57 }
 0x376   : > { %v2761_v56 = vand.u32 2147483647, %v2760_v2  ;;  %v2532_v31 = vsel %vm2530_vm4, %v2531_v59, %v9059_v61  ;;  %vm3004_vm10 = vcmp.gt.s32.totalorder %v3003_v58, 0  ;;  %v2789_v42 = vshrl.u32 %v2788_v21, 23 }
 0x377   : > { %v2533_v10 = vadd.s32 %v2532_v31, %v2528_v49  ;;  %v3005_v12 = vsel %vm3004_vm10, %v3003_v58, 0  ;;  %v9102_v15 = vadd.f32 %v8815_v35, %v8791_v39  ;;  %v2449_v63 = vand.u32 2147483647, %v9089_v18 }
 0x378   : > { %v2764_v30 = vmul.f32 %v2763_v40, %v2761_v56  ;;  %v3007_v24 = vand.u32 31, %v3005_v12  ;;  %v2451_v45 = vcvt.s32.f32 %v9079_v47  ;;  %v2774_v50 = vadd.s32 3, %v2770_v11 }
 0x379   : > { %v2534_v3 = vadd.s32 536870912, %v2533_v10  ;;  %v3001_v51 = vor.u32 8388608, %v3000_v23  ;;  %v9108_v19 = vand.u32 8388607, %v12036_v14  ;;  %v3006_v41 = vshrl.u32 %v3005_v12, 5 }
 0x37a   : > { %v2765_v16 = vxor.u32 2147483648, %v2764_v30  ;;  %v3008_v34 = vsub.s32 32, %v3007_v24  ;;  %v3010_v17 = vshll.u32 %v12340_v27, %v3007_v24  ;;  %v6168_v35 = vadd.s32 4294967169, %v2789_v42 }
 0x37b   : > { %v9110_v61 = vshrl.u32 %v2534_v3, 30  ;;  %v3013_v4 = vshll.u32 %v12341_v48, %v3007_v24  ;;  %v3016_v52 = vshll.u32 %v12342_v62, %v3007_v24  ;;  %v3019_v28 = vshll.u32 %v12343_v8, %v3007_v24 }
 0x37c   : > { %v2766_v9 = vsel %vm2683_vm5, %v2765_v16, %v2764_v30  ;;  %v3011_v53 = vshrl.u32 %v12341_v48, %v3008_v34  ;;  %v3014_v43 = vshrl.u32 %v12342_v62, %v3008_v34  ;;  %v3017_v38 = vshrl.u32 %v12343_v8, %v3008_v34 }
 0x37d   : > { %v2536_v57 = vshll.u32 %v9110_v61, 30  ;;  %v2769_v47 = vsel %vm9083_vm7, %v8804_v33, %v2766_v9  ;;  %v3020_v18 = vshrl.u32 %v12344_v5, %v3008_v34  ;;  %v3041_v58 = vshll.u32 %v3001_v51, 8 }
 0x37e   : > { %v3012_v59 = vor.u32 %v3011_v53, %v3010_v17  ;;  %v3015_v21 = vor.u32 %v3014_v43, %v3013_v4  ;;  %v3018_v11 = vor.u32 %v3017_v38, %v3016_v52  ;;  %v2795_v49 = vadd.s32 1, %v6168_v35 }
 0x37f   : > { %v9126_v2 = vsub.s32 %v2533_v10, %v2536_v57  ;;  %v3009_v23 = vshrl.u32 %v12340_v27, %v3008_v34  ;;  %v3021_v56 = vor.u32 %v3020_v18, %v3019_v28  ;;  %v3022_v40 = vshll.u32 %v12344_v5, %v3007_v24 }
 0x380   : > { %v3023_v31 = vshrl.u32 %v12345_v1, %v3008_v34  ;;  %6791 = vcosq.f32 %v2769_v47  ;;  %vm3025_vm15 = vcmp.lt.s32.totalorder %v3006_v41, 1  ;;  %vm3028_vm9 = vcmp.lt.s32.totalorder %v3006_v41, 4 }
 0x381   : > { %v2539_v29 = vsub.s32 0, %v9126_v2  ;;  %vm3026_vm3 = vcmp.lt.s32.totalorder %v3006_v41, 2  ;;  %v3030_v42 = vsel %vm3028_vm9, %v3018_v11, 2102212464  ;;  %v3033_v10 = vsel %vm3025_vm15, %v3012_v59, %v3015_v21 }
 0x382   : > { %v3024_v12 = vor.u32 %v3023_v31, %v3022_v40  ;;  %vm3027_vm6 = vcmp.lt.s32.totalorder %v3006_v41, 3  ;;  %v3034_v3 = vsel %vm3028_vm9, %v3021_v56, 920167782  ;;  %v3037_v16 = vsel %vm3025_vm15, %v3015_v21, %v3018_v11 }
 0x383   : > { %v6157_v30 = vmin.u32 %v2539_v29, %v9126_v2  ;;  %v3029_v51 = vsel %vm3025_vm15, %v3009_v23, %v3012_v59  ;;  %v3035_v17 = vsel %vm3027_vm6, %v3018_v11, %v3034_v3  ;;  %vm2796_vm11 = vcmp.gt.s32.totalorder %v2795_v49, 0 }
 0x384   : > { %v3038_v35 = vsel %vm3028_vm9, %v3024_v12, 1326507024  ;;  %v3031_v34 = vsel %vm3027_vm6, %v3015_v21, %v3030_v42  ;;  %v3036_v9 = vsel %vm3026_vm3, %v3033_v10, %v3035_v17  ;;  %v2797_v52 = vsel %vm2796_vm11, %v2795_v49, 0 }
 0x385   : > { %v2541_v24 = vclz %v6157_v30  ;;  %v3039_v53 = vsel %vm3027_vm6, %v3021_v56, %v3038_v35  ;;  %v9135_v43 = vmul.u32.u64.low %v3041_v58, %v3036_v9  ;;  %v9136_v57 = vmul.u32.u64.high %v3041_v58, %v3036_v9, %v9135_v43 }
 0x386   : > { %v3040_v4 = vsel %vm3026_vm3, %v3037_v16, %v3039_v53  ;;  %v2455_v38 = vsub.s32 4, %v8929_v46  ;;  %v9143_v11 = vmul.f32 %v2451_v45, %v2449_v63  ;;  %6793 = vsinq.f32 %v2769_v47 }
 0x387   : > { %v6158_v28 = vadd.s32 4294967294, %v2541_v24  ;;  %v9140_v18 = vmul.u32.u64.low %v3041_v58, %v3040_v4  ;;  %v9141_v59 = vmul.u32.u64.high %v3041_v58, %v3040_v4, %v9140_v18  ;;  %v9145_v21 = vand.u32 3, %v2774_v50 }
 0x388   : > { %v2799_v23 = vand.u32 31, %v2797_v52  ;;  %vm2371_vm1 = vcmp.lt.s32.totalorder %v8798_v22, 0  ;;  %v3032_v56 = vsel %vm3026_vm3, %v3029_v51, %v3031_v34  ;;  %v9150_v40 = vmul.f32 30.0, %v9102_v15 }
 0x389   : > { %vm6159_vm5 = vcmp.lt.s32.totalorder %v6158_v28, 0  ;;  %v3051_v31 = vadd.s32 1, %v9136_v57  ;;  %v2793_v29 = vor.u32 8388608, %v9108_v19  ;;  %v9159_v45 = vsel %vm2371_vm1, %v2455_v38, %v8929_v46 }
 0x38a   : > { %12354 = vst [vmem:[#allocation30_spill] sm:$0xff] %v9150_v40  ;;  %v2544_v49 = vsel %vm6159_vm5, 0, %v6158_v28  ;;  %v9154_v12 = vsub.s32 32, %v2799_v23  ;;  %v6792_v63 = vpop.eup %6791  ;;  %v2453_v41 = vxor.u32 2147483648, %v9143_v11  ;;  %vm2780_vm12 = vcmp.eq.s32.totalorder %v9145_v21, 2 }
 0x38b   : > { %v2549_v50 = vsub.s32 4294967266, %v2544_v49  ;;  %v3048_v15 = vmul.u32 %v3041_v58, %v3032_v56  ;;  %vm3050_vm14 = vc.u32 %v9141_v59, %v9135_v43  ;;  %v2529_v19 = vadd.s32 %v9058_v44, %v9073_v13 }
 0x38c   : > { %v3052_v42 = vsel %vm3050_vm14, %v3051_v31, %v9136_v57  ;;  %v12035_v10 = vand.u32 2147483647, %v9150_v40  ;;  %v9169_v46 = vshrl.u32 %v2797_v52, 5  ;;  %v2803_v3 = vshrl.u32 %v12341_v48, %v9154_v12 }
 0x38d   : > { %v2550_v47 = vadd.s32 127, %v2549_v50  ;;  %v3053_v30 = vadd.s32 %v3052_v42, %v3048_v15  ;;  %v9173_v16 = vshll.u32 %v2793_v29, 8  ;;  %v2545_v58 = vsub.s32 32, %v2544_v49 }
 0x38e   : > { %v2802_v51 = vshll.u32 %v12340_v27, %v2799_v23  ;;  %v3100_v17 = vand.u32 2139095040, %v9150_v40  ;;  %v9179_v44 = vadd.f32 %v8791_v39, %v8818_v32  ;;  %vm2777_vm13 = vcmp.eq.s32.totalorder %v9145_v21, 0 }
 0x38f   : > { %v2781_v13 = vxor.u32 2147483648, %v6792_v63  ;;  %v3054_v35 = vadd.s32 536870912, %v3053_v30  ;;  %v2805_v24 = vshll.u32 %v12341_v48, %v2799_v23  ;;  %v2806_v34 = vshrl.u32 %v12342_v62, %v9154_v12 }
 0x390   : > { %v2551_v9 = vshll.u32 %v2550_v47, 23  ;;  %v2804_v53 = vor.u32 %v2803_v3, %v2802_v51  ;;  %v2808_v4 = vshll.u32 %v12342_v62, %v2799_v23  ;;  %v2809_v57 = vshrl.u32 %v12343_v8, %v9154_v12  ;;  %v6794_v52 = vpop.eup %6793 }
 0x391   : > { %v9188_v38 = vshrl.u32 %v3054_v35, 30  ;;  %v2807_v39 = vor.u32 %v2806_v34, %v2805_v24  ;;  %v2811_v32 = vshll.u32 %v12343_v8, %v2799_v23  ;;  %v2812_v28 = vshrl.u32 %v12344_v5, %v9154_v12 }
 0x392   : > { %v2547_v18 = vshrl.u32 %v2529_v19, %v2545_v58  ;;  %v2810_v56 = vor.u32 %v2809_v57, %v2808_v4  ;;  %v2814_v31 = vshll.u32 %v12344_v5, %v2799_v23  ;;  %v2815_v29 = vshrl.u32 %v12345_v1, %v9154_v12 }
 0x393   : > { %vm9198_vm8 = vcmp.le.f32.partialorder %v2369_v7, 0.7853982  ;;  %v3056_v15 = vshll.u32 %v9188_v38, 30  ;;  %v2813_v47 = vor.u32 %v2812_v28, %v2811_v32  ;;  %vm2817_vm0 = vcmp.lt.s32.totalorder %v9169_v46, 1 }
 0x394   : > { %vm2818_vm7 = vcmp.lt.s32.totalorder %v9169_v46, 2  ;;  %v2778_v19 = vxor.u32 2147483648, %v6794_v52  ;;  %v2782_v23 = vsel %vm2780_vm12, %v2781_v13, %v6794_v52  ;;  %v2546_v42 = vshll.u32 %v9126_v2, %v2544_v49 }
 0x395   : > { %v2816_v3 = vor.u32 %v2815_v29, %v2814_v31  ;;  %v2552_v58 = vor.u32 4788187, %v2551_v9  ;;  %v9208_v51 = vsub.s32 %v3053_v30, %v3056_v15  ;;  %vm2820_vm4 = vcmp.lt.s32.totalorder %v9169_v46, 4 }
 0x396   : > { %v2825_v7 = vsel %vm2817_vm0, %v2804_v53, %v2807_v39  ;;  %v2548_v35 = vor.u32 %v2547_v18, %v2546_v42  ;;  %vm2819_vm10 = vcmp.lt.s32.totalorder %v9169_v46, 3  ;;  %v2822_v24 = vsel %vm2820_vm4, %v2810_v56, 2102212464 }
 0x397   : > { %v2826_v34 = vsel %vm2820_vm4, %v2813_v47, 920167782  ;;  %vm2475_vm15 = vcmp.lt.s32.totalorder %v8897_v26, 0  ;;  %v3059_v13 = vsub.s32 0, %v9208_v51  ;;  %v2829_v49 = vsel %vm2817_vm0, %v2807_v39, %v2810_v56 }
 0x398   : > { %v2827_v2 = vsel %vm2819_vm10, %v2810_v56, %v2826_v34  ;;  %v2830_v30 = vsel %vm2820_vm4, %v2816_v3, 1326507024  ;;  %vm2773_vm9 = vweird.f32 %v8804_v33  ;;  %v2779_v9 = vsel %vm2777_vm13, %v6792_v63, %v2778_v19  ;;  %v9267_v34 = vpop.f32.mrb[12].mxu1 }
 0x399   : > { %v2801_v4 = vshrl.u32 %v12340_v27, %v9154_v12  ;;  %v2828_v57 = vsel %vm2818_vm7, %v2825_v7, %v2827_v2  ;;  %v2831_v52 = vsel %vm2819_vm10, %v2813_v47, %v2830_v30  ;;  %v2553_v32 = vand.u32 2147483647, %v2552_v58 }
 0x39a   : > { %v6177_v28 = vmin.u32 %v3059_v13, %v9208_v51  ;;  %v2832_v18 = vsel %vm2818_vm7, %v2829_v49, %v2831_v52  ;;  %v3101_v56 = vshrl.u32 %v3100_v17, 23  ;;  %v2823_v63 = vsel %vm2819_vm10, %v2807_v39, %v2822_v24 }
 0x39b   : > { %v2821_v31 = vsel %vm2817_vm0, %v2801_v4, %v2804_v53  ;;  %v9237_v12 = vmul.u32.u64.low %v9173_v16, %v2832_v18  ;;  %v9238_v29 = vmul.u32.u64.high %v9173_v16, %v2832_v18, %v9237_v12  ;;  %vm9242_vm3 = vcmp.le.f32.partialorder %v2473_v6, 0.7853982 }
 0x39c   : > { %v2555_v47 = vcvt.s32.f32 %v2548_v35  ;;  %v3061_v19 = vclz %v6177_v28  ;;  %v9247_v17 = vmul.u32.u64.low %v9173_v16, %v2828_v57  ;;  %v9248_v42 = vmul.u32.u64.high %v9173_v16, %v2828_v57, %v9247_v17 }
 0x39d   : > { %v2454_v53 = vsel %vm2371_vm1, %v2453_v41, %v9143_v11  ;;  %v2559_v39 = vsub.s32 4, %v9110_v61  ;;  %v6180_v3 = vadd.s32 4294967169, %v3101_v56  ;;  %vm2776_vm6 = vcmp.lt.s32.totalorder %v9145_v21, 2 }
 0x39e   : > { %v2556_v58 = vmul.f32 %v2555_v47, %v2553_v32  ;;  %v6178_v7 = vadd.s32 4294967294, %v3061_v19  ;;  %v2824_v35 = vsel %vm2818_vm7, %v2821_v31, %v2823_v63  ;;  %v2783_v24 = vsel %vm2776_vm6, %v2779_v9, %v2782_v23  ;;  %v9276_v23 = vpop.f32.mrb[13].mxu1 }
 0x39f   : > { %vm2842_vm11 = vc.u32 %v9238_v29, %v9247_v17  ;;  %v3104_v11 = vand.u32 8388607, %v12035_v10  ;;  %v3107_v41 = vadd.s32 1, %v6180_v3  ;;  %v2457_v13 = vsel %vm9198_vm8, %v8798_v22, %v2454_v53 }
 0x3a0   : > { %vm6179_vm1 = vcmp.lt.s32.totalorder %v6178_v7, 0  ;;  %v2843_v21 = vadd.s32 1, %v9248_v42  ;;  %v9274_v46 = vmul.f32 30.0, %v9179_v44  ;;  %v9281_v2 = vsel %vm2475_vm15, %v2559_v39, %v9110_v61 }
 0x3a1   : > { %v9283_v49 = vsel %vm6179_vm1, 0, %v6178_v7  ;;  %v2840_v30 = vmul.u32 %v9173_v16, %v2824_v35  ;;  %vm3108_vm5 = vcmp.gt.s32.totalorder %v3107_v41, 0  ;;  %v9288_v9 = vsel %vm2773_vm9, nan, %v2783_v24 }
 0x3a2   : > { %12359 = vst [vmem:[#allocation23_spill] sm:$0xff] %v9288_v9  ;;  %v2557_v4 = vxor.u32 2147483648, %v2556_v58  ;;  %v3079_v44 = vsub.s32 4, %v9188_v38  ;;  %v2844_v57 = vsel %vm2842_vm11, %v2843_v21, %v9248_v42  ;;  %v3069_v61 = vsub.s32 4294967266, %v9283_v49 }
 0x3a3   : > { %v2845_v52 = vadd.s32 %v2844_v57, %v2840_v30  ;;  %v3105_v32 = vor.u32 8388608, %v3104_v11  ;;  %v3109_v28 = vsel %vm3108_vm5, %v3107_v41, 0  ;;  %6795 = vcosq.f32 %v2457_v13 }
 0x3a4   : > { %vm2995_vm12 = vcmp.lt.s32.totalorder %v9009_v20, 0  ;;  %v3111_v16 = vand.u32 31, %v3109_v28  ;;  %v2892_v33 = vand.u32 2139095040, %v9274_v46  ;;  %6797 = vsinq.f32 %v2457_v13 }
 0x3a5   : > { %v3049_v56 = vadd.s32 %v9135_v43, %v9141_v59  ;;  %v2846_v31 = vadd.s32 536870912, %v2845_v52  ;;  %v9307_v12 = vsel %vm2475_vm15, %v2557_v4, %v2556_v58  ;;  %v9312_v47 = vsel %vm2995_vm12, %v3079_v44, %v9188_v38 }
 0x3a6   : > { %12360 = vst [vmem:[#allocation7_spill] sm:$0xff] %v9312_v47  ;;  %v3112_v19 = vsub.s32 32, %v3111_v16  ;;  %v3070_v42 = vadd.s32 127, %v3069_v61  ;;  %v9316_v39 = vshll.u32 %v3105_v32, 8  ;;  %v12034_v43 = vand.u32 2147483647, %v9274_v46 }
 0x3a7   : > { %v9314_v53 = vshrl.u32 %v2846_v31, 30  ;;  %v3065_v59 = vsub.s32 32, %v9283_v49  ;;  %v3114_v3 = vshll.u32 %v12340_v27, %v3111_v16  ;;  %v2893_v7 = vshrl.u32 %v2892_v33, 23 }
 0x3a8   : > { %v3115_v58 = vshrl.u32 %v12341_v48, %v3112_v19  ;;  %v3117_v38 = vshll.u32 %v12341_v48, %v3111_v16  ;;  %v3118_v24 = vshrl.u32 %v12342_v62, %v3112_v19  ;;  %v3121_v11 = vshrl.u32 %v12343_v8, %v3112_v19 }
 0x3a9   : > { %v2848_v35 = vshll.u32 %v9314_v53, 30  ;;  %v3110_v41 = vshrl.u32 %v3109_v28, 5  ;;  %v3120_v13 = vshll.u32 %v12342_v62, %v3111_v16  ;;  %v3123_v21 = vshll.u32 %v12343_v8, %v3111_v16 }
 0x3aa   : > { %v3124_v30 = vshrl.u32 %v12344_v5, %v3112_v19  ;;  %v3071_v4 = vshll.u32 %v3070_v42, 23  ;;  %v3116_v57 = vor.u32 %v3115_v58, %v3114_v3  ;;  %v3119_v61 = vor.u32 %v3118_v24, %v3117_v38 }
 0x3ab   : > { %v9329_v44 = vsub.s32 %v2845_v52, %v2848_v35  ;;  %v3122_v32 = vor.u32 %v3121_v11, %v3120_v13  ;;  %v3126_v31 = vshll.u32 %v12344_v5, %v3111_v16  ;;  %v3127_v63 = vshrl.u32 %v12345_v1, %v3112_v19  ;;  %v9341_v52 = vld [vmem:[%s11924_s4] ss:$0 sm:$0xff] }
 0x3ac   : > { %v3125_v33 = vor.u32 %v3124_v30, %v3123_v21  ;;  %v3067_v18 = vshrl.u32 %v3049_v56, %v3065_v59  ;;  %v9336_v6 = vand.u32 8388607, %v12034_v43  ;;  %v2331_v42 = vadd.f32 %v9341_v52, %v8913_v25 }
 0x3ad   : > { %v2851_v28 = vsub.s32 0, %v9329_v44  ;;  %v9345_v3 = vpop.eup %6795  ;;  %v3128_v16 = vor.u32 %v3127_v63, %v3126_v31  ;;  %vm3129_vm14 = vcmp.lt.s32.totalorder %v3110_v41, 1  ;;  %vm3132_vm13 = vcmp.lt.s32.totalorder %v3110_v41, 4 }
 0x3ae   : > { %v6172_v56 = vadd.s32 4294967169, %v2893_v7  ;;  %v9347_v59 = vpop.eup %6797  ;;  %vm3131_vm0 = vcmp.lt.s32.totalorder %v3110_v41, 3  ;;  %v3137_v35 = vsel %vm3129_vm14, %v3116_v57, %v3119_v61  ;;  %v3138_v38 = vsel %vm3132_vm13, %v3125_v33, 920167782 }
 0x3af   : > { %v6169_v58 = vmin.u32 %v2851_v28, %v9329_v44  ;;  %v3072_v24 = vor.u32 4788187, %v3071_v4  ;;  %vm3130_vm7 = vcmp.lt.s32.totalorder %v3110_v41, 2  ;;  %v3134_v11 = vsel %vm3132_vm13, %v3122_v32, 2102212464 }
 0x3b0   : > { %v3139_v25 = vsel %vm3131_vm0, %v3122_v32, %v3138_v38  ;;  %v3113_v63 = vshrl.u32 %v12340_v27, %v3112_v19  ;;  %v3141_v21 = vsel %vm3129_vm14, %v3119_v61, %v3122_v32  ;;  %v3066_v30 = vshll.u32 %v9208_v51, %v9283_v49 }
 0x3b1   : > { %v2853_v13 = vclz %v6169_v58  ;;  %v3140_v7 = vsel %vm3130_vm7, %v3137_v35, %v3139_v25  ;;  %v3142_v31 = vsel %vm3132_vm13, %v3128_v16, 1326507024  ;;  %v3135_v58 = vsel %vm3131_vm0, %v3119_v61, %v3134_v11 }
 0x3b2   : > { %v9361_v28 = vmul.u32.u64.low %v9316_v39, %v3140_v7  ;;  %v9362_v4 = vmul.u32.u64.high %v9316_v39, %v3140_v7, %v9361_v28  ;;  %v3133_v38 = vsel %vm3129_vm14, %v3113_v63, %v3116_v57  ;;  %v3143_v19 = vsel %vm3131_vm0, %v3125_v33, %v3142_v31 }
 0x3b3   : > { %v6170_v43 = vadd.s32 4294967294, %v2853_v13  ;;  %v3068_v35 = vor.u32 %v3067_v18, %v3066_v30  ;;  %v3144_v32 = vsel %vm3130_vm7, %v3141_v21, %v3143_v19  ;;  %v2899_v25 = vadd.s32 1, %v6172_v56 }
 0x3b4   : > { %v9369_v10 = vmul.f32 30.0, %v2331_v42  ;;  %v3073_v51 = vand.u32 2147483647, %v3072_v24  ;;  %v9372_v49 = vmul.u32.u64.low %v9316_v39, %v3144_v32  ;;  %v9373_v16 = vmul.u32.u64.high %v9316_v39, %v3144_v32, %v9372_v49  ;;  %v9385_v24 = vpop.f32.mrb[14].mxu1 }
 0x3b5   : > { %vm6171_vm4 = vcmp.lt.s32.totalorder %v6170_v43, 0  ;;  %v3136_v13 = vsel %vm3130_vm7, %v3133_v38, %v3135_v58  ;;  %v3155_v57 = vadd.s32 1, %v9362_v4  ;;  %vm2900_vm10 = vcmp.gt.s32.totalorder %v2899_v25, 0 }
 0x3b6   : > { %12361 = vst [vmem:[#allocation12_spill] sm:$0xff] %v9369_v10  ;;  %v2856_v7 = vsel %vm6171_vm4, 0, %v6170_v43  ;;  %vm9379_vm15 = vcmp.le.f32.partialorder %v2993_v0, 0.7853982  ;;  %v12362_v18 = vmov 0  ;;  %v2841_v61 = vadd.s32 %v9247_v17, %v9238_v29 }
 0x3b7   : > { %v12363_v18 = vsel %vm9379_vm15, 4294967295, %v12362_v18  ;;  %v2857_v33 = vsub.s32 32, %v2856_v7  ;;  %v2861_v42 = vsub.s32 4294967266, %v2856_v7  ;;  %v2901_v56 = vsel %vm2900_vm10, %v2899_v25, 0 }
 0x3b8   : > { %12364 = vst [vmem:[#allocation13_spill] sm:$0xff] %v12363_v18  ;;  %v9391_v43 = vsel %vm9242_vm3, %v8897_v26, %v9307_v12  ;;  %v3075_v41 = vcvt.s32.f32 %v3068_v35  ;;  %v2897_v0 = vor.u32 8388608, %v9336_v6  ;;  %v2903_v11 = vand.u32 31, %v2901_v56 }
 0x3b9   : > { %v2859_v63 = vshrl.u32 %v2841_v61, %v2857_v33  ;;  %v2862_v21 = vadd.s32 127, %v2861_v42  ;;  %v3152_v30 = vmul.u32 %v9316_v39, %v3136_v13  ;;  %vm3154_vm9 = vc.u32 %v9373_v16, %v9361_v28 }
 0x3ba   : > { %v9397_v29 = vmul.f32 %v3075_v41, %v3073_v51  ;;  %v3156_v17 = vsel %vm3154_vm9, %v3155_v57, %v9362_v4  ;;  %v2904_v31 = vsub.s32 32, %v2903_v11  ;;  %v3412_v38 = vand.u32 2139095040, %v9369_v10 }
 0x3bb   : > { %v2858_v12 = vshll.u32 %v9329_v44, %v2856_v7  ;;  %v2863_v58 = vshll.u32 %v2862_v21, 23  ;;  %v3157_v19 = vadd.s32 %v3156_v17, %v3152_v30  ;;  %v9402_v6 = vshrl.u32 %v2901_v56, 5 }
 0x3bc   : > { %v2906_v35 = vshll.u32 %v12340_v27, %v2903_v11  ;;  %v2907_v39 = vshrl.u32 %v12341_v48, %v2904_v31  ;;  %v2910_v32 = vshrl.u32 %v12342_v62, %v2904_v31  ;;  %v2913_v25 = vshrl.u32 %v12343_v8, %v2904_v31 }
 0x3bd   : > { %v2860_v51 = vor.u32 %v2859_v63, %v2858_v12  ;;  %v3158_v49 = vadd.s32 536870912, %v3157_v19  ;;  %v2909_v4 = vshll.u32 %v12341_v48, %v2903_v11  ;;  %v2912_v13 = vshll.u32 %v12342_v62, %v2903_v11 }
 0x3be   : > { %v2864_v57 = vor.u32 4788187, %v2863_v58  ;;  %v2908_v44 = vor.u32 %v2907_v39, %v2906_v35  ;;  %v2915_v7 = vshll.u32 %v12343_v8, %v2903_v11  ;;  %v2916_v61 = vshrl.u32 %v12344_v5, %v2904_v31 }
 0x3bf   : > { %v9412_v33 = vshrl.u32 %v3158_v49, 30  ;;  %v2911_v42 = vor.u32 %v2910_v32, %v2909_v4  ;;  %v2918_v56 = vshll.u32 %v12344_v5, %v2903_v11  ;;  %v2919_v41 = vshrl.u32 %v12345_v1, %v2904_v31 }
 0x3c0   : > { %6799 = vcosq.f32 %v9391_v43  ;;  %v2914_v21 = vor.u32 %v2913_v25, %v2912_v13  ;;  %v2917_v30 = vor.u32 %v2916_v61, %v2915_v7  ;;  %v3077_v17 = vxor.u32 2147483648, %v9397_v29 }
 0x3c1   : > { %v3160_v12 = vshll.u32 %v9412_v33, 30  ;;  %v2920_v58 = vor.u32 %v2919_v41, %v2918_v56  ;;  %v9422_v35 = vshll.u32 %v2897_v0, 8  ;;  %v2867_v39 = vcvt.s32.f32 %v2860_v51 }
 0x3c2   : > { %vm2921_vm6 = vcmp.lt.s32.totalorder %v9402_v6, 1  ;;  %v12037_v11 = vand.u32 2147483647, %v9369_v10  ;;  %v3413_v32 = vshrl.u32 %v3412_v38, 23  ;;  %v2865_v49 = vand.u32 2147483647, %v2864_v57 }
 0x3c3   : > { %v9426_v4 = vsub.s32 %v3157_v19, %v3160_v12  ;;  %vm2924_vm11 = vcmp.lt.s32.totalorder %v9402_v6, 4  ;;  %v2929_v25 = vsel %vm2921_vm6, %v2908_v44, %v2911_v42  ;;  %vm2923_vm1 = vcmp.lt.s32.totalorder %v9402_v6, 3 }
 0x3c4   : > { %v2930_v13 = vsel %vm2924_vm11, %v2917_v30, 920167782  ;;  %v2933_v0 = vsel %vm2921_vm6, %v2911_v42, %v2914_v21  ;;  %v2934_v51 = vsel %vm2924_vm11, %v2920_v58, 1326507024  ;;  %vm2787_vm5 = vcmp.lt.s32.totalorder %v9015_v55, 0 }
 0x3c5   : > { %v3163_v7 = vsub.s32 0, %v9426_v4  ;;  %vm2922_vm14 = vcmp.lt.s32.totalorder %v9402_v6, 2  ;;  %v2926_v38 = vsel %vm2924_vm11, %v2914_v21, 2102212464  ;;  %v2931_v19 = vsel %vm2923_vm1, %v2914_v21, %v2930_v13 }
 0x3c6   : > { %v2905_v57 = vshrl.u32 %v12340_v27, %v2904_v31  ;;  %v2932_v61 = vsel %vm2922_vm14, %v2929_v25, %v2931_v19  ;;  %v2935_v56 = vsel %vm2923_vm1, %v2917_v30, %v2934_v51  ;;  %v3416_v41 = vand.u32 8388607, %v12037_v11  ;;  %v9481_v19 = vpop.f32.mrb[15].mxu1 }
 0x3c7   : > { %v2868_v12 = vmul.f32 %v2867_v39, %v2865_v49  ;;  %v6181_v58 = vmin.u32 %v3163_v7, %v9426_v4  ;;  %v2936_v63 = vsel %vm2922_vm14, %v2933_v0, %v2935_v56  ;;  %v6192_v14 = vadd.s32 4294967169, %v3413_v32 }
 0x3c8   : > { %v2925_v21 = vsel %vm2921_vm6, %v2905_v57, %v2908_v44  ;;  %v2927_v31 = vsel %vm2923_vm1, %v2911_v42, %v2926_v38  ;;  %v9454_v25 = vmul.u32.u64.low %v9422_v35, %v2936_v63  ;;  %v9455_v13 = vmul.u32.u64.high %v9422_v35, %v2936_v63, %v9454_v25 }
 0x3c9   : > { %v3165_v30 = vclz %v6181_v58  ;;  %v9458_v51 = vmul.u32.u64.low %v9422_v35, %v2932_v61  ;;  %v9459_v39 = vmul.u32.u64.high %v9422_v35, %v2932_v61, %v9458_v51  ;;  %v3419_v49 = vadd.s32 1, %v6192_v14 }
 0x3ca   : > { %v9462_v7 = vpop.eup %6799  ;;  %6801 = vsinq.f32 %v9391_v43  ;;  %v2871_v44 = vsub.s32 4, %v9314_v53  ;;  %v2323_v42 = vadd.f32 %v9341_v52, %v8923_v60  ;;  %v2334_v63 = vadd.f32 %v9341_v52, %v9005_v36 }
 0x3cb   : > { %v3078_v32 = vsel %vm2995_vm12, %v3077_v17, %v9397_v29  ;;  %v6182_v0 = vadd.s32 4294967294, %v3165_v30  ;;  %v2928_v14 = vsel %vm2922_vm14, %v2925_v21, %v2927_v31  ;;  %vm3420_vm13 = vcmp.gt.s32.totalorder %v3419_v49, 0 }
 0x3cc   : > { %v2869_v38 = vxor.u32 2147483648, %v2868_v12  ;;  %vm2946_vm0 = vc.u32 %v9455_v13, %v9458_v51  ;;  %v3421_v43 = vsel %vm3420_vm13, %v3419_v49, 0  ;;  %v9479_v60 = vadd.f32 %v9341_v52, %v9075_v37 }
 0x3cd   : > { %vm6183_vm7 = vcmp.lt.s32.totalorder %v6182_v0, 0  ;;  %v2947_v36 = vadd.s32 1, %v9459_v39  ;;  %v3417_v29 = vor.u32 8388608, %v3416_v41  ;;  %v3423_v17 = vand.u32 31, %v3421_v43 }
 0x3ce   : > { %v9487_v6 = vsel %vm9379_vm15, %v9009_v20, %v3078_v32  ;;  %v9492_v57 = vsel %vm2787_vm5, %v2871_v44, %v9314_v53  ;;  %v3168_v61 = vsel %vm6183_vm7, 0, %v6182_v0  ;;  %v2944_v37 = vmul.u32 %v9422_v35, %v2928_v14 }
 0x3cf   : > { %v3153_v56 = vadd.s32 %v9361_v28, %v9373_v16  ;;  %v3173_v58 = vsub.s32 4294967266, %v3168_v61  ;;  %v2948_v21 = vsel %vm2946_vm0, %v2947_v36, %v9459_v39  ;;  %v9501_v31 = vsel %vm2787_vm5, %v2869_v38, %v2868_v12 }
 0x3d0   : > { %v3169_v25 = vsub.s32 32, %v3168_v61  ;;  %v2949_v30 = vadd.s32 %v2948_v21, %v2944_v37  ;;  %v3424_v49 = vsub.s32 32, %v3423_v17  ;;  %v3426_v44 = vshll.u32 %v12340_v27, %v3423_v17 }
 0x3d1   : > { %v3174_v53 = vadd.s32 127, %v3173_v58  ;;  %v9504_v32 = vshll.u32 %v3417_v29, 8  ;;  %v9506_v35 = vmul.f32 30.0, %v2323_v42  ;;  %v3429_v0 = vshll.u32 %v12341_v48, %v3423_v17 }
 0x3d2   : > { %v2950_v28 = vadd.s32 536870912, %v2949_v30  ;;  %v3427_v16 = vshrl.u32 %v12341_v48, %v3424_v49  ;;  %v3430_v39 = vshrl.u32 %v12342_v62, %v3424_v49  ;;  %v3432_v12 = vshll.u32 %v12342_v62, %v3423_v17 }
 0x3d3   : > { %12365 = vst [vmem:[#allocation11_spill] sm:$0xff] %v9506_v35  ;;  %v3175_v14 = vshll.u32 %v3174_v53, 23  ;;  %v3433_v38 = vshrl.u32 %v12343_v8, %v3424_v49  ;;  %v3436_v36 = vshrl.u32 %v12344_v5, %v3424_v49  ;;  %v3171_v29 = vshrl.u32 %v3153_v56, %v3169_v25 }
 0x3d4   : > { %v9514_v37 = vpop.eup %6801  ;;  %v9516_v58 = vshrl.u32 %v2950_v28, 30  ;;  %v3422_v42 = vshrl.u32 %v3421_v43, 5  ;;  %v3435_v21 = vshll.u32 %v12343_v8, %v3423_v17  ;;  %v3428_v41 = vor.u32 %v3427_v16, %v3426_v44 }
 0x3d5   : > { %v3176_v11 = vor.u32 4788187, %v3175_v14  ;;  %v3431_v20 = vor.u32 %v3430_v39, %v3429_v0  ;;  %v3434_v47 = vor.u32 %v3433_v38, %v3432_v12  ;;  %v12366_v53 = vand.u32 2147483647, %v9015_v55 }
 0x3d6   : > { %v2952_v54 = vshll.u32 %v9516_v58, 30  ;;  %v3437_v9 = vor.u32 %v3436_v36, %v3435_v21  ;;  %v3438_v56 = vshll.u32 %v12344_v5, %v3423_v17  ;;  %v3439_v25 = vshrl.u32 %v12345_v1, %v3424_v49 }
 0x3d7   : > { %vm9521_vm12 = vcmp.le.f32.partialorder %v12366_v53, 0.7853982  ;;  %v3170_v43 = vshll.u32 %v9426_v4, %v3168_v61  ;;  %v3425_v28 = vshrl.u32 %v12340_v27, %v3424_v49  ;;  %v3204_v44 = vand.u32 2139095040, %v9506_v35 }
 0x3d8   : > { %v9531_v16 = vmul.f32 30.0, %v2334_v63  ;;  %vm3099_vm4 = vcmp.lt.s32.totalorder %v9150_v40, 0  ;;  %v9534_v0 = vsub.s32 %v2949_v30, %v2952_v54  ;;  %v3440_v39 = vor.u32 %v3439_v25, %v3438_v56 }
 0x3d9   : > { %vm3441_vm10 = vcmp.lt.s32.totalorder %v3422_v42, 1  ;;  %vm3444_vm9 = vcmp.lt.s32.totalorder %v3422_v42, 4  ;;  %v3172_v14 = vor.u32 %v3171_v29, %v3170_v43  ;;  %v3177_v12 = vand.u32 2147483647, %v3176_v11 }
 0x3da   : > { %12369 = vst [vmem:[#allocation26_spill] sm:$0xff] %v9531_v16  ;;  %v3446_v17 = vsel %vm3444_vm9, %v3434_v47, 2102212464  ;;  %v3449_v38 = vsel %vm3441_vm10, %v3428_v41, %v3431_v20  ;;  %v2955_v36 = vsub.s32 0, %v9534_v0  ;;  %vm3443_vm6 = vcmp.lt.s32.totalorder %v3422_v42, 3 }
 0x3db   : > { %v3450_v4 = vsel %vm3444_vm9, %v3437_v9, 920167782  ;;  %v3453_v61 = vsel %vm3441_vm10, %v3431_v20, %v3434_v47  ;;  %vm3442_vm11 = vcmp.lt.s32.totalorder %v3422_v42, 2  ;;  %v3445_v49 = vsel %vm3441_vm10, %v3425_v28, %v3428_v41 }
 0x3dc   : > { %v3451_v63 = vsel %vm3443_vm6, %v3434_v47, %v3450_v4  ;;  %v3454_v21 = vsel %vm3444_vm9, %v3440_v39, 1326507024  ;;  %v12370_v53 = vand.u32 2147483647, %v9150_v40  ;;  %v12371_v54 = vmov 0 }
 0x3dd   : > { %v6173_v30 = vmin.u32 %v2955_v36, %v9534_v0  ;;  %v3447_v11 = vsel %vm3443_vm6, %v3431_v20, %v3446_v17  ;;  %v3452_v29 = vsel %vm3442_vm11, %v3449_v38, %v3451_v63  ;;  %v3455_v56 = vsel %vm3443_vm6, %v3437_v9, %v3454_v21 }
 0x3de   : > { %vm9539_vm1 = vcmp.le.f32.partialorder %v12370_v53, 0.7853982  ;;  %v3456_v25 = vsel %vm3442_vm11, %v3453_v61, %v3455_v56  ;;  %v9547_v43 = vmul.u32.u64.low %v9504_v32, %v3452_v29  ;;  %v9548_v26 = vmul.u32.u64.high %v9504_v32, %v3452_v29, %v9547_v43 }
 0x3df   : > { %v12372_v54 = vsel %vm9539_vm1, 4294967295, %v12371_v54  ;;  %v12046_v47 = vand.u32 2147483647, %v9506_v35  ;;  %v3179_v41 = vcvt.s32.f32 %v3172_v14  ;;  %v2957_v28 = vclz %v6173_v30 }
 0x3e0   : > { %12373 = vst [vmem:[#allocation28_spill] sm:$0xff] %v12372_v54  ;;  %v9552_v39 = vmul.u32.u64.low %v9504_v32, %v3456_v25  ;;  %v9553_v4 = vmul.u32.u64.high %v9504_v32, %v3456_v25, %v9552_v39  ;;  %6803 = vcosq.f32 %v9487_v6  ;;  %vm2891_vm5 = vcmp.lt.s32.totalorder %v9274_v46, 0 }
 0x3e1   : > { %v3448_v9 = vsel %vm3442_vm11, %v3445_v49, %v3447_v11  ;;  %v3205_v17 = vshrl.u32 %v3204_v44, 23  ;;  %6805 = vsinq.f32 %v9487_v6  ;;  %v2873_v14 = vsel %vm9521_vm12, %v9015_v55, %v9501_v31 }
 0x3e2   : > { %v3180_v38 = vmul.f32 %v3179_v41, %v3177_v12  ;;  %v6174_v36 = vadd.s32 4294967294, %v2957_v28  ;;  %v12374_v61 = vsub.s32 4, %v9412_v33  ;;  %v3467_v42 = vadd.s32 1, %v9548_v26 }
 0x3e3   : > { %v6184_v49 = vadd.s32 4294967169, %v3205_v17  ;;  %v3208_v6 = vand.u32 8388607, %v12046_v47  ;;  %v3464_v44 = vmul.u32 %v9504_v32, %v3448_v9  ;;  %vm3466_vm13 = vc.u32 %v9553_v4, %v9547_v43 }
 0x3e4   : > { %v9571_v63 = vsel %vm3099_vm4, %v12374_v61, %v9412_v33  ;;  %vm6175_vm14 = vcmp.lt.s32.totalorder %v6174_v36, 0  ;;  %v3516_v31 = vand.u32 2139095040, %v9531_v16  ;;  %6807 = vcosq.f32 %v2873_v14 }
 0x3e5   : > { %12375 = vst [vmem:[#allocation22_spill] sm:$0xff] %v9571_v63  ;;  %v9579_v12 = vsel %vm6175_vm14, 0, %v6174_v36  ;;  %v3468_v21 = vsel %vm3466_vm13, %v3467_v42, %v9548_v26  ;;  %v3211_v33 = vadd.s32 1, %v6184_v49  ;;  %v3181_v53 = vxor.u32 2147483648, %v3180_v38 }
 0x3e6   : > { %v2965_v30 = vsub.s32 4294967266, %v9579_v12  ;;  %v2975_v11 = vsub.s32 4, %v9516_v58  ;;  %v3469_v29 = vadd.s32 %v3468_v21, %v3464_v44  ;;  %6809 = vsinq.f32 %v2873_v14 }
 0x3e7   : > { %v3209_v56 = vor.u32 8388608, %v3208_v6  ;;  %vm3212_vm0 = vcmp.gt.s32.totalorder %v3211_v33, 0  ;;  %v3517_v28 = vshrl.u32 %v3516_v31, 23  ;;  %v9588_v39 = vmul.f32 30.0, %v9479_v60 }
 0x3e8   : > { %v3470_v25 = vadd.s32 536870912, %v3469_v29  ;;  %v3213_v41 = vsel %vm3212_vm0, %v3211_v33, 0  ;;  %v2945_v26 = vadd.s32 %v9458_v51, %v9455_v13  ;;  %v9594_v17 = vadd.f32 %v9341_v52, %v9267_v34 }
 0x3e9   : > { %12376 = vst [vmem:[#allocation31_spill] sm:$0xff] %v9588_v39  ;;  %v3215_v9 = vand.u32 31, %v3213_v41  ;;  %v9598_v14 = vadd.f32 %v9341_v52, %v9276_v23  ;;  %v9602_v36 = vsel %vm3099_vm4, %v3181_v53, %v3180_v38  ;;  %v2966_v61 = vadd.s32 127, %v2965_v30  ;;  %v6721_v53 = vld [vmem:[%s11923_s3 + $0x10] sm:$0xff]  }
 0x3ea   : > { %v9607_v60 = vsel %vm2891_vm5, %v2975_v11, %v9516_v58  ;;  %v9609_v13 = vshrl.u32 %v3470_v25, 30  ;;  %v9611_v51 = vpop.eup %6803  ;;  %v9614_v34 = vadd.s32 %v9547_v43, %v9553_v4  ;;  %v9616_v23 = vshll.u32 %v3209_v56, 8  ;;  %6374 = vmatprep.subr.bf16.mxu1 %v6721_v53 }
 0x3eb   : > { %12377 = vst [vmem:[#allocation25_spill] sm:$0xff] %v9611_v51  ;;  %v3216_v42 = vsub.s32 32, %v3215_v9  ;;  %v12050_v49 = vand.u32 2147483647, %v9531_v16  ;;  %v9619_v38 = vpop.eup %6805  ;;  %v2961_v6 = vsub.s32 32, %v9579_v12  ;;  %v3218_v58 = vshll.u32 %v12340_v27, %v3215_v9  ;;  %6375 = vmatpush3.bf16.msra.mxu1 %v6721_v53 }
 0x3ec   : > { %12378 = vst [vmem:[#allocation19_spill] sm:$0xff] %v9619_v38  ;;  %v3472_v44 = vshll.u32 %v9609_v13, 30  ;;  %v6196_v31 = vadd.s32 4294967169, %v3517_v28  ;;  %v3221_v33 = vshll.u32 %v12341_v48, %v3215_v9  ;;  %v2967_v30 = vshll.u32 %v2966_v61, 23 }
 0x3ed   : > { %v3219_v21 = vshrl.u32 %v12341_v48, %v3216_v42  ;;  %v3222_v43 = vshrl.u32 %v12342_v62, %v3216_v42  ;;  %v3225_v4 = vshrl.u32 %v12343_v8, %v3216_v42  ;;  %v3214_v56 = vshrl.u32 %v3213_v41, 5 }
 0x3ee   : > { %v9631_v11 = vsub.s32 %v3469_v29, %v3472_v44  ;;  %v3224_v25 = vshll.u32 %v12342_v62, %v3215_v9  ;;  %v9634_v32 = vpop.eup %6807  ;;  %v2962_v28 = vshll.u32 %v9534_v0, %v9579_v12  ;;  %v9640_v63 = vand.u32 8388607, %v12050_v49 }
 0x3ef   : > { %12379 = vst [vmem:[#allocation27_spill] sm:$0xff] %v9634_v32  ;;  %v3220_v20 = vor.u32 %v3219_v21, %v3218_v58  ;;  %v3223_v47 = vor.u32 %v3222_v43, %v3221_v33  ;;  %v3227_v29 = vshll.u32 %v12343_v8, %v3215_v9  ;;  %v3228_v41 = vshrl.u32 %v12344_v5, %v3216_v42  ;;  %v6722_v21 = vld [vmem:[%s11923_s3 + $0x18] sm:$0xff]  }
 0x3f0   : > { %v3475_v51 = vsub.s32 0, %v9631_v11  ;;  %v3226_v61 = vor.u32 %v3225_v4, %v3224_v25  ;;  %v9645_v44 = vpop.eup %6809  ;;  %v2963_v38 = vshrl.u32 %v2945_v26, %v2961_v6  ;;  %v3230_v0 = vshll.u32 %v12344_v5, %v3215_v9  ;;  %6376 = vmatprep.subr.bf16.mxu1 %v6722_v21 }
 0x3f1   : > { %12380 = vst [vmem:[#allocation35_spill] sm:$0xff] %v9645_v44  ;;  %v3231_v12 = vshrl.u32 %v12345_v1, %v3216_v42  ;;  %v3523_v58 = vadd.s32 1, %v6196_v31  ;;  %v2968_v33 = vor.u32 4788187, %v2967_v30  ;;  %v3229_v4 = vor.u32 %v3228_v41, %v3227_v29  ;;  %6377 = vmatpush3.bf16.msra.mxu1 %v6722_v21 }
 0x3f2   : > { %v6193_v43 = vmin.u32 %v3475_v51, %v9631_v11  ;;  %vm3233_vm7 = vcmp.lt.s32.totalorder %v3214_v56, 1  ;;  %v3217_v25 = vshrl.u32 %v12340_v27, %v3216_v42  ;;  %vm3236_vm4 = vcmp.lt.s32.totalorder %v3214_v56, 4 }
 0x3f3   : > { %v3232_v53 = vor.u32 %v3231_v12, %v3230_v0  ;;  %v3241_v26 = vsel %vm3233_vm7, %v3220_v20, %v3223_v47  ;;  %vm3235_vm10 = vcmp.lt.s32.totalorder %v3214_v56, 3  ;;  %v3238_v6 = vsel %vm3236_vm4, %v3226_v61, 2102212464 }
 0x3f4   : > { %v3477_v9 = vclz %v6193_v43  ;;  %v3242_v31 = vsel %vm3236_vm4, %v3229_v4, 920167782  ;;  %v2964_v49 = vor.u32 %v2963_v38, %v2962_v28  ;;  %vm3234_vm9 = vcmp.lt.s32.totalorder %v3214_v56, 2 }
 0x3f5   : > { %v3243_v55 = vsel %vm3235_vm10, %v3226_v61, %v3242_v31  ;;  %v3245_v30 = vsel %vm3233_vm7, %v3223_v47, %v3226_v61  ;;  %v3237_v29 = vsel %vm3233_vm7, %v3217_v25, %v3220_v20  ;;  %v3246_v41 = vsel %vm3236_vm4, %v3232_v53, 1326507024 }
 0x3f6   : > { %v6194_v51 = vadd.s32 4294967294, %v3477_v9  ;;  %v3244_v42 = vsel %vm3234_vm9, %v3241_v26, %v3243_v55  ;;  %v3239_v0 = vsel %vm3235_vm10, %v3223_v47, %v3238_v6  ;;  %v3247_v12 = vsel %vm3235_vm10, %v3229_v4, %v3246_v41 }
 0x3f7   : > { %v9659_v32 = vmul.u32.u64.low %v9616_v23, %v3244_v42  ;;  %v9660_v43 = vmul.u32.u64.high %v9616_v23, %v3244_v42, %v9659_v32  ;;  %v2969_v44 = vand.u32 2147483647, %v2968_v33  ;;  %vm3411_vm6 = vcmp.lt.s32.totalorder %v9369_v10, 0 }
 0x3f8   : > { %vm6195_vm11 = vcmp.lt.s32.totalorder %v6194_v51, 0  ;;  %v3248_v38 = vsel %vm3234_vm9, %v3245_v30, %v3247_v12  ;;  %vm3524_vm14 = vcmp.gt.s32.totalorder %v3523_v58, 0  ;;  %v2971_v47 = vcvt.s32.f32 %v2964_v49 }
 0x3f9   : > { %v3480_v28 = vsel %vm6195_vm11, 0, %v6194_v51  ;;  %v9666_v20 = vmul.u32.u64.low %v9616_v23, %v3248_v38  ;;  %v9667_v61 = vmul.u32.u64.high %v9616_v23, %v3248_v38, %v9666_v20  ;;  %v3525_v55 = vsel %vm3524_vm14, %v3523_v58, 0 }
 0x3fa   : > { %v3481_v21 = vsub.s32 32, %v3480_v28  ;;  %v3485_v4 = vsub.s32 4294967266, %v3480_v28  ;;  %v3240_v25 = vsel %vm3234_vm9, %v3237_v29, %v3239_v0  ;;  %v9674_v33 = vsel %vm9539_vm1, %v9150_v40, %v9602_v36 }
 0x3fb   : > { %v3259_v53 = vadd.s32 1, %v9660_v43  ;;  %v3521_v26 = vor.u32 8388608, %v9640_v63  ;;  %v3527_v9 = vand.u32 31, %v3525_v55  ;;  %v2972_v6 = vmul.f32 %v2971_v47, %v2969_v44 }
 0x3fc   : > { %v3483_v31 = vshrl.u32 %v9614_v34, %v3481_v21  ;;  %v3486_v58 = vadd.s32 127, %v3485_v4  ;;  %v3495_v49 = vsub.s32 4, %v9609_v13  ;;  %v3482_v56 = vshll.u32 %v9631_v11, %v3480_v28 }
 0x3fd   : > { %v3256_v30 = vmul.u32 %v9616_v23, %v3240_v25  ;;  %vm3258_vm13 = vc.u32 %v9667_v61, %v9659_v32  ;;  %v3528_v36 = vsub.s32 32, %v3527_v9  ;;  %v3526_v42 = vshrl.u32 %v3525_v55, 5 }
 0x3fe   : > { %v3487_v51 = vshll.u32 %v3486_v58, 23  ;;  %v3260_v29 = vsel %vm3258_vm13, %v3259_v53, %v9660_v43  ;;  %v3530_v63 = vshll.u32 %v12340_v27, %v3527_v9  ;;  %v3533_v41 = vshll.u32 %v12341_v48, %v3527_v9 }
 0x3ff   : > { %v3261_v44 = vadd.s32 %v3260_v29, %v3256_v30  ;;  %v3531_v34 = vshrl.u32 %v12341_v48, %v3528_v36  ;;  %v3534_v0 = vshrl.u32 %v12342_v62, %v3528_v36  ;;  %v3484_v11 = vor.u32 %v3483_v31, %v3482_v56 }
 0x400   : > { %v3488_v12 = vor.u32 4788187, %v3487_v51  ;;  %v3536_v23 = vshll.u32 %v12342_v62, %v3527_v9  ;;  %v3537_v38 = vshrl.u32 %v12343_v8, %v3528_v36  ;;  %v9694_v43 = vsel %vm3411_vm6, %v3495_v49, %v9609_v13 }
 0x401   : > { %12381 = vst [vmem:[#allocation34_spill] sm:$0xff] %v9694_v43  ;;  %v3262_v28 = vadd.s32 536870912, %v3261_v44  ;;  %v3532_v20 = vor.u32 %v3531_v34, %v3530_v63  ;;  %v3535_v55 = vor.u32 %v3534_v0, %v3533_v41  ;;  %v3539_v4 = vshll.u32 %v12343_v8, %v3527_v9 }
 0x402   : > { %v3489_v47 = vand.u32 2147483647, %v3488_v12  ;;  %v3538_v21 = vor.u32 %v3537_v38, %v3536_v23  ;;  %v3540_v25 = vshrl.u32 %v12344_v5, %v3528_v36  ;;  %v12382_v53 = vand.u32 2147483647, %v9274_v46 }
 0x403   : > { %v2973_v58 = vxor.u32 2147483648, %v2972_v6  ;;  %v3263_v56 = vshrl.u32 %v3262_v28, 30  ;;  %v3542_v13 = vshll.u32 %v12344_v5, %v3527_v9  ;;  %v3543_v49 = vshrl.u32 %v12345_v1, %v3528_v36 }
 0x404   : > { %vm9700_vm0 = vcmp.le.f32.partialorder %v12382_v53, 0.7853982  ;;  %v3491_v30 = vcvt.s32.f32 %v3484_v11  ;;  %v3541_v51 = vor.u32 %v3540_v25, %v3539_v4  ;;  %vm3545_vm7 = vcmp.lt.s32.totalorder %v3526_v42, 1 }
 0x405   : > { %vm3546_vm4 = vcmp.lt.s32.totalorder %v3526_v42, 2  ;;  %v12385_v29 = vand.u32 2147483647, %v9369_v10  ;;  %v12386_v63 = vmov 0  ;;  %v3264_v34 = vshll.u32 %v3263_v56, 30 }
 0x406   : > { %v3544_v41 = vor.u32 %v3543_v49, %v3542_v13  ;;  %vm3547_vm9 = vcmp.lt.s32.totalorder %v3526_v42, 3  ;;  %vm3548_vm11 = vcmp.lt.s32.totalorder %v3526_v42, 4  ;;  %v3492_v0 = vmul.f32 %v3491_v30, %v3489_v47 }
 0x407   : > { %vm9708_vm10 = vcmp.le.f32.partialorder %v12385_v29, 0.7853982  ;;  %vm3203_vm14 = vcmp.lt.s32.totalorder %v9506_v35, 0  ;;  %v3550_v9 = vsel %vm3548_vm11, %v3538_v21, 2102212464  ;;  %v3553_v12 = vsel %vm3545_vm7, %v3532_v20, %v3535_v55 }
 0x408   : > { %v12387_v63 = vsel %vm9708_vm10, 4294967295, %v12386_v63  ;;  %v3554_v11 = vsel %vm3548_vm11, %v3541_v51, 920167782  ;;  %v9714_v23 = vsub.s32 %v3261_v44, %v3264_v34  ;;  %v3529_v38 = vshrl.u32 %v12340_v27, %v3528_v36 }
 0x409   : > { %12388 = vst [vmem:[#allocation40_spill] sm:$0xff] %v12387_v63  ;;  %v3555_v28 = vsel %vm3547_vm9, %v3538_v21, %v3554_v11  ;;  %v3557_v4 = vsel %vm3545_vm7, %v3535_v55, %v3538_v21  ;;  %v2974_v25 = vsel %vm2891_vm5, %v2973_v58, %v2972_v6  ;;  %v3558_v47 = vsel %vm3548_vm11, %v3544_v41, 1326507024 }
 0x40a   : > { %v3556_v53 = vsel %vm3546_vm4, %v3553_v12, %v3555_v28  ;;  %v3561_v13 = vshll.u32 %v3521_v26, 8  ;;  %v12389_v49 = vand.u32 2147483647, %v9506_v35  ;;  %v3267_v44 = vsub.s32 0, %v9714_v23 }
 0x40b   : > { %v3549_v36 = vsel %vm3545_vm7, %v3529_v38, %v3532_v20  ;;  %v3551_v29 = vsel %vm3547_vm9, %v3535_v55, %v3550_v9  ;;  %v3559_v21 = vsel %vm3547_vm9, %v3541_v51, %v3558_v47  ;;  %v3493_v34 = vxor.u32 2147483648, %v3492_v0 }
 0x40c   : > { %vm9724_vm13 = vcmp.le.f32.partialorder %v12389_v49, 0.7853982  ;;  %v3560_v6 = vsel %vm3546_vm4, %v3557_v4, %v3559_v21  ;;  %v9733_v58 = vmul.u32.u64.low %v3561_v13, %v3556_v53  ;;  %v9734_v41 = vmul.u32.u64.high %v3561_v13, %v3556_v53, %v9733_v58 }
 0x40d   : > { %v6185_v26 = vmin.u32 %v3267_v44, %v9714_v23  ;;  %v3287_v12 = vsub.s32 4, %v3263_v56  ;;  %v9737_v11 = vmul.u32.u64.low %v3561_v13, %v3560_v6  ;;  %v9738_v28 = vmul.u32.u64.high %v3561_v13, %v3560_v6, %v9737_v11 }
 0x40e   : > { %6811 = vcosq.f32 %v9674_v33  ;;  %v3552_v55 = vsel %vm3546_vm4, %v3549_v36, %v3551_v29  ;;  %v3308_v51 = vand.u32 2139095040, %v9588_v39  ;;  %v2977_v9 = vsel %vm9700_vm0, %v9274_v46, %v2974_v25 }
 0x40f   : > { %6813 = vsinq.f32 %v9674_v33  ;;  %v3269_v38 = vclz %v6185_v26  ;;  %v12054_v4 = vand.u32 2147483647, %v9588_v39  ;;  %v3494_v53 = vsel %vm3411_vm6, %v3493_v34, %v3492_v0 }
 0x410   : > { %v3571_v42 = vadd.s32 1, %v9734_v41  ;;  %v3309_v49 = vshrl.u32 %v3308_v51, 23  ;;  %v9759_v33 = vsel %vm3203_vm14, %v3287_v12, %v3263_v56  ;;  %v3568_v36 = vmul.u32 %v3561_v13, %v3552_v55 }
 0x411   : > { %v6186_v44 = vadd.s32 4294967294, %v3269_v38  ;;  %12392 = vst [vmem:[#allocation33_spill] sm:$0xff] %v9759_v33  ;;  %vm3570_vm5 = vc.u32 %v9738_v28, %v9733_v58  ;;  %6815 = vcosq.f32 %v2977_v9  ;;  %v9764_v0 = vmul.f32 30.0, %v9594_v17 }
 0x412   : > { %v3572_v25 = vsel %vm3570_vm5, %v3571_v42, %v9734_v41  ;;  %v6188_v29 = vadd.s32 4294967169, %v3309_v49  ;;  %6817 = vsinq.f32 %v2977_v9  ;;  %v3497_v21 = vsel %vm9708_vm10, %v9369_v10, %v3494_v53 }
 0x413   : > { %12393 = vst [vmem:[#allocation37_spill] sm:$0xff] %v9764_v0  ;;  %vm6187_vm6 = vcmp.lt.s32.totalorder %v6186_v44, 0  ;;  %v3573_v34 = vadd.s32 %v3572_v25, %v3568_v36  ;;  %v3257_v56 = vadd.s32 %v9659_v32, %v9667_v61  ;;  %v9776_v11 = vand.u32 8388607, %v12054_v4 }
 0x414   : > { %v3272_v13 = vsel %vm6187_vm6, 0, %v6186_v44  ;;  %v3315_v41 = vadd.s32 1, %v6188_v29  ;;  %6819 = vcosq.f32 %v3497_v21  ;;  %v3828_v51 = vand.u32 2139095040, %v9764_v0 }
 0x415   : > { %v3273_v26 = vsub.s32 32, %v3272_v13  ;;  %v3277_v12 = vsub.s32 4294967266, %v3272_v13  ;;  %v3574_v17 = vadd.s32 536870912, %v3573_v34  ;;  %v3274_v55 = vshll.u32 %v9714_v23, %v3272_v13 }
 0x416   : > { %vm3316_vm7 = vcmp.gt.s32.totalorder %v3315_v41, 0  ;;  %6821 = vsinq.f32 %v3497_v21  ;;  %v9785_v49 = vmul.f32 30.0, %v9598_v14  ;;  %v9789_v44 = vadd.f32 %v9341_v52, %v9385_v24 }
 0x417   : > { %v3275_v32 = vshrl.u32 %v3257_v56, %v3273_v26  ;;  %v3278_v61 = vadd.s32 127, %v3277_v12  ;;  %v9780_v9 = vshrl.u32 %v3574_v17, 30  ;;  %v3317_v38 = vsel %vm3316_vm7, %v3315_v41, 0 }
 0x418   : > { %v9782_v53 = vpop.eup %6811  ;;  %v3319_v42 = vand.u32 31, %v3317_v38  ;;  %v3313_v56 = vor.u32 8388608, %v9776_v11  ;;  %v9796_v13 = vadd.s32 %v9733_v58, %v9738_v28  ;;  %v3829_v14 = vshrl.u32 %v3828_v51, 23 }
 0x419   : > { %12394 = vst [vmem:[#allocation36_spill] sm:$0xff] %v9782_v53  ;;  %v9791_v23 = vpop.eup %6813  ;;  %v3276_v36 = vor.u32 %v3275_v32, %v3274_v55  ;;  %v3279_v25 = vshll.u32 %v3278_v61, 23  ;;  %v3576_v29 = vshll.u32 %v9780_v9, 30  ;;  %v3318_v52 = vshrl.u32 %v3317_v38, 5 }
 0x41a   : > { %12395 = vst [vmem:[#allocation5_spill] sm:$0xff] %v9791_v23  ;;  %v3320_v21 = vsub.s32 32, %v3319_v42  ;;  %v3322_v24 = vshll.u32 %v12340_v27, %v3319_v42  ;;  %v3325_v32 = vshll.u32 %v12341_v48, %v3319_v42  ;;  %v3328_v58 = vshll.u32 %v12342_v62, %v3319_v42 }
 0x41b   : > { %v3280_v26 = vor.u32 4788187, %v3279_v25  ;;  %v9799_v12 = vsub.s32 %v3573_v34, %v3576_v29  ;;  %v9802_v17 = vpop.eup %6815  ;;  %v3283_v51 = vcvt.s32.f32 %v3276_v36  ;;  %v3331_v47 = vshll.u32 %v12343_v8, %v3319_v42 }
 0x41c   : > { %v3323_v55 = vshrl.u32 %v12341_v48, %v3320_v21  ;;  %v3326_v11 = vshrl.u32 %v12342_v62, %v3320_v21  ;;  %v9808_v28 = vpop.eup %6817  ;;  %v3329_v38 = vshrl.u32 %v12343_v8, %v3320_v21  ;;  %v3332_v6 = vshrl.u32 %v12344_v5, %v3320_v21 }
 0x41d   : > { %v3281_v61 = vand.u32 2147483647, %v3280_v26  ;;  %v3579_v34 = vsub.s32 0, %v9799_v12  ;;  %v3334_v41 = vshll.u32 %v12344_v5, %v3319_v42  ;;  %v3335_v10 = vshrl.u32 %v12345_v1, %v3320_v21 }
 0x41e   : > { %v3324_v25 = vor.u32 %v3323_v55, %v3322_v24  ;;  %v3327_v29 = vor.u32 %v3326_v11, %v3325_v32  ;;  %v3330_v4 = vor.u32 %v3329_v38, %v3328_v58  ;;  %v9817_v43 = vpop.eup %6819  ;;  %v3321_v26 = vshrl.u32 %v12340_v27, %v3320_v21 }
 0x41f   : > { %v6197_v20 = vmin.u32 %v3579_v34, %v9799_v12  ;;  %12396 = vst [vmem:[#allocation21_spill] sm:$0xff] %v9817_v43  ;;  %v3284_v36 = vmul.f32 %v3283_v51, %v3281_v61  ;;  %v3333_v63 = vor.u32 %v3332_v6, %v3331_v47  ;;  %v6208_v40 = vadd.s32 4294967169, %v3829_v14 }
 0x420   : > { %v3336_v55 = vor.u32 %v3335_v10, %v3334_v41  ;;  %vm3337_vm4 = vcmp.lt.s32.totalorder %v3318_v52, 1  ;;  %vm3340_vm9 = vcmp.lt.s32.totalorder %v3318_v52, 4  ;;  %v9820_v32 = vpop.eup %6821  ;;  %vm3515_vm11 = vcmp.lt.s32.totalorder %v9531_v16, 0 }
 0x421   : > { %v3581_v24 = vclz %v6197_v20  ;;  %12397 = vst [vmem:[#allocation42_spill] sm:$0xff] %v9820_v32  ;;  %vm3339_vm5 = vcmp.lt.s32.totalorder %v3318_v52, 3  ;;  %v3342_v42 = vsel %vm3340_vm9, %v3330_v4, 2102212464  ;;  %v3345_v11 = vsel %vm3337_vm4, %v3324_v25, %v3327_v29 }
 0x422   : > { %v3346_v58 = vsel %vm3340_vm9, %v3333_v63, 920167782  ;;  %v3353_v21 = vshll.u32 %v3313_v56, 8  ;;  %v12398_v47 = vand.u32 2147483647, %v9764_v0  ;;  %vm3338_vm6 = vcmp.lt.s32.totalorder %v3318_v52, 2 }
 0x423   : > { %v6198_v34 = vadd.s32 4294967294, %v3581_v24  ;;  %v3347_v61 = vsel %vm3339_vm5, %v3330_v4, %v3346_v58  ;;  %v3341_v10 = vsel %vm3337_vm4, %v3321_v26, %v3324_v25  ;;  %v3343_v6 = vsel %vm3339_vm5, %v3327_v29, %v3342_v42 }
 0x424   : > { %v9828_v20 = vand.u32 8388607, %v12398_v47  ;;  %v3349_v41 = vsel %vm3337_vm4, %v3327_v29, %v3330_v4  ;;  %v3599_v14 = vsub.s32 4, %v9780_v9  ;;  %v3348_v51 = vsel %vm3338_vm6, %v3345_v11, %v3347_v61  ;;  %v6917_v11 = vld [vmem:[%s11924_s4] ss:$0 sm:$0xff] }
 0x425   : > { %vm6199_vm7 = vcmp.lt.s32.totalorder %v6198_v34, 0  ;;  %v3350_v38 = vsel %vm3340_vm9, %v3336_v55, 1326507024  ;;  %v3285_v43 = vxor.u32 2147483648, %v3284_v36  ;;  %v3835_v56 = vadd.s32 1, %v6208_v40 }
 0x426   : > { %v3584_v24 = vsel %vm6199_vm7, 0, %v6198_v34  ;;  %v3351_v58 = vsel %vm3339_vm5, %v3333_v63, %v3350_v38  ;;  %v3344_v47 = vsel %vm3338_vm6, %v3341_v10, %v3343_v6  ;;  %v12399_v63 = vand.u32 2147483647, %v9531_v16 }
 0x427   : > { %v3585_v32 = vsub.s32 32, %v3584_v24  ;;  %v3589_v33 = vsub.s32 4294967266, %v3584_v24  ;;  %v3352_v53 = vsel %vm3338_vm6, %v3349_v41, %v3351_v58  ;;  %v3586_v29 = vshll.u32 %v9799_v12, %v3584_v24 }
 0x428   : > { %v9834_v23 = vmul.u32.u64.low %v3353_v21, %v3352_v53  ;;  %v9835_v25 = vmul.u32.u64.high %v3353_v21, %v3352_v53, %v9834_v23  ;;  %v9837_v26 = vmul.u32.u64.low %v3353_v21, %v3348_v51  ;;  %v9838_v4 = vmul.u32.u64.high %v3353_v21, %v3348_v51, %v9837_v26 }
 0x429   : > { %v3587_v55 = vshrl.u32 %v9796_v13, %v3585_v32  ;;  %v3590_v42 = vadd.s32 127, %v3589_v33  ;;  %vm3836_vm4 = vcmp.gt.s32.totalorder %v3835_v56, 0  ;;  %vm9845_vm9 = vcmp.le.f32.partialorder %v12399_v63, 0.7853982 }
 0x42a   : > { %v12400_v40 = vmov 0  ;;  %v3833_v52 = vor.u32 8388608, %v9828_v20  ;;  %v3837_v53 = vsel %vm3836_vm4, %v3835_v56, 0  ;;  %v9855_v12 = vadd.f32 %v6917_v11, %v9481_v19 }
 0x42b   : > { %v12401_v40 = vsel %vm9845_vm9, 4294967295, %v12400_v40  ;;  %v3588_v33 = vor.u32 %v3587_v55, %v3586_v29  ;;  %v3591_v13 = vshll.u32 %v3590_v42, 23  ;;  %v9860_v32 = vsel %vm3515_vm11, %v3599_v14, %v9780_v9 }
 0x42c   : > { %12402 = vst [vmem:[#allocation38_spill] sm:$0xff] %v12401_v40  ;;  %12403 = vst [vmem:[#allocation43_spill] sm:$0xff] %v9860_v32  ;;  %v3839_v34 = vand.u32 31, %v3837_v53  ;;  %v3286_v61 = vsel %vm3203_vm14, %v3285_v43, %v3284_v36  ;;  %v3360_v20 = vmul.u32 %v3353_v21, %v3344_v47  ;;  %vm3362_vm5 = vc.u32 %v9835_v25, %v9837_v26 }
 0x42d   : > { %v3363_v10 = vadd.s32 1, %v9838_v4  ;;  %v3592_v6 = vor.u32 4788187, %v3591_v13  ;;  %v3838_v19 = vshrl.u32 %v3837_v53, 5  ;;  %v3620_v51 = vand.u32 2139095040, %v9785_v49 }
 0x42e   : > { %v3840_v41 = vsub.s32 32, %v3839_v34  ;;  %v3595_v38 = vcvt.s32.f32 %v3588_v33  ;;  %v3842_v9 = vshll.u32 %v12340_v27, %v3839_v34  ;;  %v3845_v14 = vshll.u32 %v12341_v48, %v3839_v34 }
 0x42f   : > { %v3364_v24 = vsel %vm3362_vm5, %v3363_v10, %v9838_v4  ;;  %v3593_v58 = vand.u32 2147483647, %v3592_v6  ;;  %v3848_v21 = vshll.u32 %v12342_v62, %v3839_v34  ;;  %v3851_v29 = vshll.u32 %v12343_v8, %v3839_v34 }
 0x430   : > { %v3365_v43 = vadd.s32 %v3364_v24, %v3360_v20  ;;  %v3843_v36 = vshrl.u32 %v12341_v48, %v3840_v41  ;;  %v3846_v56 = vshrl.u32 %v12342_v62, %v3840_v41  ;;  %v3849_v47 = vshrl.u32 %v12343_v8, %v3840_v41 }
 0x431   : > { %v3852_v55 = vshrl.u32 %v12344_v5, %v3840_v41  ;;  %v3596_v42 = vmul.f32 %v3595_v38, %v3593_v58  ;;  %v3854_v63 = vshll.u32 %v12344_v5, %v3839_v34  ;;  %v3855_v53 = vshrl.u32 %v12345_v1, %v3840_v41 }
 0x432   : > { %v3366_v4 = vadd.s32 536870912, %v3365_v43  ;;  %v3844_v11 = vor.u32 %v3843_v36, %v3842_v9  ;;  %v3847_v33 = vor.u32 %v3846_v56, %v3845_v14  ;;  %v3850_v13 = vor.u32 %v3849_v47, %v3848_v21 }
 0x433   : > { %v3853_v20 = vor.u32 %v3852_v55, %v3851_v29  ;;  %v3289_v10 = vsel %vm9724_vm13, %v9506_v35, %v3286_v61  ;;  %v3873_v23 = vshll.u32 %v3833_v52, 8  ;;  %v3597_v38 = vxor.u32 2147483648, %v3596_v42 }
 0x434   : > { %v3367_v24 = vshrl.u32 %v3366_v4, 30  ;;  %v3856_v58 = vor.u32 %v3855_v53, %v3854_v63  ;;  %v12404_v34 = vand.u32 2147483647, %v9785_v49  ;;  %v9888_v9 = vmul.f32 30.0, %v9789_v44 }
 0x435   : > { %vm3857_vm14 = vcmp.lt.s32.totalorder %v3838_v19, 1  ;;  %vm3860_vm6 = vcmp.lt.s32.totalorder %v3838_v19, 4  ;;  %v3621_v36 = vshrl.u32 %v3620_v51, 23  ;;  %v3841_v61 = vshrl.u32 %v12340_v27, %v3840_v41 }
 0x436   : > { %v3624_v54 = vand.u32 8388607, %v12404_v34  ;;  %v3368_v14 = vshll.u32 %v3367_v24, 30  ;;  %v3862_v21 = vsel %vm3860_vm6, %v3850_v13, 2102212464  ;;  %v3865_v56 = vsel %vm3857_vm14, %v3844_v11, %v3847_v33 }
 0x437   : > { %v3866_v47 = vsel %vm3860_vm6, %v3853_v20, 920167782  ;;  %vm3307_vm7 = vcmp.lt.s32.totalorder %v9588_v39, 0  ;;  %vm3858_vm4 = vcmp.lt.s32.totalorder %v3838_v19, 2  ;;  %vm3859_vm5 = vcmp.lt.s32.totalorder %v3838_v19, 3 }
 0x438   : > { %v9892_v52 = vsub.s32 %v3365_v43, %v3368_v14  ;;  %v3869_v29 = vsel %vm3857_vm14, %v3847_v33, %v3850_v13  ;;  %v3598_v44 = vsel %vm3515_vm11, %v3597_v38, %v3596_v42  ;;  %v3861_v55 = vsel %vm3857_vm14, %v3841_v61, %v3844_v11 }
 0x439   : > { %v3867_v4 = vsel %vm3859_vm5, %v3850_v13, %v3866_v47  ;;  %v3870_v63 = vsel %vm3860_vm6, %v3856_v58, 1326507024  ;;  %v3863_v53 = vsel %vm3859_vm5, %v3847_v33, %v3862_v21  ;;  %v6200_v14 = vadd.s32 4294967169, %v3621_v36 }
 0x43a   : > { %v3371_v51 = vsub.s32 0, %v9892_v52  ;;  %v3868_v41 = vsel %vm3858_vm4, %v3865_v56, %v3867_v4  ;;  %v3871_v34 = vsel %vm3859_vm5, %v3853_v20, %v3870_v63  ;;  %6823 = vcosq.f32 %v3289_v10 }
 0x43b   : > { %v3872_v6 = vsel %vm3858_vm4, %v3869_v29, %v3871_v34  ;;  %v9899_v32 = vmul.u32.u64.low %v3873_v23, %v3868_v41  ;;  %v9900_v43 = vmul.u32.u64.high %v3873_v23, %v3868_v41, %v9899_v32  ;;  %6825 = vsinq.f32 %v3289_v10 }
 0x43c   : > { %v6189_v35 = vmin.u32 %v3371_v51, %v9892_v52  ;;  %v9904_v42 = vmul.u32.u64.low %v3873_v23, %v3872_v6  ;;  %v9905_v11 = vmul.u32.u64.high %v3873_v23, %v3872_v6, %v9904_v42  ;;  %v3391_v13 = vsub.s32 4, %v3367_v24 }
 0x43d   : > { %v3864_v33 = vsel %vm3858_vm4, %v3861_v55, %v3863_v53  ;;  %v3627_v38 = vadd.s32 1, %v6200_v14  ;;  %v3601_v20 = vsel %vm9845_vm9, %v9531_v16, %v3598_v44  ;;  %v3361_v58 = vadd.s32 %v9837_v26, %v9835_v25 }
 0x43e   : > { %v3373_v61 = vclz %v6189_v35  ;;  %v9914_v36 = vmul.f32 30.0, %v9855_v12  ;;  %v3883_v21 = vadd.s32 1, %v9900_v43  ;;  %v3625_v6 = vor.u32 8388608, %v3624_v54 }
 0x43f   : > { %vm3628_vm11 = vcmp.gt.s32.totalorder %v3627_v38, 0  ;;  %v3932_v10 = vand.u32 2139095040, %v9888_v9  ;;  %v3880_v56 = vmul.u32 %v3873_v23, %v3864_v33  ;;  %vm3882_vm14 = vc.u32 %v9905_v11, %v9899_v32 }
 0x440   : > { %v6190_v19 = vadd.s32 4294967294, %v3373_v61  ;;  %v3629_v47 = vsel %vm3628_vm11, %v3627_v38, 0  ;;  %6827 = vcosq.f32 %v3601_v20  ;;  %v9922_v25 = vsel %vm3307_vm7, %v3391_v13, %v3367_v24 }
 0x441   : > { %v3884_v35 = vsel %vm3882_vm14, %v3883_v21, %v9900_v43  ;;  %v3631_v26 = vand.u32 31, %v3629_v47  ;;  %6829 = vsinq.f32 %v3601_v20  ;;  %v9926_v23 = vshll.u32 %v3625_v6, 8 }
 0x442   : > { %vm6191_vm6 = vcmp.lt.s32.totalorder %v6190_v19, 0  ;;  %v3885_v54 = vadd.s32 %v3884_v35, %v3880_v56  ;;  %v3933_v55 = vshrl.u32 %v3932_v10, 23  ;;  %v9928_v53 = vshrl.u32 %v3629_v47, 5 }
 0x443   : > { %v3376_v29 = vsel %vm6191_vm6, 0, %v6190_v19  ;;  %v3632_v44 = vsub.s32 32, %v3631_v26  ;;  %v3634_v41 = vshll.u32 %v12340_v27, %v3631_v26  ;;  %v3637_v61 = vshll.u32 %v12341_v48, %v3631_v26 }
 0x444   : > { %v3377_v4 = vsub.s32 32, %v3376_v29  ;;  %v3381_v63 = vsub.s32 4294967266, %v3376_v29  ;;  %v3886_v51 = vadd.s32 536870912, %v3885_v54  ;;  %v3378_v24 = vshll.u32 %v9892_v52, %v3376_v29  ;;  %v9934_v14 = vpop.eup %6823 }
 0x445   : > { %v3635_v34 = vshrl.u32 %v12341_v48, %v3632_v44  ;;  %v3638_v43 = vshrl.u32 %v12342_v62, %v3632_v44  ;;  %12405 = vst [vmem:[#allocation6_spill] sm:$0xff] %v9934_v14  ;;  %v3641_v38 = vshrl.u32 %v12343_v8, %v3632_v44  ;;  %v9937_v20 = vpop.eup %6825  ;;  %v3640_v21 = vshll.u32 %v12342_v62, %v3631_v26 }
 0x446   : > { %v3379_v42 = vshrl.u32 %v3361_v58, %v3377_v4  ;;  %v3382_v13 = vadd.s32 127, %v3381_v63  ;;  %v3887_v33 = vshrl.u32 %v3886_v51, 30  ;;  %v3643_v52 = vshll.u32 %v12343_v8, %v3631_v26 }
 0x447   : > { %v3644_v6 = vshrl.u32 %v12344_v5, %v3632_v44  ;;  %v3636_v47 = vor.u32 %v3635_v34, %v3634_v41  ;;  %v12406_v58 = vand.u32 2147483647, %v9588_v39  ;;  %v3639_v29 = vor.u32 %v3638_v43, %v3637_v61 }
 0x448   : > { %v3380_v10 = vor.u32 %v3379_v42, %v3378_v24  ;;  %v3383_v19 = vshll.u32 %v3382_v13, 23  ;;  %v3888_v56 = vshll.u32 %v3887_v33, 30  ;;  %v3646_v63 = vshll.u32 %v12344_v5, %v3631_v26 }
 0x449   : > { %vm9945_vm4 = vcmp.le.f32.partialorder %v12406_v58, 0.7853982  ;;  %v3645_v4 = vor.u32 %v3644_v6, %v3643_v52  ;;  %v3647_v51 = vshrl.u32 %v12345_v1, %v3632_v44  ;;  %v3642_v24 = vor.u32 %v3641_v38, %v3640_v21 }
 0x44a   : > { %v3384_v12 = vor.u32 4788187, %v3383_v19  ;;  %v9952_v16 = vsub.s32 %v3885_v54, %v3888_v56  ;;  %v6212_v42 = vadd.s32 4294967169, %v3933_v55  ;;  %v9954_v41 = vpop.eup %6827  ;;  %v3387_v34 = vcvt.s32.f32 %v3380_v10 }
 0x44b   : > { %12409 = vst [vmem:[#allocation10_spill] sm:$0xff] %v9954_v41  ;;  %v3633_v13 = vshrl.u32 %v12340_v27, %v3632_v44  ;;  %v3648_v58 = vor.u32 %v3647_v51, %v3646_v63  ;;  %v12410_v43 = vand.u32 2147483647, %v9888_v9  ;;  %v9959_v52 = vpop.eup %6829  ;;  %vm3649_vm11 = vcmp.lt.s32.totalorder %v9928_v53, 1 }
 0x44c   : > { %12411 = vst [vmem:[#allocation41_spill] sm:$0xff] %v9959_v52  ;;  %v3385_v26 = vand.u32 2147483647, %v3384_v12  ;;  %v3891_v6 = vsub.s32 0, %v9952_v16  ;;  %vm3652_vm14 = vcmp.lt.s32.totalorder %v9928_v53, 4  ;;  %v12413_v55 = vmov 0 }
 0x44d   : > { %v3936_v61 = vand.u32 8388607, %v12410_v43  ;;  %v12412_v54 = vand.u32 2147483647, %v9764_v0  ;;  %vm3650_vm2 = vcmp.lt.s32.totalorder %v9928_v53, 2  ;;  %vm3651_vm5 = vcmp.lt.s32.totalorder %v9928_v53, 3 }
 0x44e   : > { %v3657_v44 = vsel %vm3649_vm11, %v3636_v47, %v3639_v29  ;;  %v3658_v12 = vsel %vm3652_vm14, %v3645_v4, 920167782  ;;  %v3388_v38 = vmul.f32 %v3387_v34, %v3385_v26  ;;  %v6209_v21 = vmin.u32 %v3891_v6, %v9952_v16 }
 0x44f   : > { %vm9966_vm6 = vcmp.le.f32.partialorder %v12412_v54, 0.7853982  ;;  %v3654_v10 = vsel %vm3652_vm14, %v3642_v24, 2102212464  ;;  %v3659_v19 = vsel %vm3651_vm5, %v3642_v24, %v3658_v12  ;;  %v3911_v56 = vsub.s32 4, %v3887_v33 }
 0x450   : > { %v12414_v55 = vsel %vm9966_vm6, 4294967295, %v12413_v55  ;;  %v3660_v63 = vsel %vm3650_vm2, %v3657_v44, %v3659_v19  ;;  %v3661_v51 = vsel %vm3649_vm11, %v3639_v29, %v3642_v24  ;;  %v3662_v43 = vsel %vm3652_vm14, %v3648_v58, 1326507024 }
 0x451   : > { %v3389_v54 = vxor.u32 2147483648, %v3388_v38  ;;  %v3893_v41 = vclz %v6209_v21  ;;  %v3653_v52 = vsel %vm3649_vm11, %v3633_v13, %v3636_v47  ;;  %v3663_v40 = vsel %vm3651_vm5, %v3645_v4, %v3662_v43 }
 0x452   : > { %v3655_v14 = vsel %vm3651_vm5, %v3639_v29, %v3654_v10  ;;  %v3664_v34 = vsel %vm3650_vm2, %v3661_v51, %v3663_v40  ;;  %v9984_v26 = vmul.u32.u64.low %v9926_v23, %v3660_v63  ;;  %v9985_v6 = vmul.u32.u64.high %v9926_v23, %v3660_v63, %v9984_v26 }
 0x453   : > { %v6210_v58 = vadd.s32 4294967294, %v3893_v41  ;;  %v9992_v44 = vmul.u32.u64.low %v9926_v23, %v3664_v34  ;;  %v9993_v12 = vmul.u32.u64.high %v9926_v23, %v3664_v34, %v9992_v44  ;;  %v3390_v47 = vsel %vm3307_vm7, %v3389_v54, %v3388_v38 }
 0x454   : > { %vm12415_vm5 = vcmp.lt.s32.totalorder %v9764_v0, 0  ;;  %v3939_v29 = vadd.s32 1, %v6212_v42  ;;  %v3724_v4 = vand.u32 2139095040, %v9914_v36  ;;  %v3881_v13 = vadd.s32 %v9899_v32, %v9905_v11 }
 0x455   : > { %v9999_v40 = vsel %vm12415_vm5, %v3911_v56, %v3887_v33  ;;  %vm6211_vm11 = vcmp.lt.s32.totalorder %v6210_v58, 0  ;;  %v3656_v41 = vsel %vm3650_vm2, %v3653_v52, %v3655_v14  ;;  %v12077_v21 = vand.u32 2147483647, %v9914_v36 }
 0x456   : > { %12416 = vst [vmem:[#allocation48_spill] sm:$0xff] %v9999_v40  ;;  %v3896_v10 = vsel %vm6211_vm11, 0, %v6210_v58  ;;  %v3675_v19 = vadd.s32 1, %v9985_v6  ;;  %v3937_v38 = vor.u32 8388608, %v3936_v61  ;;  %vm3940_vm7 = vcmp.gt.s32.totalorder %v3939_v29, 0 }
 0x457   : > { %v10011_v33 = vsel %vm9945_vm4, %v9588_v39, %v3390_v47  ;;  %v3897_v42 = vsub.s32 32, %v3896_v10  ;;  %v3901_v56 = vsub.s32 4294967266, %v3896_v10  ;;  %v3672_v11 = vmul.u32 %v9926_v23, %v3656_v41 }
 0x458   : > { %vm3674_vm2 = vc.u32 %v9993_v12, %v9984_v26  ;;  %v3941_v53 = vsel %vm3940_vm7, %v3939_v29, 0  ;;  %v3725_v14 = vshrl.u32 %v3724_v4, 23  ;;  %v3898_v61 = vshll.u32 %v9952_v16, %v3896_v10 }
 0x459   : > { %v3899_v52 = vshrl.u32 %v3881_v13, %v3897_v42  ;;  %v3902_v63 = vadd.s32 127, %v3901_v56  ;;  %v3676_v51 = vsel %vm3674_vm2, %v3675_v19, %v9985_v6  ;;  %6831 = vcosq.f32 %v10011_v33 }
 0x45a   : > { %v3677_v43 = vadd.s32 %v3676_v51, %v3672_v11  ;;  %v3943_v54 = vand.u32 31, %v3941_v53  ;;  %v10022_v34 = vshll.u32 %v3937_v38, 8  ;;  %v10026_v23 = vand.u32 8388607, %v12077_v21 }
 0x45b   : > { %v3900_v58 = vor.u32 %v3899_v52, %v3898_v61  ;;  %v3903_v44 = vshll.u32 %v3902_v63, 23  ;;  %v12417_v16 = vsel %vm9198_vm8, 0, %v9159_v45  ;;  %v3942_v4 = vshrl.u32 %v3941_v53, 5 }
 0x45c   : > { %v2462_v47 = vadd.s32 3, %v12417_v16  ;;  %v3678_v29 = vadd.s32 536870912, %v3677_v43  ;;  %v3944_v6 = vsub.s32 32, %v3943_v54  ;;  %v6204_v13 = vadd.s32 4294967169, %v3725_v14 }
 0x45d   : > { %v3904_v41 = vor.u32 4788187, %v3903_v44  ;;  %v3907_v10 = vcvt.s32.f32 %v3900_v58  ;;  %v3946_v19 = vshll.u32 %v12340_v27, %v3943_v54  ;;  %v3949_v38 = vshll.u32 %v12341_v48, %v3943_v54 }
 0x45e   : > { %v3679_v42 = vshrl.u32 %v3678_v29, 30  ;;  %v3947_v56 = vshrl.u32 %v12341_v48, %v3944_v6  ;;  %v3950_v11 = vshrl.u32 %v12342_v62, %v3944_v6  ;;  %v3952_v50 = vshll.u32 %v12342_v62, %v3943_v54 }
 0x45f   : > { %v3905_v61 = vand.u32 2147483647, %v3904_v41  ;;  %v3953_v45 = vshrl.u32 %v12343_v8, %v3944_v6  ;;  %v3955_v53 = vshll.u32 %v12343_v8, %v3943_v54  ;;  %v3956_v14 = vshrl.u32 %v12344_v5, %v3944_v6 }
 0x460   : > { %v3680_v52 = vshll.u32 %v3679_v42, 30  ;;  %v3948_v63 = vor.u32 %v3947_v56, %v3946_v19  ;;  %v3951_v51 = vor.u32 %v3950_v11, %v3949_v38  ;;  %v3958_v58 = vshll.u32 %v12344_v5, %v3943_v54 }
 0x461   : > { %v3908_v44 = vmul.f32 %v3907_v10, %v3905_v61  ;;  %v3954_v16 = vor.u32 %v3953_v45, %v3952_v50  ;;  %v3957_v29 = vor.u32 %v3956_v14, %v3955_v53  ;;  %v3959_v32 = vshrl.u32 %v12345_v1, %v3944_v6 }
 0x462   : > { %v12418_v41 = vand.u32 2147483647, %v9785_v49  ;;  %v10049_v24 = vsub.s32 %v3677_v43, %v3680_v52  ;;  %v3703_v40 = vsub.s32 4, %v3679_v42  ;;  %v3945_v39 = vshrl.u32 %v12340_v27, %v3944_v6 }
 0x463   : > { %vm3961_vm5 = vcmp.lt.s32.totalorder %v3942_v4, 1  ;;  %v3909_v19 = vxor.u32 2147483648, %v3908_v44  ;;  %v3960_v38 = vor.u32 %v3959_v32, %v3958_v58  ;;  %vm3963_vm11 = vcmp.lt.s32.totalorder %v3942_v4, 3  ;;  %v10052_v54 = vpop.eup %6831 }
 0x464   : > { %vm10045_vm14 = vcmp.le.f32.partialorder %v12418_v41, 0.7853982  ;;  %vm3964_vm7 = vcmp.lt.s32.totalorder %v3942_v4, 4  ;;  %v3683_v10 = vsub.s32 0, %v10049_v24  ;;  %v3969_v11 = vsel %vm3961_vm5, %v3948_v63, %v3951_v51 }
 0x465   : > { %v3966_v56 = vsel %vm3964_vm7, %v3954_v16, 2102212464  ;;  %v3970_v50 = vsel %vm3964_vm7, %v3957_v29, 920167782  ;;  %vm12421_vm2 = vcmp.lt.s32.totalorder %v9764_v0, 0  ;;  %vm3962_vm8 = vcmp.lt.s32.totalorder %v3942_v4, 2 }
 0x466   : > { %v3910_v43 = vsel %vm12421_vm2, %v3909_v19, %v3908_v44  ;;  %v3965_v61 = vsel %vm3961_vm5, %v3945_v39, %v3948_v63  ;;  %v3971_v6 = vsel %vm3963_vm11, %v3954_v16, %v3970_v50  ;;  %v6201_v32 = vmin.u32 %v3683_v10, %v10049_v24 }
 0x467   : > { %v3967_v45 = vsel %vm3963_vm11, %v3951_v51, %v3966_v56  ;;  %v3972_v53 = vsel %vm3962_vm8, %v3969_v11, %v3971_v6  ;;  %v3973_v14 = vsel %vm3961_vm5, %v3951_v51, %v3954_v16  ;;  %v3974_v52 = vsel %vm3964_vm7, %v3960_v38, 1326507024 }
 0x468   : > { %v10065_v58 = vmul.u32.u64.low %v10022_v34, %v3972_v53  ;;  %v10066_v41 = vmul.u32.u64.high %v10022_v34, %v3972_v53, %v10065_v58  ;;  %v3729_v44 = vor.u32 8388608, %v10026_v23  ;;  %6833 = vsinq.f32 %v10011_v33 }
 0x469   : > { %v3685_v39 = vclz %v6201_v32  ;;  %vm12422_vm2 = vcmp.lt.s32.totalorder %v9785_v49, 0  ;;  %v3975_v19 = vsel %vm3963_vm11, %v3957_v29, %v3974_v52  ;;  %v10079_v51 = vsel %vm9966_vm6, %v9764_v0, %v3910_v43 }
 0x46a   : > { %v10073_v63 = vsel %vm12422_vm2, %v3703_v40, %v3679_v42  ;;  %v3968_v16 = vsel %vm3962_vm8, %v3965_v61, %v3967_v45  ;;  %v3976_v38 = vsel %vm3962_vm8, %v3973_v14, %v3975_v19  ;;  %v3731_v10 = vadd.s32 1, %v6204_v13 }
 0x46b   : > { %v6202_v23 = vadd.s32 4294967294, %v3685_v39  ;;  %v10084_v33 = vmul.u32.u64.low %v10022_v34, %v3976_v38  ;;  %v10085_v56 = vmul.u32.u64.high %v10022_v34, %v3976_v38, %v10084_v33  ;;  %v10087_v11 = vand.u32 3, %v2462_v47 }
 0x46c   : > { %v3673_v40 = vadd.s32 %v9984_v26, %v9993_v12  ;;  %vm3732_vm5 = vcmp.gt.s32.totalorder %v3731_v10, 0  ;;  %v10094_v29 = vshll.u32 %v3729_v44, 8  ;;  %6835 = vcosq.f32 %v10079_v51 }
 0x46d   : > { %vm6203_vm8 = vcmp.lt.s32.totalorder %v6202_v23, 0  ;;  %v3987_v4 = vadd.s32 1, %v10066_v41  ;;  %v3733_v13 = vsel %vm3732_vm5, %v3731_v10, 0  ;;  %v3984_v47 = vmul.u32 %v10022_v34, %v3968_v16 }
 0x46e   : > { %v3688_v50 = vsel %vm6203_vm8, 0, %v6202_v23  ;;  %v3735_v43 = vand.u32 31, %v3733_v13  ;;  %v2466_v61 = vxor.u32 2147483648, %v9347_v59  ;;  %vm2465_vm11 = vcmp.eq.s32.totalorder %v10087_v11, 0 }
 0x46f   : > { %v3689_v26 = vsub.s32 32, %v3688_v50  ;;  %v3693_v12 = vsub.s32 4294967266, %v3688_v50  ;;  %v2469_v6 = vxor.u32 2147483648, %v9345_v3  ;;  %v3690_v32 = vshll.u32 %v10049_v24, %v3688_v50 }
 0x470   : > { %vm3986_vm7 = vc.u32 %v10085_v56, %v10065_v58  ;;  %v3734_v45 = vshrl.u32 %v3733_v13, 5  ;;  %v3736_v53 = vsub.s32 32, %v3735_v43  ;;  %v3738_v44 = vshll.u32 %v12340_v27, %v3735_v43 }
 0x471   : > { %v3691_v14 = vshrl.u32 %v3673_v40, %v3689_v26  ;;  %v3694_v52 = vadd.s32 127, %v3693_v12  ;;  %v3988_v34 = vsel %vm3986_vm7, %v3987_v4, %v10066_v41  ;;  %v3741_v16 = vshll.u32 %v12341_v48, %v3735_v43 }
 0x472   : > { %v3989_v39 = vadd.s32 %v3988_v34, %v3984_v47  ;;  %v3739_v19 = vshrl.u32 %v12341_v48, %v3736_v53  ;;  %v3742_v38 = vshrl.u32 %v12342_v62, %v3736_v53  ;;  %v10110_v10 = vpop.eup %6833  ;;  %v3744_v33 = vshll.u32 %v12342_v62, %v3735_v43 }
 0x473   : > { %v3692_v24 = vor.u32 %v3691_v14, %v3690_v32  ;;  %v3695_v23 = vshll.u32 %v3694_v52, 23  ;;  %v3745_v40 = vshrl.u32 %v12343_v8, %v3736_v53  ;;  %v3747_v41 = vshll.u32 %v12343_v8, %v3735_v43 }
 0x474   : > { %v3990_v13 = vadd.s32 536870912, %v3989_v39  ;;  %v3748_v4 = vshrl.u32 %v12344_v5, %v3736_v53  ;;  %v2467_v50 = vsel %vm2465_vm11, %v9345_v3, %v2466_v61  ;;  %v3740_v26 = vor.u32 %v3739_v19, %v3738_v44 }
 0x475   : > { %v3696_v47 = vor.u32 4788187, %v3695_v23  ;;  %v3743_v12 = vor.u32 %v3742_v38, %v3741_v16  ;;  %v3746_v34 = vor.u32 %v3745_v40, %v3744_v33  ;;  %v3750_v14 = vshll.u32 %v12344_v5, %v3735_v43 }
 0x476   : > { %v10119_v42 = vshrl.u32 %v3990_v13, 30  ;;  %v3749_v32 = vor.u32 %v3748_v4, %v3747_v41  ;;  %v3751_v52 = vshrl.u32 %v12345_v1, %v3736_v53  ;;  %v10123_v62 = vpop.eup %6835  ;;  %v3699_v48 = vcvt.s32.f32 %v3692_v24 }
 0x477   : > { %v3697_v8 = vand.u32 2147483647, %v3696_v47  ;;  %v3737_v0 = vshrl.u32 %v12340_v27, %v3736_v53  ;;  %vm3753_vm2 = vcmp.lt.s32.totalorder %v3734_v45, 1  ;;  %vm3755_vm5 = vcmp.lt.s32.totalorder %v3734_v45, 3 }
 0x478   : > { %v3992_v3 = vshll.u32 %v10119_v42, 30  ;;  %v3752_v61 = vor.u32 %v3751_v52, %v3750_v14  ;;  %vm3756_vm8 = vcmp.lt.s32.totalorder %v3734_v45, 4  ;;  %v3761_v16 = vsel %vm3753_vm2, %v3740_v26, %v3743_v12 }
 0x479   : > { %v3700_v44 = vmul.f32 %v3699_v48, %v3697_v8  ;;  %v3758_v19 = vsel %vm3756_vm8, %v3746_v34, 2102212464  ;;  %v3762_v43 = vsel %vm3756_vm8, %v3749_v32, 920167782  ;;  %vm3754_vm7 = vcmp.lt.s32.totalorder %v3734_v45, 2 }
 0x47a   : > { %v10131_v38 = vsub.s32 %v3989_v39, %v3992_v3  ;;  %v3763_v53 = vsel %vm3755_vm5, %v3746_v34, %v3762_v43  ;;  %vm2468_vm6 = vcmp.eq.s32.totalorder %v10087_v11, 2  ;;  %v3757_v23 = vsel %vm3753_vm2, %v3737_v0, %v3740_v26  ;;  %v12428_v43 = vld [vmem:[#allocation35_spill] sm:$0xff] }
 0x47b   : > { %v3701_v24 = vxor.u32 2147483648, %v3700_v44  ;;  %v3759_v48 = vsel %vm3755_vm5, %v3743_v12, %v3758_v19  ;;  %v3764_v8 = vsel %vm3754_vm7, %v3761_v16, %v3763_v53  ;;  %v3765_v40 = vsel %vm3753_vm2, %v3743_v12, %v3746_v34 }
 0x47c   : > { %v3995_v33 = vsub.s32 0, %v10131_v38  ;;  %v3766_v13 = vsel %vm3756_vm8, %v3752_v61, 1326507024  ;;  %v2470_v39 = vsel %vm2468_vm6, %v2469_v6, %v9347_v59  ;;  %vm2464_vm11 = vcmp.lt.s32.totalorder %v10087_v11, 2 }
 0x47d   : > { %v3767_v41 = vsel %vm3755_vm5, %v3749_v32, %v3766_v13  ;;  %v10144_v4 = vmul.u32.u64.low %v10094_v29, %v3764_v8  ;;  %v10145_v47 = vmul.u32.u64.high %v10094_v29, %v3764_v8, %v10144_v4  ;;  %vm12423_vm9 = vcmp.lt.s32.totalorder %v9785_v49, 0 }
 0x47e   : > { %v3702_v0 = vsel %vm12423_vm9, %v3701_v24, %v3700_v44  ;;  %v6213_v26 = vmin.u32 %v3995_v33, %v10131_v38  ;;  %v3760_v12 = vsel %vm3754_vm7, %v3757_v23, %v3759_v48  ;;  %v3768_v34 = vsel %vm3754_vm7, %v3765_v40, %v3767_v41 }
 0x47f   : > { %6837 = vsinq.f32 %v10079_v51  ;;  %v10156_v59 = vmul.u32.u64.low %v10094_v29, %v3768_v34  ;;  %v10157_v6 = vmul.u32.u64.high %v10094_v29, %v3768_v34, %v10156_v59  ;;  %v2471_v32 = vsel %vm2464_vm11, %v2467_v50, %v2470_v39 }
 0x480   : > { %v3985_v14 = vadd.s32 %v10065_v58, %v10085_v56  ;;  %v3997_v11 = vclz %v6213_v26  ;;  %v4015_v52 = vsub.s32 4, %v10119_v42  ;;  %v12424_v3 = vsel %vm9242_vm3, 0, %v9281_v2  ;;  %v12426_v2 = vld [vmem:[#allocation15_spill] sm:$0xff] }
 0x481   : > { %v2566_v61 = vadd.s32 3, %v12424_v3  ;;  %v3705_v51 = vsel %vm10045_vm14, %v9785_v49, %v3702_v0  ;;  %v3776_v45 = vmul.u32 %v10094_v29, %v3760_v12  ;;  %v3779_v44 = vadd.s32 1, %v10145_v47 }
 0x482   : > { %v2570_v50 = vxor.u32 2147483648, %v9514_v37  ;;  %v6214_v19 = vadd.s32 4294967294, %v3997_v11  ;;  %vm12425_vm9 = vweird.f32 %v8798_v22  ;;  %v2573_v15 = vxor.u32 2147483648, %v9462_v7  ;;  %v12429_v22 = vld [vmem:[#allocation27_spill] sm:$0xff] }
 0x483   : > { %v2472_v58 = vsel %vm12425_vm9, nan, %v2471_v32  ;;  %v2567_v56 = vand.u32 3, %v2566_v61  ;;  %vm3778_vm3 = vc.u32 %v10157_v6, %v10144_v4  ;;  %vm2565_vm6 = vweird.f32 %v12426_v2 }
 0x484   : > { %v12427_v29 = vsel %vm9521_vm12, 0, %v9492_v57  ;;  %v2882_v53 = vxor.u32 2147483648, %v12428_v43  ;;  %vm6215_vm2 = vcmp.lt.s32.totalorder %v6214_v19, 0  ;;  %v3780_v24 = vsel %vm3778_vm3, %v3779_v44, %v10145_v47  ;;  %v12432_v44 = vld [vmem:[#allocation23_spill] sm:$0xff] }
 0x485   : > { %v2878_v16 = vadd.s32 3, %v12427_v29  ;;  %vm2569_vm5 = vcmp.eq.s32.totalorder %v2567_v56, 0  ;;  %v2885_v23 = vxor.u32 2147483648, %v12429_v22  ;;  %v4000_v48 = vsel %vm6215_vm2, 0, %v6214_v19 }
 0x486   : > { %v3781_v8 = vadd.s32 %v3780_v24, %v3776_v45  ;;  %v2571_v33 = vsel %vm2569_vm5, %v9462_v7, %v2570_v50  ;;  %vm2572_vm8 = vcmp.eq.s32.totalorder %v2567_v56, 2  ;;  %v4001_v40 = vsub.s32 32, %v4000_v48  ;;  %v12433_v50 = vld [vmem:[#allocation29_spill] sm:$0xff] }
 0x487   : > { %v4005_v13 = vsub.s32 4294967266, %v4000_v48  ;;  %vm2568_vm11 = vcmp.lt.s32.totalorder %v2567_v56, 2  ;;  %v2574_v18 = vsel %vm2572_vm8, %v2573_v15, %v9514_v37  ;;  %v2879_v41 = vand.u32 3, %v2878_v16  ;;  %v12436_v15 = vld [vmem:[#allocation14_spill] sm:$0xff] }
 0x488   : > { %v3782_v57 = vadd.s32 536870912, %v3781_v8  ;;  %v2575_v39 = vsel %vm2568_vm11, %v2571_v33, %v2574_v18  ;;  %v12430_v47 = vsel %vm9700_vm0, 0, %v9607_v60  ;;  %v4002_v26 = vshll.u32 %v10131_v38, %v4000_v48  ;;  %v12441_v33 = vld [vmem:[#allocation7_spill] sm:$0xff] }
 0x489   : > { %v2982_v0 = vadd.s32 3, %v12430_v47  ;;  %v4003_v12 = vshrl.u32 %v3985_v14, %v4001_v40  ;;  %v4006_v34 = vadd.s32 127, %v4005_v13  ;;  %v2576_v7 = vsel %vm2565_vm6, nan, %v2575_v39  ;;  %v10194_v59 = vpop.eup %6837  ;;  %v12443_v39 = vld [vmem:[#allocation19_spill] sm:$0xff]  ;;  %v12444_v47 = vld [vmem:[#allocation25_spill] sm:$0xff] }
 0x48a   : > { %6839 = vcosq.f32 %v3705_v51  ;;  %v10196_v32 = vshrl.u32 %v3782_v57, 30  ;;  %v4040_v37 = vpack.c.bf16 %v2576_v7, %v2472_v58  ;;  %vm2881_vm12 = vcmp.eq.s32.totalorder %v2879_v41, 0 }
 0x48b   : > { %v4004_v11 = vor.u32 %v4003_v12, %v4002_v26  ;;  %v4007_v3 = vshll.u32 %v4006_v34, 23  ;;  %v2883_v31 = vsel %vm2881_vm12, %v12429_v22, %v2882_v53  ;;  %vm2884_vm0 = vcmp.eq.s32.totalorder %v2879_v41, 2 }
 0x48c   : > { %vm3931_vm7 = vcmp.lt.s32.totalorder %v9888_v9, 0  ;;  %v3784_v60 = vshll.u32 %v10196_v32, 30  ;;  %vm12431_vm9 = vcmask 261120   ;;  %v2886_v38 = vsel %vm2884_vm0, %v2885_v23, %v12428_v43 }
 0x48d   : > { %6378 = vmatprep.mubr.msk.bf16.mxu1 %vm12431_vm9, %v4040_v37  ;;  %v2983_v14 = vand.u32 3, %v2982_v0  ;;  %v2986_v61 = vxor.u32 2147483648, %v9808_v28  ;;  %6841 = vsinq.f32 %v3705_v51  ;;  %v4008_v45 = vor.u32 4788187, %v4007_v3  ;;  %vm12435_vm3 = vmmov %vm12431_vm9 }
 0x48e   : > { %v12434_v19 = vpack.c.bf16 %v12432_v44, %v12433_v50  ;;  %vm2880_vm6 = vcmp.lt.s32.totalorder %v2879_v41, 2  ;;  %v2989_v58 = vxor.u32 2147483648, %v9802_v17  ;;  %v10209_v56 = vsub.s32 %v3781_v8, %v3784_v60  ;;  %vm12449_vm9 = vmmov %vm12435_vm3 }
 0x48f   : > { %vm2877_vm2 = vweird.f32 %v12436_v15  ;;  %v2887_v2 = vsel %vm2880_vm6, %v2883_v31, %v2886_v38  ;;  %vm2981_vm5 = vweird.f32 %v9274_v46  ;;  %v12437_v29 = vand.u32 2147483647, %v9888_v9  ;;  %v12448_v38 = vld [vmem:[#allocation17_spill] sm:$0xff]  ;;  %v12451_v15 = vld [vmem:[#allocation36_spill] sm:$0xff] }
 0x490   : > { %6379 = vmatmul.mubr.msk.bf16.vlgmr.msra.gmra.mrb[16].mxu1 %vm12435_vm3, %v12434_v19  ;;  %v4009_v16 = vand.u32 2147483647, %v4008_v45  ;;  %v4011_v43 = vcvt.s32.f32 %v4004_v11  ;;  %vm2985_vm11 = vcmp.eq.s32.totalorder %v2983_v14, 0  ;;  %vm2988_vm12 = vcmp.eq.s32.totalorder %v2983_v14, 2 }
 0x491   : > { %vm10215_vm8 = vcmp.le.f32.partialorder %v12437_v29, 0.7853982  ;;  %v3787_v53 = vsub.s32 0, %v10209_v56  ;;  %vm2984_vm0 = vcmp.lt.s32.totalorder %v2983_v14, 2  ;;  %v2987_v24 = vsel %vm2985_vm11, %v9802_v17, %v2986_v61  ;;  %v12450_v61 = vld [vmem:[#allocation5_spill] sm:$0xff] }
 0x492   : > { %v2990_v22 = vsel %vm2988_vm12, %v2989_v58, %v9808_v28  ;;  %v4012_v23 = vmul.f32 %v4011_v43, %v4009_v16  ;;  %v2888_v48 = vsel %vm2877_vm2, nan, %v2887_v2  ;;  %v12442_v40 = vsel %vm9379_vm15, 0, %v12441_v33  ;;  %v12446_v28 = vld [vmem:[#allocation22_spill] sm:$0xff]  ;;  %v12452_v29 = vld [vmem:[#allocation33_spill] sm:$0xff]  ;;  %v12455_v33 = vld [vmem:[#allocation11_spill] sm:$0xff] }
 0x493   : > { %v2991_v46 = vsel %vm2984_vm0, %v2987_v24, %v2990_v22  ;;  %v3086_v13 = vadd.s32 3, %v12442_v40  ;;  %v6205_v18 = vmin.u32 %v3787_v53, %v10209_v56  ;;  %v3090_v41 = vxor.u32 2147483648, %v12443_v39  ;;  %v12454_v22 = vld [vmem:[#allocation30_spill] sm:$0xff] }
 0x494   : > { %v2992_v57 = vsel %vm2981_vm5, nan, %v2991_v46  ;;  %v3093_v0 = vxor.u32 2147483648, %v12444_v47  ;;  %v4013_v26 = vxor.u32 2147483648, %v4012_v23  ;;  %v12447_v7 = vsel %vm9539_vm1, 0, %v12446_v28  ;;  %v10233_v11 = vpop.eup %6839 }
 0x495   : > { %v4042_v12 = vpack.c.bf16 %v2992_v57, %v2888_v48  ;;  %v3087_v17 = vand.u32 3, %v3086_v13  ;;  %v3190_v37 = vadd.s32 3, %v12447_v7  ;;  %v3777_v3 = vadd.s32 %v10144_v4, %v10157_v6  ;;  %v12456_v57 = vld [vmem:[#allocation6_spill] sm:$0xff] }
 0x496   : > { %v3789_v31 = vclz %v6205_v18  ;;  %v3807_v60 = vsub.s32 4, %v10196_v32  ;;  %vm3085_vm15 = vweird.f32 %v12448_v38  ;;  %v4014_v14 = vsel %vm3931_vm7, %v4013_v26, %v4012_v23 }
 0x497   : > { %6382 = vmatprep.mubr.msk.bf16.mxu1 %vm12449_vm9, %v4042_v12  ;;  %vm3089_vm3 = vcmp.eq.s32.totalorder %v3087_v17, 0  ;;  %vm3092_vm6 = vcmp.eq.s32.totalorder %v3087_v17, 2  ;;  %v3194_v45 = vxor.u32 2147483648, %v12450_v61  ;;  %vm3088_vm1 = vcmp.lt.s32.totalorder %v3087_v17, 2  ;;  %v10245_v6 = vpop.eup %6841 }
 0x498   : > { %v6206_v44 = vadd.s32 4294967294, %v3789_v31  ;;  %v3091_v50 = vsel %vm3089_vm3, %v12444_v47, %v3090_v41  ;;  %v3094_v4 = vsel %vm3092_vm6, %v3093_v0, %v12443_v39  ;;  %v3191_v58 = vand.u32 3, %v3190_v37 }
 0x499   : > { %v3095_v19 = vsel %vm3088_vm1, %v3091_v50, %v3094_v4  ;;  %v3197_v2 = vxor.u32 2147483648, %v12451_v15  ;;  %v12453_v16 = vsel %vm9724_vm13, 0, %v12452_v29  ;;  %v4017_v53 = vsel %vm10215_vm8, %v9888_v9, %v4014_v14 }
 0x49a   : > { %v3294_v43 = vadd.s32 3, %v12453_v16  ;;  %vm6207_vm2 = vcmp.lt.s32.totalorder %v6206_v44, 0  ;;  %v3096_v24 = vsel %vm3085_vm15, nan, %v3095_v19  ;;  %vm3189_vm5 = vweird.f32 %v12454_v22  ;;  %v12467_v22 = vld [vmem:[#allocation21_spill] sm:$0xff] }
 0x49b   : > { %v3792_v23 = vsel %vm6207_vm2, 0, %v6206_v44  ;;  %vm3192_vm11 = vcmp.lt.s32.totalorder %v3191_v58, 2  ;;  %vm3193_vm12 = vcmp.eq.s32.totalorder %v3191_v58, 0  ;;  %v3298_v48 = vxor.u32 2147483648, %v9937_v20 }
 0x49c   : > { %v3793_v46 = vsub.s32 32, %v3792_v23  ;;  %v3797_v30 = vsub.s32 4294967266, %v3792_v23  ;;  %v3195_v8 = vsel %vm3193_vm12, %v12451_v15, %v3194_v45  ;;  %vm3196_vm13 = vcmp.eq.s32.totalorder %v3191_v58, 2  ;;  %v12462_v45 = vld [vmem:[#allocation31_spill] sm:$0xff]  ;;  %v12464_v58 = vld [vmem:[#allocation34_spill] sm:$0xff] }
 0x49d   : > { %vm3293_vm0 = vweird.f32 %v12455_v33  ;;  %v3794_v40 = vshll.u32 %v10209_v56, %v3792_v23  ;;  %v3198_v13 = vsel %vm3196_vm13, %v3197_v2, %v12450_v61  ;;  %v3295_v18 = vand.u32 3, %v3294_v43  ;;  %v12466_v43 = vld [vmem:[#allocation42_spill] sm:$0xff] }
 0x49e   : > { %v3301_v39 = vxor.u32 2147483648, %v12456_v57  ;;  %vm3723_vm15 = vcmp.lt.s32.totalorder %v9914_v36, 0  ;;  %v3795_v41 = vshrl.u32 %v3777_v3, %v3793_v46  ;;  %v3798_v47 = vadd.s32 127, %v3797_v30 }
 0x49f   : > { %v3199_v0 = vsel %vm3192_vm11, %v3195_v8, %v3198_v13  ;;  %v12457_v26 = vsel %vm9945_vm4, 0, %v9922_v25  ;;  %vm3296_vm9 = vcmp.lt.s32.totalorder %v3295_v18, 2  ;;  %vm3297_vm3 = vcmp.eq.s32.totalorder %v3295_v18, 0  ;;  %v12468_v8 = vld [vmem:[#allocation38_spill] sm:$0xff] }
 0x4a0   : > { %v3398_v12 = vadd.s32 3, %v12457_v26  ;;  %v3200_v17 = vsel %vm3189_vm5, nan, %v3199_v0  ;;  %vm3300_vm6 = vcmp.eq.s32.totalorder %v3295_v18, 2  ;;  %v3796_v56 = vor.u32 %v3795_v41, %v3794_v40  ;;  %v12472_v18 = vld [vmem:[#allocation41_spill] sm:$0xff]  ;;  %v12473_v41 = vld [vmem:[#allocation10_spill] sm:$0xff] }
 0x4a1   : > { %v3799_v34 = vshll.u32 %v3798_v47, 23  ;;  %v4043_v28 = vpack.c.bf16 %v3200_v17, %v3096_v24  ;;  %v3299_v7 = vsel %vm3297_vm3, %v12456_v57, %v3298_v48  ;;  %v12458_v37 = vand.u32 2147483647, %v9914_v36 }
 0x4a2   : > { %v3302_v25 = vsel %vm3300_vm6, %v3301_v39, %v9937_v20  ;;  %v3399_v35 = vand.u32 3, %v3398_v12  ;;  %v3402_v31 = vxor.u32 2147483648, %v10110_v10  ;;  %v3405_v38 = vxor.u32 2147483648, %v10052_v54 }
 0x4a3   : > { %vm10274_vm1 = vcmp.le.f32.partialorder %v12458_v37, 0.7853982  ;;  %6843 = vcosq.f32 %v4017_v53  ;;  %v3800_v14 = vor.u32 4788187, %v3799_v34  ;;  %vm12461_vm4 = vcmask 261120   ;;  %v12476_v34 = vld [vmem:[#allocation12_spill] sm:$0xff] }
 0x4a4   : > { %6383 = vmatmul.mubr.msk.bf16.gmra.mrb[20].mxu1 %vm12461_vm4, %v4043_v28  ;;  %v3303_v61 = vsel %vm3296_vm9, %v3299_v7, %v3302_v25  ;;  %vm3397_vm2 = vweird.f32 %v12462_v45  ;;  %v3803_v44 = vcvt.s32.f32 %v3796_v56  ;;  %vm3400_vm5 = vcmp.lt.s32.totalorder %v3399_v35, 2  ;;  %vm12474_vm9 = vmmov %vm12461_vm4 }
 0x4a5   : > { %vm3401_vm11 = vcmp.eq.s32.totalorder %v3399_v35, 0  ;;  %vm3404_vm12 = vcmp.eq.s32.totalorder %v3399_v35, 2  ;;  %v3801_v50 = vand.u32 2147483647, %v3800_v14  ;;  %v12465_v15 = vsel %vm9708_vm10, 0, %v12464_v58 }
 0x4a6   : > { %v3403_v4 = vsel %vm3401_vm11, %v10052_v54, %v3402_v31  ;;  %v3406_v20 = vsel %vm3404_vm12, %v3405_v38, %v10110_v10  ;;  %v3502_v2 = vadd.s32 3, %v12465_v15  ;;  %v3304_v29 = vsel %vm3293_vm0, nan, %v3303_v61  ;;  %v12470_v54 = vld [vmem:[#allocation43_spill] sm:$0xff]  ;;  %vm12481_vm11 = vmmov %vm12474_vm9 }
 0x4a7   : > { %v3407_v16 = vsel %vm3400_vm5, %v3403_v4, %v3406_v20  ;;  %v3506_v24 = vxor.u32 2147483648, %v12466_v43  ;;  %v3509_v23 = vxor.u32 2147483648, %v12467_v22  ;;  %v3804_v48 = vmul.f32 %v3803_v44, %v3801_v50  ;;  %v12479_v44 = vld [vmem:[#allocation48_spill] sm:$0xff] }
 0x4a8   : > { %v3408_v46 = vsel %vm3397_vm2, nan, %v3407_v16  ;;  %v3503_v30 = vand.u32 3, %v3502_v2  ;;  %vm12469_vm13 = vnez %v12468_v8  ;;  %6845 = vsinq.f32 %v4017_v53 }
 0x4a9   : > { %v12471_v10 = vsel %vm12469_vm13, 0, %v12470_v54  ;;  %v3808_v33 = vsel %vm3723_vm15, %v3807_v60, %v10196_v32  ;;  %v4044_v13 = vpack.c.bf16 %v3408_v46, %v3304_v29  ;;  %v3610_v57 = vxor.u32 2147483648, %v12472_v18 }
 0x4aa   : > { %v3606_v40 = vadd.s32 3, %v12471_v10  ;;  %v3805_v39 = vxor.u32 2147483648, %v3804_v48  ;;  %vm3505_vm10 = vcmp.eq.s32.totalorder %v3503_v30, 0  ;;  %vm3508_vm0 = vcmp.eq.s32.totalorder %v3503_v30, 2 }
 0x4ab   : > { %v3613_v47 = vxor.u32 2147483648, %v12473_v41  ;;  %6386 = vmatprep.mubr.msk.bf16.mxu1 %vm12474_vm9, %v4044_v13  ;;  %v3507_v0 = vsel %vm3505_vm10, %v12467_v22, %v3506_v24  ;;  %v3510_v53 = vsel %vm3508_vm0, %v3509_v23, %v12466_v43  ;;  %v12475_v12 = vsel %vm10045_vm14, 0, %v10073_v63  ;;  %v12477_v63 = vld [vmem:[#allocation26_spill] sm:$0xff] }
 0x4ac   : > { %v3607_v26 = vand.u32 3, %v3606_v40  ;;  %v3710_v32 = vadd.s32 3, %v12475_v12  ;;  %v4016_v60 = vsel %vm3931_vm7, %v4015_v52, %v10119_v42  ;;  %v3806_v17 = vsel %vm3723_vm15, %v3805_v39, %v3804_v48  ;;  %v12482_v39 = vld [vmem:[#allocation37_spill] sm:$0xff] }
 0x4ad   : > { %v3810_v56 = vsel %vm10274_vm1, 0, %v3808_v33  ;;  %vm3501_vm3 = vweird.f32 %v12476_v34  ;;  %v3809_v21 = vsel %vm10274_vm1, %v9914_v36, %v3806_v17  ;;  %vm3504_vm14 = vcmp.lt.s32.totalorder %v3503_v30, 2  ;;  %v6844_v28 = vpop.eup %6843 }
 0x4ae   : > { %vm3605_vm6 = vweird.f32 %v12477_v63  ;;  %vm3609_vm4 = vcmp.eq.s32.totalorder %v3607_v26, 0  ;;  %6847 = vcosq.f32 %v3809_v21  ;;  %v3511_v7 = vsel %vm3504_vm14, %v3507_v0, %v3510_v53 }
 0x4af   : > { %v3611_v42 = vsel %vm3609_vm4, %v12473_v41, %v3610_v57  ;;  %vm3612_vm7 = vcmp.eq.s32.totalorder %v3607_v26, 2  ;;  %6849 = vsinq.f32 %v3809_v21  ;;  %vm3608_vm15 = vcmp.lt.s32.totalorder %v3607_v26, 2 }
 0x4b0   : > { %v3614_v52 = vsel %vm3612_vm7, %v3613_v47, %v12472_v18  ;;  %v3711_v37 = vand.u32 3, %v3710_v32  ;;  %v3714_v35 = vxor.u32 2147483648, %v10245_v6  ;;  %v3717_v3 = vxor.u32 2147483648, %v10233_v11 }
 0x4b1   : > { %v3615_v25 = vsel %vm3608_vm15, %v3611_v42, %v3614_v52  ;;  %v3814_v31 = vadd.s32 3, %v3810_v56  ;;  %v3512_v38 = vsel %vm3501_vm3, nan, %v3511_v7  ;;  %v4018_v61 = vsel %vm10215_vm8, 0, %v4016_v60 }
 0x4b2   : > { %v3616_v14 = vsel %vm3605_vm6, nan, %v3615_v25  ;;  %vm12478_vm1 = vnez %v12414_v55  ;;  %v6846_v20 = vpop.eup %6845  ;;  %vm3713_vm2 = vcmp.eq.s32.totalorder %v3711_v37, 0  ;;  %vm3716_vm5 = vcmp.eq.s32.totalorder %v3711_v37, 2 }
 0x4b3   : > { %v4045_v45 = vpack.c.bf16 %v3616_v14, %v3512_v38  ;;  %v12480_v50 = vsel %vm12478_vm1, 0, %v12479_v44  ;;  %v3715_v19 = vsel %vm3713_vm2, %v10233_v11, %v3714_v35  ;;  %v3718_v58 = vsel %vm3716_vm5, %v3717_v3, %v10245_v6  ;;  %vm12483_vm5 = vmmov %vm12481_vm11 }
 0x4b4   : > { %v3918_v4 = vadd.s32 3, %v12480_v50  ;;  %v3815_v15 = vand.u32 3, %v3814_v31  ;;  %v3922_v51 = vxor.u32 2147483648, %v10194_v59  ;;  %v3925_v29 = vxor.u32 2147483648, %v10123_v62 }
 0x4b5   : > { %6387 = vmatmul.mubr.msk.bf16.gmra.mrb[24].mxu1 %vm12481_vm11, %v4045_v45  ;;  %v4022_v16 = vadd.s32 3, %v4018_v61  ;;  %vm3712_vm8 = vcmp.lt.s32.totalorder %v3711_v37, 2  ;;  %v4026_v55 = vxor.u32 2147483648, %v6846_v20  ;;  %v4029_v22 = vxor.u32 2147483648, %v6844_v28  ;;  %vm12484_vm11 = vmmov %vm12483_vm5 }
 0x4b6   : > { %v3919_v2 = vand.u32 3, %v3918_v4  ;;  %v3719_v43 = vsel %vm3712_vm8, %v3715_v19, %v3718_v58  ;;  %vm3816_vm12 = vcmp.lt.s32.totalorder %v3815_v15, 2  ;;  %vm3817_vm13 = vcmp.eq.s32.totalorder %v3815_v15, 0 }
 0x4b7   : > { %v4023_v24 = vand.u32 3, %v4022_v16  ;;  %vm3820_vm3 = vcmp.eq.s32.totalorder %v3815_v15, 2  ;;  %vm4021_vm7 = vweird.f32 %v9888_v9  ;;  %vm3709_vm15 = vweird.f32 %v9785_v49  ;;  %v10357_v49 = vld [vmem:[%s11924_s4 + $0x1] ss:$0 sm:$0xff] }
 0x4b8   : > { %v6848_v23 = vpop.eup %6847  ;;  %vm3921_vm10 = vcmp.eq.s32.totalorder %v3919_v2, 0  ;;  %vm3924_vm0 = vcmp.eq.s32.totalorder %v3919_v2, 2  ;;  %vm3920_vm6 = vcmp.lt.s32.totalorder %v3919_v2, 2  ;;  %vm3813_vm1 = vweird.f32 %v9914_v36 }
 0x4b9   : > { %v6850_v11 = vpop.eup %6849  ;;  %v3821_v48 = vxor.u32 2147483648, %v6848_v23  ;;  %v3923_v6 = vsel %vm3921_vm10, %v10123_v62, %v3922_v51  ;;  %v3926_v46 = vsel %vm3924_vm0, %v3925_v29, %v10194_v59  ;;  %vm4025_vm9 = vcmp.eq.s32.totalorder %v4023_v24, 0 }
 0x4ba   : > { %v3818_v30 = vxor.u32 2147483648, %v6850_v11  ;;  %v4027_v8 = vsel %vm4025_vm9, %v6844_v28, %v4026_v55  ;;  %vm4028_vm14 = vcmp.eq.s32.totalorder %v4023_v24, 2  ;;  %vm4024_vm4 = vcmp.lt.s32.totalorder %v4023_v24, 2 }
 0x4bb   : > { %v3822_v54 = vsel %vm3820_vm3, %v3821_v48, %v6850_v11  ;;  %v4030_v10 = vsel %vm4028_vm14, %v4029_v22, %v6846_v20  ;;  %v3927_v33 = vsel %vm3920_vm6, %v3923_v6, %v3926_v46  ;;  %v3720_v18 = vsel %vm3709_vm15, nan, %v3719_v43 }
 0x4bc   : > { %v3819_v40 = vsel %vm3817_vm13, %v6848_v23, %v3818_v30  ;;  %v4031_v13 = vsel %vm4024_vm4, %v4027_v8, %v4030_v10  ;;  %vm3917_vm2 = vweird.f32 %v12482_v39  ;;  %v12487_v46 = vmov 2475754826  }
 0x4bd   : > { %v3823_v62 = vsel %vm3816_vm12, %v3819_v40, %v3822_v54  ;;  %v4032_v59 = vsel %vm4021_vm7, nan, %v4031_v13  ;;  %v3928_v47 = vsel %vm3917_vm2, nan, %v3927_v33  ;;  %v12488_v8 = vmov 2131351028  }
 0x4be   : > { %v3824_v57 = vsel %vm3813_vm1, nan, %v3823_v62  ;;  %v4047_v0 = vpack.c.bf16 %v4032_v59, %v3928_v47  ;;  %v12489_v10 = vmov 2102212464  }
 0x4bf   : > { %v4046_v41 = vpack.c.bf16 %v3824_v57, %v3720_v18 }
 0x4c1   : > { %6390 = vmatprep.mubr.msk.bf16.mxu1 %vm12483_vm5, %v4046_v41 }
 0x4c2   : > { %6391 = vmatmul.mubr.msk.bf16.gmra.mrb[28].mxu1 %vm12484_vm11, %v4047_v0 }
 0x563   : > { %v6380_v9 = vpop.f32.mrb[16].mxu1 }
 0x564   : > { %v4133_v36 = vadd.f32 %v6380_v9, %v10357_v49  ;;  %v4124_v53 = vpop.f32.mrb[17].mxu1 }
 0x565   : > { %v4125_v26 = vadd.f32 %v10357_v49, %v4124_v53  ;;  %v6381_v12 = vpop.f32.mrb[18].mxu1 }
 0x566   : > { %v10361_v32 = vmul.f32 30.0, %v4133_v36  ;;  %v4136_v60 = vadd.f32 %v6381_v12, %v10357_v49  ;;  %v4127_v17 = vpop.f32.mrb[19].mxu1 }
 0x567   : > { %v10364_v56 = vmul.f32 30.0, %v4125_v26  ;;  %v4128_v37 = vadd.f32 %v10357_v49, %v4127_v17 }
 0x568   : > { %12485 = vst [vmem:[#allocation9_spill] sm:$0xff] %v10361_v32  ;;  %v4411_v34 = vand.u32 2147483647, %v10361_v32  ;;  %v4414_v21 = vand.u32 2139095040, %v10361_v32  ;;  %v10368_v63 = vmul.f32 30.0, %v4136_v60 }
 0x569   : > { %v4203_v28 = vand.u32 2147483647, %v10364_v56  ;;  %v4206_v7 = vand.u32 2139095040, %v10364_v56  ;;  %v10379_v50 = vmul.f32 30.0, %v4128_v37 }
 0x56a   : > { %12486 = vst [vmem:[#allocation46_spill] sm:$0xff] %v10368_v63  ;;  %v4415_v42 = vshrl.u32 %v4414_v21, 23  ;;  %v4418_v52 = vand.u32 8388607, %v4411_v34  ;;  %v4518_v3 = vand.u32 2139095040, %v10368_v63 }
 0x56b   : > { %v4207_v25 = vshrl.u32 %v4206_v7, 23  ;;  %v4210_v35 = vand.u32 8388607, %v4203_v28  ;;  %v4515_v38 = vand.u32 2147483647, %v10368_v63  ;;  %v4310_v22 = vand.u32 2139095040, %v10379_v50 }
 0x56c   : > { %v6240_v31 = vadd.s32 4294967169, %v4415_v42  ;;  %v4519_v61 = vshrl.u32 %v4518_v3, 23  ;;  %v4419_v45 = vor.u32 8388608, %v4418_v52 }
 0x56d   : > { %v6232_v14 = vadd.s32 4294967169, %v4207_v25  ;;  %v4211_v4 = vor.u32 8388608, %v4210_v35  ;;  %v10383_v58 = vand.u32 8388607, %v4515_v38 }
 0x56e   : > { %v4421_v44 = vadd.s32 1, %v6240_v31  ;;  %v6244_v19 = vadd.s32 4294967169, %v4519_v61  ;;  %v10385_v29 = vshll.u32 %v4419_v45, 8 }
 0x56f   : > { %v4213_v20 = vadd.s32 1, %v6232_v14  ;;  %v10387_v55 = vshll.u32 %v4211_v4, 8  ;;  %v4523_v43 = vor.u32 8388608, %v10383_v58 }
 0x570   : > { %vm4422_vm8 = vcmp.gt.s32.totalorder %v4421_v44, 0  ;;  %v10390_v24 = vadd.s32 1, %v6244_v19 }
 0x571   : > { %v4423_v15 = vsel %vm4422_vm8, %v4421_v44, 0  ;;  %vm4214_vm12 = vcmp.gt.s32.totalorder %v4213_v20, 0 }
 0x572   : > { %v4424_v2 = vshrl.u32 %v4423_v15, 5  ;;  %v4425_v51 = vand.u32 31, %v4423_v15  ;;  %v4215_v16 = vsel %vm4214_vm12, %v4213_v20, 0  ;;  %vm4526_vm3 = vcmp.gt.s32.totalorder %v10390_v24, 0 }
 0x573   : > { %v10394_v48 = vshrl.u32 %v4215_v16, 5  ;;  %v4217_v6 = vand.u32 31, %v4215_v16 }
 0x574   : > { %v4426_v23 = vsub.s32 32, %v4425_v51  ;;  %v4428_v11 = vshll.u32 %v12340_v27, %v4425_v51  ;;  %v4431_v30 = vshll.u32 %v12487_v46, %v4425_v51  ;;  %v4434_v54 = vshll.u32 %v12488_v8, %v4425_v51 }
 0x575   : > { %v4437_v40 = vshll.u32 %v12489_v10, %v4425_v51  ;;  %v4440_v33 = vshll.u32 %v12344_v5, %v4425_v51  ;;  %vm4443_vm13 = vcmp.lt.s32.totalorder %v4424_v2, 1  ;;  %vm4444_vm10 = vcmp.lt.s32.totalorder %v4424_v2, 2 }
 0x576   : > { %v4429_v13 = vshrl.u32 %v12487_v46, %v4426_v23  ;;  %v4432_v62 = vshrl.u32 %v12488_v8, %v4426_v23  ;;  %v4435_v59 = vshrl.u32 %v12489_v10, %v4426_v23  ;;  %v4427_v57 = vshrl.u32 %v12340_v27, %v4426_v23 }
 0x577   : > { %v10403_v18 = vpop.f32.mrb[20].mxu1  ;;  %v4438_v39 = vshrl.u32 %v12344_v5, %v4426_v23  ;;  %v4441_v41 = vshrl.u32 %v12345_v1, %v4426_v23  ;;  %v4218_v53 = vsub.s32 32, %v4217_v6  ;;  %vm4445_vm0 = vcmp.lt.s32.totalorder %v4424_v2, 3 }
 0x578   : > { %v10408_v47 = vpop.f32.mrb[21].mxu1  ;;  %v4430_v0 = vor.u32 %v4429_v13, %v4428_v11  ;;  %v4433_v9 = vor.u32 %v4432_v62, %v4431_v30  ;;  %v4436_v36 = vor.u32 %v4435_v59, %v4434_v54  ;;  %vm4446_vm9 = vcmp.lt.s32.totalorder %v4424_v2, 4 }
 0x579   : > { %v10410_v26 = vpop.f32.mrb[22].mxu1  ;;  %v4439_v12 = vor.u32 %v4438_v39, %v4437_v40  ;;  %v4442_v60 = vor.u32 %v4441_v41, %v4440_v33  ;;  %v4220_v3 = vshll.u32 %v12340_v27, %v4217_v6  ;;  %v4221_v61 = vshrl.u32 %v12487_v46, %v4218_v53 }
 0x57a   : > { %v10412_v17 = vpop.f32.mrb[23].mxu1  ;;  %v4447_v21 = vsel %vm4443_vm13, %v4427_v57, %v4430_v0  ;;  %v4448_v7 = vsel %vm4446_vm9, %v4436_v36, 2102212464  ;;  %v4451_v42 = vsel %vm4443_vm13, %v4430_v0, %v4433_v9  ;;  %v4455_v52 = vsel %vm4443_vm13, %v4433_v9, %v4436_v36 }
 0x57b   : > { %v4449_v37 = vsel %vm4445_vm0, %v4433_v9, %v4448_v7  ;;  %v4452_v25 = vsel %vm4446_vm9, %v4439_v12, 920167782  ;;  %v4456_v35 = vsel %vm4446_vm9, %v4442_v60, 1326507024  ;;  %v4223_v45 = vshll.u32 %v12487_v46, %v4217_v6 }
 0x57c   : > { %v4453_v31 = vsel %vm4445_vm0, %v4436_v36, %v4452_v25  ;;  %v4457_v14 = vsel %vm4445_vm0, %v4439_v12, %v4456_v35  ;;  %v4450_v44 = vsel %vm4444_vm10, %v4447_v21, %v4449_v37  ;;  %v4224_v19 = vshrl.u32 %v12488_v8, %v4218_v53 }
 0x57d   : > { %v4454_v4 = vsel %vm4444_vm10, %v4451_v42, %v4453_v31  ;;  %v4458_v20 = vsel %vm4444_vm10, %v4455_v52, %v4457_v14  ;;  %v4222_v11 = vor.u32 %v4221_v61, %v4220_v3  ;;  %v4226_v54 = vshll.u32 %v12488_v8, %v4217_v6 }
 0x57e   : > { %v10426_v15 = vmul.u32.u64.low %v10385_v29, %v4458_v20  ;;  %v10427_v51 = vmul.u32.u64.high %v10385_v29, %v4458_v20, %v10426_v15  ;;  %v10430_v16 = vmul.u32.u64.low %v10385_v29, %v4454_v4  ;;  %v10431_v23 = vmul.u32.u64.high %v10385_v29, %v4454_v4, %v10430_v16 }
 0x57f   : > { %v4225_v30 = vor.u32 %v4224_v19, %v4223_v45  ;;  %v4227_v40 = vshrl.u32 %v12489_v10, %v4218_v53  ;;  %v4219_v2 = vshrl.u32 %v12340_v27, %v4218_v53  ;;  %v4229_v33 = vshll.u32 %v12489_v10, %v4217_v6 }
 0x580   : > { %v4230_v13 = vshrl.u32 %v12344_v5, %v4218_v53  ;;  %v4233_v62 = vshrl.u32 %v12345_v1, %v4218_v53  ;;  %v4466_v59 = vmul.u32 %v10385_v29, %v4450_v44  ;;  %v4232_v39 = vshll.u32 %v12344_v5, %v4217_v6 }
 0x581   : > { %v4228_v57 = vor.u32 %v4227_v40, %v4226_v54  ;;  %vm4235_vm14 = vcmp.lt.s32.totalorder %v10394_v48, 1  ;;  %vm4468_vm6 = vc.u32 %v10427_v51, %v10430_v16  ;;  %v4469_v41 = vadd.s32 1, %v10431_v23 }
 0x582   : > { %v4231_v0 = vor.u32 %v4230_v13, %v4229_v33  ;;  %vm4236_vm4 = vcmp.lt.s32.totalorder %v10394_v48, 2  ;;  %v4234_v9 = vor.u32 %v4233_v62, %v4232_v39  ;;  %vm4237_vm7 = vcmp.lt.s32.totalorder %v10394_v48, 3 }
 0x583   : > { %vm4238_vm15 = vcmp.lt.s32.totalorder %v10394_v48, 4  ;;  %v4243_v36 = vsel %vm4235_vm14, %v4222_v11, %v4225_v30  ;;  %v4470_v29 = vsel %vm4468_vm6, %v4469_v41, %v10431_v23  ;;  %v4247_v12 = vsel %vm4235_vm14, %v4225_v30, %v4228_v57 }
 0x584   : > { %v4240_v53 = vsel %vm4238_vm15, %v4228_v57, 2102212464  ;;  %v4244_v6 = vsel %vm4238_vm15, %v4231_v0, 920167782  ;;  %v4471_v60 = vadd.s32 %v4470_v29, %v4466_v59  ;;  %v4239_v21 = vsel %vm4235_vm14, %v4219_v2, %v4222_v11 }
 0x585   : > { %v4245_v7 = vsel %vm4237_vm7, %v4228_v57, %v4244_v6  ;;  %v4248_v42 = vsel %vm4238_vm15, %v4234_v9, 1326507024  ;;  %v4241_v52 = vsel %vm4237_vm7, %v4225_v30, %v4240_v53  ;;  %v4527_v35 = vsel %vm4526_vm3, %v10390_v24, 0 }
 0x586   : > { %v4246_v37 = vsel %vm4236_vm4, %v4243_v36, %v4245_v7  ;;  %v4249_v25 = vsel %vm4237_vm7, %v4231_v0, %v4248_v42  ;;  %v4472_v31 = vadd.s32 536870912, %v4471_v60  ;;  %v10468_v20 = vshrl.u32 %v4527_v35, 5 }
 0x587   : > { %v4250_v14 = vsel %vm4236_vm4, %v4247_v12, %v4249_v25  ;;  %v10460_v61 = vmul.u32.u64.low %v10387_v55, %v4246_v37  ;;  %v10461_v45 = vmul.u32.u64.high %v10387_v55, %v4246_v37, %v10460_v61  ;;  %v4311_v24 = vshrl.u32 %v4310_v22, 23 }
 0x588   : > { %v10455_v3 = vpop.f32.mrb[24].mxu1  ;;  %v10465_v44 = vmul.u32.u64.low %v10387_v55, %v4250_v14  ;;  %v10466_v4 = vmul.u32.u64.high %v10387_v55, %v4250_v14, %v10465_v44  ;;  %v10472_v19 = vshrl.u32 %v4472_v31, 30  ;;  %v4242_v15 = vsel %vm4236_vm4, %v4239_v21, %v4241_v52 }
 0x589   : > { %v4529_v23 = vand.u32 31, %v4527_v35  ;;  %v4261_v30 = vadd.s32 1, %v10461_v45  ;;  %v10480_v40 = vshll.u32 %v4523_v43, 8  ;;  %v4258_v2 = vmul.u32 %v10387_v55, %v4242_v15  ;;  %v10486_v48 = vpop.f32.mrb[25].mxu1 }
 0x58a   : > { %v4474_v11 = vshll.u32 %v10472_v19, 30  ;;  %vm4260_vm1 = vc.u32 %v10466_v4, %v10460_v61  ;;  %vm4547_vm2 = vcmp.lt.s32.totalorder %v10468_v20, 1  ;;  %v6236_v22 = vadd.s32 4294967169, %v4311_v24 }
 0x58b   : > { %v4530_v54 = vsub.s32 32, %v4529_v23  ;;  %v4262_v13 = vsel %vm4260_vm1, %v4261_v30, %v10461_v45  ;;  %v4532_v62 = vshll.u32 %v12340_v27, %v4529_v23  ;;  %vm4548_vm5 = vcmp.lt.s32.totalorder %v10468_v20, 2 }
 0x58c   : > { %v10488_v33 = vsub.s32 %v4471_v60, %v4474_v11  ;;  %vm4549_vm11 = vcmp.lt.s32.totalorder %v10468_v20, 3  ;;  %v4263_v58 = vadd.s32 %v4262_v13, %v4258_v2  ;;  %v4535_v43 = vshll.u32 %v12487_v46, %v4529_v23 }
 0x58d   : > { %v4533_v55 = vshrl.u32 %v12487_v46, %v4530_v54  ;;  %v4536_v59 = vshrl.u32 %v12488_v8, %v4530_v54  ;;  %v4538_v39 = vshll.u32 %v12488_v8, %v4529_v23  ;;  %v4539_v41 = vshrl.u32 %v12489_v10, %v4530_v54 }
 0x58e   : > { %v4477_v57 = vsub.s32 0, %v10488_v33  ;;  %v4541_v0 = vshll.u32 %v12489_v10, %v4529_v23  ;;  %v4264_v9 = vadd.s32 536870912, %v4263_v58  ;;  %v4542_v53 = vshrl.u32 %v12344_v5, %v4530_v54 }
 0x58f   : > { %v4534_v36 = vor.u32 %v4533_v55, %v4532_v62  ;;  %v4537_v29 = vor.u32 %v4536_v59, %v4535_v43  ;;  %v4540_v12 = vor.u32 %v4539_v41, %v4538_v39  ;;  %v4544_v60 = vshll.u32 %v12344_v5, %v4529_v23 }
 0x590   : > { %v6241_v6 = vmin.u32 %v4477_v57, %v10488_v33  ;;  %v4545_v21 = vshrl.u32 %v12345_v1, %v4530_v54  ;;  %v10505_v7 = vshrl.u32 %v4264_v9, 30  ;;  %v4531_v42 = vshrl.u32 %v12340_v27, %v4530_v54 }
 0x591   : > { %v4543_v52 = vor.u32 %v4542_v53, %v4541_v0  ;;  %vm4550_vm8 = vcmp.lt.s32.totalorder %v10468_v20, 4  ;;  %v4555_v31 = vsel %vm4547_vm2, %v4534_v36, %v4537_v29  ;;  %v4559_v24 = vsel %vm4547_vm2, %v4537_v29, %v4540_v12 }
 0x592   : > { %v4479_v37 = vclz %v6241_v6  ;;  %v4546_v25 = vor.u32 %v4545_v21, %v4544_v60  ;;  %v4552_v35 = vsel %vm4550_vm8, %v4540_v12, 2102212464  ;;  %v4266_v14 = vshll.u32 %v10505_v7, 30  ;;  %v10547_v21 = vpop.f32.mrb[26].mxu1 }
 0x593   : > { %v4551_v45 = vsel %vm4547_vm2, %v4531_v42, %v4534_v36  ;;  %v4556_v44 = vsel %vm4550_vm8, %v4543_v52, 920167782  ;;  %v4317_v30 = vadd.s32 1, %v6236_v22  ;;  %v4553_v2 = vsel %vm4549_vm11, %v4537_v29, %v4552_v35 }
 0x594   : > { %v6242_v15 = vadd.s32 4294967294, %v4479_v37  ;;  %v4557_v23 = vsel %vm4549_vm11, %v4540_v12, %v4556_v44  ;;  %v4560_v11 = vsel %vm4550_vm8, %v4546_v25, 1326507024  ;;  %v10518_v54 = vsub.s32 %v4263_v58, %v4266_v14 }
 0x595   : > { %v4558_v13 = vsel %vm4548_vm5, %v4555_v31, %v4557_v23  ;;  %v4561_v62 = vsel %vm4549_vm11, %v4543_v52, %v4560_v11  ;;  %v4554_v39 = vsel %vm4548_vm5, %v4551_v45, %v4553_v2  ;;  %vm4318_vm13 = vcmp.gt.s32.totalorder %v4317_v30, 0 }
 0x596   : > { %vm6243_vm12 = vcmp.lt.s32.totalorder %v6242_v15, 0  ;;  %v4562_v55 = vsel %vm4548_vm5, %v4559_v24, %v4561_v62  ;;  %v10529_v43 = vmul.u32.u64.low %v10480_v40, %v4558_v13  ;;  %v10530_v59 = vmul.u32.u64.high %v10480_v40, %v4558_v13, %v10529_v43 }
 0x597   : > { %v4269_v22 = vsub.s32 0, %v10518_v54  ;;  %v10535_v58 = vmul.u32.u64.low %v10480_v40, %v4562_v55  ;;  %v10536_v57 = vmul.u32.u64.high %v10480_v40, %v4562_v55, %v10535_v58  ;;  %v4482_v41 = vsel %vm6243_vm12, 0, %v6242_v15 }
 0x598   : > { %v4319_v9 = vsel %vm4318_vm13, %v4317_v30, 0  ;;  %v4573_v36 = vadd.s32 1, %v10530_v59  ;;  %v12089_v29 = vand.u32 2147483647, %v10379_v50  ;;  %v4570_v6 = vmul.u32 %v10480_v40, %v4554_v39 }
 0x599   : > { %v6233_v0 = vmin.u32 %v4269_v22, %v10518_v54  ;;  %vm4572_vm10 = vc.u32 %v10536_v57, %v10529_v43  ;;  %v4321_v12 = vand.u32 31, %v4319_v9  ;;  %v4487_v60 = vsub.s32 4294967266, %v4482_v41 }
 0x59a   : > { %v4574_v20 = vsel %vm4572_vm10, %v4573_v36, %v10530_v59  ;;  %v4483_v25 = vsub.s32 32, %v4482_v41  ;;  %v4314_v35 = vand.u32 8388607, %v12089_v29  ;;  %v4467_v40 = vadd.s32 %v10430_v16, %v10427_v51 }
 0x59b   : > { %v4271_v53 = vclz %v6233_v0  ;;  %v4575_v52 = vadd.s32 %v4574_v20, %v4570_v6  ;;  %v4322_v37 = vsub.s32 32, %v4321_v12  ;;  %v4488_v14 = vadd.s32 127, %v4487_v60 }
 0x59c   : > { %v4484_v23 = vshll.u32 %v10488_v33, %v4482_v41  ;;  %v4485_v11 = vshrl.u32 %v4467_v40, %v4483_v25  ;;  %v4315_v30 = vor.u32 8388608, %v4314_v35  ;;  %v4320_v62 = vshrl.u32 %v4319_v9, 5 }
 0x59d   : > { %v6234_v42 = vadd.s32 4294967294, %v4271_v53  ;;  %v4576_v31 = vadd.s32 536870912, %v4575_v52  ;;  %v4325_v24 = vshrl.u32 %v12487_v46, %v4322_v37  ;;  %v4328_v15 = vshrl.u32 %v12488_v8, %v4322_v37 }
 0x59e   : > { %v4331_v2 = vshrl.u32 %v12489_v10, %v4322_v37  ;;  %v4324_v51 = vshll.u32 %v12340_v27, %v4321_v12  ;;  %v4327_v16 = vshll.u32 %v12487_v46, %v4321_v12  ;;  %v4330_v59 = vshll.u32 %v12488_v8, %v4321_v12 }
 0x59f   : > { %vm6235_vm0 = vcmp.lt.s32.totalorder %v6234_v42, 0  ;;  %v10555_v44 = vshrl.u32 %v4576_v31, 30  ;;  %v4333_v22 = vshll.u32 %v12489_v10, %v4321_v12  ;;  %v4334_v58 = vshrl.u32 %v12344_v5, %v4322_v37 }
 0x5a0   : > { %v10553_v45 = vsel %vm6235_vm0, 0, %v6234_v42  ;;  %v4489_v33 = vshll.u32 %v4488_v14, 23  ;;  %v4326_v41 = vor.u32 %v4325_v24, %v4324_v51  ;;  %v4329_v0 = vor.u32 %v4328_v15, %v4327_v16 }
 0x5a1   : > { %v4578_v13 = vshll.u32 %v10555_v44, 30  ;;  %v4279_v55 = vsub.s32 4294967266, %v10553_v45  ;;  %v4332_v36 = vor.u32 %v4331_v2, %v4330_v59  ;;  %v4335_v53 = vor.u32 %v4334_v58, %v4333_v22 }
 0x5a2   : > { %v4336_v9 = vshll.u32 %v12344_v5, %v4321_v12  ;;  %v4337_v6 = vshrl.u32 %v12345_v1, %v4322_v37  ;;  %v4259_v60 = vadd.s32 %v10460_v61, %v10466_v4  ;;  %v4355_v42 = vshll.u32 %v4315_v30, 8 }
 0x5a3   : > { %v10568_v39 = vsub.s32 %v4575_v52, %v4578_v13  ;;  %v4149_v25 = vadd.f32 %v10403_v18, %v10357_v49  ;;  %v4486_v35 = vor.u32 %v4485_v11, %v4484_v23  ;;  %v4280_v52 = vadd.s32 127, %v4279_v55 }
 0x5a4   : > { %v4338_v31 = vor.u32 %v4337_v6, %v4336_v9  ;;  %vm4339_vm9 = vcmp.lt.s32.totalorder %v4320_v62, 1  ;;  %v4490_v40 = vor.u32 4788187, %v4489_v33  ;;  %v4323_v12 = vshrl.u32 %v12340_v27, %v4322_v37 }
 0x5a5   : > { %v4581_v20 = vsub.s32 0, %v10568_v39  ;;  %vm4342_vm3 = vcmp.lt.s32.totalorder %v4320_v62, 4  ;;  %vm4341_vm14 = vcmp.lt.s32.totalorder %v4320_v62, 3  ;;  %v4347_v61 = vsel %vm4339_vm9, %v4326_v41, %v4329_v0 }
 0x5a6   : > { %v4344_v24 = vsel %vm4342_vm3, %v4332_v36, 2102212464  ;;  %v4348_v4 = vsel %vm4342_vm3, %v4335_v53, 920167782  ;;  %v4275_v15 = vsub.s32 32, %v10553_v45  ;;  %vm4340_vm6 = vcmp.lt.s32.totalorder %v4320_v62, 2 }
 0x5a7   : > { %v6245_v14 = vmin.u32 %v4581_v20, %v10568_v39  ;;  %v4349_v18 = vsel %vm4341_vm14, %v4332_v36, %v4348_v4  ;;  %v4281_v23 = vshll.u32 %v4280_v52, 23  ;;  %v4351_v2 = vsel %vm4339_vm9, %v4329_v0, %v4332_v36 }
 0x5a8   : > { %v4350_v11 = vsel %vm4340_vm6, %v4347_v61, %v4349_v18  ;;  %v4352_v13 = vsel %vm4342_vm3, %v4338_v31, 1326507024  ;;  %v4343_v37 = vsel %vm4339_vm9, %v4323_v12, %v4326_v41  ;;  %v4345_v16 = vsel %vm4341_vm14, %v4329_v0, %v4344_v24  ;;  %v10605_v18 = vpop.f32.mrb[27].mxu1 }
 0x5a9   : > { %v4583_v30 = vclz %v6245_v14  ;;  %v4353_v55 = vsel %vm4341_vm14, %v4335_v53, %v4352_v13  ;;  %v10585_v22 = vmul.u32.u64.low %v4355_v42, %v4350_v11  ;;  %v10586_v58 = vmul.u32.u64.high %v4355_v42, %v4350_v11, %v10585_v22 }
 0x5aa   : > { %v4354_v59 = vsel %vm4340_vm6, %v4351_v2, %v4353_v55  ;;  %v10589_v33 = vmul.f32 30.0, %v4149_v25  ;;  %v4277_v9 = vshrl.u32 %v4259_v60, %v4275_v15  ;;  %v4491_v36 = vand.u32 2147483647, %v4490_v40 }
 0x5ab   : > { %v6246_v51 = vadd.s32 4294967294, %v4583_v30  ;;  %v10591_v6 = vmul.u32.u64.low %v4355_v42, %v4354_v59  ;;  %v10592_v20 = vmul.u32.u64.high %v4355_v42, %v4354_v59, %v10591_v6  ;;  %v4346_v31 = vsel %vm4340_vm6, %v4343_v37, %v4345_v16 }
 0x5ac   : > { %12490 = vst [vmem:[#allocation47_spill] sm:$0xff] %v10589_v33  ;;  %v4276_v41 = vshll.u32 %v10518_v54, %v10553_v45  ;;  %v4282_v0 = vor.u32 4788187, %v4281_v23  ;;  %v4493_v14 = vcvt.s32.f32 %v4486_v35  ;;  %v4365_v12 = vadd.s32 1, %v10586_v58 }
 0x5ad   : > { %vm6247_vm4 = vcmp.lt.s32.totalorder %v6246_v51, 0  ;;  %v12088_v25 = vand.u32 2147483647, %v10589_v33  ;;  %v4830_v60 = vand.u32 2139095040, %v10589_v33  ;;  %v4362_v61 = vmul.u32 %v4355_v42, %v4346_v31 }
 0x5ae   : > { %v4586_v52 = vsel %vm6247_vm4, 0, %v6246_v51  ;;  %v4278_v24 = vor.u32 %v4277_v9, %v4276_v41  ;;  %vm4364_vm7 = vc.u32 %v10592_v20, %v10585_v22  ;;  %v4494_v40 = vmul.f32 %v4493_v14, %v4491_v36 }
 0x5af   : > { %v4591_v53 = vsub.s32 4294967266, %v4586_v52  ;;  %v4366_v62 = vsel %vm4364_vm7, %v4365_v12, %v10586_v58  ;;  %v4831_v4 = vshrl.u32 %v4830_v60, 23  ;;  %v4141_v54 = vadd.f32 %v10357_v49, %v10408_v47 }
 0x5b0   : > { %v4283_v45 = vand.u32 2147483647, %v4282_v0  ;;  %v4587_v35 = vsub.s32 32, %v4586_v52  ;;  %v4367_v30 = vadd.s32 %v4366_v62, %v4362_v61  ;;  %v4834_v42 = vand.u32 8388607, %v12088_v25 }
 0x5b1   : > { %v4592_v15 = vadd.s32 127, %v4591_v53  ;;  %v6256_v23 = vadd.s32 4294967169, %v4831_v4  ;;  %v4285_v11 = vcvt.s32.f32 %v4278_v24  ;;  %v4571_v2 = vadd.s32 %v10529_v43, %v10536_v57 }
 0x5b2   : > { %v4368_v13 = vadd.s32 536870912, %v4367_v30  ;;  %v10611_v51 = vmul.f32 30.0, %v4141_v54  ;;  %v4495_v37 = vxor.u32 2147483648, %v4494_v40  ;;  %v4497_v47 = vsub.s32 4, %v10472_v19 }
 0x5b3   : > { %v4837_v16 = vadd.s32 1, %v6256_v23  ;;  %v10614_v55 = vmul.f32 %v4285_v11, %v4283_v45  ;;  %v4589_v59 = vshrl.u32 %v4571_v2, %v4587_v35  ;;  %v4593_v58 = vshll.u32 %v4592_v15, 23 }
 0x5b4   : > { %12491 = vst [vmem:[#allocation44_spill] sm:$0xff] %v10611_v51  ;;  %v10616_v9 = vshrl.u32 %v4368_v13, 30  ;;  %vm4413_vm15 = vcmp.lt.s32.totalorder %v10361_v32, 0  ;;  %v4835_v6 = vor.u32 8388608, %v4834_v42  ;;  %v4152_v43 = vadd.f32 %v10410_v26, %v10357_v49 }
 0x5b5   : > { %vm4838_vm1 = vcmp.gt.s32.totalorder %v4837_v16, 0  ;;  %v4588_v57 = vshll.u32 %v10568_v39, %v4586_v52  ;;  %v4622_v41 = vand.u32 2139095040, %v10611_v51  ;;  %v4496_v0 = vsel %vm4413_vm15, %v4495_v37, %v4494_v40 }
 0x5b6   : > { %v4370_v36 = vshll.u32 %v10616_v9, 30  ;;  %v4839_v31 = vsel %vm4838_vm1, %v4837_v16, 0  ;;  %v10625_v53 = vsel %vm4413_vm15, %v4497_v47, %v10472_v19  ;;  %v4601_v14 = vsub.s32 4, %v10555_v44 }
 0x5b7   : > { %12492 = vst [vmem:[#allocation16_spill] sm:$0xff] %v10625_v53  ;;  %v4841_v12 = vand.u32 31, %v4839_v31  ;;  %v4287_v60 = vxor.u32 2147483648, %v10614_v55  ;;  %v10629_v24 = vor.u32 %v4589_v59, %v4588_v57  ;;  %v10631_v61 = vor.u32 4788187, %v4593_v58 }
 0x5b8   : > { %v10633_v26 = vsub.s32 %v4367_v30, %v4370_v36  ;;  %v10635_v52 = vshll.u32 %v4835_v6, 8  ;;  %v12086_v62 = vand.u32 2147483647, %v10611_v51  ;;  %v10638_v40 = vmul.f32 30.0, %v4152_v43 }
 0x5b9   : > { %v4842_v39 = vsub.s32 32, %v4841_v12  ;;  %v4840_v4 = vshrl.u32 %v4839_v31, 5  ;;  %v4844_v54 = vshll.u32 %v12340_v27, %v4841_v12  ;;  %v4623_v45 = vshrl.u32 %v4622_v41, 23 }
 0x5ba   : > { %12493 = vst [vmem:[#allocation20_spill] sm:$0xff] %v10638_v40  ;;  %v4373_v19 = vsub.s32 0, %v10633_v26  ;;  %v4847_v15 = vshll.u32 %v12487_v46, %v4841_v12  ;;  %v4850_v23 = vshll.u32 %v12488_v8, %v4841_v12  ;;  %v4853_v2 = vshll.u32 %v12489_v10, %v4841_v12 }
 0x5bb   : > { %v4845_v35 = vshrl.u32 %v12487_v46, %v4842_v39  ;;  %v4848_v30 = vshrl.u32 %v12488_v8, %v4842_v39  ;;  %v4851_v11 = vshrl.u32 %v12489_v10, %v4842_v39  ;;  %v4854_v13 = vshrl.u32 %v12344_v5, %v4842_v39 }
 0x5bc   : > { %v6237_v42 = vmin.u32 %v4373_v19, %v10633_v26  ;;  %vm10652_vm2 = vcmp.le.f32.partialorder %v4411_v34, 0.7853982  ;;  %v12494_v37 = vmov 0  ;;  %vm4517_vm5 = vcmp.lt.s32.totalorder %v10368_v63, 0 }
 0x5bd   : > { %v12495_v37 = vsel %vm10652_vm2, 4294967295, %v12494_v37  ;;  %v4846_v47 = vor.u32 %v4845_v35, %v4844_v54  ;;  %v4849_v16 = vor.u32 %v4848_v30, %v4847_v15  ;;  %v4856_v59 = vshll.u32 %v12344_v5, %v4841_v12 }
 0x5be   : > { %12496 = vst [vmem:[#allocation52_spill] sm:$0xff] %v12495_v37  ;;  %v4857_v58 = vshrl.u32 %v12345_v1, %v4842_v39  ;;  %v4595_v6 = vand.u32 2147483647, %v10631_v61  ;;  %v4375_v43 = vclz %v6237_v42  ;;  %v4852_v57 = vor.u32 %v4851_v11, %v4850_v23 }
 0x5bf   : > { %v4855_v36 = vor.u32 %v4854_v13, %v4853_v2  ;;  %vm12126_vm11 = vcmp.lt.s32.totalorder %v10364_v56, 0  ;;  %v4843_v34 = vshrl.u32 %v12340_v27, %v4842_v39  ;;  %vm4859_vm8 = vcmp.lt.s32.totalorder %v4840_v4, 1 }
 0x5c0   : > { %v4858_v31 = vor.u32 %v4857_v58, %v4856_v59  ;;  %v6248_v41 = vadd.s32 4294967169, %v4623_v45  ;;  %v6238_v19 = vadd.s32 4294967294, %v4375_v43  ;;  %vm4861_vm12 = vcmp.lt.s32.totalorder %v4840_v4, 3 }
 0x5c1   : > { %vm4862_vm13 = vcmp.lt.s32.totalorder %v4840_v4, 4  ;;  %v4867_v54 = vsel %vm4859_vm8, %v4846_v47, %v4849_v16  ;;  %v4871_v15 = vsel %vm4859_vm8, %v4849_v16, %v4852_v57  ;;  %vm4860_vm0 = vcmp.lt.s32.totalorder %v4840_v4, 2 }
 0x5c2   : > { %v4864_v12 = vsel %vm4862_vm13, %v4852_v57, 2102212464  ;;  %v4868_v35 = vsel %vm4862_vm13, %v4855_v36, 920167782  ;;  %v4872_v61 = vsel %vm4862_vm13, %v4858_v31, 1326507024  ;;  %v4863_v13 = vsel %vm4859_vm8, %v4843_v34, %v4846_v47 }
 0x5c3   : > { %vm6239_vm10 = vcmp.lt.s32.totalorder %v6238_v19, 0  ;;  %v4869_v30 = vsel %vm4861_vm12, %v4852_v57, %v4868_v35  ;;  %v4873_v23 = vsel %vm4861_vm12, %v4855_v36, %v4872_v61  ;;  %v4626_v11 = vand.u32 8388607, %v12086_v62 }
 0x5c4   : > { %v4378_v39 = vsel %vm6239_vm10, 0, %v6238_v19  ;;  %v4870_v42 = vsel %vm4860_vm0, %v4867_v54, %v4869_v30  ;;  %v4874_v45 = vsel %vm4860_vm0, %v4871_v15, %v4873_v23  ;;  %v4865_v59 = vsel %vm4861_vm12, %v4849_v16, %v4864_v12 }
 0x5c5   : > { %v4383_v2 = vsub.s32 4294967266, %v4378_v39  ;;  %v4629_v58 = vadd.s32 1, %v6248_v41  ;;  %v10673_v43 = vmul.u32.u64.low %v10635_v52, %v4874_v45  ;;  %v10674_v31 = vmul.u32.u64.high %v10635_v52, %v4874_v45, %v10673_v43 }
 0x5c6   : > { %v10677_v57 = vmul.u32.u64.low %v10635_v52, %v4870_v42  ;;  %v10678_v36 = vmul.u32.u64.high %v10635_v52, %v4870_v42, %v10677_v57  ;;  %v10684_v19 = vsel %vm10652_vm2, %v10361_v32, %v4496_v0  ;;  %v4597_v54 = vcvt.s32.f32 %v10629_v24 }
 0x5c7   : > { %v10690_v47 = vsel %vm4517_vm5, %v4601_v14, %v10555_v44  ;;  %vm4630_vm9 = vcmp.gt.s32.totalorder %v4629_v58, 0  ;;  %v4379_v16 = vsub.s32 32, %v4378_v39  ;;  %v4384_v34 = vadd.s32 127, %v4383_v2 }
 0x5c8   : > { %12497 = vst [vmem:[#allocation49_spill] sm:$0xff] %v10690_v47  ;;  %v4866_v41 = vsel %vm4860_vm0, %v4863_v13, %v4865_v59  ;;  %v4631_v12 = vsel %vm4630_vm9, %v4629_v58, 0  ;;  %v10698_v0 = vsel %vm12126_vm11, %v4287_v60, %v10614_v55  ;;  %v4363_v24 = vadd.s32 %v10585_v22, %v10592_v20 }
 0x5c9   : > { %v4633_v35 = vand.u32 31, %v4631_v12  ;;  %v12087_v44 = vand.u32 2147483647, %v10638_v40  ;;  %v10703_v14 = vmul.f32 %v4597_v54, %v4595_v6  ;;  %vm4884_vm3 = vc.u32 %v10674_v31, %v10677_v57 }
 0x5ca   : > { %v4885_v4 = vadd.s32 1, %v10678_v36  ;;  %v4627_v15 = vor.u32 8388608, %v4626_v11  ;;  %v4380_v61 = vshll.u32 %v10633_v26, %v4378_v39  ;;  %v4882_v30 = vmul.u32 %v10635_v52, %v4866_v41 }
 0x5cb   : > { %v4634_v55 = vsub.s32 32, %v4633_v35  ;;  %v4934_v60 = vand.u32 2139095040, %v10638_v40  ;;  %v4381_v23 = vshrl.u32 %v4363_v24, %v4379_v16  ;;  %v4385_v22 = vshll.u32 %v4384_v34, 23 }
 0x5cc   : > { %v4886_v20 = vsel %vm4884_vm3, %v4885_v4, %v10678_v36  ;;  %v4636_v6 = vshll.u32 %v12340_v27, %v4633_v35  ;;  %v4639_v2 = vshll.u32 %v12487_v46, %v4633_v35  ;;  %v4642_v11 = vshll.u32 %v12488_v8, %v4633_v35 }
 0x5cd   : > { %v4887_v42 = vadd.s32 %v4886_v20, %v4882_v30  ;;  %v4637_v45 = vshrl.u32 %v12487_v46, %v4634_v55  ;;  %v4640_v26 = vshrl.u32 %v12488_v8, %v4634_v55  ;;  %v4643_v52 = vshrl.u32 %v12489_v10, %v4634_v55 }
 0x5ce   : > { %v4645_v39 = vshll.u32 %v12489_v10, %v4633_v35  ;;  %v4646_v13 = vshrl.u32 %v12344_v5, %v4634_v55  ;;  %v4632_v58 = vshrl.u32 %v4631_v12, 5  ;;  %v4648_v43 = vshll.u32 %v12344_v5, %v4633_v35 }
 0x5cf   : > { %v4888_v59 = vadd.s32 536870912, %v4887_v42  ;;  %v4649_v36 = vshrl.u32 %v12345_v1, %v4634_v55  ;;  %v4638_v54 = vor.u32 %v4637_v45, %v4636_v6  ;;  %v4641_v16 = vor.u32 %v4640_v26, %v4639_v2 }
 0x5d0   : > { %v4644_v34 = vor.u32 %v4643_v52, %v4642_v11  ;;  %v4647_v41 = vor.u32 %v4646_v13, %v4645_v39  ;;  %v4599_v24 = vxor.u32 2147483648, %v10703_v14  ;;  %v4935_v30 = vshrl.u32 %v4934_v60, 23 }
 0x5d1   : > { %v10723_v4 = vshrl.u32 %v4888_v59, 30  ;;  %v4144_v20 = vadd.f32 %v10357_v49, %v10412_v17  ;;  %vm10729_vm14 = vcmp.le.f32.partialorder %v4203_v28, 0.7853982  ;;  %v4382_v35 = vor.u32 %v4381_v23, %v4380_v61 }
 0x5d2   : > { %v4650_v62 = vor.u32 %v4649_v36, %v4648_v43  ;;  %v4667_v6 = vshll.u32 %v4627_v15, 8  ;;  %v10735_v45 = vand.u32 8388607, %v12087_v44  ;;  %v4386_v2 = vor.u32 4788187, %v4385_v22 }
 0x5d3   : > { %v4890_v11 = vshll.u32 %v10723_v4, 30  ;;  %vm4651_vm6 = vcmp.lt.s32.totalorder %v4632_v58, 1  ;;  %vm4654_vm4 = vcmp.lt.s32.totalorder %v4632_v58, 4  ;;  %v4635_v49 = vshrl.u32 %v12340_v27, %v4634_v55 }
 0x5d4   : > { %v4656_v17 = vsel %vm4654_vm4, %v4644_v34, 2102212464  ;;  %v4659_v60 = vsel %vm4651_vm6, %v4638_v54, %v4641_v16  ;;  %v4660_v28 = vsel %vm4654_vm4, %v4647_v41, 920167782  ;;  %vm4653_vm7 = vcmp.lt.s32.totalorder %v4632_v58, 3 }
 0x5d5   : > { %v10739_v26 = vsub.s32 %v4887_v42, %v4890_v11  ;;  %v4663_v61 = vsel %vm4651_vm6, %v4641_v16, %v4644_v34  ;;  %v6260_v23 = vadd.s32 4294967169, %v4935_v30  ;;  %vm10743_vm15 = vcmp.le.f32.partialorder %v4515_v38, 0.7853982  ;;  %v10754_v38 = vpop.f32.mrb[28].mxu1 }
 0x5d6   : > { %v12500_v15 = vmov 0  ;;  %vm4652_vm1 = vcmp.lt.s32.totalorder %v4632_v58, 2  ;;  %v4655_v22 = vsel %vm4651_vm6, %v4635_v49, %v4638_v54  ;;  %v4661_v52 = vsel %vm4653_vm7, %v4644_v34, %v4660_v28 }
 0x5d7   : > { %v12501_v15 = vsel %vm10743_vm15, 4294967295, %v12500_v15  ;;  %v4664_v39 = vsel %vm4654_vm4, %v4650_v62, 1326507024  ;;  %v4893_v55 = vsub.s32 0, %v10739_v26  ;;  %v4657_v13 = vsel %vm4653_vm7, %v4641_v16, %v4656_v17 }
 0x5d8   : > { %12502 = vst [vmem:[#allocation24_spill] sm:$0xff] %v12501_v15  ;;  %v4662_v59 = vsel %vm4652_vm1, %v4659_v60, %v4661_v52  ;;  %v4665_v42 = vsel %vm4653_vm7, %v4647_v41, %v4664_v39  ;;  %v4387_v43 = vand.u32 2147483647, %v4386_v2  ;;  %v4941_v62 = vadd.s32 1, %v6260_v23 }
 0x5d9   : > { %v4666_v36 = vsel %vm4652_vm1, %v4663_v61, %v4665_v42  ;;  %v10750_v30 = vmul.u32.u64.low %v4667_v6, %v4662_v59  ;;  %v10751_v11 = vmul.u32.u64.high %v4667_v6, %v4662_v59, %v10750_v30  ;;  %v6257_v44 = vmin.u32 %v4893_v55, %v10739_v26 }
 0x5da   : > { %v10757_v54 = vmul.u32.u64.low %v4667_v6, %v4666_v36  ;;  %v10758_v34 = vmul.u32.u64.high %v4667_v6, %v4666_v36, %v10757_v54  ;;  %6851 = vcosq.f32 %v10684_v19  ;;  %v4389_v16 = vcvt.s32.f32 %v4382_v35 }
 0x5db   : > { %v4658_v41 = vsel %vm4652_vm1, %v4655_v22, %v4657_v13  ;;  %v10762_v2 = vmul.f32 30.0, %v4144_v20  ;;  %6853 = vsinq.f32 %v10684_v19  ;;  %v4291_v49 = vsel %vm10729_vm14, %v10364_v56, %v10698_v0  ;;  %v10780_v22 = vpop.f32.mrb[29].mxu1 }
 0x5dc   : > { %v4895_v17 = vclz %v6257_v44  ;;  %vm4942_vm8 = vcmp.gt.s32.totalorder %v4941_v62, 0  ;;  %v4600_v60 = vsel %vm4517_vm5, %v4599_v24, %v10703_v14  ;;  %v10772_v28 = vmul.f32 %v4389_v16, %v4387_v43 }
 0x5dd   : > { %12503 = vst [vmem:[#allocation18_spill] sm:$0xff] %v10762_v2  ;;  %v4677_v58 = vadd.s32 1, %v10751_v11  ;;  %v4943_v35 = vsel %vm4942_vm8, %v4941_v62, 0  ;;  %v4674_v61 = vmul.u32 %v4667_v6, %v4658_v41  ;;  %vm4676_vm12 = vc.u32 %v10758_v34, %v10750_v30 }
 0x5de   : > { %v6258_v20 = vadd.s32 4294967294, %v4895_v17  ;;  %v4939_v19 = vor.u32 8388608, %v10735_v45  ;;  %6855 = vcosq.f32 %v4291_v49  ;;  %v4945_v44 = vand.u32 31, %v4943_v35 }
 0x5df   : > { %v4678_v0 = vsel %vm4676_vm12, %v4677_v58, %v10751_v11  ;;  %v4726_v23 = vand.u32 2139095040, %v10762_v2  ;;  %6857 = vsinq.f32 %v4291_v49  ;;  %v10785_v14 = vsel %vm10743_vm15, %v10368_v63, %v4600_v60 }
 0x5e0   : > { %vm6259_vm5 = vcmp.lt.s32.totalorder %v6258_v20, 0  ;;  %v4679_v24 = vadd.s32 %v4678_v0, %v4674_v61  ;;  %v4883_v45 = vadd.s32 %v10677_v57, %v10674_v31  ;;  %v4946_v39 = vsub.s32 32, %v4945_v44 }
 0x5e1   : > { %v4898_v52 = vsel %vm6259_vm5, 0, %v6258_v20  ;;  %v10790_v42 = vshll.u32 %v4939_v19, 8  ;;  %v10792_v43 = vshrl.u32 %v4943_v35, 5  ;;  %v4727_v54 = vshrl.u32 %v4726_v23, 23 }
 0x5e2   : > { %v4899_v55 = vsub.s32 32, %v4898_v52  ;;  %v4903_v13 = vsub.s32 4294967266, %v4898_v52  ;;  %v4680_v59 = vadd.s32 536870912, %v4679_v24  ;;  %v4949_v36 = vshrl.u32 %v12487_v46, %v4946_v39 }
 0x5e3   : > { %v4952_v11 = vshrl.u32 %v12488_v8, %v4946_v39  ;;  %v4948_v41 = vshll.u32 %v12340_v27, %v4945_v44  ;;  %v4955_v31 = vshrl.u32 %v12489_v10, %v4946_v39  ;;  %v4951_v49 = vshll.u32 %v12487_v46, %v4945_v44 }
 0x5e4   : > { %v4904_v62 = vadd.s32 127, %v4903_v13  ;;  %v10796_v16 = vshrl.u32 %v4680_v59, 30  ;;  %v10800_v57 = vpop.eup %6851  ;;  %v4954_v17 = vshll.u32 %v12488_v8, %v4945_v44  ;;  %v4957_v60 = vshll.u32 %v12489_v10, %v4945_v44 }
 0x5e5   : > { %12504 = vst [vmem:[#allocation50_spill] sm:$0xff] %v10800_v57  ;;  %v4958_v58 = vshrl.u32 %v12344_v5, %v4946_v39  ;;  %v10806_v35 = vpop.eup %6853  ;;  %v4901_v20 = vshrl.u32 %v4883_v45, %v4899_v55  ;;  %v4950_v0 = vor.u32 %v4949_v36, %v4948_v41  ;;  %v4953_v23 = vor.u32 %v4952_v11, %v4951_v49 }
 0x5e6   : > { %12505 = vst [vmem:[#allocation53_spill] sm:$0xff] %v10806_v35  ;;  %v4905_v61 = vshll.u32 %v4904_v62, 23  ;;  %v4682_v19 = vshll.u32 %v10796_v16, 30  ;;  %v4960_v59 = vshll.u32 %v12344_v5, %v4945_v44  ;;  %v4961_v25 = vshrl.u32 %v12345_v1, %v4946_v39 }
 0x5e7   : > { %v4959_v13 = vor.u32 %v4958_v58, %v4957_v60  ;;  %v4956_v6 = vor.u32 %v4955_v31, %v4954_v17  ;;  %v12095_v63 = vand.u32 2147483647, %v10762_v2  ;;  %v6252_v32 = vadd.s32 4294967169, %v4727_v54 }
 0x5e8   : > { %v10811_v29 = vsub.s32 %v4679_v24, %v4682_v19  ;;  %v10814_v57 = vpop.eup %6855  ;;  %v4900_v45 = vshll.u32 %v10739_v26, %v4898_v52  ;;  %v4906_v55 = vor.u32 4788187, %v4905_v61  ;;  %v4962_v62 = vor.u32 %v4961_v25, %v4960_v59 }
 0x5e9   : > { %vm4963_vm13 = vcmp.lt.s32.totalorder %v10792_v43, 1  ;;  %v10818_v36 = vpop.eup %6857  ;;  %vm12125_vm10 = vcmp.lt.s32.totalorder %v10379_v50, 0  ;;  %v4947_v24 = vshrl.u32 %v12340_v27, %v4946_v39  ;;  %vm4964_vm0 = vcmp.lt.s32.totalorder %v10792_v43, 2 }
 0x5ea   : > { %v4685_v44 = vsub.s32 0, %v10811_v29  ;;  %vm4966_vm9 = vcmp.lt.s32.totalorder %v10792_v43, 4  ;;  %v4902_v11 = vor.u32 %v4901_v20, %v4900_v45  ;;  %vm4965_vm3 = vcmp.lt.s32.totalorder %v10792_v43, 3  ;;  %v10873_v43 = vld [vmem:[%s11924_s4 + $0x1] ss:$0 sm:$0xff] }
 0x5eb   : > { %v4971_v25 = vsel %vm4963_vm13, %v4950_v0, %v4953_v23  ;;  %v4972_v26 = vsel %vm4966_vm9, %v4959_v13, 920167782  ;;  %v4968_v54 = vsel %vm4966_vm9, %v4956_v6, 2102212464  ;;  %v4975_v31 = vsel %vm4963_vm13, %v4953_v23, %v4956_v6 }
 0x5ec   : > { %v6249_v52 = vmin.u32 %v4685_v44, %v10811_v29  ;;  %v4973_v41 = vsel %vm4965_vm3, %v4956_v6, %v4972_v26  ;;  %v4907_v49 = vand.u32 2147483647, %v4906_v55  ;;  %v4976_v17 = vsel %vm4966_vm9, %v4962_v62, 1326507024 }
 0x5ed   : > { %v4974_v39 = vsel %vm4964_vm0, %v4971_v25, %v4973_v41  ;;  %v4730_v60 = vand.u32 8388607, %v12095_v63  ;;  %v4967_v20 = vsel %vm4963_vm13, %v4947_v24, %v4950_v0  ;;  %v4977_v61 = vsel %vm4965_vm3, %v4959_v13, %v4976_v17 }
 0x5ee   : > { %v4687_v58 = vclz %v6249_v52  ;;  %v4733_v19 = vadd.s32 1, %v6252_v32  ;;  %v4969_v59 = vsel %vm4965_vm3, %v4953_v23, %v4968_v54  ;;  %v4978_v45 = vsel %vm4964_vm0, %v4975_v31, %v4977_v61 }
 0x5ef   : > { %v10840_v6 = vmul.u32.u64.low %v10790_v42, %v4974_v39  ;;  %v10841_v55 = vmul.u32.u64.high %v10790_v42, %v4974_v39, %v10840_v6  ;;  %v4909_v44 = vcvt.s32.f32 %v4902_v11  ;;  %6859 = vcosq.f32 %v10785_v14  ;;  %v10867_v39 = vpop.f32.mrb[30].mxu1 }
 0x5f0   : > { %v6250_v62 = vadd.s32 4294967294, %v4687_v58  ;;  %v10845_v25 = vmul.u32.u64.low %v10790_v42, %v4978_v45  ;;  %v10846_v26 = vmul.u32.u64.high %v10790_v42, %v4978_v45, %v10845_v25  ;;  %vm4734_vm6 = vcmp.gt.s32.totalorder %v4733_v19, 0 }
 0x5f1   : > { %v10855_v23 = vmul.f32 %v4909_v44, %v4907_v49  ;;  %v4970_v13 = vsel %vm4964_vm0, %v4967_v20, %v4969_v59  ;;  %v4735_v24 = vsel %vm4734_vm6, %v4733_v19, 0  ;;  %v12506_v11 = vxor.u32 2147483648, %v10772_v28 }
 0x5f2   : > { %vm6251_vm4 = vcmp.lt.s32.totalorder %v6250_v62, 0  ;;  %v4989_v41 = vadd.s32 1, %v10841_v55  ;;  %v4731_v31 = vor.u32 8388608, %v4730_v60  ;;  %v4165_v20 = vadd.f32 %v10873_v43, %v10455_v3 }
 0x5f3   : > { %v10864_v52 = vsel %vm12125_vm10, %v12506_v11, %v10772_v28  ;;  %v4690_v54 = vsel %vm6251_vm4, 0, %v6250_v62  ;;  %v4986_v28 = vmul.u32 %v10790_v42, %v4970_v13  ;;  %vm4988_vm7 = vc.u32 %v10846_v26, %v10840_v6 }
 0x5f4   : > { %v4691_v17 = vsub.s32 32, %v4690_v54  ;;  %v4695_v58 = vsub.s32 4294967266, %v4690_v54  ;;  %v4737_v60 = vand.u32 31, %v4735_v24  ;;  %v4157_v61 = vadd.f32 %v10873_v43, %v10486_v48 }
 0x5f5   : > { %v4911_v19 = vxor.u32 2147483648, %v10855_v23  ;;  %v4675_v59 = vadd.s32 %v10750_v30, %v10758_v34  ;;  %v4990_v44 = vsel %vm4988_vm7, %v4989_v41, %v10841_v55  ;;  %v10887_v42 = vshll.u32 %v4731_v31, 8 }
 0x5f6   : > { %v4696_v62 = vadd.s32 127, %v4695_v58  ;;  %v4991_v3 = vadd.s32 %v4990_v44, %v4986_v28  ;;  %v4738_v25 = vsub.s32 32, %v4737_v60  ;;  %v4736_v11 = vshrl.u32 %v4735_v24, 5 }
 0x5f7   : > { %v4693_v13 = vshrl.u32 %v4675_v59, %v4691_v17  ;;  %v4740_v32 = vshll.u32 %v12340_v27, %v4737_v60  ;;  %v10890_v0 = vmul.f32 30.0, %v4165_v20  ;;  %v4743_v30 = vshll.u32 %v12487_v46, %v4737_v60 }
 0x5f8   : > { %v4992_v48 = vadd.s32 536870912, %v4991_v3  ;;  %v4741_v63 = vshrl.u32 %v12487_v46, %v4738_v25  ;;  %v4744_v34 = vshrl.u32 %v12488_v8, %v4738_v25  ;;  %v4746_v55 = vshll.u32 %v12488_v8, %v4737_v60 }
 0x5f9   : > { %12507 = vst [vmem:[#allocation39_spill] sm:$0xff] %v10890_v0  ;;  %v4747_v41 = vshrl.u32 %v12489_v10, %v4738_v25  ;;  %v4749_v31 = vshll.u32 %v12489_v10, %v4737_v60  ;;  %v4750_v17 = vshrl.u32 %v12344_v5, %v4738_v25  ;;  %v10899_v24 = vpop.eup %6859  ;;  %vm4829_vm1 = vcmp.lt.s32.totalorder %v10589_v33, 0 }
 0x5fa   : > { %12508 = vst [vmem:[#allocation8_spill] sm:$0xff] %v10899_v24  ;;  %v4697_v58 = vshll.u32 %v4696_v62, 23  ;;  %v10902_v20 = vshrl.u32 %v4992_v48, 30  ;;  %v4742_v28 = vor.u32 %v4741_v63, %v4740_v32  ;;  %v4745_v59 = vor.u32 %v4744_v34, %v4743_v30 }
 0x5fb   : > { %v12509_v44 = vand.u32 2147483647, %v10379_v50  ;;  %v4748_v49 = vor.u32 %v4747_v41, %v4746_v55  ;;  %v4751_v47 = vor.u32 %v4750_v17, %v4749_v31  ;;  %v4752_v15 = vshll.u32 %v12344_v5, %v4737_v60 }
 0x5fc   : > { %v4753_v35 = vshrl.u32 %v12345_v1, %v4738_v25  ;;  %vm4621_vm12 = vcmp.lt.s32.totalorder %v10611_v51, 0  ;;  %v4692_v62 = vshll.u32 %v10811_v29, %v4690_v54  ;;  %v4994_v48 = vshll.u32 %v10902_v20, 30 }
 0x5fd   : > { %vm10906_vm8 = vcmp.le.f32.partialorder %v12509_v44, 0.7853982  ;;  %vm4755_vm5 = vcmp.lt.s32.totalorder %v4736_v11, 1  ;;  %vm4756_vm13 = vcmp.lt.s32.totalorder %v4736_v11, 2  ;;  %v12512_v63 = vand.u32 2147483647, %v10589_v33 }
 0x5fe   : > { %v12513_v32 = vmov 0  ;;  %v4739_v30 = vshrl.u32 %v12340_v27, %v4738_v25  ;;  %v4754_v34 = vor.u32 %v4753_v35, %v4752_v15  ;;  %vm4758_vm9 = vcmp.lt.s32.totalorder %v4736_v11, 4 }
 0x5ff   : > { %vm10917_vm0 = vcmp.le.f32.partialorder %v12512_v63, 0.7853982  ;;  %v4763_v60 = vsel %vm4755_vm5, %v4742_v28, %v4745_v59  ;;  %v10923_v55 = vsub.s32 %v4991_v3, %v4994_v48  ;;  %vm4757_vm3 = vcmp.lt.s32.totalorder %v4736_v11, 3 }
 0x600   : > { %v12514_v32 = vsel %vm10917_vm0, 4294967295, %v12513_v32  ;;  %v4760_v29 = vsel %vm4758_vm9, %v4748_v49, 2102212464  ;;  %v4764_v54 = vsel %vm4758_vm9, %v4751_v47, 920167782  ;;  %v4694_v41 = vor.u32 %v4693_v13, %v4692_v62 }
 0x601   : > { %12515 = vst [vmem:[#allocation32_spill] sm:$0xff] %v12514_v32  ;;  %v4698_v31 = vor.u32 4788187, %v4697_v58  ;;  %v4759_v17 = vsel %vm4755_vm5, %v4739_v30, %v4742_v28  ;;  %v4765_v44 = vsel %vm4757_vm3, %v4748_v49, %v4764_v54  ;;  %v4997_v63 = vsub.s32 0, %v10923_v55 }
 0x602   : > { %v4766_v24 = vsel %vm4756_vm13, %v4763_v60, %v4765_v44  ;;  %v4767_v25 = vsel %vm4755_vm5, %v4745_v59, %v4748_v49  ;;  %v4768_v15 = vsel %vm4758_vm9, %v4754_v34, 1326507024  ;;  %v4761_v35 = vsel %vm4757_vm3, %v4745_v59, %v4760_v29 }
 0x603   : > { %v4769_v53 = vsel %vm4757_vm3, %v4751_v47, %v4768_v15  ;;  %v10930_v3 = vmul.u32.u64.low %v10887_v42, %v4766_v24  ;;  %v10931_v48 = vmul.u32.u64.high %v10887_v42, %v4766_v24, %v10930_v3  ;;  %6861 = vsinq.f32 %v10785_v14 }
 0x604   : > { %v12516_v13 = vand.u32 2147483647, %v10611_v51  ;;  %v6261_v28 = vmin.u32 %v4997_v63, %v10923_v55  ;;  %v4770_v49 = vsel %vm4756_vm13, %v4767_v25, %v4769_v53  ;;  %v10943_v62 = vmul.f32 30.0, %v4157_v61 }
 0x605   : > { %v4912_v47 = vsel %vm4829_vm1, %v4911_v19, %v10855_v23  ;;  %v4699_v24 = vand.u32 2147483647, %v4698_v31  ;;  %vm4933_vm4 = vcmp.lt.s32.totalorder %v10638_v40, 0  ;;  %v4395_v30 = vsel %vm10906_vm8, %v10379_v50, %v10864_v52 }
 0x606   : > { %vm10937_vm6 = vcmp.le.f32.partialorder %v12516_v13, 0.7853982  ;;  %12519 = vst [vmem:[#allocation51_spill] sm:$0xff] %v10943_v62  ;;  %v10950_v14 = vmul.u32.u64.low %v10887_v42, %v4770_v49  ;;  %v10951_v59 = vmul.u32.u64.high %v10887_v42, %v4770_v49, %v10950_v14  ;;  %v4999_v34 = vclz %v6261_v28 }
 0x607   : > { %v4762_v53 = vsel %vm4756_vm13, %v4759_v17, %v4761_v35  ;;  %v5246_v61 = vand.u32 2139095040, %v10890_v0  ;;  %v12520_v23 = vsub.s32 4, %v10723_v4  ;;  %v4701_v60 = vcvt.s32.f32 %v4694_v41 }
 0x608   : > { %v12522_v29 = vsub.s32 4, %v10796_v16  ;;  %v4781_v52 = vadd.s32 1, %v10931_v48  ;;  %v4915_v11 = vsel %vm10917_vm0, %v10589_v33, %v4912_v47  ;;  %v12524_v31 = vand.u32 2147483647, %v10638_v40 }
 0x609   : > { %v10964_v19 = vsel %vm4829_vm1, %v12520_v23, %v10723_v4  ;;  %v12525_v17 = vmov 0  ;;  %v6262_v4 = vadd.s32 4294967294, %v4999_v34  ;;  %v5247_v41 = vshrl.u32 %v5246_v61, 23  ;;  %v10993_v34 = vpop.f32.mrb[31].mxu1 }
 0x60a   : > { %12521 = vst [vmem:[#allocation45_spill] sm:$0xff] %v10964_v19  ;;  %v10971_v54 = vsel %vm4621_vm12, %v12522_v29, %v10796_v16  ;;  %vm10979_vm7 = vcmp.le.f32.partialorder %v12524_v31, 0.7853982  ;;  %v5038_v44 = vand.u32 2139095040, %v10943_v62  ;;  %v4702_v63 = vmul.f32 %v4701_v60, %v4699_v24 }
 0x60b   : > { %12523 = vst [vmem:[#allocation15_spill] sm:$0xff] %v10971_v54  ;;  %v12526_v17 = vsel %vm10979_vm7, 4294967295, %v12525_v17  ;;  %v5017_v16 = vsub.s32 4, %v10902_v20  ;;  %v4778_v25 = vmul.u32 %v10887_v42, %v4762_v53  ;;  %vm4780_vm1 = vc.u32 %v10951_v59, %v10930_v3 }
 0x60c   : > { %12527 = vst [vmem:[#allocation35_spill] sm:$0xff] %v12526_v17  ;;  %vm6263_vm5 = vcmp.lt.s32.totalorder %v6262_v4, 0  ;;  %v4782_v15 = vsel %vm4780_vm1, %v4781_v52, %v10931_v48  ;;  %v12101_v35 = vand.u32 2147483647, %v10890_v0  ;;  %v6272_v13 = vadd.s32 4294967169, %v5247_v41 }
 0x60d   : > { %6863 = vcosq.f32 %v4395_v30  ;;  %v5002_v28 = vsel %vm6263_vm5, 0, %v6262_v4  ;;  %v4783_v49 = vadd.s32 %v4782_v15, %v4778_v25  ;;  %v5039_v47 = vshrl.u32 %v5038_v44, 23  ;;  %v10998_v23 = vpop.eup %6861 }
 0x60e   : > { %6865 = vsinq.f32 %v4395_v30  ;;  %v5007_v14 = vsub.s32 4294967266, %v5002_v28  ;;  %v5253_v42 = vadd.s32 1, %v6272_v13  ;;  %v4703_v53 = vxor.u32 2147483648, %v4702_v63  ;;  %12528 = vst [vmem:[#allocation27_spill] sm:$0xff] %v10998_v23 }
 0x60f   : > { %6867 = vcosq.f32 %v4915_v11  ;;  %v4784_v61 = vadd.s32 536870912, %v4783_v49  ;;  %v5003_v60 = vsub.s32 32, %v5002_v28  ;;  %v11003_v30 = vsel %vm4933_vm4, %v5017_v16, %v10902_v20 }
 0x610   : > { %12529 = vst [vmem:[#allocation23_spill] sm:$0xff] %v11003_v30  ;;  %v5250_v29 = vand.u32 8388607, %v12101_v35  ;;  %vm5254_vm13 = vcmp.gt.s32.totalorder %v5253_v42, 0  ;;  %v5008_v52 = vadd.s32 127, %v5007_v14  ;;  %v6264_v41 = vadd.s32 4294967169, %v5039_v47 }
 0x611   : > { %v11007_v31 = vshrl.u32 %v4784_v61, 30  ;;  %v5255_v4 = vsel %vm5254_vm13, %v5253_v42, 0  ;;  %6869 = vsinq.f32 %v4915_v11  ;;  %v4987_v44 = vadd.s32 %v10840_v6, %v10846_v26 }
 0x612   : > { %v5257_v25 = vand.u32 31, %v5255_v4  ;;  %v11013_v15 = vadd.f32 %v10873_v43, %v10547_v21  ;;  %v11017_v20 = vsel %vm4621_vm12, %v4703_v53, %v4702_v63  ;;  %v5004_v47 = vshll.u32 %v10923_v55, %v5002_v28 }
 0x613   : > { %v4786_v13 = vshll.u32 %v11007_v31, 30  ;;  %v11027_v6 = vadd.s32 %v10930_v3, %v10951_v59  ;;  %v5251_v21 = vor.u32 8388608, %v5250_v29  ;;  %v5005_v14 = vshrl.u32 %v4987_v44, %v5003_v60 }
 0x614   : > { %v5258_v26 = vsub.s32 32, %v5257_v25  ;;  %v5009_v42 = vshll.u32 %v5008_v52, 23  ;;  %v5045_v53 = vadd.s32 1, %v6264_v41  ;;  %v5256_v61 = vshrl.u32 %v5255_v4, 5 }
 0x615   : > { %v11029_v63 = vsub.s32 %v4783_v49, %v4786_v13  ;;  %v5260_v16 = vshll.u32 %v12340_v27, %v5257_v25  ;;  %v5263_v48 = vshll.u32 %v12487_v46, %v5257_v25  ;;  %v5266_v59 = vshll.u32 %v12488_v8, %v5257_v25 }
 0x616   : > { %v5261_v24 = vshrl.u32 %v12487_v46, %v5258_v26  ;;  %v5264_v3 = vshrl.u32 %v12488_v8, %v5258_v26  ;;  %v5267_v28 = vshrl.u32 %v12489_v10, %v5258_v26  ;;  %v5269_v29 = vshll.u32 %v12489_v10, %v5257_v25 }
 0x617   : > { %v11034_v35 = vpop.eup %6863  ;;  %v4789_v55 = vsub.s32 0, %v11029_v63  ;;  %v5270_v52 = vshrl.u32 %v12344_v5, %v5258_v26  ;;  %v5272_v4 = vshll.u32 %v12344_v5, %v5257_v25  ;;  %v5273_v33 = vshrl.u32 %v12345_v1, %v5258_v26 }
 0x618   : > { %v11040_v49 = vpop.eup %6865  ;;  %v5262_v60 = vor.u32 %v5261_v24, %v5260_v16  ;;  %v5265_v13 = vor.u32 %v5264_v3, %v5263_v48  ;;  %v5268_v11 = vor.u32 %v5267_v28, %v5266_v59  ;;  %v5006_v30 = vor.u32 %v5005_v14, %v5004_v47 }
 0x619   : > { %v11045_v41 = vpop.eup %6867  ;;  %v6253_v44 = vmin.u32 %v4789_v55, %v11029_v63  ;;  %v5271_v19 = vor.u32 %v5270_v52, %v5269_v29  ;;  %v5291_v32 = vshll.u32 %v5251_v21, 8  ;;  %v12531_v54 = vand.u32 2147483647, %v10943_v62 }
 0x61a   : > { %12530 = vst [vmem:[#allocation29_spill] sm:$0xff] %v11045_v41  ;;  %v5274_v23 = vor.u32 %v5273_v33, %v5272_v4  ;;  %vm5275_vm12 = vcmp.lt.s32.totalorder %v5256_v61, 1  ;;  %vm5278_vm9 = vcmp.lt.s32.totalorder %v5256_v61, 4  ;;  %v5259_v41 = vshrl.u32 %v12340_v27, %v5258_v26 }
 0x61b   : > { %v11051_v24 = vand.u32 8388607, %v12531_v54  ;;  %v4791_v16 = vclz %v6253_v44  ;;  %v11053_v25 = vpop.eup %6869  ;;  %v5280_v48 = vsel %vm5278_vm9, %v5268_v11, 2102212464  ;;  %v5283_v55 = vsel %vm5275_vm12, %v5262_v60, %v5265_v13 }
 0x61c   : > { %12532 = vst [vmem:[#allocation14_spill] sm:$0xff] %v11053_v25  ;;  %vm5046_vm3 = vcmp.gt.s32.totalorder %v5045_v53, 0  ;;  %v5010_v3 = vor.u32 4788187, %v5009_v42  ;;  %vm5277_vm1 = vcmp.lt.s32.totalorder %v5256_v61, 3  ;;  %vm5276_vm5 = vcmp.lt.s32.totalorder %v5256_v61, 2 }
 0x61d   : > { %v6254_v47 = vadd.s32 4294967294, %v4791_v16  ;;  %v5284_v21 = vsel %vm5278_vm9, %v5271_v19, 920167782  ;;  %v5279_v54 = vsel %vm5275_vm12, %v5259_v41, %v5262_v60  ;;  %v5287_v59 = vsel %vm5275_vm12, %v5265_v13, %v5268_v11 }
 0x61e   : > { %v5285_v14 = vsel %vm5277_vm1, %v5268_v11, %v5284_v21  ;;  %v5281_v33 = vsel %vm5277_vm1, %v5265_v13, %v5280_v48  ;;  %v5288_v29 = vsel %vm5278_vm9, %v5274_v23, 1326507024  ;;  %v5011_v42 = vand.u32 2147483647, %v5010_v3 }
 0x61f   : > { %vm6255_vm13 = vcmp.lt.s32.totalorder %v6254_v47, 0  ;;  %v5286_v28 = vsel %vm5276_vm5, %v5283_v55, %v5285_v14  ;;  %v5289_v52 = vsel %vm5277_vm1, %v5271_v19, %v5288_v29  ;;  %v5013_v60 = vcvt.s32.f32 %v5006_v30 }
 0x620   : > { %v4794_v26 = vsel %vm6255_vm13, 0, %v6254_v47  ;;  %v11060_v4 = vmul.u32.u64.low %v5291_v32, %v5286_v28  ;;  %v11061_v44 = vmul.u32.u64.high %v5291_v32, %v5286_v28, %v11060_v4  ;;  %v5290_v37 = vsel %vm5276_vm5, %v5287_v59, %v5289_v52 }
 0x621   : > { %v4795_v16 = vsub.s32 32, %v4794_v26  ;;  %v4799_v25 = vsub.s32 4294967266, %v4794_v26  ;;  %v11065_v41 = vmul.u32.u64.low %v5291_v32, %v5290_v37  ;;  %v11066_v11 = vmul.u32.u64.high %v5291_v32, %v5290_v37, %v11065_v41 }
 0x622   : > { %v5047_v13 = vsel %vm5046_vm3, %v5045_v53, 0  ;;  %vm4725_vm12 = vcmp.lt.s32.totalorder %v10762_v2, 0  ;;  %v5282_v48 = vsel %vm5276_vm5, %v5279_v54, %v5281_v33  ;;  %v4796_v3 = vshll.u32 %v11029_v63, %v4794_v26 }
 0x623   : > { %v4797_v23 = vshrl.u32 %v11027_v6, %v4795_v16  ;;  %v4800_v19 = vadd.s32 127, %v4799_v25  ;;  %v5049_v55 = vand.u32 31, %v5047_v13  ;;  %v5301_v47 = vadd.s32 1, %v11061_v44 }
 0x624   : > { %v5043_v21 = vor.u32 8388608, %v11051_v24  ;;  %v11076_v30 = vmul.f32 30.0, %v11013_v15  ;;  %v5014_v37 = vmul.f32 %v5013_v60, %v5011_v42  ;;  %v4809_v53 = vsub.s32 4, %v11007_v31 }
 0x625   : > { %v4801_v14 = vshll.u32 %v4800_v19, 23  ;;  %v5050_v59 = vsub.s32 32, %v5049_v55  ;;  %v4798_v28 = vor.u32 %v4797_v23, %v4796_v3  ;;  %v5298_v6 = vmul.u32 %v5291_v32, %v5282_v48 }
 0x626   : > { %12533 = vst [vmem:[#allocation13_spill] sm:$0xff] %v11076_v30  ;;  %vm5300_vm9 = vc.u32 %v11066_v11, %v11060_v4  ;;  %v5048_v61 = vshrl.u32 %v5047_v13, 5  ;;  %v5052_v54 = vshll.u32 %v12340_v27, %v5049_v55  ;;  %v5055_v24 = vshll.u32 %v12487_v46, %v5049_v55 }
 0x627   : > { %v4802_v25 = vor.u32 4788187, %v4801_v14  ;;  %v5302_v63 = vsel %vm5300_vm9, %v5301_v47, %v11061_v44  ;;  %v5053_v33 = vshrl.u32 %v12487_v46, %v5050_v59  ;;  %v5056_v29 = vshrl.u32 %v12488_v8, %v5050_v59 }
 0x628   : > { %v5303_v15 = vadd.s32 %v5302_v63, %v5298_v6  ;;  %v5059_v26 = vshrl.u32 %v12489_v10, %v5050_v59  ;;  %v5058_v32 = vshll.u32 %v12488_v8, %v5049_v55  ;;  %v5061_v42 = vshll.u32 %v12489_v10, %v5049_v55 }
 0x629   : > { %v4803_v52 = vand.u32 2147483647, %v4802_v25  ;;  %v5062_v16 = vshrl.u32 %v12344_v5, %v5050_v59  ;;  %v4805_v60 = vcvt.s32.f32 %v4798_v28  ;;  %v5054_v41 = vor.u32 %v5053_v33, %v5052_v54 }
 0x62a   : > { %v5304_v44 = vadd.s32 536870912, %v5303_v15  ;;  %v5057_v13 = vor.u32 %v5056_v29, %v5055_v24  ;;  %v5060_v23 = vor.u32 %v5059_v26, %v5058_v32  ;;  %v5064_v48 = vshll.u32 %v12344_v5, %v5049_v55 }
 0x62b   : > { %v5063_v19 = vor.u32 %v5062_v16, %v5061_v42  ;;  %v5065_v3 = vshrl.u32 %v12345_v1, %v5050_v59  ;;  %v4707_v47 = vsel %vm10937_vm6, %v10611_v51, %v11017_v20  ;;  %v11099_v14 = vsel %vm4725_vm12, %v4809_v53, %v11007_v31 }
 0x62c   : > { %v11101_v28 = vshrl.u32 %v5304_v44, 30  ;;  %v5083_v6 = vshll.u32 %v5043_v21, 8  ;;  %v5015_v25 = vxor.u32 2147483648, %v5014_v37  ;;  %v12534_v63 = vand.u32 2147483647, %v10762_v2 }
 0x62d   : > { %v4806_v54 = vmul.f32 %v4805_v60, %v4803_v52  ;;  %v5066_v24 = vor.u32 %v5065_v3, %v5064_v48  ;;  %vm5067_vm1 = vcmp.lt.s32.totalorder %v5048_v61, 1  ;;  %vm5070_vm5 = vcmp.lt.s32.totalorder %v5048_v61, 4 }
 0x62e   : > { %vm11105_vm3 = vcmp.le.f32.partialorder %v12534_v63, 0.7853982  ;;  %v5306_v20 = vshll.u32 %v11101_v28, 30  ;;  %v5075_v33 = vsel %vm5067_vm1, %v5054_v41, %v5057_v13  ;;  %v5350_v31 = vand.u32 2139095040, %v11076_v30 }
 0x62f   : > { %v5051_v53 = vshrl.u32 %v12340_v27, %v5050_v59  ;;  %vm5069_vm13 = vcmp.lt.s32.totalorder %v5048_v61, 3  ;;  %v5072_v21 = vsel %vm5070_vm5, %v5060_v23, 2102212464  ;;  %v5076_v29 = vsel %vm5070_vm5, %v5063_v19, 920167782 }
 0x630   : > { %v11113_v26 = vsub.s32 %v5303_v15, %v5306_v20  ;;  %vm5068_vm9 = vcmp.lt.s32.totalorder %v5048_v61, 2  ;;  %v5077_v32 = vsel %vm5069_vm13, %v5060_v23, %v5076_v29  ;;  %v5079_v52 = vsel %vm5067_vm1, %v5057_v13, %v5060_v23 }
 0x631   : > { %v5016_v42 = vsel %vm4933_vm4, %v5015_v25, %v5014_v37  ;;  %v4807_v16 = vxor.u32 2147483648, %v4806_v54  ;;  %v5078_v60 = vsel %vm5068_vm9, %v5075_v33, %v5077_v32  ;;  %v5080_v44 = vsel %vm5070_vm5, %v5066_v24, 1326507024 }
 0x632   : > { %v5309_v48 = vsub.s32 0, %v11113_v26  ;;  %v5071_v59 = vsel %vm5067_vm1, %v5051_v53, %v5054_v41  ;;  %v5073_v3 = vsel %vm5069_vm13, %v5057_v13, %v5072_v21  ;;  %v5081_v63 = vsel %vm5069_vm13, %v5063_v19, %v5080_v44 }
 0x633   : > { %v5082_v15 = vsel %vm5068_vm9, %v5079_v52, %v5081_v63  ;;  %v11122_v20 = vmul.u32.u64.low %v5083_v6, %v5078_v60  ;;  %v11123_v51 = vmul.u32.u64.high %v5083_v6, %v5078_v60, %v11122_v20  ;;  %v5351_v23 = vshrl.u32 %v5350_v31, 23 }
 0x634   : > { %v5019_v37 = vsel %vm10979_vm7, %v10638_v40, %v5016_v42  ;;  %v6273_v25 = vmin.u32 %v5309_v48, %v11113_v26  ;;  %v11130_v24 = vmul.u32.u64.low %v5083_v6, %v5082_v15  ;;  %v11131_v33 = vmul.u32.u64.high %v5083_v6, %v5082_v15, %v11130_v24 }
 0x635   : > { %6871 = vcosq.f32 %v4707_v47  ;;  %v5074_v41 = vsel %vm5068_vm9, %v5071_v59, %v5073_v3  ;;  %v12114_v13 = vand.u32 2147483647, %v11076_v30  ;;  %v6276_v19 = vadd.s32 4294967169, %v5351_v23 }
 0x636   : > { %6873 = vsinq.f32 %v4707_v47  ;;  %vm5245_vm4 = vcmp.lt.s32.totalorder %v10890_v0, 0  ;;  %v5311_v53 = vclz %v6273_v25  ;;  %v4808_v21 = vsel %vm4725_vm12, %v4807_v16, %v4806_v54 }
 0x637   : > { %6875 = vcosq.f32 %v5019_v37  ;;  %v5093_v29 = vadd.s32 1, %v11123_v51  ;;  %v5357_v32 = vadd.s32 1, %v6276_v19  ;;  %v5329_v52 = vsub.s32 4, %v11101_v28 }
 0x638   : > { %v6274_v61 = vadd.s32 4294967294, %v5311_v53  ;;  %v5090_v42 = vmul.u32 %v5083_v6, %v5074_v41  ;;  %vm5092_vm1 = vc.u32 %v11131_v33, %v11122_v20  ;;  %v5354_v60 = vand.u32 8388607, %v12114_v13 }
 0x639   : > { %v5094_v47 = vsel %vm5092_vm1, %v5093_v29, %v11123_v51  ;;  %vm5358_vm5 = vcmp.gt.s32.totalorder %v5357_v32, 0  ;;  %v4160_v44 = vadd.f32 %v10873_v43, %v10605_v18  ;;  %v11153_v54 = vsel %vm11105_vm3, %v10762_v2, %v4808_v21 }
 0x63a   : > { %vm6275_vm12 = vcmp.lt.s32.totalorder %v6274_v61, 0  ;;  %v5095_v16 = vadd.s32 %v5094_v47, %v5090_v42  ;;  %v5359_v6 = vsel %vm5358_vm5, %v5357_v32, 0  ;;  %6877 = vsinq.f32 %v5019_v37 }
 0x63b   : > { %v12537_v48 = vand.u32 2147483647, %v10890_v0  ;;  %v12538_v51 = vmov 0  ;;  %v5299_v59 = vadd.s32 %v11060_v4, %v11066_v11  ;;  %v5314_v3 = vsel %vm6275_vm12, 0, %v6274_v61 }
 0x63c   : > { %v5361_v18 = vand.u32 31, %v5359_v6  ;;  %v5315_v63 = vsub.s32 32, %v5314_v3  ;;  %v5319_v15 = vsub.s32 4294967266, %v5314_v3  ;;  %v11166_v23 = vsel %vm5245_vm4, %v5329_v52, %v11101_v28 }
 0x63d   : > { %vm11157_vm13 = vcmp.le.f32.partialorder %v12537_v48, 0.7853982  ;;  %12541 = vst [vmem:[#allocation19_spill] sm:$0xff] %v11166_v23  ;;  %v5096_v25 = vadd.s32 536870912, %v5095_v16  ;;  %6879 = vcosq.f32 %v11153_v54  ;;  %v5355_v37 = vor.u32 8388608, %v5354_v60 }
 0x63e   : > { %v12539_v51 = vsel %vm11157_vm13, 4294967295, %v12538_v51  ;;  %v5362_v24 = vsub.s32 32, %v5361_v18  ;;  %v11169_v41 = vmul.f32 30.0, %v4160_v44  ;;  %v5317_v19 = vshrl.u32 %v5299_v59, %v5315_v63 }
 0x63f   : > { %12540 = vst [vmem:[#allocation7_spill] sm:$0xff] %v12539_v51  ;;  %v5320_v53 = vadd.s32 127, %v5319_v15  ;;  %v11171_v21 = vshrl.u32 %v5096_v25, 30  ;;  %v11173_v4 = vshrl.u32 %v5359_v6, 5  ;;  %v11175_v11 = vpop.eup %6871  ;;  %v5316_v29 = vshll.u32 %v11113_v26, %v5314_v3 }
 0x640   : > { %12542 = vst [vmem:[#allocation25_spill] sm:$0xff] %v11169_v41  ;;  %v5365_v28 = vshrl.u32 %v12487_v46, %v5362_v24  ;;  %v5368_v32 = vshrl.u32 %v12488_v8, %v5362_v24  ;;  %v5371_v61 = vshrl.u32 %v12489_v10, %v5362_v24  ;;  %v11181_v52 = vpop.eup %6873  ;;  %v5364_v60 = vshll.u32 %v12340_v27, %v5361_v18 }
 0x641   : > { %v5321_v42 = vshll.u32 %v5320_v53, 23  ;;  %v5098_v47 = vshll.u32 %v11171_v21, 30  ;;  %v5367_v44 = vshll.u32 %v12487_v46, %v5361_v18  ;;  %v11186_v6 = vpop.eup %6875  ;;  %v5318_v48 = vor.u32 %v5317_v19, %v5316_v29 }
 0x642   : > { %12543 = vst [vmem:[#allocation28_spill] sm:$0xff] %v11186_v6  ;;  %v5370_v26 = vshll.u32 %v12488_v8, %v5361_v18  ;;  %v5373_v59 = vshll.u32 %v12489_v10, %v5361_v18  ;;  %v5374_v3 = vshrl.u32 %v12344_v5, %v5362_v24  ;;  %v5366_v25 = vor.u32 %v5365_v28, %v5364_v60 }
 0x643   : > { %v5322_v63 = vor.u32 4788187, %v5321_v42  ;;  %v11191_v15 = vsub.s32 %v5095_v16, %v5098_v47  ;;  %v5369_v53 = vor.u32 %v5368_v32, %v5367_v44  ;;  %v5376_v40 = vshll.u32 %v12344_v5, %v5361_v18 }
 0x644   : > { %v5372_v31 = vor.u32 %v5371_v61, %v5370_v26  ;;  %v5375_v13 = vor.u32 %v5374_v3, %v5373_v59  ;;  %v5377_v17 = vshrl.u32 %v12345_v1, %v5362_v24  ;;  %v5395_v6 = vshll.u32 %v5355_v37, 8  ;;  %v11200_v42 = vpop.eup %6877 }
 0x645   : > { %v5101_v29 = vsub.s32 0, %v11191_v15  ;;  %v5142_v2 = vand.u32 2139095040, %v11169_v41  ;;  %12544 = vst [vmem:[#allocation22_spill] sm:$0xff] %v11200_v42  ;;  %v5325_v16 = vcvt.s32.f32 %v5318_v48  ;;  %v5363_v28 = vshrl.u32 %v12340_v27, %v5362_v24 }
 0x646   : > { %v5378_v32 = vor.u32 %v5377_v17, %v5376_v40  ;;  %vm5379_vm9 = vcmp.lt.s32.totalorder %v11173_v4, 1  ;;  %v5323_v18 = vand.u32 2147483647, %v5322_v63  ;;  %vm5382_vm1 = vcmp.lt.s32.totalorder %v11173_v4, 4 }
 0x647   : > { %v6265_v61 = vmin.u32 %v5101_v29, %v11191_v15  ;;  %v5387_v47 = vsel %vm5379_vm9, %v5366_v25, %v5369_v53  ;;  %v11208_v60 = vpop.eup %6879  ;;  %vm5381_vm5 = vcmp.lt.s32.totalorder %v11173_v4, 3  ;;  %v5388_v37 = vsel %vm5382_vm1, %v5375_v13, 920167782 }
 0x648   : > { %12545 = vst [vmem:[#allocation17_spill] sm:$0xff] %v11208_v60  ;;  %v5391_v44 = vsel %vm5379_vm9, %v5369_v53, %v5372_v31  ;;  %v5392_v24 = vsel %vm5382_vm1, %v5378_v32, 1326507024  ;;  %vm5380_vm12 = vcmp.lt.s32.totalorder %v11173_v4, 2  ;;  %v5384_v17 = vsel %vm5382_vm1, %v5372_v31, 2102212464 }
 0x649   : > { %v5103_v40 = vclz %v6265_v61  ;;  %v5389_v48 = vsel %vm5381_vm5, %v5372_v31, %v5388_v37  ;;  %v5393_v59 = vsel %vm5381_vm5, %v5375_v13, %v5392_v24  ;;  %v12122_v3 = vand.u32 2147483647, %v11169_v41 }
 0x64a   : > { %v5390_v26 = vsel %vm5380_vm12, %v5387_v47, %v5389_v48  ;;  %v5143_v63 = vshrl.u32 %v5142_v2, 23  ;;  %v5326_v29 = vmul.f32 %v5325_v16, %v5323_v18  ;;  %v5383_v32 = vsel %vm5379_vm9, %v5363_v28, %v5366_v25 }
 0x64b   : > { %v6266_v19 = vadd.s32 4294967294, %v5103_v40  ;;  %v5394_v61 = vsel %vm5380_vm12, %v5391_v44, %v5393_v59  ;;  %v5385_v31 = vsel %vm5381_vm5, %v5369_v53, %v5384_v17  ;;  %6881 = vsinq.f32 %v11153_v54 }
 0x64c   : > { %v11227_v37 = vmul.u32.u64.low %v5395_v6, %v5394_v61  ;;  %v11228_v23 = vmul.u32.u64.high %v5395_v6, %v5394_v61, %v11227_v37  ;;  %v6268_v47 = vadd.s32 4294967169, %v5143_v63  ;;  %v5091_v25 = vadd.s32 %v11122_v20, %v11131_v33 }
 0x64d   : > { %vm6267_vm1 = vcmp.lt.s32.totalorder %v6266_v19, 0  ;;  %v11231_v13 = vmul.u32.u64.low %v5395_v6, %v5390_v26  ;;  %v11232_v2 = vmul.u32.u64.high %v5395_v6, %v5390_v26, %v11231_v13  ;;  %v4181_v18 = vadd.f32 %v10873_v43, %v10754_v38 }
 0x64e   : > { %v5106_v16 = vsel %vm6267_vm1, 0, %v6266_v19  ;;  %v5149_v28 = vadd.s32 1, %v6268_v47  ;;  %v5327_v53 = vxor.u32 2147483648, %v5326_v29  ;;  %v5386_v40 = vsel %vm5380_vm12, %v5383_v32, %v5385_v31 }
 0x64f   : > { %v5107_v44 = vsub.s32 32, %v5106_v16  ;;  %v5111_v24 = vsub.s32 4294967266, %v5106_v16  ;;  %vm5404_vm9 = vc.u32 %v11228_v23, %v11231_v13  ;;  %v5146_v54 = vand.u32 8388607, %v12122_v3 }
 0x650   : > { %vm5150_vm5 = vcmp.gt.s32.totalorder %v5149_v28, 0  ;;  %v4173_v20 = vadd.f32 %v10873_v43, %v10780_v22  ;;  %vm5037_vm1 = vcmp.lt.s32.totalorder %v10943_v62, 0  ;;  %v5405_v19 = vadd.s32 1, %v11232_v2 }
 0x651   : > { %v5109_v33 = vshrl.u32 %v5091_v25, %v5107_v44  ;;  %v5112_v38 = vadd.s32 127, %v5111_v24  ;;  %v5151_v17 = vsel %vm5150_vm5, %v5149_v28, 0  ;;  %v5121_v4 = vsub.s32 4, %v11171_v21 }
 0x652   : > { %v5402_v48 = vmul.u32 %v5395_v6, %v5386_v40  ;;  %v5153_v26 = vand.u32 31, %v5151_v17  ;;  %v11250_v59 = vmul.f32 30.0, %v4181_v18  ;;  %v5328_v63 = vsel %vm5245_vm4, %v5327_v53, %v5326_v29 }
 0x653   : > { %v5108_v32 = vshll.u32 %v11191_v15, %v5106_v16  ;;  %v5113_v61 = vshll.u32 %v5112_v38, 23  ;;  %v5406_v22 = vsel %vm5404_vm9, %v5405_v19, %v11232_v2  ;;  %v5147_v37 = vor.u32 8388608, %v5146_v54 }
 0x654   : > { %v5407_v31 = vadd.s32 %v5406_v22, %v5402_v48  ;;  %v11259_v47 = vshrl.u32 %v5151_v17, 5  ;;  %v5154_v25 = vsub.s32 32, %v5153_v26  ;;  %v5156_v18 = vshll.u32 %v12340_v27, %v5153_v26 }
 0x655   : > { %v5110_v6 = vor.u32 %v5109_v33, %v5108_v32  ;;  %v5114_v28 = vor.u32 4788187, %v5113_v61  ;;  %v5159_v44 = vshll.u32 %v12487_v46, %v5153_v26  ;;  %v5162_v53 = vshll.u32 %v12488_v8, %v5153_v26  ;;  %v11266_v24 = vpop.eup %6881 }
 0x656   : > { %v5408_v29 = vadd.s32 536870912, %v5407_v31  ;;  %v5157_v15 = vshrl.u32 %v12487_v46, %v5154_v25  ;;  %v5160_v16 = vshrl.u32 %v12488_v8, %v5154_v25  ;;  %v5163_v40 = vshrl.u32 %v12489_v10, %v5154_v25 }
 0x657   : > { %v5115_v2 = vand.u32 2147483647, %v5114_v28  ;;  %v5165_v54 = vshll.u32 %v12489_v10, %v5153_v26  ;;  %v5166_v33 = vshrl.u32 %v12344_v5, %v5154_v25  ;;  %v5169_v48 = vshrl.u32 %v12345_v1, %v5154_v25 }
 0x658   : > { %v5409_v38 = vshrl.u32 %v5408_v29, 30  ;;  %v5158_v19 = vor.u32 %v5157_v15, %v5156_v18  ;;  %v5161_v17 = vor.u32 %v5160_v16, %v5159_v44  ;;  %v5117_v32 = vcvt.s32.f32 %v5110_v6 }
 0x659   : > { %v5164_v61 = vor.u32 %v5163_v40, %v5162_v53  ;;  %v5167_v22 = vor.u32 %v5166_v33, %v5165_v54  ;;  %v5168_v3 = vshll.u32 %v12344_v5, %v5153_v26  ;;  %v12546_v42 = vand.u32 2147483647, %v10943_v62 }
 0x65a   : > { %v12547_v28 = vmov 0  ;;  %v11282_v60 = vsel %vm5037_vm1, %v5121_v4, %v11171_v21  ;;  %v5410_v18 = vshll.u32 %v5409_v38, 30  ;;  %v11284_v44 = vmul.f32 30.0, %v4173_v20 }
 0x65b   : > { %vm11275_vm4 = vcmp.le.f32.partialorder %v12546_v42, 0.7853982  ;;  %v11288_v6 = vadd.f32 %v10873_v43, %v10867_v39  ;;  %v5331_v26 = vsel %vm11157_vm13, %v10890_v0, %v5328_v63  ;;  %v5118_v42 = vmul.f32 %v5117_v32, %v5115_v2 }
 0x65c   : > { %v12548_v28 = vsel %vm11275_vm4, 4294967295, %v12547_v28  ;;  %v5170_v29 = vor.u32 %v5169_v48, %v5168_v3  ;;  %vm5171_vm12 = vcmp.lt.s32.totalorder %v11259_v47, 1  ;;  %v11294_v15 = vsub.s32 %v5407_v31, %v5410_v18 }
 0x65d   : > { %vm5174_vm9 = vcmp.lt.s32.totalorder %v11259_v47, 4  ;;  %v5179_v21 = vsel %vm5171_vm12, %v5158_v19, %v5161_v17  ;;  %v5187_v20 = vshll.u32 %v5147_v37, 8  ;;  %vm5173_vm10 = vcmp.lt.s32.totalorder %v11259_v47, 3 }
 0x65e   : > { %v5176_v39 = vsel %vm5174_vm9, %v5164_v61, 2102212464  ;;  %v5180_v4 = vsel %vm5174_vm9, %v5167_v22, 920167782  ;;  %v5662_v63 = vand.u32 2139095040, %v11250_v59  ;;  %v5413_v3 = vsub.s32 0, %v11294_v15 }
 0x65f   : > { %v5155_v16 = vshrl.u32 %v12340_v27, %v5154_v25  ;;  %vm5172_vm11 = vcmp.lt.s32.totalorder %v11259_v47, 2  ;;  %v5181_v31 = vsel %vm5173_vm10, %v5164_v61, %v5180_v4  ;;  %v5119_v53 = vxor.u32 2147483648, %v5118_v42 }
 0x660   : > { %v5182_v37 = vsel %vm5172_vm11, %v5179_v21, %v5181_v31  ;;  %v5183_v2 = vsel %vm5171_vm12, %v5161_v17, %v5164_v61  ;;  %v5184_v40 = vsel %vm5174_vm9, %v5170_v29, 1326507024  ;;  %v12549_v54 = vand.u32 2147483647, %v11076_v30 }
 0x661   : > { %v12550_v33 = vmov 0  ;;  %v6277_v25 = vmin.u32 %v5413_v3, %v11294_v15  ;;  %v5175_v48 = vsel %vm5171_vm12, %v5155_v16, %v5158_v19  ;;  %v5177_v32 = vsel %vm5173_vm10, %v5161_v17, %v5176_v39 }
 0x662   : > { %vm11313_vm5 = vcmp.le.f32.partialorder %v12549_v54, 0.7853982  ;;  %v5185_v18 = vsel %vm5173_vm10, %v5167_v22, %v5184_v40  ;;  %v11326_v29 = vmul.u32.u64.low %v5187_v20, %v5182_v37  ;;  %v11327_v21 = vmul.u32.u64.high %v5187_v20, %v5182_v37, %v11326_v29 }
 0x663   : > { %v12551_v33 = vsel %vm11313_vm5, 4294967295, %v12550_v33  ;;  %v5186_v61 = vsel %vm5172_vm11, %v5183_v2, %v5185_v18  ;;  %v5663_v4 = vshrl.u32 %v5662_v63, 23  ;;  %v5415_v31 = vclz %v6277_v25 }
 0x664   : > { %12552 = vst [vmem:[#allocation5_spill] sm:$0xff] %v12551_v33  ;;  %v5433_v54 = vsub.s32 4, %v5409_v38  ;;  %v11330_v3 = vmul.u32.u64.low %v5187_v20, %v5186_v61  ;;  %v11331_v0 = vmul.u32.u64.high %v5187_v20, %v5186_v61, %v11330_v3  ;;  %v5178_v17 = vsel %vm5172_vm11, %v5175_v48, %v5177_v32 }
 0x665   : > { %v6288_v22 = vadd.s32 4294967169, %v5663_v4  ;;  %v4176_v39 = vadd.f32 %v10873_v43, %v10993_v34  ;;  %6883 = vcosq.f32 %v5331_v26  ;;  %v5120_v63 = vsel %vm5037_vm1, %v5119_v53, %v5118_v42 }
 0x666   : > { %v6278_v16 = vadd.s32 4294967294, %v5415_v31  ;;  %v12128_v37 = vand.u32 2147483647, %v11250_v59  ;;  %v5403_v2 = vadd.s32 %v11231_v13, %v11228_v23  ;;  %v5197_v40 = vadd.s32 1, %v11327_v21 }
 0x667   : > { %v5669_v25 = vadd.s32 1, %v6288_v22  ;;  %v5454_v47 = vand.u32 2139095040, %v11284_v44  ;;  %vm12553_vm10 = vcmp.lt.s32.totalorder %v11076_v30, 0  ;;  %v5194_v43 = vmul.u32 %v5187_v20, %v5178_v17 }
 0x668   : > { %vm6279_vm11 = vcmp.lt.s32.totalorder %v6278_v16, 0  ;;  %v11349_v48 = vsel %vm12553_vm10, %v5433_v54, %v5409_v38  ;;  %vm5196_vm1 = vc.u32 %v11331_v0, %v11326_v29  ;;  %v5123_v34 = vsel %vm11275_vm4, %v10943_v62, %v5120_v63 }
 0x669   : > { %12554 = vst [vmem:[#allocation36_spill] sm:$0xff] %v11349_v48  ;;  %v5418_v42 = vsel %vm6279_vm11, 0, %v6278_v16  ;;  %v5198_v23 = vsel %vm5196_vm1, %v5197_v40, %v11327_v21  ;;  %vm5670_vm12 = vcmp.gt.s32.totalorder %v5669_v25, 0  ;;  %v5666_v18 = vand.u32 8388607, %v12128_v37 }
 0x66a   : > { %v5419_v13 = vsub.s32 32, %v5418_v42  ;;  %v5423_v53 = vsub.s32 4294967266, %v5418_v42  ;;  %v5199_v32 = vadd.s32 %v5198_v23, %v5194_v43  ;;  %6885 = vsinq.f32 %v5331_v26 }
 0x66b   : > { %v5671_v20 = vsel %vm5670_vm12, %v5669_v25, 0  ;;  %v5455_v61 = vshrl.u32 %v5454_v47, 23  ;;  %6887 = vcosq.f32 %v5123_v34  ;;  %v5420_v21 = vshll.u32 %v11294_v15, %v5418_v42 }
 0x66c   : > { %v5421_v4 = vshrl.u32 %v5403_v2, %v5419_v13  ;;  %v5424_v31 = vadd.s32 127, %v5423_v53  ;;  %v5200_v54 = vadd.s32 536870912, %v5199_v32  ;;  %6889 = vsinq.f32 %v5123_v34 }
 0x66d   : > { %v5673_v3 = vand.u32 31, %v5671_v20  ;;  %v5667_v26 = vor.u32 8388608, %v5666_v18  ;;  %v11367_v16 = vmul.f32 30.0, %v11288_v6  ;;  %v5672_v25 = vshrl.u32 %v5671_v20, 5 }
 0x66e   : > { %v5425_v22 = vshll.u32 %v5424_v31, 23  ;;  %v11364_v63 = vshrl.u32 %v5200_v54, 30  ;;  %v5422_v40 = vor.u32 %v5421_v4, %v5420_v21  ;;  %v6280_v43 = vadd.s32 4294967169, %v5455_v61 }
 0x66f   : > { %v5674_v47 = vsub.s32 32, %v5673_v3  ;;  %v11369_v2 = vpop.eup %6883  ;;  %v5676_v15 = vshll.u32 %v12340_v27, %v5673_v3  ;;  %v5679_v42 = vshll.u32 %v12487_v46, %v5673_v3  ;;  %v5682_v6 = vshll.u32 %v12488_v8, %v5673_v3 }
 0x670   : > { %12555 = vst [vmem:[#allocation33_spill] sm:$0xff] %v11369_v2  ;;  %v5426_v23 = vor.u32 4788187, %v5425_v22  ;;  %v5202_v34 = vshll.u32 %v11364_v63, 30  ;;  %v11380_v61 = vshll.u32 %v5667_v26, 8  ;;  %v11382_v31 = vmul.f32 30.0, %v4176_v39 }
 0x671   : > { %v5677_v13 = vshrl.u32 %v12487_v46, %v5674_v47  ;;  %v5680_v53 = vshrl.u32 %v12488_v8, %v5674_v47  ;;  %v5683_v18 = vshrl.u32 %v12489_v10, %v5674_v47  ;;  %v5461_v38 = vadd.s32 1, %v6280_v43 }
 0x672   : > { %v5427_v20 = vand.u32 2147483647, %v5426_v23  ;;  %v11378_v4 = vsub.s32 %v5199_v32, %v5202_v34  ;;  %v5429_v19 = vcvt.s32.f32 %v5422_v40  ;;  %v5685_v17 = vshll.u32 %v12489_v10, %v5673_v3 }
 0x673   : > { %v5678_v54 = vor.u32 %v5677_v13, %v5676_v15  ;;  %v5681_v21 = vor.u32 %v5680_v53, %v5679_v42  ;;  %v5684_v22 = vor.u32 %v5683_v18, %v5682_v6  ;;  %v5686_v48 = vshrl.u32 %v12344_v5, %v5674_v47 }
 0x674   : > { %v5205_v37 = vsub.s32 0, %v11378_v4  ;;  %v11387_v2 = vpop.eup %6885  ;;  %v5675_v32 = vshrl.u32 %v12340_v27, %v5674_v47  ;;  %v5688_v26 = vshll.u32 %v12344_v5, %v5673_v3  ;;  %v5689_v39 = vshrl.u32 %v12345_v1, %v5674_v47 }
 0x675   : > { %12556 = vst [vmem:[#allocation30_spill] sm:$0xff] %v11387_v2  ;;  %vm5691_vm9 = vcmp.lt.s32.totalorder %v5672_v25, 1  ;;  %v11392_v23 = vpop.eup %6887  ;;  %v5430_v34 = vmul.f32 %v5429_v19, %v5427_v20  ;;  %v5687_v43 = vor.u32 %v5686_v48, %v5685_v17  ;;  %vm5694_vm11 = vcmp.lt.s32.totalorder %v5672_v25, 4 }
 0x676   : > { %12557 = vst [vmem:[#allocation11_spill] sm:$0xff] %v11392_v23  ;;  %v6269_v40 = vmin.u32 %v5205_v37, %v11378_v4  ;;  %v11395_v15 = vpop.eup %6889  ;;  %v5690_v42 = vor.u32 %v5689_v39, %v5688_v26  ;;  %vm5692_vm10 = vcmp.lt.s32.totalorder %v5672_v25, 2  ;;  %v5696_v13 = vsel %vm5694_vm11, %v5684_v22, 2102212464 }
 0x677   : > { %12558 = vst [vmem:[#allocation6_spill] sm:$0xff] %v11395_v15  ;;  %v5699_v53 = vsel %vm5691_vm9, %v5678_v54, %v5681_v21  ;;  %vm5693_vm1 = vcmp.lt.s32.totalorder %v5672_v25, 3  ;;  %v5700_v18 = vsel %vm5694_vm11, %v5687_v43, 920167782  ;;  %v5703_v3 = vsel %vm5691_vm9, %v5681_v21, %v5684_v22 }
 0x678   : > { %v5207_v6 = vclz %v6269_v40  ;;  %v5695_v2 = vsel %vm5691_vm9, %v5675_v32, %v5678_v54  ;;  %v5697_v47 = vsel %vm5693_vm1, %v5681_v21, %v5696_v13  ;;  %v5701_v51 = vsel %vm5693_vm1, %v5684_v22, %v5700_v18 }
 0x679   : > { %v5704_v62 = vsel %vm5694_vm11, %v5690_v42, 1326507024  ;;  %v5702_v19 = vsel %vm5692_vm10, %v5699_v53, %v5701_v51  ;;  %vm5462_vm12 = vcmp.gt.s32.totalorder %v5461_v38, 0  ;;  %v5431_v48 = vxor.u32 2147483648, %v5430_v34 }
 0x67a   : > { %v6270_v23 = vadd.s32 4294967294, %v5207_v6  ;;  %v5705_v37 = vsel %vm5693_vm1, %v5687_v43, %v5704_v62  ;;  %v11400_v20 = vmul.u32.u64.low %v11380_v61, %v5702_v19  ;;  %v11401_v26 = vmul.u32.u64.high %v11380_v61, %v5702_v19, %v11400_v20 }
 0x67b   : > { %v5706_v17 = vsel %vm5692_vm10, %v5703_v3, %v5705_v37  ;;  %v5698_v39 = vsel %vm5692_vm10, %v5695_v2, %v5697_v47  ;;  %v5195_v51 = vadd.s32 %v11326_v29, %v11331_v0  ;;  %v12559_v22 = vand.u32 2147483647, %v11284_v44 }
 0x67c   : > { %vm6271_vm13 = vcmp.lt.s32.totalorder %v6270_v23, 0  ;;  %v11406_v54 = vmul.u32.u64.low %v11380_v61, %v5706_v17  ;;  %v11407_v21 = vmul.u32.u64.high %v11380_v61, %v5706_v17, %v11406_v54  ;;  %v5463_v40 = vsel %vm5462_vm12, %v5461_v38, 0 }
 0x67d   : > { %v5210_v62 = vsel %vm6271_vm13, 0, %v6270_v23  ;;  %v11413_v32 = vand.u32 8388607, %v12559_v22  ;;  %vm5141_vm9 = vcmp.lt.s32.totalorder %v11169_v41, 0  ;;  %v5225_v25 = vsub.s32 4, %v11364_v63 }
 0x67e   : > { %v5211_v43 = vsub.s32 32, %v5210_v62  ;;  %v5215_v42 = vsub.s32 4294967266, %v5210_v62  ;;  %vm12560_vm11 = vcmp.lt.s32.totalorder %v11076_v30, 0  ;;  %v5714_v53 = vmul.u32 %v11380_v61, %v5698_v39 }
 0x67f   : > { %v5432_v13 = vsel %vm12560_vm11, %v5431_v48, %v5430_v34  ;;  %v5717_v0 = vadd.s32 1, %v11401_v26  ;;  %v5465_v29 = vand.u32 31, %v5463_v40  ;;  %v5212_v23 = vshll.u32 %v11378_v4, %v5210_v62 }
 0x680   : > { %v5213_v6 = vshrl.u32 %v5195_v51, %v5211_v43  ;;  %v5216_v38 = vadd.s32 127, %v5215_v42  ;;  %vm5716_vm13 = vc.u32 %v11407_v21, %v11400_v20  ;;  %v5464_v3 = vshrl.u32 %v5463_v40, 5 }
 0x681   : > { %v5718_v18 = vsel %vm5716_vm13, %v5717_v0, %v11401_v26  ;;  %v5466_v47 = vsub.s32 32, %v5465_v29  ;;  %v5468_v19 = vshll.u32 %v12340_v27, %v5465_v29  ;;  %v5471_v61 = vshll.u32 %v12487_v46, %v5465_v29 }
 0x682   : > { %v5214_v37 = vor.u32 %v5213_v6, %v5212_v23  ;;  %v5217_v34 = vshll.u32 %v5216_v38, 23  ;;  %v5719_v48 = vadd.s32 %v5718_v18, %v5714_v53  ;;  %v5474_v39 = vshll.u32 %v12488_v8, %v5465_v29 }
 0x683   : > { %v5469_v17 = vshrl.u32 %v12487_v46, %v5466_v47  ;;  %v5472_v4 = vshrl.u32 %v12488_v8, %v5466_v47  ;;  %v5475_v54 = vshrl.u32 %v12489_v10, %v5466_v47  ;;  %v5477_v22 = vshll.u32 %v12489_v10, %v5465_v29 }
 0x684   : > { %v5218_v51 = vor.u32 4788187, %v5217_v34  ;;  %v5221_v62 = vcvt.s32.f32 %v5214_v37  ;;  %v5720_v26 = vadd.s32 536870912, %v5719_v48  ;;  %v5478_v53 = vshrl.u32 %v12344_v5, %v5466_v47 }
 0x685   : > { %v5470_v40 = vor.u32 %v5469_v17, %v5468_v19  ;;  %v5473_v43 = vor.u32 %v5472_v4, %v5471_v61  ;;  %v5476_v42 = vor.u32 %v5475_v54, %v5474_v39  ;;  %v5480_v6 = vshll.u32 %v12344_v5, %v5465_v29 }
 0x686   : > { %v5219_v0 = vand.u32 2147483647, %v5218_v51  ;;  %v11434_v23 = vshrl.u32 %v5720_v26, 30  ;;  %v5481_v38 = vshrl.u32 %v12345_v1, %v5466_v47  ;;  %v5435_v18 = vsel %vm11313_vm5, %v11076_v30, %v5432_v13 }
 0x687   : > { %v11444_v37 = vsel %vm5141_vm9, %v5225_v25, %v11364_v63  ;;  %v5459_v19 = vor.u32 8388608, %v11413_v32  ;;  %v5479_v34 = vor.u32 %v5478_v53, %v5477_v22  ;;  %v12563_v61 = vand.u32 2147483647, %v11169_v41 }
 0x688   : > { %12561 = vst [vmem:[#allocation31_spill] sm:$0xff] %v11434_v23  ;;  %12562 = vst [vmem:[#allocation40_spill] sm:$0xff] %v11444_v37  ;;  %v12564_v17 = vmov 0  ;;  %v5222_v29 = vmul.f32 %v5221_v62, %v5219_v0  ;;  %v5722_v4 = vshll.u32 %v11434_v23, 30  ;;  %v5482_v39 = vor.u32 %v5481_v38, %v5480_v6 }
 0x689   : > { %vm11449_vm10 = vcmp.le.f32.partialorder %v12563_v61, 0.7853982  ;;  %v5766_v13 = vand.u32 2139095040, %v11367_v16  ;;  %v5467_v54 = vshrl.u32 %v12340_v27, %v5466_v47  ;;  %vm5483_vm1 = vcmp.lt.s32.totalorder %v5464_v3, 1 }
 0x68a   : > { %v12565_v17 = vsel %vm11449_vm10, 4294967295, %v12564_v17  ;;  %vm5484_vm12 = vcmp.lt.s32.totalorder %v5464_v3, 2  ;;  %vm5486_vm11 = vcmp.lt.s32.totalorder %v5464_v3, 4  ;;  %v11456_v63 = vsub.s32 %v5719_v48, %v5722_v4  ;;  %v5868_v48 = vld [vmem:[%s11926_s6] sm:$0x7] }
 0x68b   : > { %vm5485_vm13 = vcmp.lt.s32.totalorder %v5464_v3, 3  ;;  %v5488_v32 = vsel %vm5486_vm11, %v5476_v42, 2102212464  ;;  %v5491_v25 = vsel %vm5483_vm1, %v5470_v40, %v5473_v43  ;;  %v5223_v51 = vxor.u32 2147483648, %v5222_v29  ;;  %5871 = vperm.xlu1 %6717, %v5868_v48  }
 0x68c   : > { %v5492_v26 = vsel %vm5486_vm11, %v5479_v34, 920167782  ;;  %v5495_v22 = vsel %vm5483_vm1, %v5473_v43, %v5476_v42  ;;  %v5496_v53 = vsel %vm5486_vm11, %v5482_v39, 1326507024  ;;  %v5725_v62 = vsub.s32 0, %v11456_v63 }
 0x68d   : > { %v5487_v0 = vsel %vm5483_vm1, %v5467_v54, %v5470_v40  ;;  %v5489_v6 = vsel %vm5485_vm13, %v5473_v43, %v5488_v32  ;;  %v5493_v38 = vsel %vm5485_vm13, %v5476_v42, %v5492_v26  ;;  %6891 = vcosq.f32 %v5435_v18 }
 0x68e   : > { %v5494_v47 = vsel %vm5484_vm12, %v5491_v25, %v5493_v38  ;;  %v5497_v61 = vsel %vm5485_vm13, %v5479_v34, %v5496_v53  ;;  %v5499_v2 = vshll.u32 %v5459_v19, 8  ;;  %v6289_v4 = vmin.u32 %v5725_v62, %v11456_v63 }
 0x68f   : > { %v5498_v30 = vsel %vm5484_vm12, %v5495_v22, %v5497_v61  ;;  %v5767_v33 = vshrl.u32 %v5766_v13, 23  ;;  %v12566_v39 = vand.u32 2147483647, %v11367_v16  ;;  %v5224_v40 = vsel %vm5141_vm9, %v5223_v51, %v5222_v29 }
 0x690   : > { %v5490_v43 = vsel %vm5484_vm12, %v5487_v0, %v5489_v6  ;;  %v11470_v42 = vmul.u32.u64.low %v5499_v2, %v5498_v30  ;;  %v11471_v19 = vmul.u32.u64.high %v5499_v2, %v5498_v30, %v11470_v42  ;;  %v5727_v34 = vclz %v6289_v4 }
 0x691   : > { %v5770_v15 = vand.u32 8388607, %v12566_v39  ;;  %v11473_v54 = vmul.u32.u64.low %v5499_v2, %v5494_v47  ;;  %v11474_v32 = vmul.u32.u64.high %v5499_v2, %v5494_v47, %v11473_v54  ;;  %v6292_v25 = vadd.s32 4294967169, %v5767_v33 }
 0x692   : > { %6893 = vsinq.f32 %v5435_v18  ;;  %v5715_v26 = vadd.s32 %v11400_v20, %v11407_v21  ;;  %v5558_v3 = vand.u32 2139095040, %v11382_v31  ;;  %v5227_v30 = vsel %vm11449_vm10, %v11169_v41, %v5224_v40 }
 0x693   : > { %v6290_v29 = vadd.s32 4294967294, %v5727_v34  ;;  %v5773_v51 = vadd.s32 1, %v6292_v25  ;;  %v5506_v53 = vmul.u32 %v5499_v2, %v5490_v43  ;;  %vm5508_vm9 = vc.u32 %v11471_v19, %v11473_v54 }
 0x694   : > { %v5771_v33 = vor.u32 8388608, %v5770_v15  ;;  %v12140_v18 = vmov 0.0|0.0   ;;  %v5509_v20 = vadd.s32 1, %v11474_v32  ;;  %v12139_v21 = vand.u32 2147483647, %v11382_v31 }
 0x695   : > { %6429 = vmatprep.subr.bf16.mxu0 %v12140_v18  ;;  %vm6291_vm1 = vcmp.lt.s32.totalorder %v6290_v29, 0  ;;  %vm5774_vm12 = vcmp.gt.s32.totalorder %v5773_v51, 0  ;;  %6895 = vcosq.f32 %v5227_v30  ;;  %v5559_v6 = vshrl.u32 %v5558_v3, 23 }
 0x696   : > { %v5730_v62 = vsel %vm6291_vm1, 0, %v6290_v29  ;;  %v5775_v0 = vsel %vm5774_vm12, %v5773_v51, 0  ;;  %6897 = vsinq.f32 %v5227_v30  ;;  %v5510_v47 = vsel %vm5508_vm9, %v5509_v20, %v11474_v32 }
 0x697   : > { %v5731_v38 = vsub.s32 32, %v5730_v62  ;;  %v5735_v2 = vsub.s32 4294967266, %v5730_v62  ;;  %v11493_v61 = vpop.eup %6891  ;;  %v5511_v15 = vadd.s32 %v5510_v47, %v5506_v53  ;;  %v5777_v48 = vand.u32 31, %v5775_v0 }
 0x698   : > { %12567 = vst [vmem:[#allocation34_spill] sm:$0xff] %v11493_v61  ;;  %v11495_v4 = vshll.u32 %v5771_v33, 8  ;;  %v5732_v40 = vshll.u32 %v11456_v63, %v5730_v62  ;;  %v11501_v34 = vand.u32 8388607, %v12139_v21  ;;  %v5776_v3 = vshrl.u32 %v5775_v0, 5 }
 0x699   : > { %v5733_v43 = vshrl.u32 %v5715_v26, %v5731_v38  ;;  %v5736_v42 = vadd.s32 127, %v5735_v2  ;;  %v5512_v25 = vadd.s32 536870912, %v5511_v15  ;;  %v5778_v30 = vsub.s32 32, %v5777_v48 }
 0x69a   : > { %v6284_v32 = vadd.s32 4294967169, %v5559_v6  ;;  %v5780_v53 = vshll.u32 %v12340_v27, %v5777_v48  ;;  %v5783_v33 = vshll.u32 %v12487_v46, %v5777_v48  ;;  %v5786_v38 = vshll.u32 %v12488_v8, %v5777_v48 }
 0x69b   : > { %v5734_v29 = vor.u32 %v5733_v43, %v5732_v40  ;;  %v5737_v51 = vshll.u32 %v5736_v42, 23  ;;  %v5513_v63 = vshrl.u32 %v5512_v25, 30  ;;  %v5781_v26 = vshrl.u32 %v12487_v46, %v5778_v30 }
 0x69c   : > { %v11505_v20 = vpop.eup %6893  ;;  %v5784_v62 = vshrl.u32 %v12488_v8, %v5778_v30  ;;  %v5787_v6 = vshrl.u32 %v12489_v10, %v5778_v30  ;;  %v5789_v2 = vshll.u32 %v12489_v10, %v5777_v48  ;;  %v5790_v47 = vshrl.u32 %v12344_v5, %v5778_v30 }
 0x69d   : > { %12568 = vst [vmem:[#allocation42_spill] sm:$0xff] %v11505_v20  ;;  %v5738_v0 = vor.u32 4788187, %v5737_v51  ;;  %v5741_v40 = vcvt.s32.f32 %v5734_v29  ;;  %v5514_v43 = vshll.u32 %v5513_v63, 30  ;;  %v5779_v42 = vshrl.u32 %v12340_v27, %v5778_v30 }
 0x69e   : > { %v5782_v25 = vor.u32 %v5781_v26, %v5780_v53  ;;  %v12569_v22 = vand.u32 2147483647, %v11250_v59  ;;  %v5785_v21 = vor.u32 %v5784_v62, %v5783_v33  ;;  %v5788_v18 = vor.u32 %v5787_v6, %v5786_v38 }
 0x69f   : > { %v5739_v51 = vand.u32 2147483647, %v5738_v0  ;;  %v5791_v39 = vor.u32 %v5790_v47, %v5789_v2  ;;  %v11522_v23 = vpop.eup %6895  ;;  %v11524_v61 = vsub.s32 %v5511_v15, %v5514_v43  ;;  %v5537_v20 = vsub.s32 4, %v5513_v63 }
 0x6a0   : > { %vm11518_vm9 = vcmp.le.f32.partialorder %v12569_v22, 0.7853982  ;;  %v5792_v29 = vshll.u32 %v12344_v5, %v5777_v48  ;;  %v5793_v41 = vshrl.u32 %v12345_v1, %v5778_v30  ;;  %v11528_v53 = vpop.eup %6897  ;;  %v12572_v22 = vand.u32 2147483647, %v11284_v44 }
 0x6a1   : > { %v5742_v26 = vmul.f32 %v5741_v40, %v5739_v51  ;;  %vm5795_vm12 = vcmp.lt.s32.totalorder %v5776_v3, 1  ;;  %vm5796_vm13 = vcmp.lt.s32.totalorder %v5776_v3, 2  ;;  %vm5797_vm11 = vcmp.lt.s32.totalorder %v5776_v3, 3 }
 0x6a2   : > { %vm11532_vm1 = vcmp.le.f32.partialorder %v12572_v22, 0.7853982  ;;  %v5517_v15 = vsub.s32 0, %v11524_v61  ;;  %v5794_v33 = vor.u32 %v5793_v41, %v5792_v29  ;;  %vm5798_vm5 = vcmp.lt.s32.totalorder %v5776_v3, 4 }
 0x6a3   : > { %v5799_v62 = vsel %vm5795_vm12, %v5779_v42, %v5782_v25  ;;  %v5743_v48 = vxor.u32 2147483648, %v5742_v26  ;;  %v5800_v38 = vsel %vm5798_vm5, %v5788_v18, 2102212464  ;;  %v5803_v30 = vsel %vm5795_vm12, %v5782_v25, %v5785_v21 }
 0x6a4   : > { %v5804_v0 = vsel %vm5798_vm5, %v5791_v39, 920167782  ;;  %v6281_v6 = vmin.u32 %v5517_v15, %v11524_v61  ;;  %v5801_v2 = vsel %vm5797_vm11, %v5785_v21, %v5800_v38  ;;  %v5807_v40 = vsel %vm5795_vm12, %v5785_v21, %v5788_v18 }
 0x6a5   : > { %v5805_v47 = vsel %vm5797_vm11, %v5788_v18, %v5804_v0  ;;  %vm12575_vm10 = vcmp.lt.s32.totalorder %v11250_v59, 0  ;;  %v5808_v22 = vsel %vm5798_vm5, %v5794_v33, 1326507024  ;;  %v5565_v41 = vadd.s32 1, %v6284_v32 }
 0x6a6   : > { %v5744_v43 = vsel %vm12575_vm10, %v5743_v48, %v5742_v26  ;;  %v5806_v51 = vsel %vm5796_vm13, %v5803_v30, %v5805_v47  ;;  %v5519_v29 = vclz %v6281_v6  ;;  %vm12576_vm4 = vcmp.lt.s32.totalorder %v11284_v44, 0 }
 0x6a7   : > { %v11545_v42 = vsel %vm12576_vm4, %v5537_v20, %v5513_v63  ;;  %v5809_v25 = vsel %vm5797_vm11, %v5791_v39, %v5808_v22  ;;  %v12577_v15 = vsub.s32 4, %v10505_v7  ;;  %vm12578_vm7 = vcmp.lt.s32.totalorder %v10364_v56, 0 }
 0x6a8   : > { %v5802_v21 = vsel %vm5796_vm13, %v5799_v62, %v5801_v2  ;;  %v5810_v26 = vsel %vm5796_vm13, %v5807_v40, %v5809_v25  ;;  %v11556_v33 = vmul.u32.u64.low %v11495_v4, %v5806_v51  ;;  %v11557_v32 = vmul.u32.u64.high %v11495_v4, %v5806_v51, %v11556_v33 }
 0x6a9   : > { %v4290_v18 = vsel %vm12578_vm7, %v12577_v15, %v10505_v7  ;;  %v5747_v20 = vsel %vm11518_vm9, %v11250_v59, %v5744_v43  ;;  %v6282_v39 = vadd.s32 4294967294, %v5519_v29  ;;  %v5507_v7 = vadd.s32 %v11473_v54, %v11471_v19 }
 0x6aa   : > { %v11564_v63 = vmul.u32.u64.low %v11495_v4, %v5810_v26  ;;  %v11565_v48 = vmul.u32.u64.high %v11495_v4, %v5810_v26, %v11564_v63  ;;  %v5563_v3 = vor.u32 8388608, %v11501_v34  ;;  %vm5566_vm7 = vcmp.gt.s32.totalorder %v5565_v41, 0 }
 0x6ab   : > { %v4292_v62 = vsel %vm10729_vm14, 0, %v4290_v18  ;;  %vm6283_vm4 = vcmp.lt.s32.totalorder %v6282_v39, 0  ;;  %v5540_v38 = vsel %vm11532_vm1, 0, %v11545_v42  ;;  %v5818_v30 = vmul.u32 %v11495_v4, %v5802_v21 }
 0x6ac   : > { %v5567_v0 = vsel %vm5566_vm7, %v5565_v41, 0  ;;  %6899 = vcosq.f32 %v5747_v20  ;;  %v5522_v6 = vsel %vm6283_vm4, 0, %v6282_v39  ;;  %v5821_v2 = vadd.s32 1, %v11557_v32 }
 0x6ad   : > { %v5569_v47 = vand.u32 31, %v5567_v0  ;;  %6901 = vsinq.f32 %v5747_v20  ;;  %v5523_v19 = vsub.s32 32, %v5522_v6  ;;  %v5527_v54 = vsub.s32 4294967266, %v5522_v6 }
 0x6ae   : > { %v4296_v40 = vadd.s32 3, %v4292_v62  ;;  %v5524_v12 = vshll.u32 %v11524_v61, %v5522_v6  ;;  %vm5820_vm14 = vc.u32 %v11565_v48, %v11556_v33  ;;  %v5568_v43 = vshrl.u32 %v5567_v0, 5 }
 0x6af   : > { %v5570_v51 = vsub.s32 32, %v5569_v47  ;;  %v5525_v22 = vshrl.u32 %v5507_v7, %v5523_v19  ;;  %v5528_v29 = vadd.s32 127, %v5527_v54  ;;  %v5822_v4 = vsel %vm5820_vm14, %v5821_v2, %v11557_v32 }
 0x6b0   : > { %v5572_v41 = vshll.u32 %v12340_v27, %v5569_v47  ;;  %v5823_v25 = vadd.s32 %v5822_v4, %v5818_v30  ;;  %v5575_v18 = vshll.u32 %v12487_v46, %v5569_v47  ;;  %v5578_v20 = vshll.u32 %v12488_v8, %v5569_v47 }
 0x6b1   : > { %v5573_v15 = vshrl.u32 %v12487_v46, %v5570_v51  ;;  %v5576_v21 = vshrl.u32 %v12488_v8, %v5570_v51  ;;  %v5526_v26 = vor.u32 %v5525_v22, %v5524_v12  ;;  %v5529_v61 = vshll.u32 %v5528_v29, 23 }
 0x6b2   : > { %v5579_v39 = vshrl.u32 %v12489_v10, %v5570_v51  ;;  %v5824_v63 = vadd.s32 536870912, %v5823_v25  ;;  %v5581_v62 = vshll.u32 %v12489_v10, %v5569_v47  ;;  %v5582_v32 = vshrl.u32 %v12344_v5, %v5570_v51 }
 0x6b3   : > { %v5574_v7 = vor.u32 %v5573_v15, %v5572_v41  ;;  %v5530_v0 = vor.u32 4788187, %v5529_v61  ;;  %v5571_v30 = vshrl.u32 %v12340_v27, %v5570_v51  ;;  %v5577_v6 = vor.u32 %v5576_v21, %v5575_v18 }
 0x6b4   : > { %v5580_v2 = vor.u32 %v5579_v39, %v5578_v20  ;;  %v11590_v46 = vshrl.u32 %v5824_v63, 30  ;;  %v5583_v19 = vor.u32 %v5582_v32, %v5581_v62  ;;  %v5584_v54 = vshll.u32 %v12344_v5, %v5569_v47 }
 0x6b5   : > { %v5585_v8 = vshrl.u32 %v12345_v1, %v5570_v51  ;;  %v5531_v12 = vand.u32 2147483647, %v5530_v0  ;;  %v5533_v22 = vcvt.s32.f32 %v5526_v26  ;;  %vm5587_vm5 = vcmp.lt.s32.totalorder %v5568_v43, 1 }
 0x6b6   : > { %vm5589_vm10 = vcmp.lt.s32.totalorder %v5568_v43, 3  ;;  %v11594_v29 = vpop.eup %6899  ;;  %v5826_v10 = vshll.u32 %v11590_v46, 30  ;;  %vm5590_vm11 = vcmp.lt.s32.totalorder %v5568_v43, 4  ;;  %v5591_v27 = vsel %vm5587_vm5, %v5571_v30, %v5574_v7 }
 0x6b7   : > { %v5586_v4 = vor.u32 %v5585_v8, %v5584_v54  ;;  %v11598_v41 = vpop.eup %6901  ;;  %v5534_v15 = vmul.f32 %v5533_v22, %v5531_v12  ;;  %v5592_v18 = vsel %vm5590_vm11, %v5580_v2, 2102212464  ;;  %v5595_v5 = vsel %vm5587_vm5, %v5574_v7, %v5577_v6 }
 0x6b8   : > { %v5596_v1 = vsel %vm5590_vm11, %v5583_v19, 920167782  ;;  %v11603_v47 = vsub.s32 %v5823_v25, %v5826_v10  ;;  %vm5588_vm13 = vcmp.lt.s32.totalorder %v5568_v43, 2  ;;  %v5593_v51 = vsel %vm5589_vm10, %v5577_v6, %v5592_v18 }
 0x6b9   : > { %v5597_v21 = vsel %vm5589_vm10, %v5580_v2, %v5596_v1  ;;  %v5535_v26 = vxor.u32 2147483648, %v5534_v15  ;;  %v5603_v20 = vshll.u32 %v5563_v3, 8  ;;  %v4300_v39 = vxor.u32 2147483648, %v10818_v36 }
 0x6ba   : > { %v5598_v61 = vsel %vm5588_vm13, %v5595_v5, %v5597_v21  ;;  %v5829_v63 = vsub.s32 0, %v11603_v47  ;;  %v5594_v7 = vsel %vm5588_vm13, %v5591_v27, %v5593_v51  ;;  %v5599_v25 = vsel %vm5587_vm5, %v5577_v6, %v5580_v2 }
 0x6bb   : > { %v5600_v62 = vsel %vm5590_vm11, %v5586_v4, 1326507024  ;;  %vm12579_vm12 = vcmp.lt.s32.totalorder %v11284_v44, 0  ;;  %v11618_v30 = vmul.u32.u64.low %v5603_v20, %v5598_v61  ;;  %v11619_v54 = vmul.u32.u64.high %v5603_v20, %v5598_v61, %v11618_v30 }
 0x6bc   : > { %v5536_v32 = vsel %vm12579_vm12, %v5535_v26, %v5534_v15  ;;  %v5601_v0 = vsel %vm5589_vm10, %v5583_v19, %v5600_v62  ;;  %v6293_v3 = vmin.u32 %v5829_v63, %v11603_v47  ;;  %v4297_v6 = vand.u32 3, %v4296_v40 }
 0x6bd   : > { %v5539_v34 = vsel %vm11532_vm1, %v11284_v44, %v5536_v32  ;;  %v5602_v8 = vsel %vm5588_vm13, %v5599_v25, %v5601_v0  ;;  %v4303_v22 = vxor.u32 2147483648, %v10814_v57  ;;  %v4393_v19 = vsub.s32 4, %v10616_v9 }
 0x6be   : > { %v11627_v2 = vmul.u32.u64.low %v5603_v20, %v5602_v8  ;;  %v11628_v12 = vmul.u32.u64.high %v5603_v20, %v5602_v8, %v11627_v2  ;;  %v5819_v10 = vadd.s32 %v11556_v33, %v11565_v48  ;;  %v5831_v4 = vclz %v6293_v3 }
 0x6bf   : > { %v5610_v27 = vmul.u32 %v5603_v20, %v5594_v7  ;;  %vm4295_vm7 = vweird.f32 %v10364_v56  ;;  %6903 = vcosq.f32 %v5539_v34  ;;  %v5613_v15 = vadd.s32 1, %v11619_v54 }
 0x6c0   : > { %vm4298_vm4 = vcmp.lt.s32.totalorder %v4297_v6, 2  ;;  %vm12580_vm14 = vcmp.lt.s32.totalorder %v10379_v50, 0  ;;  %v6294_v43 = vadd.s32 4294967294, %v5831_v4  ;;  %vm4299_vm5 = vcmp.eq.s32.totalorder %v4297_v6, 0 }
 0x6c1   : > { %v4394_v40 = vsel %vm12580_vm14, %v4393_v19, %v10616_v9  ;;  %vm4302_vm10 = vcmp.eq.s32.totalorder %v4297_v6, 2  ;;  %vm5612_vm11 = vc.u32 %v11628_v12, %v11618_v30  ;;  %v4301_v33 = vsel %vm4299_vm5, %v10814_v57, %v4300_v39 }
 0x6c2   : > { %v4396_v18 = vsel %vm10906_vm8, 0, %v4394_v40  ;;  %v4304_v48 = vsel %vm4302_vm10, %v4303_v22, %v10818_v36  ;;  %vm6295_vm13 = vcmp.lt.s32.totalorder %v6294_v43, 0  ;;  %v5614_v1 = vsel %vm5612_vm11, %v5613_v15, %v11619_v54  ;;  %v12588_v40 = vld [vmem:[#allocation50_spill] sm:$0xff] }
 0x6c3   : > { %v4400_v5 = vadd.s32 3, %v4396_v18  ;;  %vm4399_vm12 = vweird.f32 %v10379_v50  ;;  %v4404_v9 = vxor.u32 2147483648, %v11040_v49  ;;  %v5834_v51 = vsel %vm6295_vm13, 0, %v6294_v43 }
 0x6c4   : > { %v5615_v21 = vadd.s32 %v5614_v1, %v5610_v27  ;;  %v4407_v45 = vxor.u32 2147483648, %v11034_v35  ;;  %v5835_v61 = vsub.s32 32, %v5834_v51  ;;  %v5836_v20 = vshll.u32 %v11603_v47, %v5834_v51  ;;  %v12582_v47 = vld [vmem:[#allocation16_spill] sm:$0xff] }
 0x6c5   : > { %v4401_v26 = vand.u32 3, %v4400_v5  ;;  %v5839_v63 = vsub.s32 4294967266, %v5834_v51  ;;  %v4305_v57 = vsel %vm4298_vm4, %v4301_v33, %v4304_v48  ;;  %v12583_v8 = vsel %vm10652_vm2, 0, %v12582_v47  ;;  %v12590_v48 = vld [vmem:[#allocation49_spill] sm:$0xff]  ;;  %v12599_v47 = vld [vmem:[#allocation46_spill] sm:$0xff] }
 0x6c6   : > { %v5616_v36 = vadd.s32 536870912, %v5615_v21  ;;  %v5837_v39 = vshrl.u32 %v5819_v10, %v5835_v61  ;;  %v4306_v0 = vsel %vm4295_vm7, nan, %v4305_v57  ;;  %v4504_v6 = vadd.s32 3, %v12583_v8 }
 0x6c7   : > { %vm4402_vm8 = vcmp.lt.s32.totalorder %v4401_v26, 2  ;;  %vm4403_vm14 = vcmp.eq.s32.totalorder %v4401_v26, 0  ;;  %vm4406_vm5 = vcmp.eq.s32.totalorder %v4401_v26, 2  ;;  %v5840_v7 = vadd.s32 127, %v5839_v63  ;;  %v12592_v26 = vld [vmem:[#allocation9_spill] sm:$0xff] }
 0x6c8   : > { %v4405_v25 = vsel %vm4403_vm14, %v11034_v35, %v4404_v9  ;;  %v4408_v62 = vsel %vm4406_vm5, %v4407_v45, %v11040_v49  ;;  %v5617_v32 = vshrl.u32 %v5616_v36, 30  ;;  %v5838_v2 = vor.u32 %v5837_v39, %v5836_v20  ;;  %v12587_v49 = vld [vmem:[#allocation53_spill] sm:$0xff]  ;;  %v12597_v36 = vld [vmem:[#allocation27_spill] sm:$0xff] }
 0x6c9   : > { %v4409_v54 = vsel %vm4402_vm8, %v4405_v25, %v4408_v62  ;;  %v5841_v22 = vshll.u32 %v5840_v7, 23  ;;  %vm12584_vm4 = vcmask 261120   ;;  %v4508_v56 = vxor.u32 2147483648, %v12587_v49  ;;  %v11668_v10 = vpop.eup %6903  ;;  %v12598_v62 = vld [vmem:[#allocation8_spill] sm:$0xff] }
 0x6ca   : > { %v4410_v19 = vsel %vm4399_vm12, nan, %v4409_v54  ;;  %vm11663_vm10 = vmpackc.low %vm12584_vm4, %vm12584_vm4  ;;  %vm5765_vm7 = vcmp.lt.s32.totalorder %v11367_v16, 0  ;;  %v5618_v4 = vshll.u32 %v5617_v32, 30  ;;  %v4505_v15 = vand.u32 3, %v4504_v6 }
 0x6cb   : > { %v6430_v27 = vpack.c.bf16 %v4410_v19, %v4306_v0  ;;  %v4511_v43 = vxor.u32 2147483648, %v12588_v40  ;;  %6905 = vsinq.f32 %v5539_v34  ;;  %v5842_v50 = vor.u32 4788187, %v5841_v22 }
 0x6cc   : > { %v5849_v18 = vsub.s32 4, %v11590_v46  ;;  %v12591_v5 = vsel %vm10743_vm15, 0, %v12590_v48  ;;  %vm5557_vm2 = vcmp.lt.s32.totalorder %v11382_v31, 0  ;;  %v5611_v9 = vadd.s32 %v11618_v30, %v11628_v12 }
 0x6cd   : > { %v4608_v1 = vadd.s32 3, %v12591_v5  ;;  %v11680_v51 = vsub.s32 %v5615_v21, %v5618_v4  ;;  %6432 = vmatpush3.bf16.xpose.msk.msra.mxu0 %vm11663_vm10, %v6430_v27  ;;  %vm4503_vm11 = vweird.f32 %v12592_v26  ;;  %vm4507_vm13 = vcmp.eq.s32.totalorder %v4505_v15, 0 }
 0x6ce   : > { %v12593_v34 = vand.u32 2147483647, %v11367_v16  ;;  %v5843_v61 = vand.u32 2147483647, %v5842_v50  ;;  %v5845_v20 = vcvt.s32.f32 %v5838_v2  ;;  %v12596_v63 = vmov 0.0|0.0   ;;  %v12600_v2 = vld [vmem:[#allocation15_spill] sm:$0xff] }
 0x6cf   : > { %6433 = vmatprep.subr.bf16.mxu0 %v12596_v63  ;;  %v4509_v30 = vsel %vm4507_vm13, %v12588_v40, %v4508_v56  ;;  %vm4510_vm15 = vcmp.eq.s32.totalorder %v4505_v15, 2  ;;  %v5621_v12 = vsub.s32 0, %v11680_v51  ;;  %v4609_v57 = vand.u32 3, %v4608_v1 }
 0x6d0   : > { %vm11687_vm12 = vcmp.le.f32.partialorder %v12593_v34, 0.7853982  ;;  %v4512_v21 = vsel %vm4510_vm15, %v4511_v43, %v12587_v49  ;;  %v4612_v39 = vxor.u32 2147483648, %v12597_v36  ;;  %v5846_v7 = vmul.f32 %v5845_v20, %v5843_v61  ;;  %v12603_v20 = vld [vmem:[#allocation44_spill] sm:$0xff] }
 0x6d1   : > { %v5641_v25 = vsub.s32 4, %v5617_v32  ;;  %vm4506_vm8 = vcmp.lt.s32.totalorder %v4505_v15, 2  ;;  %v4615_v0 = vxor.u32 2147483648, %v12598_v62  ;;  %v6285_v54 = vmin.u32 %v5621_v12, %v11680_v51 }
 0x6d2   : > { %v4513_v3 = vsel %vm4506_vm8, %v4509_v30, %v4512_v21  ;;  %vm4607_vm14 = vweird.f32 %v12599_v47  ;;  %vm4611_vm5 = vcmp.eq.s32.totalorder %v4609_v57, 0  ;;  %v5847_v8 = vxor.u32 2147483648, %v5846_v7 }
 0x6d3   : > { %v4613_v6 = vsel %vm4611_vm5, %v12598_v62, %v4612_v39  ;;  %vm4614_vm4 = vcmp.eq.s32.totalorder %v4609_v57, 2  ;;  %v12601_v22 = vsel %vm10937_vm6, 0, %v12600_v2  ;;  %v5623_v49 = vclz %v6285_v54  ;;  %v12605_v62 = vld [vmem:[#allocation17_spill] sm:$0xff] }
 0x6d4   : > { %v4712_v19 = vadd.s32 3, %v12601_v22  ;;  %vm4610_vm13 = vcmp.lt.s32.totalorder %v4609_v57, 2  ;;  %v4616_v56 = vsel %vm4614_vm4, %v4615_v0, %v12597_v36  ;;  %v4716_v4 = vxor.u32 2147483648, %v11181_v52  ;;  %v12604_v36 = vld [vmem:[#allocation18_spill] sm:$0xff] }
 0x6d5   : > { %v5848_v27 = vsel %vm5765_vm7, %v5847_v8, %v5846_v7  ;;  %v4617_v15 = vsel %vm4610_vm13, %v4613_v6, %v4616_v56  ;;  %v4719_v43 = vxor.u32 2147483648, %v11175_v11  ;;  %v6286_v50 = vadd.s32 4294967294, %v5623_v49  ;;  %v11717_v1 = vpop.eup %6905  ;;  %v12609_v6 = vld [vmem:[#allocation14_spill] sm:$0xff]  ;;  %v12610_v49 = vld [vmem:[#allocation29_spill] sm:$0xff] }
 0x6d6   : > { %v4713_v40 = vand.u32 3, %v4712_v19  ;;  %v4514_v58 = vsel %vm4503_vm11, nan, %v4513_v3  ;;  %v4618_v33 = vsel %vm4607_vm14, nan, %v4617_v15  ;;  %v12602_v48 = vsel %vm11105_vm3, 0, %v11099_v14  ;;  %v12607_v3 = vld [vmem:[#allocation45_spill] sm:$0xff]  ;;  %v12611_v15 = vld [vmem:[#allocation35_spill] sm:$0xff] }
 0x6d7   : > { %v4816_v5 = vadd.s32 3, %v12602_v48  ;;  %v11721_v34 = vsel %vm5557_vm2, %v5641_v25, %v5617_v32  ;;  %v6434_v61 = vpack.c.bf16 %v4618_v33, %v4514_v58  ;;  %vm4711_vm6 = vweird.f32 %v12603_v20 }
 0x6d8   : > { %vm4715_vm15 = vcmp.eq.s32.totalorder %v4713_v40, 0  ;;  %v11727_v26 = vsel %vm11687_vm12, %v11367_v16, %v5848_v27  ;;  %vm6287_vm11 = vcmp.lt.s32.totalorder %v6286_v50, 0  ;;  %vm4718_vm3 = vcmp.eq.s32.totalorder %v4713_v40, 2 }
 0x6d9   : > { %v4717_v55 = vsel %vm4715_vm15, %v11175_v11, %v4716_v4  ;;  %v5626_v14 = vsel %vm6287_vm11, 0, %v6286_v50  ;;  %6436 = vmatpush3.bf16.xpose.msk.msra.mxu0 %vm11663_vm10, %v6434_v61  ;;  %v4720_v32 = vsel %vm4718_vm3, %v4719_v43, %v11181_v52  ;;  %v4817_v30 = vand.u32 3, %v4816_v5  ;;  %v12618_v61 = vld [vmem:[#allocation22_spill] sm:$0xff] }
 0x6da   : > { %v4820_v12 = vxor.u32 2147483648, %v11266_v24  ;;  %v5627_v21 = vsub.s32 32, %v5626_v14  ;;  %v5631_v57 = vsub.s32 4294967266, %v5626_v14  ;;  %6437 = vmatprep.subr.bf16.mxu0 %v12596_v63  ;;  %vm4714_vm8 = vcmp.lt.s32.totalorder %v4713_v40, 2  ;;  %v12613_v40 = vld [vmem:[#allocation23_spill] sm:$0xff] }
 0x6db   : > { %vm4815_vm14 = vweird.f32 %v12604_v36  ;;  %6907 = vsinq.f32 %v11727_v26  ;;  %v5628_v11 = vshll.u32 %v11680_v51, %v5626_v14  ;;  %v4721_v39 = vsel %vm4714_vm8, %v4717_v55, %v4720_v32  ;;  %v12619_v14 = vld [vmem:[#allocation28_spill] sm:$0xff] }
 0x6dc   : > { %vm4819_vm5 = vcmp.eq.s32.totalorder %v4817_v30, 0  ;;  %v5629_v7 = vshrl.u32 %v5611_v9, %v5627_v21  ;;  %v5632_v25 = vadd.s32 127, %v5631_v57  ;;  %v4823_v0 = vxor.u32 2147483648, %v12605_v62  ;;  %v12621_v36 = vld [vmem:[#allocation20_spill] sm:$0xff] }
 0x6dd   : > { %v4821_v52 = vsel %vm4819_vm5, %v12605_v62, %v4820_v12  ;;  %vm4818_vm4 = vcmp.lt.s32.totalorder %v4817_v30, 2  ;;  %vm4822_vm13 = vcmp.eq.s32.totalorder %v4817_v30, 2  ;;  %v12608_v47 = vsel %vm10917_vm0, 0, %v12607_v3 }
 0x6de   : > { %v4920_v8 = vadd.s32 3, %v12608_v47  ;;  %v4924_v2 = vxor.u32 2147483648, %v12609_v6  ;;  %v5630_v22 = vor.u32 %v5629_v7, %v5628_v11  ;;  %v5633_v19 = vshll.u32 %v5632_v25, 23  ;;  %v12620_v11 = vld [vmem:[#allocation47_spill] sm:$0xff] }
 0x6df   : > { %v4824_v51 = vsel %vm4822_vm13, %v4823_v0, %v11266_v24  ;;  %v4927_v9 = vxor.u32 2147483648, %v12610_v49  ;;  %v4722_v56 = vsel %vm4711_vm6, nan, %v4721_v39  ;;  %vm12612_vm15 = vnez %v12611_v15 }
 0x6e0   : > { %v4825_v4 = vsel %vm4818_vm4, %v4821_v52, %v4824_v51  ;;  %v4921_v27 = vand.u32 3, %v4920_v8  ;;  %v12614_v43 = vsel %vm12612_vm15, 0, %v12613_v40  ;;  %v12615_v58 = vand.u32 2147483647, %v11382_v31  ;;  %v12624_v52 = vld [vmem:[#allocation6_spill] sm:$0xff]  ;;  %v12625_v8 = vld [vmem:[#allocation11_spill] sm:$0xff] }
 0x6e1   : > { %v5024_v50 = vadd.s32 3, %v12614_v43  ;;  %v5634_v48 = vor.u32 4788187, %v5633_v19  ;;  %v5637_v24 = vcvt.s32.f32 %v5630_v22  ;;  %v4826_v5 = vsel %vm4815_vm14, nan, %v4825_v4 }
 0x6e2   : > { %vm11755_vm0 = vcmp.le.f32.partialorder %v12615_v58, 0.7853982  ;;  %v5028_v20 = vxor.u32 2147483648, %v12618_v61  ;;  %v6438_v55 = vpack.c.bf16 %v4826_v5, %v4722_v56  ;;  %vm4923_vm6 = vcmp.eq.s32.totalorder %v4921_v27, 0 }
 0x6e3   : > { %vm4926_vm11 = vcmp.eq.s32.totalorder %v4921_v27, 2  ;;  %v5031_v32 = vxor.u32 2147483648, %v12619_v14  ;;  %v5635_v30 = vand.u32 2147483647, %v5634_v48  ;;  %v4925_v12 = vsel %vm4923_vm6, %v12610_v49, %v4924_v2  ;;  %v12629_v48 = vld [vmem:[#allocation51_spill] sm:$0xff] }
 0x6e4   : > { %v4928_v21 = vsel %vm4926_vm11, %v4927_v9, %v12609_v6  ;;  %v5025_v57 = vand.u32 3, %v5024_v50  ;;  %6440 = vmatpush3.bf16.xpose.msk.msra.mxu0 %vm11663_vm10, %v6438_v55  ;;  %vm4919_vm3 = vweird.f32 %v12620_v11  ;;  %vm4922_vm8 = vcmp.lt.s32.totalorder %v4921_v27, 2 }
 0x6e5   : > { %vm5023_vm14 = vweird.f32 %v12621_v36  ;;  %vm12622_vm5 = vnez %v12548_v28  ;;  %v5638_v25 = vmul.f32 %v5637_v24, %v5635_v30  ;;  %6441 = vmatprep.subr.bf16.mxu0 %v12596_v63  ;;  %v4929_v62 = vsel %vm4922_vm8, %v4925_v12, %v4928_v21  ;;  %v11775_v54 = vpop.eup %6907  ;;  %v12627_v28 = vld [vmem:[#allocation40_spill] sm:$0xff]  ;;  %v12634_v30 = vld [vmem:[#allocation25_spill] sm:$0xff]  ;;  %v12635_v21 = vld [vmem:[#allocation30_spill] sm:$0xff] }
 0x6e6   : > { %v12623_v39 = vsel %vm12622_vm5, 0, %v11282_v60  ;;  %vm5027_vm4 = vcmp.eq.s32.totalorder %v5025_v57, 0  ;;  %v5132_v0 = vxor.u32 2147483648, %v12624_v52  ;;  %vm5030_vm13 = vcmp.eq.s32.totalorder %v5025_v57, 2 }
 0x6e7   : > { %v5128_v7 = vadd.s32 3, %v12623_v39  ;;  %v5029_v3 = vsel %vm5027_vm4, %v12619_v14, %v5028_v20  ;;  %v5135_v6 = vxor.u32 2147483648, %v12625_v8  ;;  %v5639_v2 = vxor.u32 2147483648, %v5638_v25  ;;  %v12632_v20 = vld [vmem:[#allocation19_spill] sm:$0xff]  ;;  %v12636_v39 = vld [vmem:[#allocation33_spill] sm:$0xff] }
 0x6e8   : > { %vm5026_vm15 = vcmp.lt.s32.totalorder %v5025_v57, 2  ;;  %v5032_v60 = vsel %vm5030_vm13, %v5031_v32, %v12618_v61  ;;  %vm12626_vm6 = vnez %v12565_v17  ;;  %v4930_v51 = vsel %vm4919_vm3, nan, %v4929_v62  ;;  %v12630_v61 = vld [vmem:[#allocation7_spill] sm:$0xff] }
 0x6e9   : > { %v5129_v47 = vand.u32 3, %v5128_v7  ;;  %v12628_v22 = vsel %vm12626_vm6, 0, %v12627_v28  ;;  %v5033_v49 = vsel %vm5026_vm15, %v5029_v3, %v5032_v60  ;;  %v5640_v9 = vsel %vm5557_vm2, %v5639_v2, %v5638_v25  ;;  %v12637_v25 = vld [vmem:[#allocation5_spill] sm:$0xff]  ;;  %v12643_v2 = vld [vmem:[#allocation31_spill] sm:$0xff] }
 0x6ea   : > { %v5232_v19 = vadd.s32 3, %v12628_v22  ;;  %v5034_v56 = vsel %vm5023_vm14, nan, %v5033_v49  ;;  %v5643_v17 = vsel %vm11755_vm0, %v11382_v31, %v5640_v9  ;;  %v5236_v50 = vxor.u32 2147483648, %v11528_v53 }
 0x6eb   : > { %vm5131_vm11 = vcmp.eq.s32.totalorder %v5129_v47, 0  ;;  %vm5134_vm8 = vcmp.eq.s32.totalorder %v5129_v47, 2  ;;  %v6442_v15 = vpack.c.bf16 %v5034_v56, %v4930_v51  ;;  %vm5130_vm5 = vcmp.lt.s32.totalorder %v5129_v47, 2  ;;  %v12642_v47 = vld [vmem:[#allocation34_spill] sm:$0xff] }
 0x6ec   : > { %v5133_v4 = vsel %vm5131_vm11, %v12625_v8, %v5132_v0  ;;  %v5136_v27 = vsel %vm5134_vm8, %v5135_v6, %v12624_v52  ;;  %v5233_v40 = vand.u32 3, %v5232_v19  ;;  %6909 = vcosq.f32 %v5643_v17  ;;  %v12641_v0 = vld [vmem:[#allocation42_spill] sm:$0xff] }
 0x6ed   : > { %v5137_v43 = vsel %vm5130_vm5, %v5133_v4, %v5136_v27  ;;  %v5239_v58 = vxor.u32 2147483648, %v11522_v23  ;;  %6911 = vsinq.f32 %v5643_v17  ;;  %6444 = vmatpush3.bf16.xpose.msk.msra.mxu0 %vm11663_vm10, %v6442_v15  ;;  %vm5127_vm2 = vweird.f32 %v12629_v48  ;;  %v12646_v27 = vld [vmem:[#allocation13_spill] sm:$0xff] }
 0x6ee   : > { %vm5235_vm3 = vcmp.eq.s32.totalorder %v5233_v40, 0  ;;  %vm5238_vm14 = vcmp.eq.s32.totalorder %v5233_v40, 2  ;;  %6445 = vmatprep.subr.bf16.mxu0 %v12596_v63  ;;  %vm5234_vm4 = vcmp.lt.s32.totalorder %v5233_v40, 2  ;;  %vm12631_vm13 = vnez %v12630_v61 }
 0x6ef   : > { %v5237_v24 = vsel %vm5235_vm3, %v11522_v23, %v5236_v50  ;;  %v5240_v5 = vsel %vm5238_vm14, %v5239_v58, %v11528_v53  ;;  %v12633_v55 = vsel %vm12631_vm13, 0, %v12632_v20  ;;  %v5138_v32 = vsel %vm5127_vm2, nan, %v5137_v43  ;;  %v12639_v23 = vld [vmem:[#allocation36_spill] sm:$0xff]  ;;  %v12647_v58 = vld [vmem:[#allocation39_spill] sm:$0xff] }
 0x6f0   : > { %v5336_v14 = vadd.s32 3, %v12633_v55  ;;  %vm5231_vm15 = vweird.f32 %v12634_v30  ;;  %v5241_v12 = vsel %vm5234_vm4, %v5237_v24, %v5240_v5  ;;  %v5340_v57 = vxor.u32 2147483648, %v12635_v21 }
 0x6f1   : > { %v5242_v11 = vsel %vm5231_vm15, nan, %v5241_v12  ;;  %v5343_v7 = vxor.u32 2147483648, %v12636_v39  ;;  %vm12638_vm6 = vnez %v12637_v25  ;;  %v5444_v3 = vxor.u32 2147483648, %v12641_v0 }
 0x6f2   : > { %v5337_v36 = vand.u32 3, %v5336_v14  ;;  %v12640_v62 = vsel %vm12638_vm6, 0, %v12639_v23  ;;  %v6446_v52 = vpack.c.bf16 %v5242_v11, %v5138_v32  ;;  %v5447_v8 = vxor.u32 2147483648, %v12642_v47 }
 0x6f3   : > { %v5440_v53 = vadd.s32 3, %v12640_v62  ;;  %v5544_v6 = vadd.s32 3, %v5540_v38  ;;  %v12644_v60 = vsub.s32 4, %v12643_v2  ;;  %vm12645_vm11 = vcmp.lt.s32.totalorder %v11250_v59, 0 }
 0x6f4   : > { %6913 = vcosq.f32 %v11727_v26  ;;  %v5850_v19 = vsel %vm5765_vm7, %v5849_v18, %v11590_v46  ;;  %v5644_v37 = vsel %vm11755_vm0, 0, %v11721_v34  ;;  %vm5339_vm1 = vcmp.eq.s32.totalorder %v5337_v36, 0 }
 0x6f5   : > { %v5746_v28 = vsel %vm12645_vm11, %v12644_v60, %v12643_v2  ;;  %v5441_v22 = vand.u32 3, %v5440_v53  ;;  %vm5342_vm8 = vcmp.eq.s32.totalorder %v5337_v36, 2  ;;  %v5341_v42 = vsel %vm5339_vm1, %v12636_v39, %v5340_v57  ;;  %6448 = vmatpush3.bf16.xpose.msk.msra.mxu0 %vm11663_vm10, %v6446_v52 }
 0x6f6   : > { %v5344_v38 = vsel %vm5342_vm8, %v5343_v7, %v12635_v21  ;;  %v5545_v18 = vand.u32 3, %v5544_v6  ;;  %v6910_v51 = vpop.eup %6909  ;;  %6449 = vmatprep.subr.bf16.mxu0 %v12596_v63  ;;  %vm5338_vm7 = vcmp.lt.s32.totalorder %v5337_v36, 2  ;;  %v5548_v33 = vxor.u32 2147483648, %v11717_v1 }
 0x6f7   : > { %vm5443_vm5 = vcmp.eq.s32.totalorder %v5441_v22, 0  ;;  %vm5446_vm2 = vcmp.eq.s32.totalorder %v5441_v22, 2  ;;  %vm5442_vm3 = vcmp.lt.s32.totalorder %v5441_v22, 2  ;;  %v5551_v49 = vxor.u32 2147483648, %v11668_v10  ;;  %v6912_v9 = vpop.eup %6911 }
 0x6f8   : > { %v5445_v26 = vsel %vm5443_vm5, %v12642_v47, %v5444_v3  ;;  %v5448_v46 = vsel %vm5446_vm2, %v5447_v8, %v12641_v0  ;;  %v5748_v56 = vsel %vm11518_vm9, 0, %v5746_v28  ;;  %v5345_v4 = vsel %vm5338_vm7, %v5341_v42, %v5344_v38 }
 0x6f9   : > { %v5449_v34 = vsel %vm5442_vm3, %v5445_v26, %v5448_v46  ;;  %vm5439_vm0 = vweird.f32 %v12646_v27  ;;  %v5648_v17 = vadd.s32 3, %v5644_v37  ;;  %v5852_v15 = vsel %vm11687_vm12, 0, %v5850_v19 }
 0x6fa   : > { %v5450_v40 = vsel %vm5439_vm0, nan, %v5449_v34  ;;  %v5652_v43 = vxor.u32 2147483648, %v6912_v9  ;;  %v5655_v50 = vxor.u32 2147483648, %v6910_v51  ;;  %vm5335_vm14 = vweird.f32 %v12647_v58 }
 0x6fb   : > { %vm5547_vm4 = vcmp.eq.s32.totalorder %v5545_v18, 0  ;;  %vm5550_vm13 = vcmp.eq.s32.totalorder %v5545_v18, 2  ;;  %v5649_v48 = vand.u32 3, %v5648_v17  ;;  %v5346_v24 = vsel %vm5335_vm14, nan, %v5345_v4 }
 0x6fc   : > { %vm5546_vm15 = vcmp.lt.s32.totalorder %v5545_v18, 2  ;;  %v5549_v13 = vsel %vm5547_vm4, %v11668_v10, %v5548_v33  ;;  %v5552_v5 = vsel %vm5550_vm13, %v5551_v49, %v11717_v1  ;;  %v6450_v61 = vpack.c.bf16 %v5450_v40, %v5346_v24 }
 0x6fd   : > { %vm5651_vm9 = vcmp.eq.s32.totalorder %v5649_v48, 0  ;;  %vm5654_vm6 = vcmp.eq.s32.totalorder %v5649_v48, 2  ;;  %v5752_v20 = vadd.s32 3, %v5748_v56  ;;  %vm5650_vm12 = vcmp.lt.s32.totalorder %v5649_v48, 2 }
 0x6fe   : > { %v6914_v45 = vpop.eup %6913  ;;  %v5653_v55 = vsel %vm5651_vm9, %v6910_v51, %v5652_v43  ;;  %v5656_v14 = vsel %vm5654_vm6, %v5655_v50, %v6912_v9  ;;  %v5856_v32 = vadd.s32 3, %v5852_v15  ;;  %6452 = vmatpush3.bf16.xpose.msk.msra.mxu0 %vm11663_vm10, %v6450_v61  ;;  %v5553_v30 = vsel %vm5546_vm15, %v5549_v13, %v5552_v5 }
 0x6ff   : > { %vm5647_vm11 = vweird.f32 %v11382_v31  ;;  %v5657_v12 = vsel %vm5650_vm12, %v5653_v55, %v5656_v14  ;;  %6453 = vmatprep.subr.bf16.mxu0 %v12596_v63  ;;  %v5860_v21 = vxor.u32 2147483648, %v11775_v54  ;;  %vm5543_vm1 = vweird.f32 %v11284_v44 }
 0x700   : > { %v5658_v10 = vsel %vm5647_vm11, nan, %v5657_v12  ;;  %v5857_v1 = vand.u32 3, %v5856_v32  ;;  %v5753_v57 = vand.u32 3, %v5752_v20  ;;  %v5863_v11 = vxor.u32 2147483648, %v6914_v45 }
 0x701   : > { %v5554_v36 = vsel %vm5543_vm1, nan, %v5553_v30  ;;  %v5756_v39 = vxor.u32 2147483648, %v11598_v41  ;;  %v5759_v7 = vxor.u32 2147483648, %v11594_v29  ;;  %vm6992_vm2 = vmmov 0  }
 0x702   : > { %v6454_v25 = vpack.c.bf16 %v5658_v10, %v5554_v36  ;;  %vm5859_vm8 = vcmp.eq.s32.totalorder %v5857_v1, 0  ;;  %vm5862_vm5 = vcmp.eq.s32.totalorder %v5857_v1, 2  ;;  %v6993_v62 = vmov 0.0  }
 0x703   : > { %v5861_v31 = vsel %vm5859_vm8, %v6914_v45, %v5860_v21  ;;  %v5864_v23 = vsel %vm5862_vm5, %v5863_v11, %v11775_v54  ;;  %6426 = vmatprep.mubr.msk.f32.mxu0 %vm6992_vm2, %v6993_v62  ;;  %vm5755_vm3 = vcmp.eq.s32.totalorder %v5753_v57, 0  ;;  %vm5758_vm7 = vcmp.eq.s32.totalorder %v5753_v57, 2 }
 0x704   : > { %v5757_v44 = vsel %vm5755_vm3, %v11594_v29, %v5756_v39  ;;  %v5760_v53 = vsel %vm5758_vm7, %v5759_v7, %v11598_v41  ;;  %vm5858_vm0 = vcmp.lt.s32.totalorder %v5857_v1, 2  ;;  %vm5754_vm14 = vcmp.lt.s32.totalorder %v5753_v57, 2  ;;  %v5867_v41 = vld [vmem:[%s11925_s5] sm:$0x7] }
 0x705   : > { %v5865_v52 = vsel %vm5858_vm0, %v5861_v31, %v5864_v23  ;;  %v5761_v54 = vsel %vm5754_vm14, %v5757_v44, %v5760_v53  ;;  %vm5855_vm4 = vweird.f32 %v11367_v16  ;;  %vm5751_vm13 = vweird.f32 %v11250_v59 }
 0x706   : > { %6456 = vmatpush3.bf16.xpose.msk.msra.mxu0 %vm11663_vm10, %v6454_v25  ;;  %v5866_v0 = vsel %vm5855_vm4, nan, %v5865_v52  ;;  %v5762_v3 = vsel %vm5751_vm13, nan, %v5761_v54  ;;  %vm12648_vm15 = vcmask 261120  }
 0x707   : > { %6457 = vmatprep.subr.bf16.mxu0 %v12596_v63  ;;  %v6458_v29 = vpack.c.bf16 %v5866_v0, %v5762_v3 }
 0x70a   : > { %v5872_v63 = vpop.permute.xlu1 %5871 }
 0x70e   : > { %6460 = vmatpush3.bf16.xpose.msk.msra.mxu0 %vm11663_vm10, %v6458_v29 }
 0x715   : > { %6427 = vmatmul.mubr.msk.f32.vlgmr.msra.gmra.mrb[0].mxu0 %vm12648_vm15, %v5867_v41 }
 0x7e8   : > { %v5991_v16 = vpop.f32.mrb[0].mxu0 }
 0x7e9   : > { %v5992_v59 = vadd.f32 %v5991_v16, %v5872_v63  ;;  %v6428_v47 = vpop.f32.mrb[1].mxu0 }
 0x7eb   : > { %5995 = vst [vmem:[%s272_s21] sm:$0x7] %v5992_v59 }
 0x7ec   : > { %6932 = shalt.err (!%p6929_p3)
}
 0x7ed   : > { %s6933_s16 = scalar_lea.hbm %s11878_s8, 64  ;;  %s6937_s19 = scalar_lea.hbm %s11927_s7, 128 }
 0x7ee   : > { %p6934_p4 = scmp.ne.s32.totalorder %s11878_s8, %s6933_s16  ;;  %p6938_p9 = scmp.lt.u32.totalorder %s11878_s8, %s11927_s7 }
 0x7ef   : > { %p6939_p10 = scmp.lt.u32.totalorder %s6937_s19, %s6933_s16  ;;  %p6941_p12 = scmp.lt.u32.totalorder %s6933_s16, %s11878_s8 }
 0x7f0   : > { %p6935_p7 = pnand %p6934_p4, %p7073_p5 }
 0x7f1   : > { %p6940_p11 = por %p6939_p10, %p6938_p9 }
 0x7f2   : > { %p6936_p8 = pneg %p6935_p7 }
 0x7f3   : > { %p6942_p13 = por %p6941_p12, %p6940_p11 }
 0x7f5   : > { %p6943_p0 = pnand %p6942_p13, %p6936_p8 }
 0x7f7   : > { %6946 = shalt.err (!%p6943_p0)
}
 0x7f8   : > { %6653 = dma.vmem_to_hbm [thread:$0]  (%p7073_p5), %s11880_s22, 64, %s11878_s8, %s5997_s9  }
 0x7f9 PF: > { %p6659_p1 = scmp.ge.s32.totalorder %s6981_s27, 2  ;;  %s6022_s23 = sand.u32 1, %s6969_s24  }
 0x7fa   : > { %s6023_s29 = scalar_lea.sflag [#allocation3], %s6022_s23 }
 0x7fb   : > { %p6656_p2 = pnand %p6659_p1, %p7077_p6 }
 0x7fd   : > { %6964 = dma.done.wait (!%p6656_p2), %s6023_s29, 64  }
 0x7fe   : > { %6966 = vsyncadd (!%p6656_p2), %s6023_s29, 4294967232  ;;  %p17_p3 = scmp.ge.s32.totalorder %s7060_s30, 4   ;;  %s12649_s24 = smov %s6973_s25 }
 0x7ff   : > { %s12650_s25 = smov %s6977_s26  ;;  %s12651_s26 = smov %s7071_s10 }
 0x800   : > { %s12652_s27 = smov %s7060_s30  ;;  %19 = sbr.rel (!%p17_p3) target bundleno = 3 (0x3), region = 85 }
 0x807   :  { %6028 = vsyncpa [#allocation3], 1 }
 0x808   :  { %6030 = vsyncpa [#allocation3 + $0x1], 1 }

</bundles_post_ra>
